<compile_context>
chip_gen: v7x
topology: tpu7x:2x2x1
jax: 0.10.0
libtpu: 0.0.40
codegen_flags: <defaults>
</compile_context>

<pallas_src>
import jax
import jax.numpy as jnp
import numpy as np
from jax import lax
from jax.experimental import pallas as pl
from jax.experimental.pallas import tpu as pltpu


# ---------------------------------------------------------------------------
# Shape bookkeeping copied verbatim from the PyTorch module.
# ---------------------------------------------------------------------------
def _cal_out_dim(w0, kernel_size, padding, stride, pool_kernel_size=None,
                 pool_stride=None, pool_padding=0):
    w1 = int((w0 + 2 * padding - kernel_size) / stride + 1)
    pool_stride = pool_stride if pool_stride is not None else pool_kernel_size
    if pool_kernel_size is not None:
        w1 = int((w1 + 2 * pool_padding - pool_kernel_size) / pool_stride + 1)
    return w1


# ---------------------------------------------------------------------------
# Trace-time composition of AvgPool with the 2x2 / stride-2 conv tap gathers.
# Every contribution has weight exactly 0.25 (count_include_pad=True), so only
# the source spatial indices are needed (pure Python lists, folded as constants
# into the kernel).
# ---------------------------------------------------------------------------
def _conv2_tap_sources(in_dim):
    """Sources (into the in_dim x in_dim conv1/ReLU output) for each conv2 tap
    output position, with AvgPool2d(2, stride=1, padding=1) composed in."""
    hp = in_dim + 1                     # pool1 output size
    h2 = (hp - 2) // 2 + 1              # conv2 output size (k=2, s=2)
    taps = []
    for dy in range(2):
        for dx in range(2):
            per_u = []
            for i in range(h2):
                for j in range(h2):
                    pi, pj = 2 * i + dy, 2 * j + dx     # pool1 position read
                    srcs = [r * in_dim + c
                            for r in (pi - 1, pi) if 0 <= r < in_dim
                            for c in (pj - 1, pj) if 0 <= c < in_dim]
                    per_u.append(srcs)
            taps.append(per_u)
    return taps, h2


def _conv3_tap_sources(h2):
    """Sources (into the h2 x h2 conv2/ReLU output) for each conv3 tap, with
    AvgPool2d(2, stride=2) composed in (always 4 sources, weight 0.25)."""
    taps = []
    for dy in range(2):
        for dx in range(2):
            taps.append([(2 * dy + r) * h2 + (2 * dx + c)
                         for r in range(2) for c in range(2)])
    return taps


# ---------------------------------------------------------------------------
# Fused forward: one batch tile per grid step; everything stays in VMEM.
# ---------------------------------------------------------------------------
def cnn3_forward(x, prep, *, bt=128):
    w1, b1, w2, b2, w3, b3, wfc = prep
    B, cin, H, W = x.shape
    assert H == W, "square inputs only"
    S1 = H * W
    n1, k1 = w1.shape
    n2, n3 = w2.shape[0], w3.shape[0]
    out_dim = wfc.shape[0]
    assert k1 == cin * 9

    bt = min(bt, B)
    assert B % bt == 0, "batch must be a multiple of the batch tile"
    assert bt == B or bt % 128 == 0, "batch tile must be 128-aligned when tiled"
    G = B // bt

    taps2, h2 = _conv2_tap_sources(H)
    S2 = h2 * h2
    assert h2 == 4, "fused conv3/fc path assumes the conv stack ends at 1x1"
    taps3 = _conv3_tap_sources(h2)

    f32, bf16 = jnp.float32, jnp.bfloat16

    # im2col for conv1 (pure layout, 0 FLOPs), batch-tiled with spatial-major
    # lanes: per tile the lane index is s * bt + b_local.
    xp = jnp.pad(x, ((0, 0), (0, 0), (1, 1), (1, 1)))
    cols = []
    for ci in range(cin):
        for dy in range(3):
            for dx in range(3):
                cols.append(xp[:, ci, dy:dy + H, dx:dx + W].reshape(B, S1))
    patches = jnp.stack(cols, axis=1)                        # (B, k1, S1)
    patches = patches.reshape(G, bt, k1, S1).transpose(0, 2, 3, 1)
    patches = patches.reshape(G, k1, S1 * bt).astype(bf16)   # (G, k1, S1*bt)

    def kernel(pat_ref, w1_ref, b1_ref, w2_ref, b2_ref, w3_ref, b3_ref,
               wfc_ref, o_ref, y1_ref, x2_ref, y2_ref, x3_ref):
        # conv1 + folded BN + ReLU: (n1, k1) @ (k1, S1*bt) on the MXU.
        y1_ref[...] = jnp.maximum(
            jnp.dot(w1_ref[...], pat_ref[0], preferred_element_type=f32)
            + b1_ref[...], 0.0)

        # pool1 o conv2-tap gather (all weights exactly 0.25, folded), written
        # as the K-concatenated (4*n1, S2*bt) conv2 input.
        for t in range(4):
            for u in range(S2):
                srcs = taps2[t][u]
                acc = y1_ref[:, srcs[0] * bt:(srcs[0] + 1) * bt]
                for s in srcs[1:]:
                    acc = acc + y1_ref[:, s * bt:(s + 1) * bt]
                x2_ref[t * n1:(t + 1) * n1, u * bt:(u + 1) * bt] = (
                    0.25 * acc).astype(bf16)

        # conv2 + folded BN + ReLU: single K = 4*n1 matmul over the whole tile.
        y2_ref[...] = jnp.maximum(
            jnp.dot(w2_ref[...], x2_ref[...], preferred_element_type=f32)
            + b2_ref[...], 0.0)

        # pool2 o conv3-tap gather -> K-concatenated (4*n2, bt) conv3 input.
        for t in range(4):
            srcs = taps3[t]
            acc = y2_ref[:, srcs[0] * bt:(srcs[0] + 1) * bt]
            for s in srcs[1:]:
                acc = acc + y2_ref[:, s * bt:(s + 1) * bt]
            x3_ref[t * n2:(t + 1) * n2, :] = (0.25 * acc).astype(bf16)

        # conv3 + folded BN + ReLU: single K = 4*n2 matmul, N = bt lanes.
        y3 = jnp.maximum(
            jnp.dot(w3_ref[...], x3_ref[...], preferred_element_type=f32)
            + b3_ref[...], 0.0)

        # fc (no bias): lane-dense (out_dim, bt) store.
        o_ref[...] = jnp.dot(wfc_ref[...], y3.astype(bf16),
                             preferred_element_type=f32).astype(o_ref.dtype)

    out = pl.pallas_call(
        kernel,
        out_shape=jax.ShapeDtypeStruct((out_dim, B), jnp.float32),
        grid=(G,),
        in_specs=[
            pl.BlockSpec((1, k1, S1 * bt), lambda g: (g, 0, 0)),   # patches
            pl.BlockSpec((n1, k1), lambda g: (0, 0)),              # conv1 w
            pl.BlockSpec((n1, 1), lambda g: (0, 0)),               # conv1 bias
            pl.BlockSpec((n2, 4 * n1), lambda g: (0, 0)),          # conv2 w (K-concat)
            pl.BlockSpec((n2, 1), lambda g: (0, 0)),               # conv2 bias
            pl.BlockSpec((n3, 4 * n2), lambda g: (0, 0)),          # conv3 w (K-concat)
            pl.BlockSpec((n3, 1), lambda g: (0, 0)),               # conv3 bias
            pl.BlockSpec((out_dim, n3), lambda g: (0, 0)),         # fc weight
        ],
        out_specs=pl.BlockSpec((out_dim, bt), lambda g: (0, g)),
        scratch_shapes=[
            pltpu.VMEM((n1, S1 * bt), jnp.float32),       # y1 (conv1 output)
            pltpu.VMEM((4 * n1, S2 * bt), jnp.bfloat16),  # conv2 K-concat input
            pltpu.VMEM((n2, S2 * bt), jnp.float32),       # y2 (conv2 output)
            pltpu.VMEM((4 * n2, bt), jnp.bfloat16),       # conv3 K-concat input
        ],
        compiler_params=pltpu.CompilerParams(
            dimension_semantics=("parallel",)),
    )(patches, w1, b1, w2, b2, w3, b3, wfc)
    return out.T                                            # (B, out_dim)


# ---------------------------------------------------------------------------
# Parameter construction / preparation.
# ---------------------------------------------------------------------------
def make_params(key, in_channels, n1, n2, n3, in_dim, out_dim):
    d = _cal_out_dim(in_dim, kernel_size=3, stride=1, padding=1,
                     pool_kernel_size=2, pool_stride=1, pool_padding=1)
    d = _cal_out_dim(d, kernel_size=2, stride=2, padding=0,
                     pool_kernel_size=2, pool_stride=1)
    d = _cal_out_dim(d, kernel_size=2, stride=2, padding=0)
    fc_in = n3 * d * d

    keys = list(jax.random.split(key, 19))

    def nk():
        return keys.pop()

    def conv_w(co, ci, kh):
        return jax.random.normal(nk(), (co, ci, kh, kh), jnp.float32) / np.sqrt(ci * kh * kh)

    def conv_b(co):
        return jax.random.normal(nk(), (co,), jnp.float32) * 0.1

    def bn(c):
        return dict(
            gamma=jax.random.uniform(nk(), (c,), jnp.float32, 0.5, 1.5),
            beta=jax.random.normal(nk(), (c,), jnp.float32) * 0.1,
            mean=jax.random.normal(nk(), (c,), jnp.float32) * 0.1,
            var=jax.random.uniform(nk(), (c,), jnp.float32, 0.5, 1.5))

    return dict(
        w1=conv_w(n1, in_channels, 3), cb1=conv_b(n1), bn1=bn(n1),
        w2=conv_w(n2, n1, 2), cb2=conv_b(n2), bn2=bn(n2),
        w3=conv_w(n3, n2, 2), cb3=conv_b(n3), bn3=bn(n3),
        wfc=jax.random.normal(nk(), (out_dim, fc_in), jnp.float32) / np.sqrt(fc_in))


def prepare_params(params, eps=1e-5):
    """Fold BN (eval) into conv weights/biases; tap-concatenate the 2x2 convs;
    cast MXU operands to bf16 (biases stay f32)."""
    def fold(w, cb, bn):
        s = bn['gamma'] / jnp.sqrt(bn['var'] + eps)
        return w * s[:, None, None, None], (cb - bn['mean']) * s + bn['beta']

    w1f, b1 = fold(params['w1'], params['cb1'], params['bn1'])
    w2f, b2 = fold(params['w2'], params['cb2'], params['bn2'])
    w3f, b3 = fold(params['w3'], params['cb3'], params['bn3'])
    n1, cin = w1f.shape[0], w1f.shape[1]
    n2, n3 = w2f.shape[0], w3f.shape[0]
    assert params['wfc'].shape[1] == n3, "fused fc path assumes s3 == 1"

    bf16 = jnp.bfloat16
    w1_k = w1f.reshape(n1, cin * 9).astype(bf16)             # cols: ci*9+dy*3+dx
    # Tap-major K-concat: column (dy*2+dx)*n_in + c_in.
    w2_k = jnp.transpose(w2f, (0, 2, 3, 1)).reshape(n2, 4 * n1).astype(bf16)
    w3_k = jnp.transpose(w3f, (0, 2, 3, 1)).reshape(n3, 4 * n2).astype(bf16)
    wfc_k = params['wfc'].astype(bf16)
    return (w1_k, b1.reshape(n1, 1), w2_k, b2.reshape(n2, 1),
            w3_k, b3.reshape(n3, 1), wfc_k)


# ---------------------------------------------------------------------------
# Pure-JAX reference replicating the PyTorch forward (eval mode, f32).
# ---------------------------------------------------------------------------
def ref_forward(x, params, eps=1e-5):
    hp = lax.Precision.HIGHEST

    def conv(h, w, b, stride, pad):
        y = lax.conv_general_dilated(
            h, w, (stride, stride), ((pad, pad), (pad, pad)),
            dimension_numbers=("NCHW", "OIHW", "NCHW"), precision=hp)
        return y + b.reshape(1, -1, 1, 1)

    def bn(y, p):
        g = p['gamma'].reshape(1, -1, 1, 1)
        be = p['beta'].reshape(1, -1, 1, 1)
        m = p['mean'].reshape(1, -1, 1, 1)
        v = p['var'].reshape(1, -1, 1, 1)
        return (y - m) / jnp.sqrt(v + eps) * g + be

    def avgpool(y, k, s, pad):
        z = lax.reduce_window(y, 0.0, lax.add, (1, 1, k, k), (1, 1, s, s),
                              ((0, 0), (0, 0), (pad, pad), (pad, pad)))
        return z / float(k * k)

    h = jnp.maximum(bn(conv(x, params['w1'], params['cb1'], 1, 1), params['bn1']), 0.0)
    h = avgpool(h, 2, 1, 1)      # Dropout: identity in eval mode
    h = jnp.maximum(bn(conv(h, params['w2'], params['cb2'], 2, 0), params['bn2']), 0.0)
    h = avgpool(h, 2, 2, 0)
    h = jnp.maximum(bn(conv(h, params['w3'], params['cb3'], 2, 0), params['bn3']), 0.0)
    flat = h.reshape(h.shape[0], -1)
    return jnp.dot(flat, params['wfc'].T, precision=hp)


if __name__ == "__main__":
    # in_dim=8: the only small size for which the module's own fc sizing matches
    # the real conv-stack output.  Batch 256 with a 128-image tile demonstrates
    # the lane-batched design (grid=(2,)); the data itself is tiny (64 KiB).
    B, BT, IN_DIM, IN_CH = 256, 128, 8, 1
    N1, N2, N3, OUT_DIM = 32, 48, 64, 10

    key = jax.random.PRNGKey(0)
    kx, kp = jax.random.split(key)
    x = jax.random.normal(kx, (B, IN_CH, IN_DIM, IN_DIM), jnp.float32)
    params = make_params(kp, IN_CH, N1, N2, N3, IN_DIM, OUT_DIM)
    prep = prepare_params(params)

    out = jax.block_until_ready(jax.jit(cnn3_forward)(x, prep))
    ref = jax.block_until_ready(ref_forward(x, params))
    # bf16 MXU operands -> tolerance loosened vs the f32 HIGHEST-precision ref.
    np.testing.assert_allclose(np.asarray(out), np.asarray(ref),
                               rtol=5e-2, atol=5e-2)

    print("KERNEL_OK")
</pallas_src>

<mosaic_0001>
module attributes {stable_mosaic.version = 11 : i64} {
  func.func @kernel(%arg0: i32, %arg1: memref<1x9x8192xbf16, #tpu.memory_space<vmem>>, %arg2: memref<32x9xbf16, #tpu.memory_space<vmem>>, %arg3: memref<32x1xf32, #tpu.memory_space<vmem>>, %arg4: memref<48x128xbf16, #tpu.memory_space<vmem>>, %arg5: memref<48x1xf32, #tpu.memory_space<vmem>>, %arg6: memref<64x192xbf16, #tpu.memory_space<vmem>>, %arg7: memref<64x1xf32, #tpu.memory_space<vmem>>, %arg8: memref<10x64xbf16, #tpu.memory_space<vmem>>, %arg9: memref<10x128xf32, #tpu.memory_space<vmem>>, %arg10: memref<32x8192xf32, #tpu.memory_space<vmem>>, %arg11: memref<128x2048xbf16, #tpu.memory_space<vmem>>, %arg12: memref<48x2048xf32, #tpu.memory_space<vmem>>, %arg13: memref<192x128xbf16, #tpu.memory_space<vmem>>) attributes {dimension_semantics = [#tpu.dimension_semantics<parallel>], iteration_bounds = array<i64: 2>, scalar_prefetch = 0 : i64, scratch_operands = 4 : i64, tpu.core_type = #tpu.core_type<tc>, window_params = [{transform_indices = @transform_0, window_bounds = array<i64: 1, 9, 8192>}, {pipeline_mode = #tpu.pipeline_mode<synchronous>, transform_indices = @transform_1, window_bounds = array<i64: 32, 9>}, {pipeline_mode = #tpu.pipeline_mode<synchronous>, transform_indices = @transform_2, window_bounds = array<i64: 32, 1>}, {pipeline_mode = #tpu.pipeline_mode<synchronous>, transform_indices = @transform_3, window_bounds = array<i64: 48, 128>}, {pipeline_mode = #tpu.pipeline_mode<synchronous>, transform_indices = @transform_4, window_bounds = array<i64: 48, 1>}, {pipeline_mode = #tpu.pipeline_mode<synchronous>, transform_indices = @transform_5, window_bounds = array<i64: 64, 192>}, {pipeline_mode = #tpu.pipeline_mode<synchronous>, transform_indices = @transform_6, window_bounds = array<i64: 64, 1>}, {pipeline_mode = #tpu.pipeline_mode<synchronous>, transform_indices = @transform_7, window_bounds = array<i64: 10, 64>}, {transform_indices = @transform_8, window_bounds = array<i64: 10, 128>}]} {
    %c0 = arith.constant 0 : index
    %c0_0 = arith.constant 0 : index
    %0 = vector.load %arg2[%c0, %c0_0] : memref<32x9xbf16, #tpu.memory_space<vmem>>, vector<32x9xbf16>
    %c0_1 = arith.constant 0 : index
    %c0_2 = arith.constant 0 : index
    %c0_3 = arith.constant 0 : index
    %1 = vector.load %arg1[%c0_1, %c0_2, %c0_3] : memref<1x9x8192xbf16, #tpu.memory_space<vmem>>, vector<1x9x8192xbf16>
    %2 = vector.shape_cast %1 : vector<1x9x8192xbf16> to vector<9x8192xbf16>
    %cst = arith.constant dense<0.000000e+00> : vector<32x8192xf32>
    %3 = tpu.matmul %0, %2, %cst {dimension_numbers = #tpu.dot_dimension_numbers<[1], [0], [0], [1], [0, 0, 1, 1], [], []>} : vector<32x9xbf16>, vector<9x8192xbf16>, vector<32x8192xf32> -> vector<32x8192xf32>
    %c0_4 = arith.constant 0 : index
    %c0_5 = arith.constant 0 : index
    %4 = vector.load %arg3[%c0_4, %c0_5] : memref<32x1xf32, #tpu.memory_space<vmem>>, vector<32x1xf32>
    %5 = vector.broadcast %4 : vector<32x1xf32> to vector<32x8192xf32>
    %6 = arith.addf %3, %5 : vector<32x8192xf32>
    %cst_6 = arith.constant 0.000000e+00 : f32
    %7 = vector.broadcast %cst_6 : f32 to vector<32x8192xf32>
    %8 = arith.maximumf %6, %7 : vector<32x8192xf32>
    %c0_7 = arith.constant 0 : index
    %c0_8 = arith.constant 0 : index
    %9 = vector.load %arg10[%c0_7, %c0_8] : memref<32x8192xf32, #tpu.memory_space<vmem>>, vector<32x8192xf32>
    tpu.vector_store %arg10[%c0_7, %c0_8], %8 {strides = array<i32>} : memref<32x8192xf32, #tpu.memory_space<vmem>>, vector<32x8192xf32>,
    %c0_9 = arith.constant 0 : index
    %c0_10 = arith.constant 0 : index
    %10 = vector.load %arg10[%c0_9, %c0_10] : memref<32x8192xf32, #tpu.memory_space<vmem>>, vector<32x128xf32>
    %cst_11 = arith.constant 2.500000e-01 : f32
    %11 = vector.broadcast %cst_11 : f32 to vector<32x128xf32>
    %12 = arith.mulf %11, %10 : vector<32x128xf32>
    %13 = arith.truncf %12 : vector<32x128xf32> to vector<32x128xbf16>
    %c0_12 = arith.constant 0 : index
    %c0_13 = arith.constant 0 : index
    %14 = vector.load %arg11[%c0_12, %c0_13] : memref<128x2048xbf16, #tpu.memory_space<vmem>>, vector<32x128xbf16>
    tpu.vector_store %arg11[%c0_12, %c0_13], %13 {strides = array<i32>} : memref<128x2048xbf16, #tpu.memory_space<vmem>>, vector<32x128xbf16>,
    %c0_14 = arith.constant 0 : index
    %c128 = arith.constant 128 : index
    %15 = vector.load %arg10[%c0_14, %c128] : memref<32x8192xf32, #tpu.memory_space<vmem>>, vector<32x128xf32>
    %c0_15 = arith.constant 0 : index
    %c256 = arith.constant 256 : index
    %16 = vector.load %arg10[%c0_15, %c256] : memref<32x8192xf32, #tpu.memory_space<vmem>>, vector<32x128xf32>
    %17 = arith.addf %15, %16 : vector<32x128xf32>
    %cst_16 = arith.constant 2.500000e-01 : f32
    %18 = vector.broadcast %cst_16 : f32 to vector<32x128xf32>
    %19 = arith.mulf %18, %17 : vector<32x128xf32>
    %20 = arith.truncf %19 : vector<32x128xf32> to vector<32x128xbf16>
    %c0_17 = arith.constant 0 : index
    %c128_18 = arith.constant 128 : index
    %21 = vector.load %arg11[%c0_17, %c128_18] : memref<128x2048xbf16, #tpu.memory_space<vmem>>, vector<32x128xbf16>
    tpu.vector_store %arg11[%c0_17, %c128_18], %20 {strides = array<i32>} : memref<128x2048xbf16, #tpu.memory_space<vmem>>, vector<32x128xbf16>,
    %c0_19 = arith.constant 0 : index
    %c384 = arith.constant 384 : index
    %22 = vector.load %arg10[%c0_19, %c384] : memref<32x8192xf32, #tpu.memory_space<vmem>>, vector<32x128xf32>
    %c0_20 = arith.constant 0 : index
    %c512 = arith.constant 512 : index
    %23 = vector.load %arg10[%c0_20, %c512] : memref<32x8192xf32, #tpu.memory_space<vmem>>, vector<32x128xf32>
    %24 = arith.addf %22, %23 : vector<32x128xf32>
    %cst_21 = arith.constant 2.500000e-01 : f32
    %25 = vector.broadcast %cst_21 : f32 to vector<32x128xf32>
    %26 = arith.mulf %25, %24 : vector<32x128xf32>
    %27 = arith.truncf %26 : vector<32x128xf32> to vector<32x128xbf16>
    %c0_22 = arith.constant 0 : index
    %c256_23 = arith.constant 256 : index
    %28 = vector.load %arg11[%c0_22, %c256_23] : memref<128x2048xbf16, #tpu.memory_space<vmem>>, vector<32x128xbf16>
    tpu.vector_store %arg11[%c0_22, %c256_23], %27 {strides = array<i32>} : memref<128x2048xbf16, #tpu.memory_space<vmem>>, vector<32x128xbf16>,
    %c0_24 = arith.constant 0 : index
    %c640 = arith.constant 640 : index
    %29 = vector.load %arg10[%c0_24, %c640] : memref<32x8192xf32, #tpu.memory_space<vmem>>, vector<32x128xf32>
    %c0_25 = arith.constant 0 : index
    %c768 = arith.constant 768 : index
    %30 = vector.load %arg10[%c0_25, %c768] : memref<32x8192xf32, #tpu.memory_space<vmem>>, vector<32x128xf32>
    %31 = arith.addf %29, %30 : vector<32x128xf32>
    %cst_26 = arith.constant 2.500000e-01 : f32
    %32 = vector.broadcast %cst_26 : f32 to vector<32x128xf32>
    %33 = arith.mulf %32, %31 : vector<32x128xf32>
    %34 = arith.truncf %33 : vector<32x128xf32> to vector<32x128xbf16>
    %c0_27 = arith.constant 0 : index
    %c384_28 = arith.constant 384 : index
    %35 = vector.load %arg11[%c0_27, %c384_28] : memref<128x2048xbf16, #tpu.memory_space<vmem>>, vector<32x128xbf16>
    tpu.vector_store %arg11[%c0_27, %c384_28], %34 {strides = array<i32>} : memref<128x2048xbf16, #tpu.memory_space<vmem>>, vector<32x128xbf16>,
    %c0_29 = arith.constant 0 : index
    %c1024 = arith.constant 1024 : index
    %36 = vector.load %arg10[%c0_29, %c1024] : memref<32x8192xf32, #tpu.memory_space<vmem>>, vector<32x128xf32>
    %c0_30 = arith.constant 0 : index
    %c2048 = arith.constant 2048 : index
    %37 = vector.load %arg10[%c0_30, %c2048] : memref<32x8192xf32, #tpu.memory_space<vmem>>, vector<32x128xf32>
    %38 = arith.addf %36, %37 : vector<32x128xf32>
    %cst_31 = arith.constant 2.500000e-01 : f32
    %39 = vector.broadcast %cst_31 : f32 to vector<32x128xf32>
    %40 = arith.mulf %39, %38 : vector<32x128xf32>
    %41 = arith.truncf %40 : vector<32x128xf32> to vector<32x128xbf16>
    %c0_32 = arith.constant 0 : index
    %c512_33 = arith.constant 512 : index
    %42 = vector.load %arg11[%c0_32, %c512_33] : memref<128x2048xbf16, #tpu.memory_space<vmem>>, vector<32x128xbf16>
    tpu.vector_store %arg11[%c0_32, %c512_33], %41 {strides = array<i32>} : memref<128x2048xbf16, #tpu.memory_space<vmem>>, vector<32x128xbf16>,
    %c0_34 = arith.constant 0 : index
    %c1152 = arith.constant 1152 : index
    %43 = vector.load %arg10[%c0_34, %c1152] : memref<32x8192xf32, #tpu.memory_space<vmem>>, vector<32x128xf32>
    %c0_35 = arith.constant 0 : index
    %c1280 = arith.constant 1280 : index
    %44 = vector.load %arg10[%c0_35, %c1280] : memref<32x8192xf32, #tpu.memory_space<vmem>>, vector<32x128xf32>
    %45 = arith.addf %43, %44 : vector<32x128xf32>
    %c0_36 = arith.constant 0 : index
    %c2176 = arith.constant 2176 : index
    %46 = vector.load %arg10[%c0_36, %c2176] : memref<32x8192xf32, #tpu.memory_space<vmem>>, vector<32x128xf32>
    %47 = arith.addf %45, %46 : vector<32x128xf32>
    %c0_37 = arith.constant 0 : index
    %c2304 = arith.constant 2304 : index
    %48 = vector.load %arg10[%c0_37, %c2304] : memref<32x8192xf32, #tpu.memory_space<vmem>>, vector<32x128xf32>
    %49 = arith.addf %47, %48 : vector<32x128xf32>
    %cst_38 = arith.constant 2.500000e-01 : f32
    %50 = vector.broadcast %cst_38 : f32 to vector<32x128xf32>
    %51 = arith.mulf %50, %49 : vector<32x128xf32>
    %52 = arith.truncf %51 : vector<32x128xf32> to vector<32x128xbf16>
    %c0_39 = arith.constant 0 : index
    %c640_40 = arith.constant 640 : index
    %53 = vector.load %arg11[%c0_39, %c640_40] : memref<128x2048xbf16, #tpu.memory_space<vmem>>, vector<32x128xbf16>
    tpu.vector_store %arg11[%c0_39, %c640_40], %52 {strides = array<i32>} : memref<128x2048xbf16, #tpu.memory_space<vmem>>, vector<32x128xbf16>,
    %c0_41 = arith.constant 0 : index
    %c1408 = arith.constant 1408 : index
    %54 = vector.load %arg10[%c0_41, %c1408] : memref<32x8192xf32, #tpu.memory_space<vmem>>, vector<32x128xf32>
    %c0_42 = arith.constant 0 : index
    %c1536 = arith.constant 1536 : index
    %55 = vector.load %arg10[%c0_42, %c1536] : memref<32x8192xf32, #tpu.memory_space<vmem>>, vector<32x128xf32>
    %56 = arith.addf %54, %55 : vector<32x128xf32>
    %c0_43 = arith.constant 0 : index
    %c2432 = arith.constant 2432 : index
    %57 = vector.load %arg10[%c0_43, %c2432] : memref<32x8192xf32, #tpu.memory_space<vmem>>, vector<32x128xf32>
    %58 = arith.addf %56, %57 : vector<32x128xf32>
    %c0_44 = arith.constant 0 : index
    %c2560 = arith.constant 2560 : index
    %59 = vector.load %arg10[%c0_44, %c2560] : memref<32x8192xf32, #tpu.memory_space<vmem>>, vector<32x128xf32>
    %60 = arith.addf %58, %59 : vector<32x128xf32>
    %cst_45 = arith.constant 2.500000e-01 : f32
    %61 = vector.broadcast %cst_45 : f32 to vector<32x128xf32>
    %62 = arith.mulf %61, %60 : vector<32x128xf32>
    %63 = arith.truncf %62 : vector<32x128xf32> to vector<32x128xbf16>
    %c0_46 = arith.constant 0 : index
    %c768_47 = arith.constant 768 : index
    %64 = vector.load %arg11[%c0_46, %c768_47] : memref<128x2048xbf16, #tpu.memory_space<vmem>>, vector<32x128xbf16>
    tpu.vector_store %arg11[%c0_46, %c768_47], %63 {strides = array<i32>} : memref<128x2048xbf16, #tpu.memory_space<vmem>>, vector<32x128xbf16>,
    %c0_48 = arith.constant 0 : index
    %c1664 = arith.constant 1664 : index
    %65 = vector.load %arg10[%c0_48, %c1664] : memref<32x8192xf32, #tpu.memory_space<vmem>>, vector<32x128xf32>
    %c0_49 = arith.constant 0 : index
    %c1792 = arith.constant 1792 : index
    %66 = vector.load %arg10[%c0_49, %c1792] : memref<32x8192xf32, #tpu.memory_space<vmem>>, vector<32x128xf32>
    %67 = arith.addf %65, %66 : vector<32x128xf32>
    %c0_50 = arith.constant 0 : index
    %c2688 = arith.constant 2688 : index
    %68 = vector.load %arg10[%c0_50, %c2688] : memref<32x8192xf32, #tpu.memory_space<vmem>>, vector<32x128xf32>
    %69 = arith.addf %67, %68 : vector<32x128xf32>
    %c0_51 = arith.constant 0 : index
    %c2816 = arith.constant 2816 : index
    %70 = vector.load %arg10[%c0_51, %c2816] : memref<32x8192xf32, #tpu.memory_space<vmem>>, vector<32x128xf32>
    %71 = arith.addf %69, %70 : vector<32x128xf32>
    %cst_52 = arith.constant 2.500000e-01 : f32
    %72 = vector.broadcast %cst_52 : f32 to vector<32x128xf32>
    %73 = arith.mulf %72, %71 : vector<32x128xf32>
    %74 = arith.truncf %73 : vector<32x128xf32> to vector<32x128xbf16>
    %c0_53 = arith.constant 0 : index
    %c896 = arith.constant 896 : index
    %75 = vector.load %arg11[%c0_53, %c896] : memref<128x2048xbf16, #tpu.memory_space<vmem>>, vector<32x128xbf16>
    tpu.vector_store %arg11[%c0_53, %c896], %74 {strides = array<i32>} : memref<128x2048xbf16, #tpu.memory_space<vmem>>, vector<32x128xbf16>,
    %c0_54 = arith.constant 0 : index
    %c3072 = arith.constant 3072 : index
    %76 = vector.load %arg10[%c0_54, %c3072] : memref<32x8192xf32, #tpu.memory_space<vmem>>, vector<32x128xf32>
    %c0_55 = arith.constant 0 : index
    %c4096 = arith.constant 4096 : index
    %77 = vector.load %arg10[%c0_55, %c4096] : memref<32x8192xf32, #tpu.memory_space<vmem>>, vector<32x128xf32>
    %78 = arith.addf %76, %77 : vector<32x128xf32>
    %cst_56 = arith.constant 2.500000e-01 : f32
    %79 = vector.broadcast %cst_56 : f32 to vector<32x128xf32>
    %80 = arith.mulf %79, %78 : vector<32x128xf32>
    %81 = arith.truncf %80 : vector<32x128xf32> to vector<32x128xbf16>
    %c0_57 = arith.constant 0 : index
    %c1024_58 = arith.constant 1024 : index
    %82 = vector.load %arg11[%c0_57, %c1024_58] : memref<128x2048xbf16, #tpu.memory_space<vmem>>, vector<32x128xbf16>
    tpu.vector_store %arg11[%c0_57, %c1024_58], %81 {strides = array<i32>} : memref<128x2048xbf16, #tpu.memory_space<vmem>>, vector<32x128xbf16>,
    %c0_59 = arith.constant 0 : index
    %c3200 = arith.constant 3200 : index
    %83 = vector.load %arg10[%c0_59, %c3200] : memref<32x8192xf32, #tpu.memory_space<vmem>>, vector<32x128xf32>
    %c0_60 = arith.constant 0 : index
    %c3328 = arith.constant 3328 : index
    %84 = vector.load %arg10[%c0_60, %c3328] : memref<32x8192xf32, #tpu.memory_space<vmem>>, vector<32x128xf32>
    %85 = arith.addf %83, %84 : vector<32x128xf32>
    %c0_61 = arith.constant 0 : index
    %c4224 = arith.constant 4224 : index
    %86 = vector.load %arg10[%c0_61, %c4224] : memref<32x8192xf32, #tpu.memory_space<vmem>>, vector<32x128xf32>
    %87 = arith.addf %85, %86 : vector<32x128xf32>
    %c0_62 = arith.constant 0 : index
    %c4352 = arith.constant 4352 : index
    %88 = vector.load %arg10[%c0_62, %c4352] : memref<32x8192xf32, #tpu.memory_space<vmem>>, vector<32x128xf32>
    %89 = arith.addf %87, %88 : vector<32x128xf32>
    %cst_63 = arith.constant 2.500000e-01 : f32
    %90 = vector.broadcast %cst_63 : f32 to vector<32x128xf32>
    %91 = arith.mulf %90, %89 : vector<32x128xf32>
    %92 = arith.truncf %91 : vector<32x128xf32> to vector<32x128xbf16>
    %c0_64 = arith.constant 0 : index
    %c1152_65 = arith.constant 1152 : index
    %93 = vector.load %arg11[%c0_64, %c1152_65] : memref<128x2048xbf16, #tpu.memory_space<vmem>>, vector<32x128xbf16>
    tpu.vector_store %arg11[%c0_64, %c1152_65], %92 {strides = array<i32>} : memref<128x2048xbf16, #tpu.memory_space<vmem>>, vector<32x128xbf16>,
    %c0_66 = arith.constant 0 : index
    %c3456 = arith.constant 3456 : index
    %94 = vector.load %arg10[%c0_66, %c3456] : memref<32x8192xf32, #tpu.memory_space<vmem>>, vector<32x128xf32>
    %c0_67 = arith.constant 0 : index
    %c3584 = arith.constant 3584 : index
    %95 = vector.load %arg10[%c0_67, %c3584] : memref<32x8192xf32, #tpu.memory_space<vmem>>, vector<32x128xf32>
    %96 = arith.addf %94, %95 : vector<32x128xf32>
    %c0_68 = arith.constant 0 : index
    %c4480 = arith.constant 4480 : index
    %97 = vector.load %arg10[%c0_68, %c4480] : memref<32x8192xf32, #tpu.memory_space<vmem>>, vector<32x128xf32>
    %98 = arith.addf %96, %97 : vector<32x128xf32>
    %c0_69 = arith.constant 0 : index
    %c4608 = arith.constant 4608 : index
    %99 = vector.load %arg10[%c0_69, %c4608] : memref<32x8192xf32, #tpu.memory_space<vmem>>, vector<32x128xf32>
    %100 = arith.addf %98, %99 : vector<32x128xf32>
    %cst_70 = arith.constant 2.500000e-01 : f32
    %101 = vector.broadcast %cst_70 : f32 to vector<32x128xf32>
    %102 = arith.mulf %101, %100 : vector<32x128xf32>
    %103 = arith.truncf %102 : vector<32x128xf32> to vector<32x128xbf16>
    %c0_71 = arith.constant 0 : index
    %c1280_72 = arith.constant 1280 : index
    %104 = vector.load %arg11[%c0_71, %c1280_72] : memref<128x2048xbf16, #tpu.memory_space<vmem>>, vector<32x128xbf16>
    tpu.vector_store %arg11[%c0_71, %c1280_72], %103 {strides = array<i32>} : memref<128x2048xbf16, #tpu.memory_space<vmem>>, vector<32x128xbf16>,
    %c0_73 = arith.constant 0 : index
    %c3712 = arith.constant 3712 : index
    %105 = vector.load %arg10[%c0_73, %c3712] : memref<32x8192xf32, #tpu.memory_space<vmem>>, vector<32x128xf32>
    %c0_74 = arith.constant 0 : index
    %c3840 = arith.constant 3840 : index
    %106 = vector.load %arg10[%c0_74, %c3840] : memref<32x8192xf32, #tpu.memory_space<vmem>>, vector<32x128xf32>
    %107 = arith.addf %105, %106 : vector<32x128xf32>
    %c0_75 = arith.constant 0 : index
    %c4736 = arith.constant 4736 : index
    %108 = vector.load %arg10[%c0_75, %c4736] : memref<32x8192xf32, #tpu.memory_space<vmem>>, vector<32x128xf32>
    %109 = arith.addf %107, %108 : vector<32x128xf32>
    %c0_76 = arith.constant 0 : index
    %c4864 = arith.constant 4864 : index
    %110 = vector.load %arg10[%c0_76, %c4864] : memref<32x8192xf32, #tpu.memory_space<vmem>>, vector<32x128xf32>
    %111 = arith.addf %109, %110 : vector<32x128xf32>
    %cst_77 = arith.constant 2.500000e-01 : f32
    %112 = vector.broadcast %cst_77 : f32 to vector<32x128xf32>
    %113 = arith.mulf %112, %111 : vector<32x128xf32>
    %114 = arith.truncf %113 : vector<32x128xf32> to vector<32x128xbf16>
    %c0_78 = arith.constant 0 : index
    %c1408_79 = arith.constant 1408 : index
    %115 = vector.load %arg11[%c0_78, %c1408_79] : memref<128x2048xbf16, #tpu.memory_space<vmem>>, vector<32x128xbf16>
    tpu.vector_store %arg11[%c0_78, %c1408_79], %114 {strides = array<i32>} : memref<128x2048xbf16, #tpu.memory_space<vmem>>, vector<32x128xbf16>,
    %c0_80 = arith.constant 0 : index
    %c5120 = arith.constant 5120 : index
    %116 = vector.load %arg10[%c0_80, %c5120] : memref<32x8192xf32, #tpu.memory_space<vmem>>, vector<32x128xf32>
    %c0_81 = arith.constant 0 : index
    %c6144 = arith.constant 6144 : index
    %117 = vector.load %arg10[%c0_81, %c6144] : memref<32x8192xf32, #tpu.memory_space<vmem>>, vector<32x128xf32>
    %118 = arith.addf %116, %117 : vector<32x128xf32>
    %cst_82 = arith.constant 2.500000e-01 : f32
    %119 = vector.broadcast %cst_82 : f32 to vector<32x128xf32>
    %120 = arith.mulf %119, %118 : vector<32x128xf32>
    %121 = arith.truncf %120 : vector<32x128xf32> to vector<32x128xbf16>
    %c0_83 = arith.constant 0 : index
    %c1536_84 = arith.constant 1536 : index
    %122 = vector.load %arg11[%c0_83, %c1536_84] : memref<128x2048xbf16, #tpu.memory_space<vmem>>, vector<32x128xbf16>
    tpu.vector_store %arg11[%c0_83, %c1536_84], %121 {strides = array<i32>} : memref<128x2048xbf16, #tpu.memory_space<vmem>>, vector<32x128xbf16>,
    %c0_85 = arith.constant 0 : index
    %c5248 = arith.constant 5248 : index
    %123 = vector.load %arg10[%c0_85, %c5248] : memref<32x8192xf32, #tpu.memory_space<vmem>>, vector<32x128xf32>
    %c0_86 = arith.constant 0 : index
    %c5376 = arith.constant 5376 : index
    %124 = vector.load %arg10[%c0_86, %c5376] : memref<32x8192xf32, #tpu.memory_space<vmem>>, vector<32x128xf32>
    %125 = arith.addf %123, %124 : vector<32x128xf32>
    %c0_87 = arith.constant 0 : index
    %c6272 = arith.constant 6272 : index
    %126 = vector.load %arg10[%c0_87, %c6272] : memref<32x8192xf32, #tpu.memory_space<vmem>>, vector<32x128xf32>
    %127 = arith.addf %125, %126 : vector<32x128xf32>
    %c0_88 = arith.constant 0 : index
    %c6400 = arith.constant 6400 : index
    %128 = vector.load %arg10[%c0_88, %c6400] : memref<32x8192xf32, #tpu.memory_space<vmem>>, vector<32x128xf32>
    %129 = arith.addf %127, %128 : vector<32x128xf32>
    %cst_89 = arith.constant 2.500000e-01 : f32
    %130 = vector.broadcast %cst_89 : f32 to vector<32x128xf32>
    %131 = arith.mulf %130, %129 : vector<32x128xf32>
    %132 = arith.truncf %131 : vector<32x128xf32> to vector<32x128xbf16>
    %c0_90 = arith.constant 0 : index
    %c1664_91 = arith.constant 1664 : index
    %133 = vector.load %arg11[%c0_90, %c1664_91] : memref<128x2048xbf16, #tpu.memory_space<vmem>>, vector<32x128xbf16>
    tpu.vector_store %arg11[%c0_90, %c1664_91], %132 {strides = array<i32>} : memref<128x2048xbf16, #tpu.memory_space<vmem>>, vector<32x128xbf16>,
    %c0_92 = arith.constant 0 : index
    %c5504 = arith.constant 5504 : index
    %134 = vector.load %arg10[%c0_92, %c5504] : memref<32x8192xf32, #tpu.memory_space<vmem>>, vector<32x128xf32>
    %c0_93 = arith.constant 0 : index
    %c5632 = arith.constant 5632 : index
    %135 = vector.load %arg10[%c0_93, %c5632] : memref<32x8192xf32, #tpu.memory_space<vmem>>, vector<32x128xf32>
    %136 = arith.addf %134, %135 : vector<32x128xf32>
    %c0_94 = arith.constant 0 : index
    %c6528 = arith.constant 6528 : index
    %137 = vector.load %arg10[%c0_94, %c6528] : memref<32x8192xf32, #tpu.memory_space<vmem>>, vector<32x128xf32>
    %138 = arith.addf %136, %137 : vector<32x128xf32>
    %c0_95 = arith.constant 0 : index
    %c6656 = arith.constant 6656 : index
    %139 = vector.load %arg10[%c0_95, %c6656] : memref<32x8192xf32, #tpu.memory_space<vmem>>, vector<32x128xf32>
    %140 = arith.addf %138, %139 : vector<32x128xf32>
    %cst_96 = arith.constant 2.500000e-01 : f32
    %141 = vector.broadcast %cst_96 : f32 to vector<32x128xf32>
    %142 = arith.mulf %141, %140 : vector<32x128xf32>
    %143 = arith.truncf %142 : vector<32x128xf32> to vector<32x128xbf16>
    %c0_97 = arith.constant 0 : index
    %c1792_98 = arith.constant 1792 : index
    %144 = vector.load %arg11[%c0_97, %c1792_98] : memref<128x2048xbf16, #tpu.memory_space<vmem>>, vector<32x128xbf16>
    tpu.vector_store %arg11[%c0_97, %c1792_98], %143 {strides = array<i32>} : memref<128x2048xbf16, #tpu.memory_space<vmem>>, vector<32x128xbf16>,
    %c0_99 = arith.constant 0 : index
    %c5760 = arith.constant 5760 : index
    %145 = vector.load %arg10[%c0_99, %c5760] : memref<32x8192xf32, #tpu.memory_space<vmem>>, vector<32x128xf32>
    %c0_100 = arith.constant 0 : index
    %c5888 = arith.constant 5888 : index
    %146 = vector.load %arg10[%c0_100, %c5888] : memref<32x8192xf32, #tpu.memory_space<vmem>>, vector<32x128xf32>
    %147 = arith.addf %145, %146 : vector<32x128xf32>
    %c0_101 = arith.constant 0 : index
    %c6784 = arith.constant 6784 : index
    %148 = vector.load %arg10[%c0_101, %c6784] : memref<32x8192xf32, #tpu.memory_space<vmem>>, vector<32x128xf32>
    %149 = arith.addf %147, %148 : vector<32x128xf32>
    %c0_102 = arith.constant 0 : index
    %c6912 = arith.constant 6912 : index
    %150 = vector.load %arg10[%c0_102, %c6912] : memref<32x8192xf32, #tpu.memory_space<vmem>>, vector<32x128xf32>
    %151 = arith.addf %149, %150 : vector<32x128xf32>
    %cst_103 = arith.constant 2.500000e-01 : f32
    %152 = vector.broadcast %cst_103 : f32 to vector<32x128xf32>
    %153 = arith.mulf %152, %151 : vector<32x128xf32>
    %154 = arith.truncf %153 : vector<32x128xf32> to vector<32x128xbf16>
    %c0_104 = arith.constant 0 : index
    %c1920 = arith.constant 1920 : index
    %155 = vector.load %arg11[%c0_104, %c1920] : memref<128x2048xbf16, #tpu.memory_space<vmem>>, vector<32x128xbf16>
    tpu.vector_store %arg11[%c0_104, %c1920], %154 {strides = array<i32>} : memref<128x2048xbf16, #tpu.memory_space<vmem>>, vector<32x128xbf16>,
    %c0_105 = arith.constant 0 : index
    %c0_106 = arith.constant 0 : index
    %156 = vector.load %arg10[%c0_105, %c0_106] : memref<32x8192xf32, #tpu.memory_space<vmem>>, vector<32x128xf32>
    %c0_107 = arith.constant 0 : index
    %c128_108 = arith.constant 128 : index
    %157 = vector.load %arg10[%c0_107, %c128_108] : memref<32x8192xf32, #tpu.memory_space<vmem>>, vector<32x128xf32>
    %158 = arith.addf %156, %157 : vector<32x128xf32>
    %cst_109 = arith.constant 2.500000e-01 : f32
    %159 = vector.broadcast %cst_109 : f32 to vector<32x128xf32>
    %160 = arith.mulf %159, %158 : vector<32x128xf32>
    %161 = arith.truncf %160 : vector<32x128xf32> to vector<32x128xbf16>
    %c32 = arith.constant 32 : index
    %c0_110 = arith.constant 0 : index
    %162 = vector.load %arg11[%c32, %c0_110] : memref<128x2048xbf16, #tpu.memory_space<vmem>>, vector<32x128xbf16>
    tpu.vector_store %arg11[%c32, %c0_110], %161 {strides = array<i32>} : memref<128x2048xbf16, #tpu.memory_space<vmem>>, vector<32x128xbf16>,
    %c0_111 = arith.constant 0 : index
    %c256_112 = arith.constant 256 : index
    %163 = vector.load %arg10[%c0_111, %c256_112] : memref<32x8192xf32, #tpu.memory_space<vmem>>, vector<32x128xf32>
    %c0_113 = arith.constant 0 : index
    %c384_114 = arith.constant 384 : index
    %164 = vector.load %arg10[%c0_113, %c384_114] : memref<32x8192xf32, #tpu.memory_space<vmem>>, vector<32x128xf32>
    %165 = arith.addf %163, %164 : vector<32x128xf32>
    %cst_115 = arith.constant 2.500000e-01 : f32
    %166 = vector.broadcast %cst_115 : f32 to vector<32x128xf32>
    %167 = arith.mulf %166, %165 : vector<32x128xf32>
    %168 = arith.truncf %167 : vector<32x128xf32> to vector<32x128xbf16>
    %c32_116 = arith.constant 32 : index
    %c128_117 = arith.constant 128 : index
    %169 = vector.load %arg11[%c32_116, %c128_117] : memref<128x2048xbf16, #tpu.memory_space<vmem>>, vector<32x128xbf16>
    tpu.vector_store %arg11[%c32_116, %c128_117], %168 {strides = array<i32>} : memref<128x2048xbf16, #tpu.memory_space<vmem>>, vector<32x128xbf16>,
    %c0_118 = arith.constant 0 : index
    %c512_119 = arith.constant 512 : index
    %170 = vector.load %arg10[%c0_118, %c512_119] : memref<32x8192xf32, #tpu.memory_space<vmem>>, vector<32x128xf32>
    %c0_120 = arith.constant 0 : index
    %c640_121 = arith.constant 640 : index
    %171 = vector.load %arg10[%c0_120, %c640_121] : memref<32x8192xf32, #tpu.memory_space<vmem>>, vector<32x128xf32>
    %172 = arith.addf %170, %171 : vector<32x128xf32>
    %cst_122 = arith.constant 2.500000e-01 : f32
    %173 = vector.broadcast %cst_122 : f32 to vector<32x128xf32>
    %174 = arith.mulf %173, %172 : vector<32x128xf32>
    %175 = arith.truncf %174 : vector<32x128xf32> to vector<32x128xbf16>
    %c32_123 = arith.constant 32 : index
    %c256_124 = arith.constant 256 : index
    %176 = vector.load %arg11[%c32_123, %c256_124] : memref<128x2048xbf16, #tpu.memory_space<vmem>>, vector<32x128xbf16>
    tpu.vector_store %arg11[%c32_123, %c256_124], %175 {strides = array<i32>} : memref<128x2048xbf16, #tpu.memory_space<vmem>>, vector<32x128xbf16>,
    %c0_125 = arith.constant 0 : index
    %c768_126 = arith.constant 768 : index
    %177 = vector.load %arg10[%c0_125, %c768_126] : memref<32x8192xf32, #tpu.memory_space<vmem>>, vector<32x128xf32>
    %c0_127 = arith.constant 0 : index
    %c896_128 = arith.constant 896 : index
    %178 = vector.load %arg10[%c0_127, %c896_128] : memref<32x8192xf32, #tpu.memory_space<vmem>>, vector<32x128xf32>
    %179 = arith.addf %177, %178 : vector<32x128xf32>
    %cst_129 = arith.constant 2.500000e-01 : f32
    %180 = vector.broadcast %cst_129 : f32 to vector<32x128xf32>
    %181 = arith.mulf %180, %179 : vector<32x128xf32>
    %182 = arith.truncf %181 : vector<32x128xf32> to vector<32x128xbf16>
    %c32_130 = arith.constant 32 : index
    %c384_131 = arith.constant 384 : index
    %183 = vector.load %arg11[%c32_130, %c384_131] : memref<128x2048xbf16, #tpu.memory_space<vmem>>, vector<32x128xbf16>
    tpu.vector_store %arg11[%c32_130, %c384_131], %182 {strides = array<i32>} : memref<128x2048xbf16, #tpu.memory_space<vmem>>, vector<32x128xbf16>,
    %c0_132 = arith.constant 0 : index
    %c1024_133 = arith.constant 1024 : index
    %184 = vector.load %arg10[%c0_132, %c1024_133] : memref<32x8192xf32, #tpu.memory_space<vmem>>, vector<32x128xf32>
    %c0_134 = arith.constant 0 : index
    %c1152_135 = arith.constant 1152 : index
    %185 = vector.load %arg10[%c0_134, %c1152_135] : memref<32x8192xf32, #tpu.memory_space<vmem>>, vector<32x128xf32>
    %186 = arith.addf %184, %185 : vector<32x128xf32>
    %c0_136 = arith.constant 0 : index
    %c2048_137 = arith.constant 2048 : index
    %187 = vector.load %arg10[%c0_136, %c2048_137] : memref<32x8192xf32, #tpu.memory_space<vmem>>, vector<32x128xf32>
    %188 = arith.addf %186, %187 : vector<32x128xf32>
    %c0_138 = arith.constant 0 : index
    %c2176_139 = arith.constant 2176 : index
    %189 = vector.load %arg10[%c0_138, %c2176_139] : memref<32x8192xf32, #tpu.memory_space<vmem>>, vector<32x128xf32>
    %190 = arith.addf %188, %189 : vector<32x128xf32>
    %cst_140 = arith.constant 2.500000e-01 : f32
    %191 = vector.broadcast %cst_140 : f32 to vector<32x128xf32>
    %192 = arith.mulf %191, %190 : vector<32x128xf32>
    %193 = arith.truncf %192 : vector<32x128xf32> to vector<32x128xbf16>
    %c32_141 = arith.constant 32 : index
    %c512_142 = arith.constant 512 : index
    %194 = vector.load %arg11[%c32_141, %c512_142] : memref<128x2048xbf16, #tpu.memory_space<vmem>>, vector<32x128xbf16>
    tpu.vector_store %arg11[%c32_141, %c512_142], %193 {strides = array<i32>} : memref<128x2048xbf16, #tpu.memory_space<vmem>>, vector<32x128xbf16>,
    %c0_143 = arith.constant 0 : index
    %c1280_144 = arith.constant 1280 : index
    %195 = vector.load %arg10[%c0_143, %c1280_144] : memref<32x8192xf32, #tpu.memory_space<vmem>>, vector<32x128xf32>
    %c0_145 = arith.constant 0 : index
    %c1408_146 = arith.constant 1408 : index
    %196 = vector.load %arg10[%c0_145, %c1408_146] : memref<32x8192xf32, #tpu.memory_space<vmem>>, vector<32x128xf32>
    %197 = arith.addf %195, %196 : vector<32x128xf32>
    %c0_147 = arith.constant 0 : index
    %c2304_148 = arith.constant 2304 : index
    %198 = vector.load %arg10[%c0_147, %c2304_148] : memref<32x8192xf32, #tpu.memory_space<vmem>>, vector<32x128xf32>
    %199 = arith.addf %197, %198 : vector<32x128xf32>
    %c0_149 = arith.constant 0 : index
    %c2432_150 = arith.constant 2432 : index
    %200 = vector.load %arg10[%c0_149, %c2432_150] : memref<32x8192xf32, #tpu.memory_space<vmem>>, vector<32x128xf32>
    %201 = arith.addf %199, %200 : vector<32x128xf32>
    %cst_151 = arith.constant 2.500000e-01 : f32
    %202 = vector.broadcast %cst_151 : f32 to vector<32x128xf32>
    %203 = arith.mulf %202, %201 : vector<32x128xf32>
    %204 = arith.truncf %203 : vector<32x128xf32> to vector<32x128xbf16>
    %c32_152 = arith.constant 32 : index
    %c640_153 = arith.constant 640 : index
    %205 = vector.load %arg11[%c32_152, %c640_153] : memref<128x2048xbf16, #tpu.memory_space<vmem>>, vector<32x128xbf16>
    tpu.vector_store %arg11[%c32_152, %c640_153], %204 {strides = array<i32>} : memref<128x2048xbf16, #tpu.memory_space<vmem>>, vector<32x128xbf16>,
    %c0_154 = arith.constant 0 : index
    %c1536_155 = arith.constant 1536 : index
    %206 = vector.load %arg10[%c0_154, %c1536_155] : memref<32x8192xf32, #tpu.memory_space<vmem>>, vector<32x128xf32>
    %c0_156 = arith.constant 0 : index
    %c1664_157 = arith.constant 1664 : index
    %207 = vector.load %arg10[%c0_156, %c1664_157] : memref<32x8192xf32, #tpu.memory_space<vmem>>, vector<32x128xf32>
    %208 = arith.addf %206, %207 : vector<32x128xf32>
    %c0_158 = arith.constant 0 : index
    %c2560_159 = arith.constant 2560 : index
    %209 = vector.load %arg10[%c0_158, %c2560_159] : memref<32x8192xf32, #tpu.memory_space<vmem>>, vector<32x128xf32>
    %210 = arith.addf %208, %209 : vector<32x128xf32>
    %c0_160 = arith.constant 0 : index
    %c2688_161 = arith.constant 2688 : index
    %211 = vector.load %arg10[%c0_160, %c2688_161] : memref<32x8192xf32, #tpu.memory_space<vmem>>, vector<32x128xf32>
    %212 = arith.addf %210, %211 : vector<32x128xf32>
    %cst_162 = arith.constant 2.500000e-01 : f32
    %213 = vector.broadcast %cst_162 : f32 to vector<32x128xf32>
    %214 = arith.mulf %213, %212 : vector<32x128xf32>
    %215 = arith.truncf %214 : vector<32x128xf32> to vector<32x128xbf16>
    %c32_163 = arith.constant 32 : index
    %c768_164 = arith.constant 768 : index
    %216 = vector.load %arg11[%c32_163, %c768_164] : memref<128x2048xbf16, #tpu.memory_space<vmem>>, vector<32x128xbf16>
    tpu.vector_store %arg11[%c32_163, %c768_164], %215 {strides = array<i32>} : memref<128x2048xbf16, #tpu.memory_space<vmem>>, vector<32x128xbf16>,
    %c0_165 = arith.constant 0 : index
    %c1792_166 = arith.constant 1792 : index
    %217 = vector.load %arg10[%c0_165, %c1792_166] : memref<32x8192xf32, #tpu.memory_space<vmem>>, vector<32x128xf32>
    %c0_167 = arith.constant 0 : index
    %c1920_168 = arith.constant 1920 : index
    %218 = vector.load %arg10[%c0_167, %c1920_168] : memref<32x8192xf32, #tpu.memory_space<vmem>>, vector<32x128xf32>
    %219 = arith.addf %217, %218 : vector<32x128xf32>
    %c0_169 = arith.constant 0 : index
    %c2816_170 = arith.constant 2816 : index
    %220 = vector.load %arg10[%c0_169, %c2816_170] : memref<32x8192xf32, #tpu.memory_space<vmem>>, vector<32x128xf32>
    %221 = arith.addf %219, %220 : vector<32x128xf32>
    %c0_171 = arith.constant 0 : index
    %c2944 = arith.constant 2944 : index
    %222 = vector.load %arg10[%c0_171, %c2944] : memref<32x8192xf32, #tpu.memory_space<vmem>>, vector<32x128xf32>
    %223 = arith.addf %221, %222 : vector<32x128xf32>
    %cst_172 = arith.constant 2.500000e-01 : f32
    %224 = vector.broadcast %cst_172 : f32 to vector<32x128xf32>
    %225 = arith.mulf %224, %223 : vector<32x128xf32>
    %226 = arith.truncf %225 : vector<32x128xf32> to vector<32x128xbf16>
    %c32_173 = arith.constant 32 : index
    %c896_174 = arith.constant 896 : index
    %227 = vector.load %arg11[%c32_173, %c896_174] : memref<128x2048xbf16, #tpu.memory_space<vmem>>, vector<32x128xbf16>
    tpu.vector_store %arg11[%c32_173, %c896_174], %226 {strides = array<i32>} : memref<128x2048xbf16, #tpu.memory_space<vmem>>, vector<32x128xbf16>,
    %c0_175 = arith.constant 0 : index
    %c3072_176 = arith.constant 3072 : index
    %228 = vector.load %arg10[%c0_175, %c3072_176] : memref<32x8192xf32, #tpu.memory_space<vmem>>, vector<32x128xf32>
    %c0_177 = arith.constant 0 : index
    %c3200_178 = arith.constant 3200 : index
    %229 = vector.load %arg10[%c0_177, %c3200_178] : memref<32x8192xf32, #tpu.memory_space<vmem>>, vector<32x128xf32>
    %230 = arith.addf %228, %229 : vector<32x128xf32>
    %c0_179 = arith.constant 0 : index
    %c4096_180 = arith.constant 4096 : index
    %231 = vector.load %arg10[%c0_179, %c4096_180] : memref<32x8192xf32, #tpu.memory_space<vmem>>, vector<32x128xf32>
    %232 = arith.addf %230, %231 : vector<32x128xf32>
    %c0_181 = arith.constant 0 : index
    %c4224_182 = arith.constant 4224 : index
    %233 = vector.load %arg10[%c0_181, %c4224_182] : memref<32x8192xf32, #tpu.memory_space<vmem>>, vector<32x128xf32>
    %234 = arith.addf %232, %233 : vector<32x128xf32>
    %cst_183 = arith.constant 2.500000e-01 : f32
    %235 = vector.broadcast %cst_183 : f32 to vector<32x128xf32>
    %236 = arith.mulf %235, %234 : vector<32x128xf32>
    %237 = arith.truncf %236 : vector<32x128xf32> to vector<32x128xbf16>
    %c32_184 = arith.constant 32 : index
    %c1024_185 = arith.constant 1024 : index
    %238 = vector.load %arg11[%c32_184, %c1024_185] : memref<128x2048xbf16, #tpu.memory_space<vmem>>, vector<32x128xbf16>
    tpu.vector_store %arg11[%c32_184, %c1024_185], %237 {strides = array<i32>} : memref<128x2048xbf16, #tpu.memory_space<vmem>>, vector<32x128xbf16>,
    %c0_186 = arith.constant 0 : index
    %c3328_187 = arith.constant 3328 : index
    %239 = vector.load %arg10[%c0_186, %c3328_187] : memref<32x8192xf32, #tpu.memory_space<vmem>>, vector<32x128xf32>
    %c0_188 = arith.constant 0 : index
    %c3456_189 = arith.constant 3456 : index
    %240 = vector.load %arg10[%c0_188, %c3456_189] : memref<32x8192xf32, #tpu.memory_space<vmem>>, vector<32x128xf32>
    %241 = arith.addf %239, %240 : vector<32x128xf32>
    %c0_190 = arith.constant 0 : index
    %c4352_191 = arith.constant 4352 : index
    %242 = vector.load %arg10[%c0_190, %c4352_191] : memref<32x8192xf32, #tpu.memory_space<vmem>>, vector<32x128xf32>
    %243 = arith.addf %241, %242 : vector<32x128xf32>
    %c0_192 = arith.constant 0 : index
    %c4480_193 = arith.constant 4480 : index
    %244 = vector.load %arg10[%c0_192, %c4480_193] : memref<32x8192xf32, #tpu.memory_space<vmem>>, vector<32x128xf32>
    %245 = arith.addf %243, %244 : vector<32x128xf32>
    %cst_194 = arith.constant 2.500000e-01 : f32
    %246 = vector.broadcast %cst_194 : f32 to vector<32x128xf32>
    %247 = arith.mulf %246, %245 : vector<32x128xf32>
    %248 = arith.truncf %247 : vector<32x128xf32> to vector<32x128xbf16>
    %c32_195 = arith.constant 32 : index
    %c1152_196 = arith.constant 1152 : index
    %249 = vector.load %arg11[%c32_195, %c1152_196] : memref<128x2048xbf16, #tpu.memory_space<vmem>>, vector<32x128xbf16>
    tpu.vector_store %arg11[%c32_195, %c1152_196], %248 {strides = array<i32>} : memref<128x2048xbf16, #tpu.memory_space<vmem>>, vector<32x128xbf16>,
    %c0_197 = arith.constant 0 : index
    %c3584_198 = arith.constant 3584 : index
    %250 = vector.load %arg10[%c0_197, %c3584_198] : memref<32x8192xf32, #tpu.memory_space<vmem>>, vector<32x128xf32>
    %c0_199 = arith.constant 0 : index
    %c3712_200 = arith.constant 3712 : index
    %251 = vector.load %arg10[%c0_199, %c3712_200] : memref<32x8192xf32, #tpu.memory_space<vmem>>, vector<32x128xf32>
    %252 = arith.addf %250, %251 : vector<32x128xf32>
    %c0_201 = arith.constant 0 : index
    %c4608_202 = arith.constant 4608 : index
    %253 = vector.load %arg10[%c0_201, %c4608_202] : memref<32x8192xf32, #tpu.memory_space<vmem>>, vector<32x128xf32>
    %254 = arith.addf %252, %253 : vector<32x128xf32>
    %c0_203 = arith.constant 0 : index
    %c4736_204 = arith.constant 4736 : index
    %255 = vector.load %arg10[%c0_203, %c4736_204] : memref<32x8192xf32, #tpu.memory_space<vmem>>, vector<32x128xf32>
    %256 = arith.addf %254, %255 : vector<32x128xf32>
    %cst_205 = arith.constant 2.500000e-01 : f32
    %257 = vector.broadcast %cst_205 : f32 to vector<32x128xf32>
    %258 = arith.mulf %257, %256 : vector<32x128xf32>
    %259 = arith.truncf %258 : vector<32x128xf32> to vector<32x128xbf16>
    %c32_206 = arith.constant 32 : index
    %c1280_207 = arith.constant 1280 : index
    %260 = vector.load %arg11[%c32_206, %c1280_207] : memref<128x2048xbf16, #tpu.memory_space<vmem>>, vector<32x128xbf16>
    tpu.vector_store %arg11[%c32_206, %c1280_207], %259 {strides = array<i32>} : memref<128x2048xbf16, #tpu.memory_space<vmem>>, vector<32x128xbf16>,
    %c0_208 = arith.constant 0 : index
    %c3840_209 = arith.constant 3840 : index
    %261 = vector.load %arg10[%c0_208, %c3840_209] : memref<32x8192xf32, #tpu.memory_space<vmem>>, vector<32x128xf32>
    %c0_210 = arith.constant 0 : index
    %c3968 = arith.constant 3968 : index
    %262 = vector.load %arg10[%c0_210, %c3968] : memref<32x8192xf32, #tpu.memory_space<vmem>>, vector<32x128xf32>
    %263 = arith.addf %261, %262 : vector<32x128xf32>
    %c0_211 = arith.constant 0 : index
    %c4864_212 = arith.constant 4864 : index
    %264 = vector.load %arg10[%c0_211, %c4864_212] : memref<32x8192xf32, #tpu.memory_space<vmem>>, vector<32x128xf32>
    %265 = arith.addf %263, %264 : vector<32x128xf32>
    %c0_213 = arith.constant 0 : index
    %c4992 = arith.constant 4992 : index
    %266 = vector.load %arg10[%c0_213, %c4992] : memref<32x8192xf32, #tpu.memory_space<vmem>>, vector<32x128xf32>
    %267 = arith.addf %265, %266 : vector<32x128xf32>
    %cst_214 = arith.constant 2.500000e-01 : f32
    %268 = vector.broadcast %cst_214 : f32 to vector<32x128xf32>
    %269 = arith.mulf %268, %267 : vector<32x128xf32>
    %270 = arith.truncf %269 : vector<32x128xf32> to vector<32x128xbf16>
    %c32_215 = arith.constant 32 : index
    %c1408_216 = arith.constant 1408 : index
    %271 = vector.load %arg11[%c32_215, %c1408_216] : memref<128x2048xbf16, #tpu.memory_space<vmem>>, vector<32x128xbf16>
    tpu.vector_store %arg11[%c32_215, %c1408_216], %270 {strides = array<i32>} : memref<128x2048xbf16, #tpu.memory_space<vmem>>, vector<32x128xbf16>,
    %c0_217 = arith.constant 0 : index
    %c5120_218 = arith.constant 5120 : index
    %272 = vector.load %arg10[%c0_217, %c5120_218] : memref<32x8192xf32, #tpu.memory_space<vmem>>, vector<32x128xf32>
    %c0_219 = arith.constant 0 : index
    %c5248_220 = arith.constant 5248 : index
    %273 = vector.load %arg10[%c0_219, %c5248_220] : memref<32x8192xf32, #tpu.memory_space<vmem>>, vector<32x128xf32>
    %274 = arith.addf %272, %273 : vector<32x128xf32>
    %c0_221 = arith.constant 0 : index
    %c6144_222 = arith.constant 6144 : index
    %275 = vector.load %arg10[%c0_221, %c6144_222] : memref<32x8192xf32, #tpu.memory_space<vmem>>, vector<32x128xf32>
    %276 = arith.addf %274, %275 : vector<32x128xf32>
    %c0_223 = arith.constant 0 : index
    %c6272_224 = arith.constant 6272 : index
    %277 = vector.load %arg10[%c0_223, %c6272_224] : memref<32x8192xf32, #tpu.memory_space<vmem>>, vector<32x128xf32>
    %278 = arith.addf %276, %277 : vector<32x128xf32>
    %cst_225 = arith.constant 2.500000e-01 : f32
    %279 = vector.broadcast %cst_225 : f32 to vector<32x128xf32>
    %280 = arith.mulf %279, %278 : vector<32x128xf32>
    %281 = arith.truncf %280 : vector<32x128xf32> to vector<32x128xbf16>
    %c32_226 = arith.constant 32 : index
    %c1536_227 = arith.constant 1536 : index
    %282 = vector.load %arg11[%c32_226, %c1536_227] : memref<128x2048xbf16, #tpu.memory_space<vmem>>, vector<32x128xbf16>
    tpu.vector_store %arg11[%c32_226, %c1536_227], %281 {strides = array<i32>} : memref<128x2048xbf16, #tpu.memory_space<vmem>>, vector<32x128xbf16>,
    %c0_228 = arith.constant 0 : index
    %c5376_229 = arith.constant 5376 : index
    %283 = vector.load %arg10[%c0_228, %c5376_229] : memref<32x8192xf32, #tpu.memory_space<vmem>>, vector<32x128xf32>
    %c0_230 = arith.constant 0 : index
    %c5504_231 = arith.constant 5504 : index
    %284 = vector.load %arg10[%c0_230, %c5504_231] : memref<32x8192xf32, #tpu.memory_space<vmem>>, vector<32x128xf32>
    %285 = arith.addf %283, %284 : vector<32x128xf32>
    %c0_232 = arith.constant 0 : index
    %c6400_233 = arith.constant 6400 : index
    %286 = vector.load %arg10[%c0_232, %c6400_233] : memref<32x8192xf32, #tpu.memory_space<vmem>>, vector<32x128xf32>
    %287 = arith.addf %285, %286 : vector<32x128xf32>
    %c0_234 = arith.constant 0 : index
    %c6528_235 = arith.constant 6528 : index
    %288 = vector.load %arg10[%c0_234, %c6528_235] : memref<32x8192xf32, #tpu.memory_space<vmem>>, vector<32x128xf32>
    %289 = arith.addf %287, %288 : vector<32x128xf32>
    %cst_236 = arith.constant 2.500000e-01 : f32
    %290 = vector.broadcast %cst_236 : f32 to vector<32x128xf32>
    %291 = arith.mulf %290, %289 : vector<32x128xf32>
    %292 = arith.truncf %291 : vector<32x128xf32> to vector<32x128xbf16>
    %c32_237 = arith.constant 32 : index
    %c1664_238 = arith.constant 1664 : index
    %293 = vector.load %arg11[%c32_237, %c1664_238] : memref<128x2048xbf16, #tpu.memory_space<vmem>>, vector<32x128xbf16>
    tpu.vector_store %arg11[%c32_237, %c1664_238], %292 {strides = array<i32>} : memref<128x2048xbf16, #tpu.memory_space<vmem>>, vector<32x128xbf16>,
    %c0_239 = arith.constant 0 : index
    %c5632_240 = arith.constant 5632 : index
    %294 = vector.load %arg10[%c0_239, %c5632_240] : memref<32x8192xf32, #tpu.memory_space<vmem>>, vector<32x128xf32>
    %c0_241 = arith.constant 0 : index
    %c5760_242 = arith.constant 5760 : index
    %295 = vector.load %arg10[%c0_241, %c5760_242] : memref<32x8192xf32, #tpu.memory_space<vmem>>, vector<32x128xf32>
    %296 = arith.addf %294, %295 : vector<32x128xf32>
    %c0_243 = arith.constant 0 : index
    %c6656_244 = arith.constant 6656 : index
    %297 = vector.load %arg10[%c0_243, %c6656_244] : memref<32x8192xf32, #tpu.memory_space<vmem>>, vector<32x128xf32>
    %298 = arith.addf %296, %297 : vector<32x128xf32>
    %c0_245 = arith.constant 0 : index
    %c6784_246 = arith.constant 6784 : index
    %299 = vector.load %arg10[%c0_245, %c6784_246] : memref<32x8192xf32, #tpu.memory_space<vmem>>, vector<32x128xf32>
    %300 = arith.addf %298, %299 : vector<32x128xf32>
    %cst_247 = arith.constant 2.500000e-01 : f32
    %301 = vector.broadcast %cst_247 : f32 to vector<32x128xf32>
    %302 = arith.mulf %301, %300 : vector<32x128xf32>
    %303 = arith.truncf %302 : vector<32x128xf32> to vector<32x128xbf16>
    %c32_248 = arith.constant 32 : index
    %c1792_249 = arith.constant 1792 : index
    %304 = vector.load %arg11[%c32_248, %c1792_249] : memref<128x2048xbf16, #tpu.memory_space<vmem>>, vector<32x128xbf16>
    tpu.vector_store %arg11[%c32_248, %c1792_249], %303 {strides = array<i32>} : memref<128x2048xbf16, #tpu.memory_space<vmem>>, vector<32x128xbf16>,
    %c0_250 = arith.constant 0 : index
    %c5888_251 = arith.constant 5888 : index
    %305 = vector.load %arg10[%c0_250, %c5888_251] : memref<32x8192xf32, #tpu.memory_space<vmem>>, vector<32x128xf32>
    %c0_252 = arith.constant 0 : index
    %c6016 = arith.constant 6016 : index
    %306 = vector.load %arg10[%c0_252, %c6016] : memref<32x8192xf32, #tpu.memory_space<vmem>>, vector<32x128xf32>
    %307 = arith.addf %305, %306 : vector<32x128xf32>
    %c0_253 = arith.constant 0 : index
    %c6912_254 = arith.constant 6912 : index
    %308 = vector.load %arg10[%c0_253, %c6912_254] : memref<32x8192xf32, #tpu.memory_space<vmem>>, vector<32x128xf32>
    %309 = arith.addf %307, %308 : vector<32x128xf32>
    %c0_255 = arith.constant 0 : index
    %c7040 = arith.constant 7040 : index
    %310 = vector.load %arg10[%c0_255, %c7040] : memref<32x8192xf32, #tpu.memory_space<vmem>>, vector<32x128xf32>
    %311 = arith.addf %309, %310 : vector<32x128xf32>
    %cst_256 = arith.constant 2.500000e-01 : f32
    %312 = vector.broadcast %cst_256 : f32 to vector<32x128xf32>
    %313 = arith.mulf %312, %311 : vector<32x128xf32>
    %314 = arith.truncf %313 : vector<32x128xf32> to vector<32x128xbf16>
    %c32_257 = arith.constant 32 : index
    %c1920_258 = arith.constant 1920 : index
    %315 = vector.load %arg11[%c32_257, %c1920_258] : memref<128x2048xbf16, #tpu.memory_space<vmem>>, vector<32x128xbf16>
    tpu.vector_store %arg11[%c32_257, %c1920_258], %314 {strides = array<i32>} : memref<128x2048xbf16, #tpu.memory_space<vmem>>, vector<32x128xbf16>,
    %c0_259 = arith.constant 0 : index
    %c0_260 = arith.constant 0 : index
    %316 = vector.load %arg10[%c0_259, %c0_260] : memref<32x8192xf32, #tpu.memory_space<vmem>>, vector<32x128xf32>
    %c0_261 = arith.constant 0 : index
    %c1024_262 = arith.constant 1024 : index
    %317 = vector.load %arg10[%c0_261, %c1024_262] : memref<32x8192xf32, #tpu.memory_space<vmem>>, vector<32x128xf32>
    %318 = arith.addf %316, %317 : vector<32x128xf32>
    %cst_263 = arith.constant 2.500000e-01 : f32
    %319 = vector.broadcast %cst_263 : f32 to vector<32x128xf32>
    %320 = arith.mulf %319, %318 : vector<32x128xf32>
    %321 = arith.truncf %320 : vector<32x128xf32> to vector<32x128xbf16>
    %c64 = arith.constant 64 : index
    %c0_264 = arith.constant 0 : index
    %322 = vector.load %arg11[%c64, %c0_264] : memref<128x2048xbf16, #tpu.memory_space<vmem>>, vector<32x128xbf16>
    tpu.vector_store %arg11[%c64, %c0_264], %321 {strides = array<i32>} : memref<128x2048xbf16, #tpu.memory_space<vmem>>, vector<32x128xbf16>,
    %c0_265 = arith.constant 0 : index
    %c128_266 = arith.constant 128 : index
    %323 = vector.load %arg10[%c0_265, %c128_266] : memref<32x8192xf32, #tpu.memory_space<vmem>>, vector<32x128xf32>
    %c0_267 = arith.constant 0 : index
    %c256_268 = arith.constant 256 : index
    %324 = vector.load %arg10[%c0_267, %c256_268] : memref<32x8192xf32, #tpu.memory_space<vmem>>, vector<32x128xf32>
    %325 = arith.addf %323, %324 : vector<32x128xf32>
    %c0_269 = arith.constant 0 : index
    %c1152_270 = arith.constant 1152 : index
    %326 = vector.load %arg10[%c0_269, %c1152_270] : memref<32x8192xf32, #tpu.memory_space<vmem>>, vector<32x128xf32>
    %327 = arith.addf %325, %326 : vector<32x128xf32>
    %c0_271 = arith.constant 0 : index
    %c1280_272 = arith.constant 1280 : index
    %328 = vector.load %arg10[%c0_271, %c1280_272] : memref<32x8192xf32, #tpu.memory_space<vmem>>, vector<32x128xf32>
    %329 = arith.addf %327, %328 : vector<32x128xf32>
    %cst_273 = arith.constant 2.500000e-01 : f32
    %330 = vector.broadcast %cst_273 : f32 to vector<32x128xf32>
    %331 = arith.mulf %330, %329 : vector<32x128xf32>
    %332 = arith.truncf %331 : vector<32x128xf32> to vector<32x128xbf16>
    %c64_274 = arith.constant 64 : index
    %c128_275 = arith.constant 128 : index
    %333 = vector.load %arg11[%c64_274, %c128_275] : memref<128x2048xbf16, #tpu.memory_space<vmem>>, vector<32x128xbf16>
    tpu.vector_store %arg11[%c64_274, %c128_275], %332 {strides = array<i32>} : memref<128x2048xbf16, #tpu.memory_space<vmem>>, vector<32x128xbf16>,
    %c0_276 = arith.constant 0 : index
    %c384_277 = arith.constant 384 : index
    %334 = vector.load %arg10[%c0_276, %c384_277] : memref<32x8192xf32, #tpu.memory_space<vmem>>, vector<32x128xf32>
    %c0_278 = arith.constant 0 : index
    %c512_279 = arith.constant 512 : index
    %335 = vector.load %arg10[%c0_278, %c512_279] : memref<32x8192xf32, #tpu.memory_space<vmem>>, vector<32x128xf32>
    %336 = arith.addf %334, %335 : vector<32x128xf32>
    %c0_280 = arith.constant 0 : index
    %c1408_281 = arith.constant 1408 : index
    %337 = vector.load %arg10[%c0_280, %c1408_281] : memref<32x8192xf32, #tpu.memory_space<vmem>>, vector<32x128xf32>
    %338 = arith.addf %336, %337 : vector<32x128xf32>
    %c0_282 = arith.constant 0 : index
    %c1536_283 = arith.constant 1536 : index
    %339 = vector.load %arg10[%c0_282, %c1536_283] : memref<32x8192xf32, #tpu.memory_space<vmem>>, vector<32x128xf32>
    %340 = arith.addf %338, %339 : vector<32x128xf32>
    %cst_284 = arith.constant 2.500000e-01 : f32
    %341 = vector.broadcast %cst_284 : f32 to vector<32x128xf32>
    %342 = arith.mulf %341, %340 : vector<32x128xf32>
    %343 = arith.truncf %342 : vector<32x128xf32> to vector<32x128xbf16>
    %c64_285 = arith.constant 64 : index
    %c256_286 = arith.constant 256 : index
    %344 = vector.load %arg11[%c64_285, %c256_286] : memref<128x2048xbf16, #tpu.memory_space<vmem>>, vector<32x128xbf16>
    tpu.vector_store %arg11[%c64_285, %c256_286], %343 {strides = array<i32>} : memref<128x2048xbf16, #tpu.memory_space<vmem>>, vector<32x128xbf16>,
    %c0_287 = arith.constant 0 : index
    %c640_288 = arith.constant 640 : index
    %345 = vector.load %arg10[%c0_287, %c640_288] : memref<32x8192xf32, #tpu.memory_space<vmem>>, vector<32x128xf32>
    %c0_289 = arith.constant 0 : index
    %c768_290 = arith.constant 768 : index
    %346 = vector.load %arg10[%c0_289, %c768_290] : memref<32x8192xf32, #tpu.memory_space<vmem>>, vector<32x128xf32>
    %347 = arith.addf %345, %346 : vector<32x128xf32>
    %c0_291 = arith.constant 0 : index
    %c1664_292 = arith.constant 1664 : index
    %348 = vector.load %arg10[%c0_291, %c1664_292] : memref<32x8192xf32, #tpu.memory_space<vmem>>, vector<32x128xf32>
    %349 = arith.addf %347, %348 : vector<32x128xf32>
    %c0_293 = arith.constant 0 : index
    %c1792_294 = arith.constant 1792 : index
    %350 = vector.load %arg10[%c0_293, %c1792_294] : memref<32x8192xf32, #tpu.memory_space<vmem>>, vector<32x128xf32>
    %351 = arith.addf %349, %350 : vector<32x128xf32>
    %cst_295 = arith.constant 2.500000e-01 : f32
    %352 = vector.broadcast %cst_295 : f32 to vector<32x128xf32>
    %353 = arith.mulf %352, %351 : vector<32x128xf32>
    %354 = arith.truncf %353 : vector<32x128xf32> to vector<32x128xbf16>
    %c64_296 = arith.constant 64 : index
    %c384_297 = arith.constant 384 : index
    %355 = vector.load %arg11[%c64_296, %c384_297] : memref<128x2048xbf16, #tpu.memory_space<vmem>>, vector<32x128xbf16>
    tpu.vector_store %arg11[%c64_296, %c384_297], %354 {strides = array<i32>} : memref<128x2048xbf16, #tpu.memory_space<vmem>>, vector<32x128xbf16>,
    %c0_298 = arith.constant 0 : index
    %c2048_299 = arith.constant 2048 : index
    %356 = vector.load %arg10[%c0_298, %c2048_299] : memref<32x8192xf32, #tpu.memory_space<vmem>>, vector<32x128xf32>
    %c0_300 = arith.constant 0 : index
    %c3072_301 = arith.constant 3072 : index
    %357 = vector.load %arg10[%c0_300, %c3072_301] : memref<32x8192xf32, #tpu.memory_space<vmem>>, vector<32x128xf32>
    %358 = arith.addf %356, %357 : vector<32x128xf32>
    %cst_302 = arith.constant 2.500000e-01 : f32
    %359 = vector.broadcast %cst_302 : f32 to vector<32x128xf32>
    %360 = arith.mulf %359, %358 : vector<32x128xf32>
    %361 = arith.truncf %360 : vector<32x128xf32> to vector<32x128xbf16>
    %c64_303 = arith.constant 64 : index
    %c512_304 = arith.constant 512 : index
    %362 = vector.load %arg11[%c64_303, %c512_304] : memref<128x2048xbf16, #tpu.memory_space<vmem>>, vector<32x128xbf16>
    tpu.vector_store %arg11[%c64_303, %c512_304], %361 {strides = array<i32>} : memref<128x2048xbf16, #tpu.memory_space<vmem>>, vector<32x128xbf16>,
    %c0_305 = arith.constant 0 : index
    %c2176_306 = arith.constant 2176 : index
    %363 = vector.load %arg10[%c0_305, %c2176_306] : memref<32x8192xf32, #tpu.memory_space<vmem>>, vector<32x128xf32>
    %c0_307 = arith.constant 0 : index
    %c2304_308 = arith.constant 2304 : index
    %364 = vector.load %arg10[%c0_307, %c2304_308] : memref<32x8192xf32, #tpu.memory_space<vmem>>, vector<32x128xf32>
    %365 = arith.addf %363, %364 : vector<32x128xf32>
    %c0_309 = arith.constant 0 : index
    %c3200_310 = arith.constant 3200 : index
    %366 = vector.load %arg10[%c0_309, %c3200_310] : memref<32x8192xf32, #tpu.memory_space<vmem>>, vector<32x128xf32>
    %367 = arith.addf %365, %366 : vector<32x128xf32>
    %c0_311 = arith.constant 0 : index
    %c3328_312 = arith.constant 3328 : index
    %368 = vector.load %arg10[%c0_311, %c3328_312] : memref<32x8192xf32, #tpu.memory_space<vmem>>, vector<32x128xf32>
    %369 = arith.addf %367, %368 : vector<32x128xf32>
    %cst_313 = arith.constant 2.500000e-01 : f32
    %370 = vector.broadcast %cst_313 : f32 to vector<32x128xf32>
    %371 = arith.mulf %370, %369 : vector<32x128xf32>
    %372 = arith.truncf %371 : vector<32x128xf32> to vector<32x128xbf16>
    %c64_314 = arith.constant 64 : index
    %c640_315 = arith.constant 640 : index
    %373 = vector.load %arg11[%c64_314, %c640_315] : memref<128x2048xbf16, #tpu.memory_space<vmem>>, vector<32x128xbf16>
    tpu.vector_store %arg11[%c64_314, %c640_315], %372 {strides = array<i32>} : memref<128x2048xbf16, #tpu.memory_space<vmem>>, vector<32x128xbf16>,
    %c0_316 = arith.constant 0 : index
    %c2432_317 = arith.constant 2432 : index
    %374 = vector.load %arg10[%c0_316, %c2432_317] : memref<32x8192xf32, #tpu.memory_space<vmem>>, vector<32x128xf32>
    %c0_318 = arith.constant 0 : index
    %c2560_319 = arith.constant 2560 : index
    %375 = vector.load %arg10[%c0_318, %c2560_319] : memref<32x8192xf32, #tpu.memory_space<vmem>>, vector<32x128xf32>
    %376 = arith.addf %374, %375 : vector<32x128xf32>
    %c0_320 = arith.constant 0 : index
    %c3456_321 = arith.constant 3456 : index
    %377 = vector.load %arg10[%c0_320, %c3456_321] : memref<32x8192xf32, #tpu.memory_space<vmem>>, vector<32x128xf32>
    %378 = arith.addf %376, %377 : vector<32x128xf32>
    %c0_322 = arith.constant 0 : index
    %c3584_323 = arith.constant 3584 : index
    %379 = vector.load %arg10[%c0_322, %c3584_323] : memref<32x8192xf32, #tpu.memory_space<vmem>>, vector<32x128xf32>
    %380 = arith.addf %378, %379 : vector<32x128xf32>
    %cst_324 = arith.constant 2.500000e-01 : f32
    %381 = vector.broadcast %cst_324 : f32 to vector<32x128xf32>
    %382 = arith.mulf %381, %380 : vector<32x128xf32>
    %383 = arith.truncf %382 : vector<32x128xf32> to vector<32x128xbf16>
    %c64_325 = arith.constant 64 : index
    %c768_326 = arith.constant 768 : index
    %384 = vector.load %arg11[%c64_325, %c768_326] : memref<128x2048xbf16, #tpu.memory_space<vmem>>, vector<32x128xbf16>
    tpu.vector_store %arg11[%c64_325, %c768_326], %383 {strides = array<i32>} : memref<128x2048xbf16, #tpu.memory_space<vmem>>, vector<32x128xbf16>,
    %c0_327 = arith.constant 0 : index
    %c2688_328 = arith.constant 2688 : index
    %385 = vector.load %arg10[%c0_327, %c2688_328] : memref<32x8192xf32, #tpu.memory_space<vmem>>, vector<32x128xf32>
    %c0_329 = arith.constant 0 : index
    %c2816_330 = arith.constant 2816 : index
    %386 = vector.load %arg10[%c0_329, %c2816_330] : memref<32x8192xf32, #tpu.memory_space<vmem>>, vector<32x128xf32>
    %387 = arith.addf %385, %386 : vector<32x128xf32>
    %c0_331 = arith.constant 0 : index
    %c3712_332 = arith.constant 3712 : index
    %388 = vector.load %arg10[%c0_331, %c3712_332] : memref<32x8192xf32, #tpu.memory_space<vmem>>, vector<32x128xf32>
    %389 = arith.addf %387, %388 : vector<32x128xf32>
    %c0_333 = arith.constant 0 : index
    %c3840_334 = arith.constant 3840 : index
    %390 = vector.load %arg10[%c0_333, %c3840_334] : memref<32x8192xf32, #tpu.memory_space<vmem>>, vector<32x128xf32>
    %391 = arith.addf %389, %390 : vector<32x128xf32>
    %cst_335 = arith.constant 2.500000e-01 : f32
    %392 = vector.broadcast %cst_335 : f32 to vector<32x128xf32>
    %393 = arith.mulf %392, %391 : vector<32x128xf32>
    %394 = arith.truncf %393 : vector<32x128xf32> to vector<32x128xbf16>
    %c64_336 = arith.constant 64 : index
    %c896_337 = arith.constant 896 : index
    %395 = vector.load %arg11[%c64_336, %c896_337] : memref<128x2048xbf16, #tpu.memory_space<vmem>>, vector<32x128xbf16>
    tpu.vector_store %arg11[%c64_336, %c896_337], %394 {strides = array<i32>} : memref<128x2048xbf16, #tpu.memory_space<vmem>>, vector<32x128xbf16>,
    %c0_338 = arith.constant 0 : index
    %c4096_339 = arith.constant 4096 : index
    %396 = vector.load %arg10[%c0_338, %c4096_339] : memref<32x8192xf32, #tpu.memory_space<vmem>>, vector<32x128xf32>
    %c0_340 = arith.constant 0 : index
    %c5120_341 = arith.constant 5120 : index
    %397 = vector.load %arg10[%c0_340, %c5120_341] : memref<32x8192xf32, #tpu.memory_space<vmem>>, vector<32x128xf32>
    %398 = arith.addf %396, %397 : vector<32x128xf32>
    %cst_342 = arith.constant 2.500000e-01 : f32
    %399 = vector.broadcast %cst_342 : f32 to vector<32x128xf32>
    %400 = arith.mulf %399, %398 : vector<32x128xf32>
    %401 = arith.truncf %400 : vector<32x128xf32> to vector<32x128xbf16>
    %c64_343 = arith.constant 64 : index
    %c1024_344 = arith.constant 1024 : index
    %402 = vector.load %arg11[%c64_343, %c1024_344] : memref<128x2048xbf16, #tpu.memory_space<vmem>>, vector<32x128xbf16>
    tpu.vector_store %arg11[%c64_343, %c1024_344], %401 {strides = array<i32>} : memref<128x2048xbf16, #tpu.memory_space<vmem>>, vector<32x128xbf16>,
    %c0_345 = arith.constant 0 : index
    %c4224_346 = arith.constant 4224 : index
    %403 = vector.load %arg10[%c0_345, %c4224_346] : memref<32x8192xf32, #tpu.memory_space<vmem>>, vector<32x128xf32>
    %c0_347 = arith.constant 0 : index
    %c4352_348 = arith.constant 4352 : index
    %404 = vector.load %arg10[%c0_347, %c4352_348] : memref<32x8192xf32, #tpu.memory_space<vmem>>, vector<32x128xf32>
    %405 = arith.addf %403, %404 : vector<32x128xf32>
    %c0_349 = arith.constant 0 : index
    %c5248_350 = arith.constant 5248 : index
    %406 = vector.load %arg10[%c0_349, %c5248_350] : memref<32x8192xf32, #tpu.memory_space<vmem>>, vector<32x128xf32>
    %407 = arith.addf %405, %406 : vector<32x128xf32>
    %c0_351 = arith.constant 0 : index
    %c5376_352 = arith.constant 5376 : index
    %408 = vector.load %arg10[%c0_351, %c5376_352] : memref<32x8192xf32, #tpu.memory_space<vmem>>, vector<32x128xf32>
    %409 = arith.addf %407, %408 : vector<32x128xf32>
    %cst_353 = arith.constant 2.500000e-01 : f32
    %410 = vector.broadcast %cst_353 : f32 to vector<32x128xf32>
    %411 = arith.mulf %410, %409 : vector<32x128xf32>
    %412 = arith.truncf %411 : vector<32x128xf32> to vector<32x128xbf16>
    %c64_354 = arith.constant 64 : index
    %c1152_355 = arith.constant 1152 : index
    %413 = vector.load %arg11[%c64_354, %c1152_355] : memref<128x2048xbf16, #tpu.memory_space<vmem>>, vector<32x128xbf16>
    tpu.vector_store %arg11[%c64_354, %c1152_355], %412 {strides = array<i32>} : memref<128x2048xbf16, #tpu.memory_space<vmem>>, vector<32x128xbf16>,
    %c0_356 = arith.constant 0 : index
    %c4480_357 = arith.constant 4480 : index
    %414 = vector.load %arg10[%c0_356, %c4480_357] : memref<32x8192xf32, #tpu.memory_space<vmem>>, vector<32x128xf32>
    %c0_358 = arith.constant 0 : index
    %c4608_359 = arith.constant 4608 : index
    %415 = vector.load %arg10[%c0_358, %c4608_359] : memref<32x8192xf32, #tpu.memory_space<vmem>>, vector<32x128xf32>
    %416 = arith.addf %414, %415 : vector<32x128xf32>
    %c0_360 = arith.constant 0 : index
    %c5504_361 = arith.constant 5504 : index
    %417 = vector.load %arg10[%c0_360, %c5504_361] : memref<32x8192xf32, #tpu.memory_space<vmem>>, vector<32x128xf32>
    %418 = arith.addf %416, %417 : vector<32x128xf32>
    %c0_362 = arith.constant 0 : index
    %c5632_363 = arith.constant 5632 : index
    %419 = vector.load %arg10[%c0_362, %c5632_363] : memref<32x8192xf32, #tpu.memory_space<vmem>>, vector<32x128xf32>
    %420 = arith.addf %418, %419 : vector<32x128xf32>
    %cst_364 = arith.constant 2.500000e-01 : f32
    %421 = vector.broadcast %cst_364 : f32 to vector<32x128xf32>
    %422 = arith.mulf %421, %420 : vector<32x128xf32>
    %423 = arith.truncf %422 : vector<32x128xf32> to vector<32x128xbf16>
    %c64_365 = arith.constant 64 : index
    %c1280_366 = arith.constant 1280 : index
    %424 = vector.load %arg11[%c64_365, %c1280_366] : memref<128x2048xbf16, #tpu.memory_space<vmem>>, vector<32x128xbf16>
    tpu.vector_store %arg11[%c64_365, %c1280_366], %423 {strides = array<i32>} : memref<128x2048xbf16, #tpu.memory_space<vmem>>, vector<32x128xbf16>,
    %c0_367 = arith.constant 0 : index
    %c4736_368 = arith.constant 4736 : index
    %425 = vector.load %arg10[%c0_367, %c4736_368] : memref<32x8192xf32, #tpu.memory_space<vmem>>, vector<32x128xf32>
    %c0_369 = arith.constant 0 : index
    %c4864_370 = arith.constant 4864 : index
    %426 = vector.load %arg10[%c0_369, %c4864_370] : memref<32x8192xf32, #tpu.memory_space<vmem>>, vector<32x128xf32>
    %427 = arith.addf %425, %426 : vector<32x128xf32>
    %c0_371 = arith.constant 0 : index
    %c5760_372 = arith.constant 5760 : index
    %428 = vector.load %arg10[%c0_371, %c5760_372] : memref<32x8192xf32, #tpu.memory_space<vmem>>, vector<32x128xf32>
    %429 = arith.addf %427, %428 : vector<32x128xf32>
    %c0_373 = arith.constant 0 : index
    %c5888_374 = arith.constant 5888 : index
    %430 = vector.load %arg10[%c0_373, %c5888_374] : memref<32x8192xf32, #tpu.memory_space<vmem>>, vector<32x128xf32>
    %431 = arith.addf %429, %430 : vector<32x128xf32>
    %cst_375 = arith.constant 2.500000e-01 : f32
    %432 = vector.broadcast %cst_375 : f32 to vector<32x128xf32>
    %433 = arith.mulf %432, %431 : vector<32x128xf32>
    %434 = arith.truncf %433 : vector<32x128xf32> to vector<32x128xbf16>
    %c64_376 = arith.constant 64 : index
    %c1408_377 = arith.constant 1408 : index
    %435 = vector.load %arg11[%c64_376, %c1408_377] : memref<128x2048xbf16, #tpu.memory_space<vmem>>, vector<32x128xbf16>
    tpu.vector_store %arg11[%c64_376, %c1408_377], %434 {strides = array<i32>} : memref<128x2048xbf16, #tpu.memory_space<vmem>>, vector<32x128xbf16>,
    %c0_378 = arith.constant 0 : index
    %c6144_379 = arith.constant 6144 : index
    %436 = vector.load %arg10[%c0_378, %c6144_379] : memref<32x8192xf32, #tpu.memory_space<vmem>>, vector<32x128xf32>
    %c0_380 = arith.constant 0 : index
    %c7168 = arith.constant 7168 : index
    %437 = vector.load %arg10[%c0_380, %c7168] : memref<32x8192xf32, #tpu.memory_space<vmem>>, vector<32x128xf32>
    %438 = arith.addf %436, %437 : vector<32x128xf32>
    %cst_381 = arith.constant 2.500000e-01 : f32
    %439 = vector.broadcast %cst_381 : f32 to vector<32x128xf32>
    %440 = arith.mulf %439, %438 : vector<32x128xf32>
    %441 = arith.truncf %440 : vector<32x128xf32> to vector<32x128xbf16>
    %c64_382 = arith.constant 64 : index
    %c1536_383 = arith.constant 1536 : index
    %442 = vector.load %arg11[%c64_382, %c1536_383] : memref<128x2048xbf16, #tpu.memory_space<vmem>>, vector<32x128xbf16>
    tpu.vector_store %arg11[%c64_382, %c1536_383], %441 {strides = array<i32>} : memref<128x2048xbf16, #tpu.memory_space<vmem>>, vector<32x128xbf16>,
    %c0_384 = arith.constant 0 : index
    %c6272_385 = arith.constant 6272 : index
    %443 = vector.load %arg10[%c0_384, %c6272_385] : memref<32x8192xf32, #tpu.memory_space<vmem>>, vector<32x128xf32>
    %c0_386 = arith.constant 0 : index
    %c6400_387 = arith.constant 6400 : index
    %444 = vector.load %arg10[%c0_386, %c6400_387] : memref<32x8192xf32, #tpu.memory_space<vmem>>, vector<32x128xf32>
    %445 = arith.addf %443, %444 : vector<32x128xf32>
    %c0_388 = arith.constant 0 : index
    %c7296 = arith.constant 7296 : index
    %446 = vector.load %arg10[%c0_388, %c7296] : memref<32x8192xf32, #tpu.memory_space<vmem>>, vector<32x128xf32>
    %447 = arith.addf %445, %446 : vector<32x128xf32>
    %c0_389 = arith.constant 0 : index
    %c7424 = arith.constant 7424 : index
    %448 = vector.load %arg10[%c0_389, %c7424] : memref<32x8192xf32, #tpu.memory_space<vmem>>, vector<32x128xf32>
    %449 = arith.addf %447, %448 : vector<32x128xf32>
    %cst_390 = arith.constant 2.500000e-01 : f32
    %450 = vector.broadcast %cst_390 : f32 to vector<32x128xf32>
    %451 = arith.mulf %450, %449 : vector<32x128xf32>
    %452 = arith.truncf %451 : vector<32x128xf32> to vector<32x128xbf16>
    %c64_391 = arith.constant 64 : index
    %c1664_392 = arith.constant 1664 : index
    %453 = vector.load %arg11[%c64_391, %c1664_392] : memref<128x2048xbf16, #tpu.memory_space<vmem>>, vector<32x128xbf16>
    tpu.vector_store %arg11[%c64_391, %c1664_392], %452 {strides = array<i32>} : memref<128x2048xbf16, #tpu.memory_space<vmem>>, vector<32x128xbf16>,
    %c0_393 = arith.constant 0 : index
    %c6528_394 = arith.constant 6528 : index
    %454 = vector.load %arg10[%c0_393, %c6528_394] : memref<32x8192xf32, #tpu.memory_space<vmem>>, vector<32x128xf32>
    %c0_395 = arith.constant 0 : index
    %c6656_396 = arith.constant 6656 : index
    %455 = vector.load %arg10[%c0_395, %c6656_396] : memref<32x8192xf32, #tpu.memory_space<vmem>>, vector<32x128xf32>
    %456 = arith.addf %454, %455 : vector<32x128xf32>
    %c0_397 = arith.constant 0 : index
    %c7552 = arith.constant 7552 : index
    %457 = vector.load %arg10[%c0_397, %c7552] : memref<32x8192xf32, #tpu.memory_space<vmem>>, vector<32x128xf32>
    %458 = arith.addf %456, %457 : vector<32x128xf32>
    %c0_398 = arith.constant 0 : index
    %c7680 = arith.constant 7680 : index
    %459 = vector.load %arg10[%c0_398, %c7680] : memref<32x8192xf32, #tpu.memory_space<vmem>>, vector<32x128xf32>
    %460 = arith.addf %458, %459 : vector<32x128xf32>
    %cst_399 = arith.constant 2.500000e-01 : f32
    %461 = vector.broadcast %cst_399 : f32 to vector<32x128xf32>
    %462 = arith.mulf %461, %460 : vector<32x128xf32>
    %463 = arith.truncf %462 : vector<32x128xf32> to vector<32x128xbf16>
    %c64_400 = arith.constant 64 : index
    %c1792_401 = arith.constant 1792 : index
    %464 = vector.load %arg11[%c64_400, %c1792_401] : memref<128x2048xbf16, #tpu.memory_space<vmem>>, vector<32x128xbf16>
    tpu.vector_store %arg11[%c64_400, %c1792_401], %463 {strides = array<i32>} : memref<128x2048xbf16, #tpu.memory_space<vmem>>, vector<32x128xbf16>,
    %c0_402 = arith.constant 0 : index
    %c6784_403 = arith.constant 6784 : index
    %465 = vector.load %arg10[%c0_402, %c6784_403] : memref<32x8192xf32, #tpu.memory_space<vmem>>, vector<32x128xf32>
    %c0_404 = arith.constant 0 : index
    %c6912_405 = arith.constant 6912 : index
    %466 = vector.load %arg10[%c0_404, %c6912_405] : memref<32x8192xf32, #tpu.memory_space<vmem>>, vector<32x128xf32>
    %467 = arith.addf %465, %466 : vector<32x128xf32>
    %c0_406 = arith.constant 0 : index
    %c7808 = arith.constant 7808 : index
    %468 = vector.load %arg10[%c0_406, %c7808] : memref<32x8192xf32, #tpu.memory_space<vmem>>, vector<32x128xf32>
    %469 = arith.addf %467, %468 : vector<32x128xf32>
    %c0_407 = arith.constant 0 : index
    %c7936 = arith.constant 7936 : index
    %470 = vector.load %arg10[%c0_407, %c7936] : memref<32x8192xf32, #tpu.memory_space<vmem>>, vector<32x128xf32>
    %471 = arith.addf %469, %470 : vector<32x128xf32>
    %cst_408 = arith.constant 2.500000e-01 : f32
    %472 = vector.broadcast %cst_408 : f32 to vector<32x128xf32>
    %473 = arith.mulf %472, %471 : vector<32x128xf32>
    %474 = arith.truncf %473 : vector<32x128xf32> to vector<32x128xbf16>
    %c64_409 = arith.constant 64 : index
    %c1920_410 = arith.constant 1920 : index
    %475 = vector.load %arg11[%c64_409, %c1920_410] : memref<128x2048xbf16, #tpu.memory_space<vmem>>, vector<32x128xbf16>
    tpu.vector_store %arg11[%c64_409, %c1920_410], %474 {strides = array<i32>} : memref<128x2048xbf16, #tpu.memory_space<vmem>>, vector<32x128xbf16>,
    %c0_411 = arith.constant 0 : index
    %c0_412 = arith.constant 0 : index
    %476 = vector.load %arg10[%c0_411, %c0_412] : memref<32x8192xf32, #tpu.memory_space<vmem>>, vector<32x128xf32>
    %c0_413 = arith.constant 0 : index
    %c128_414 = arith.constant 128 : index
    %477 = vector.load %arg10[%c0_413, %c128_414] : memref<32x8192xf32, #tpu.memory_space<vmem>>, vector<32x128xf32>
    %478 = arith.addf %476, %477 : vector<32x128xf32>
    %c0_415 = arith.constant 0 : index
    %c1024_416 = arith.constant 1024 : index
    %479 = vector.load %arg10[%c0_415, %c1024_416] : memref<32x8192xf32, #tpu.memory_space<vmem>>, vector<32x128xf32>
    %480 = arith.addf %478, %479 : vector<32x128xf32>
    %c0_417 = arith.constant 0 : index
    %c1152_418 = arith.constant 1152 : index
    %481 = vector.load %arg10[%c0_417, %c1152_418] : memref<32x8192xf32, #tpu.memory_space<vmem>>, vector<32x128xf32>
    %482 = arith.addf %480, %481 : vector<32x128xf32>
    %cst_419 = arith.constant 2.500000e-01 : f32
    %483 = vector.broadcast %cst_419 : f32 to vector<32x128xf32>
    %484 = arith.mulf %483, %482 : vector<32x128xf32>
    %485 = arith.truncf %484 : vector<32x128xf32> to vector<32x128xbf16>
    %c96 = arith.constant 96 : index
    %c0_420 = arith.constant 0 : index
    %486 = vector.load %arg11[%c96, %c0_420] : memref<128x2048xbf16, #tpu.memory_space<vmem>>, vector<32x128xbf16>
    tpu.vector_store %arg11[%c96, %c0_420], %485 {strides = array<i32>} : memref<128x2048xbf16, #tpu.memory_space<vmem>>, vector<32x128xbf16>,
    %c0_421 = arith.constant 0 : index
    %c256_422 = arith.constant 256 : index
    %487 = vector.load %arg10[%c0_421, %c256_422] : memref<32x8192xf32, #tpu.memory_space<vmem>>, vector<32x128xf32>
    %c0_423 = arith.constant 0 : index
    %c384_424 = arith.constant 384 : index
    %488 = vector.load %arg10[%c0_423, %c384_424] : memref<32x8192xf32, #tpu.memory_space<vmem>>, vector<32x128xf32>
    %489 = arith.addf %487, %488 : vector<32x128xf32>
    %c0_425 = arith.constant 0 : index
    %c1280_426 = arith.constant 1280 : index
    %490 = vector.load %arg10[%c0_425, %c1280_426] : memref<32x8192xf32, #tpu.memory_space<vmem>>, vector<32x128xf32>
    %491 = arith.addf %489, %490 : vector<32x128xf32>
    %c0_427 = arith.constant 0 : index
    %c1408_428 = arith.constant 1408 : index
    %492 = vector.load %arg10[%c0_427, %c1408_428] : memref<32x8192xf32, #tpu.memory_space<vmem>>, vector<32x128xf32>
    %493 = arith.addf %491, %492 : vector<32x128xf32>
    %cst_429 = arith.constant 2.500000e-01 : f32
    %494 = vector.broadcast %cst_429 : f32 to vector<32x128xf32>
    %495 = arith.mulf %494, %493 : vector<32x128xf32>
    %496 = arith.truncf %495 : vector<32x128xf32> to vector<32x128xbf16>
    %c96_430 = arith.constant 96 : index
    %c128_431 = arith.constant 128 : index
    %497 = vector.load %arg11[%c96_430, %c128_431] : memref<128x2048xbf16, #tpu.memory_space<vmem>>, vector<32x128xbf16>
    tpu.vector_store %arg11[%c96_430, %c128_431], %496 {strides = array<i32>} : memref<128x2048xbf16, #tpu.memory_space<vmem>>, vector<32x128xbf16>,
    %c0_432 = arith.constant 0 : index
    %c512_433 = arith.constant 512 : index
    %498 = vector.load %arg10[%c0_432, %c512_433] : memref<32x8192xf32, #tpu.memory_space<vmem>>, vector<32x128xf32>
    %c0_434 = arith.constant 0 : index
    %c640_435 = arith.constant 640 : index
    %499 = vector.load %arg10[%c0_434, %c640_435] : memref<32x8192xf32, #tpu.memory_space<vmem>>, vector<32x128xf32>
    %500 = arith.addf %498, %499 : vector<32x128xf32>
    %c0_436 = arith.constant 0 : index
    %c1536_437 = arith.constant 1536 : index
    %501 = vector.load %arg10[%c0_436, %c1536_437] : memref<32x8192xf32, #tpu.memory_space<vmem>>, vector<32x128xf32>
    %502 = arith.addf %500, %501 : vector<32x128xf32>
    %c0_438 = arith.constant 0 : index
    %c1664_439 = arith.constant 1664 : index
    %503 = vector.load %arg10[%c0_438, %c1664_439] : memref<32x8192xf32, #tpu.memory_space<vmem>>, vector<32x128xf32>
    %504 = arith.addf %502, %503 : vector<32x128xf32>
    %cst_440 = arith.constant 2.500000e-01 : f32
    %505 = vector.broadcast %cst_440 : f32 to vector<32x128xf32>
    %506 = arith.mulf %505, %504 : vector<32x128xf32>
    %507 = arith.truncf %506 : vector<32x128xf32> to vector<32x128xbf16>
    %c96_441 = arith.constant 96 : index
    %c256_442 = arith.constant 256 : index
    %508 = vector.load %arg11[%c96_441, %c256_442] : memref<128x2048xbf16, #tpu.memory_space<vmem>>, vector<32x128xbf16>
    tpu.vector_store %arg11[%c96_441, %c256_442], %507 {strides = array<i32>} : memref<128x2048xbf16, #tpu.memory_space<vmem>>, vector<32x128xbf16>,
    %c0_443 = arith.constant 0 : index
    %c768_444 = arith.constant 768 : index
    %509 = vector.load %arg10[%c0_443, %c768_444] : memref<32x8192xf32, #tpu.memory_space<vmem>>, vector<32x128xf32>
    %c0_445 = arith.constant 0 : index
    %c896_446 = arith.constant 896 : index
    %510 = vector.load %arg10[%c0_445, %c896_446] : memref<32x8192xf32, #tpu.memory_space<vmem>>, vector<32x128xf32>
    %511 = arith.addf %509, %510 : vector<32x128xf32>
    %c0_447 = arith.constant 0 : index
    %c1792_448 = arith.constant 1792 : index
    %512 = vector.load %arg10[%c0_447, %c1792_448] : memref<32x8192xf32, #tpu.memory_space<vmem>>, vector<32x128xf32>
    %513 = arith.addf %511, %512 : vector<32x128xf32>
    %c0_449 = arith.constant 0 : index
    %c1920_450 = arith.constant 1920 : index
    %514 = vector.load %arg10[%c0_449, %c1920_450] : memref<32x8192xf32, #tpu.memory_space<vmem>>, vector<32x128xf32>
    %515 = arith.addf %513, %514 : vector<32x128xf32>
    %cst_451 = arith.constant 2.500000e-01 : f32
    %516 = vector.broadcast %cst_451 : f32 to vector<32x128xf32>
    %517 = arith.mulf %516, %515 : vector<32x128xf32>
    %518 = arith.truncf %517 : vector<32x128xf32> to vector<32x128xbf16>
    %c96_452 = arith.constant 96 : index
    %c384_453 = arith.constant 384 : index
    %519 = vector.load %arg11[%c96_452, %c384_453] : memref<128x2048xbf16, #tpu.memory_space<vmem>>, vector<32x128xbf16>
    tpu.vector_store %arg11[%c96_452, %c384_453], %518 {strides = array<i32>} : memref<128x2048xbf16, #tpu.memory_space<vmem>>, vector<32x128xbf16>,
    %c0_454 = arith.constant 0 : index
    %c2048_455 = arith.constant 2048 : index
    %520 = vector.load %arg10[%c0_454, %c2048_455] : memref<32x8192xf32, #tpu.memory_space<vmem>>, vector<32x128xf32>
    %c0_456 = arith.constant 0 : index
    %c2176_457 = arith.constant 2176 : index
    %521 = vector.load %arg10[%c0_456, %c2176_457] : memref<32x8192xf32, #tpu.memory_space<vmem>>, vector<32x128xf32>
    %522 = arith.addf %520, %521 : vector<32x128xf32>
    %c0_458 = arith.constant 0 : index
    %c3072_459 = arith.constant 3072 : index
    %523 = vector.load %arg10[%c0_458, %c3072_459] : memref<32x8192xf32, #tpu.memory_space<vmem>>, vector<32x128xf32>
    %524 = arith.addf %522, %523 : vector<32x128xf32>
    %c0_460 = arith.constant 0 : index
    %c3200_461 = arith.constant 3200 : index
    %525 = vector.load %arg10[%c0_460, %c3200_461] : memref<32x8192xf32, #tpu.memory_space<vmem>>, vector<32x128xf32>
    %526 = arith.addf %524, %525 : vector<32x128xf32>
    %cst_462 = arith.constant 2.500000e-01 : f32
    %527 = vector.broadcast %cst_462 : f32 to vector<32x128xf32>
    %528 = arith.mulf %527, %526 : vector<32x128xf32>
    %529 = arith.truncf %528 : vector<32x128xf32> to vector<32x128xbf16>
    %c96_463 = arith.constant 96 : index
    %c512_464 = arith.constant 512 : index
    %530 = vector.load %arg11[%c96_463, %c512_464] : memref<128x2048xbf16, #tpu.memory_space<vmem>>, vector<32x128xbf16>
    tpu.vector_store %arg11[%c96_463, %c512_464], %529 {strides = array<i32>} : memref<128x2048xbf16, #tpu.memory_space<vmem>>, vector<32x128xbf16>,
    %c0_465 = arith.constant 0 : index
    %c2304_466 = arith.constant 2304 : index
    %531 = vector.load %arg10[%c0_465, %c2304_466] : memref<32x8192xf32, #tpu.memory_space<vmem>>, vector<32x128xf32>
    %c0_467 = arith.constant 0 : index
    %c2432_468 = arith.constant 2432 : index
    %532 = vector.load %arg10[%c0_467, %c2432_468] : memref<32x8192xf32, #tpu.memory_space<vmem>>, vector<32x128xf32>
    %533 = arith.addf %531, %532 : vector<32x128xf32>
    %c0_469 = arith.constant 0 : index
    %c3328_470 = arith.constant 3328 : index
    %534 = vector.load %arg10[%c0_469, %c3328_470] : memref<32x8192xf32, #tpu.memory_space<vmem>>, vector<32x128xf32>
    %535 = arith.addf %533, %534 : vector<32x128xf32>
    %c0_471 = arith.constant 0 : index
    %c3456_472 = arith.constant 3456 : index
    %536 = vector.load %arg10[%c0_471, %c3456_472] : memref<32x8192xf32, #tpu.memory_space<vmem>>, vector<32x128xf32>
    %537 = arith.addf %535, %536 : vector<32x128xf32>
    %cst_473 = arith.constant 2.500000e-01 : f32
    %538 = vector.broadcast %cst_473 : f32 to vector<32x128xf32>
    %539 = arith.mulf %538, %537 : vector<32x128xf32>
    %540 = arith.truncf %539 : vector<32x128xf32> to vector<32x128xbf16>
    %c96_474 = arith.constant 96 : index
    %c640_475 = arith.constant 640 : index
    %541 = vector.load %arg11[%c96_474, %c640_475] : memref<128x2048xbf16, #tpu.memory_space<vmem>>, vector<32x128xbf16>
    tpu.vector_store %arg11[%c96_474, %c640_475], %540 {strides = array<i32>} : memref<128x2048xbf16, #tpu.memory_space<vmem>>, vector<32x128xbf16>,
    %c0_476 = arith.constant 0 : index
    %c2560_477 = arith.constant 2560 : index
    %542 = vector.load %arg10[%c0_476, %c2560_477] : memref<32x8192xf32, #tpu.memory_space<vmem>>, vector<32x128xf32>
    %c0_478 = arith.constant 0 : index
    %c2688_479 = arith.constant 2688 : index
    %543 = vector.load %arg10[%c0_478, %c2688_479] : memref<32x8192xf32, #tpu.memory_space<vmem>>, vector<32x128xf32>
    %544 = arith.addf %542, %543 : vector<32x128xf32>
    %c0_480 = arith.constant 0 : index
    %c3584_481 = arith.constant 3584 : index
    %545 = vector.load %arg10[%c0_480, %c3584_481] : memref<32x8192xf32, #tpu.memory_space<vmem>>, vector<32x128xf32>
    %546 = arith.addf %544, %545 : vector<32x128xf32>
    %c0_482 = arith.constant 0 : index
    %c3712_483 = arith.constant 3712 : index
    %547 = vector.load %arg10[%c0_482, %c3712_483] : memref<32x8192xf32, #tpu.memory_space<vmem>>, vector<32x128xf32>
    %548 = arith.addf %546, %547 : vector<32x128xf32>
    %cst_484 = arith.constant 2.500000e-01 : f32
    %549 = vector.broadcast %cst_484 : f32 to vector<32x128xf32>
    %550 = arith.mulf %549, %548 : vector<32x128xf32>
    %551 = arith.truncf %550 : vector<32x128xf32> to vector<32x128xbf16>
    %c96_485 = arith.constant 96 : index
    %c768_486 = arith.constant 768 : index
    %552 = vector.load %arg11[%c96_485, %c768_486] : memref<128x2048xbf16, #tpu.memory_space<vmem>>, vector<32x128xbf16>
    tpu.vector_store %arg11[%c96_485, %c768_486], %551 {strides = array<i32>} : memref<128x2048xbf16, #tpu.memory_space<vmem>>, vector<32x128xbf16>,
    %c0_487 = arith.constant 0 : index
    %c2816_488 = arith.constant 2816 : index
    %553 = vector.load %arg10[%c0_487, %c2816_488] : memref<32x8192xf32, #tpu.memory_space<vmem>>, vector<32x128xf32>
    %c0_489 = arith.constant 0 : index
    %c2944_490 = arith.constant 2944 : index
    %554 = vector.load %arg10[%c0_489, %c2944_490] : memref<32x8192xf32, #tpu.memory_space<vmem>>, vector<32x128xf32>
    %555 = arith.addf %553, %554 : vector<32x128xf32>
    %c0_491 = arith.constant 0 : index
    %c3840_492 = arith.constant 3840 : index
    %556 = vector.load %arg10[%c0_491, %c3840_492] : memref<32x8192xf32, #tpu.memory_space<vmem>>, vector<32x128xf32>
    %557 = arith.addf %555, %556 : vector<32x128xf32>
    %c0_493 = arith.constant 0 : index
    %c3968_494 = arith.constant 3968 : index
    %558 = vector.load %arg10[%c0_493, %c3968_494] : memref<32x8192xf32, #tpu.memory_space<vmem>>, vector<32x128xf32>
    %559 = arith.addf %557, %558 : vector<32x128xf32>
    %cst_495 = arith.constant 2.500000e-01 : f32
    %560 = vector.broadcast %cst_495 : f32 to vector<32x128xf32>
    %561 = arith.mulf %560, %559 : vector<32x128xf32>
    %562 = arith.truncf %561 : vector<32x128xf32> to vector<32x128xbf16>
    %c96_496 = arith.constant 96 : index
    %c896_497 = arith.constant 896 : index
    %563 = vector.load %arg11[%c96_496, %c896_497] : memref<128x2048xbf16, #tpu.memory_space<vmem>>, vector<32x128xbf16>
    tpu.vector_store %arg11[%c96_496, %c896_497], %562 {strides = array<i32>} : memref<128x2048xbf16, #tpu.memory_space<vmem>>, vector<32x128xbf16>,
    %c0_498 = arith.constant 0 : index
    %c4096_499 = arith.constant 4096 : index
    %564 = vector.load %arg10[%c0_498, %c4096_499] : memref<32x8192xf32, #tpu.memory_space<vmem>>, vector<32x128xf32>
    %c0_500 = arith.constant 0 : index
    %c4224_501 = arith.constant 4224 : index
    %565 = vector.load %arg10[%c0_500, %c4224_501] : memref<32x8192xf32, #tpu.memory_space<vmem>>, vector<32x128xf32>
    %566 = arith.addf %564, %565 : vector<32x128xf32>
    %c0_502 = arith.constant 0 : index
    %c5120_503 = arith.constant 5120 : index
    %567 = vector.load %arg10[%c0_502, %c5120_503] : memref<32x8192xf32, #tpu.memory_space<vmem>>, vector<32x128xf32>
    %568 = arith.addf %566, %567 : vector<32x128xf32>
    %c0_504 = arith.constant 0 : index
    %c5248_505 = arith.constant 5248 : index
    %569 = vector.load %arg10[%c0_504, %c5248_505] : memref<32x8192xf32, #tpu.memory_space<vmem>>, vector<32x128xf32>
    %570 = arith.addf %568, %569 : vector<32x128xf32>
    %cst_506 = arith.constant 2.500000e-01 : f32
    %571 = vector.broadcast %cst_506 : f32 to vector<32x128xf32>
    %572 = arith.mulf %571, %570 : vector<32x128xf32>
    %573 = arith.truncf %572 : vector<32x128xf32> to vector<32x128xbf16>
    %c96_507 = arith.constant 96 : index
    %c1024_508 = arith.constant 1024 : index
    %574 = vector.load %arg11[%c96_507, %c1024_508] : memref<128x2048xbf16, #tpu.memory_space<vmem>>, vector<32x128xbf16>
    tpu.vector_store %arg11[%c96_507, %c1024_508], %573 {strides = array<i32>} : memref<128x2048xbf16, #tpu.memory_space<vmem>>, vector<32x128xbf16>,
    %c0_509 = arith.constant 0 : index
    %c4352_510 = arith.constant 4352 : index
    %575 = vector.load %arg10[%c0_509, %c4352_510] : memref<32x8192xf32, #tpu.memory_space<vmem>>, vector<32x128xf32>
    %c0_511 = arith.constant 0 : index
    %c4480_512 = arith.constant 4480 : index
    %576 = vector.load %arg10[%c0_511, %c4480_512] : memref<32x8192xf32, #tpu.memory_space<vmem>>, vector<32x128xf32>
    %577 = arith.addf %575, %576 : vector<32x128xf32>
    %c0_513 = arith.constant 0 : index
    %c5376_514 = arith.constant 5376 : index
    %578 = vector.load %arg10[%c0_513, %c5376_514] : memref<32x8192xf32, #tpu.memory_space<vmem>>, vector<32x128xf32>
    %579 = arith.addf %577, %578 : vector<32x128xf32>
    %c0_515 = arith.constant 0 : index
    %c5504_516 = arith.constant 5504 : index
    %580 = vector.load %arg10[%c0_515, %c5504_516] : memref<32x8192xf32, #tpu.memory_space<vmem>>, vector<32x128xf32>
    %581 = arith.addf %579, %580 : vector<32x128xf32>
    %cst_517 = arith.constant 2.500000e-01 : f32
    %582 = vector.broadcast %cst_517 : f32 to vector<32x128xf32>
    %583 = arith.mulf %582, %581 : vector<32x128xf32>
    %584 = arith.truncf %583 : vector<32x128xf32> to vector<32x128xbf16>
    %c96_518 = arith.constant 96 : index
    %c1152_519 = arith.constant 1152 : index
    %585 = vector.load %arg11[%c96_518, %c1152_519] : memref<128x2048xbf16, #tpu.memory_space<vmem>>, vector<32x128xbf16>
    tpu.vector_store %arg11[%c96_518, %c1152_519], %584 {strides = array<i32>} : memref<128x2048xbf16, #tpu.memory_space<vmem>>, vector<32x128xbf16>,
    %c0_520 = arith.constant 0 : index
    %c4608_521 = arith.constant 4608 : index
    %586 = vector.load %arg10[%c0_520, %c4608_521] : memref<32x8192xf32, #tpu.memory_space<vmem>>, vector<32x128xf32>
    %c0_522 = arith.constant 0 : index
    %c4736_523 = arith.constant 4736 : index
    %587 = vector.load %arg10[%c0_522, %c4736_523] : memref<32x8192xf32, #tpu.memory_space<vmem>>, vector<32x128xf32>
    %588 = arith.addf %586, %587 : vector<32x128xf32>
    %c0_524 = arith.constant 0 : index
    %c5632_525 = arith.constant 5632 : index
    %589 = vector.load %arg10[%c0_524, %c5632_525] : memref<32x8192xf32, #tpu.memory_space<vmem>>, vector<32x128xf32>
    %590 = arith.addf %588, %589 : vector<32x128xf32>
    %c0_526 = arith.constant 0 : index
    %c5760_527 = arith.constant 5760 : index
    %591 = vector.load %arg10[%c0_526, %c5760_527] : memref<32x8192xf32, #tpu.memory_space<vmem>>, vector<32x128xf32>
    %592 = arith.addf %590, %591 : vector<32x128xf32>
    %cst_528 = arith.constant 2.500000e-01 : f32
    %593 = vector.broadcast %cst_528 : f32 to vector<32x128xf32>
    %594 = arith.mulf %593, %592 : vector<32x128xf32>
    %595 = arith.truncf %594 : vector<32x128xf32> to vector<32x128xbf16>
    %c96_529 = arith.constant 96 : index
    %c1280_530 = arith.constant 1280 : index
    %596 = vector.load %arg11[%c96_529, %c1280_530] : memref<128x2048xbf16, #tpu.memory_space<vmem>>, vector<32x128xbf16>
    tpu.vector_store %arg11[%c96_529, %c1280_530], %595 {strides = array<i32>} : memref<128x2048xbf16, #tpu.memory_space<vmem>>, vector<32x128xbf16>,
    %c0_531 = arith.constant 0 : index
    %c4864_532 = arith.constant 4864 : index
    %597 = vector.load %arg10[%c0_531, %c4864_532] : memref<32x8192xf32, #tpu.memory_space<vmem>>, vector<32x128xf32>
    %c0_533 = arith.constant 0 : index
    %c4992_534 = arith.constant 4992 : index
    %598 = vector.load %arg10[%c0_533, %c4992_534] : memref<32x8192xf32, #tpu.memory_space<vmem>>, vector<32x128xf32>
    %599 = arith.addf %597, %598 : vector<32x128xf32>
    %c0_535 = arith.constant 0 : index
    %c5888_536 = arith.constant 5888 : index
    %600 = vector.load %arg10[%c0_535, %c5888_536] : memref<32x8192xf32, #tpu.memory_space<vmem>>, vector<32x128xf32>
    %601 = arith.addf %599, %600 : vector<32x128xf32>
    %c0_537 = arith.constant 0 : index
    %c6016_538 = arith.constant 6016 : index
    %602 = vector.load %arg10[%c0_537, %c6016_538] : memref<32x8192xf32, #tpu.memory_space<vmem>>, vector<32x128xf32>
    %603 = arith.addf %601, %602 : vector<32x128xf32>
    %cst_539 = arith.constant 2.500000e-01 : f32
    %604 = vector.broadcast %cst_539 : f32 to vector<32x128xf32>
    %605 = arith.mulf %604, %603 : vector<32x128xf32>
    %606 = arith.truncf %605 : vector<32x128xf32> to vector<32x128xbf16>
    %c96_540 = arith.constant 96 : index
    %c1408_541 = arith.constant 1408 : index
    %607 = vector.load %arg11[%c96_540, %c1408_541] : memref<128x2048xbf16, #tpu.memory_space<vmem>>, vector<32x128xbf16>
    tpu.vector_store %arg11[%c96_540, %c1408_541], %606 {strides = array<i32>} : memref<128x2048xbf16, #tpu.memory_space<vmem>>, vector<32x128xbf16>,
    %c0_542 = arith.constant 0 : index
    %c6144_543 = arith.constant 6144 : index
    %608 = vector.load %arg10[%c0_542, %c6144_543] : memref<32x8192xf32, #tpu.memory_space<vmem>>, vector<32x128xf32>
    %c0_544 = arith.constant 0 : index
    %c6272_545 = arith.constant 6272 : index
    %609 = vector.load %arg10[%c0_544, %c6272_545] : memref<32x8192xf32, #tpu.memory_space<vmem>>, vector<32x128xf32>
    %610 = arith.addf %608, %609 : vector<32x128xf32>
    %c0_546 = arith.constant 0 : index
    %c7168_547 = arith.constant 7168 : index
    %611 = vector.load %arg10[%c0_546, %c7168_547] : memref<32x8192xf32, #tpu.memory_space<vmem>>, vector<32x128xf32>
    %612 = arith.addf %610, %611 : vector<32x128xf32>
    %c0_548 = arith.constant 0 : index
    %c7296_549 = arith.constant 7296 : index
    %613 = vector.load %arg10[%c0_548, %c7296_549] : memref<32x8192xf32, #tpu.memory_space<vmem>>, vector<32x128xf32>
    %614 = arith.addf %612, %613 : vector<32x128xf32>
    %cst_550 = arith.constant 2.500000e-01 : f32
    %615 = vector.broadcast %cst_550 : f32 to vector<32x128xf32>
    %616 = arith.mulf %615, %614 : vector<32x128xf32>
    %617 = arith.truncf %616 : vector<32x128xf32> to vector<32x128xbf16>
    %c96_551 = arith.constant 96 : index
    %c1536_552 = arith.constant 1536 : index
    %618 = vector.load %arg11[%c96_551, %c1536_552] : memref<128x2048xbf16, #tpu.memory_space<vmem>>, vector<32x128xbf16>
    tpu.vector_store %arg11[%c96_551, %c1536_552], %617 {strides = array<i32>} : memref<128x2048xbf16, #tpu.memory_space<vmem>>, vector<32x128xbf16>,
    %c0_553 = arith.constant 0 : index
    %c6400_554 = arith.constant 6400 : index
    %619 = vector.load %arg10[%c0_553, %c6400_554] : memref<32x8192xf32, #tpu.memory_space<vmem>>, vector<32x128xf32>
    %c0_555 = arith.constant 0 : index
    %c6528_556 = arith.constant 6528 : index
    %620 = vector.load %arg10[%c0_555, %c6528_556] : memref<32x8192xf32, #tpu.memory_space<vmem>>, vector<32x128xf32>
    %621 = arith.addf %619, %620 : vector<32x128xf32>
    %c0_557 = arith.constant 0 : index
    %c7424_558 = arith.constant 7424 : index
    %622 = vector.load %arg10[%c0_557, %c7424_558] : memref<32x8192xf32, #tpu.memory_space<vmem>>, vector<32x128xf32>
    %623 = arith.addf %621, %622 : vector<32x128xf32>
    %c0_559 = arith.constant 0 : index
    %c7552_560 = arith.constant 7552 : index
    %624 = vector.load %arg10[%c0_559, %c7552_560] : memref<32x8192xf32, #tpu.memory_space<vmem>>, vector<32x128xf32>
    %625 = arith.addf %623, %624 : vector<32x128xf32>
    %cst_561 = arith.constant 2.500000e-01 : f32
    %626 = vector.broadcast %cst_561 : f32 to vector<32x128xf32>
    %627 = arith.mulf %626, %625 : vector<32x128xf32>
    %628 = arith.truncf %627 : vector<32x128xf32> to vector<32x128xbf16>
    %c96_562 = arith.constant 96 : index
    %c1664_563 = arith.constant 1664 : index
    %629 = vector.load %arg11[%c96_562, %c1664_563] : memref<128x2048xbf16, #tpu.memory_space<vmem>>, vector<32x128xbf16>
    tpu.vector_store %arg11[%c96_562, %c1664_563], %628 {strides = array<i32>} : memref<128x2048xbf16, #tpu.memory_space<vmem>>, vector<32x128xbf16>,
    %c0_564 = arith.constant 0 : index
    %c6656_565 = arith.constant 6656 : index
    %630 = vector.load %arg10[%c0_564, %c6656_565] : memref<32x8192xf32, #tpu.memory_space<vmem>>, vector<32x128xf32>
    %c0_566 = arith.constant 0 : index
    %c6784_567 = arith.constant 6784 : index
    %631 = vector.load %arg10[%c0_566, %c6784_567] : memref<32x8192xf32, #tpu.memory_space<vmem>>, vector<32x128xf32>
    %632 = arith.addf %630, %631 : vector<32x128xf32>
    %c0_568 = arith.constant 0 : index
    %c7680_569 = arith.constant 7680 : index
    %633 = vector.load %arg10[%c0_568, %c7680_569] : memref<32x8192xf32, #tpu.memory_space<vmem>>, vector<32x128xf32>
    %634 = arith.addf %632, %633 : vector<32x128xf32>
    %c0_570 = arith.constant 0 : index
    %c7808_571 = arith.constant 7808 : index
    %635 = vector.load %arg10[%c0_570, %c7808_571] : memref<32x8192xf32, #tpu.memory_space<vmem>>, vector<32x128xf32>
    %636 = arith.addf %634, %635 : vector<32x128xf32>
    %cst_572 = arith.constant 2.500000e-01 : f32
    %637 = vector.broadcast %cst_572 : f32 to vector<32x128xf32>
    %638 = arith.mulf %637, %636 : vector<32x128xf32>
    %639 = arith.truncf %638 : vector<32x128xf32> to vector<32x128xbf16>
    %c96_573 = arith.constant 96 : index
    %c1792_574 = arith.constant 1792 : index
    %640 = vector.load %arg11[%c96_573, %c1792_574] : memref<128x2048xbf16, #tpu.memory_space<vmem>>, vector<32x128xbf16>
    tpu.vector_store %arg11[%c96_573, %c1792_574], %639 {strides = array<i32>} : memref<128x2048xbf16, #tpu.memory_space<vmem>>, vector<32x128xbf16>,
    %c0_575 = arith.constant 0 : index
    %c6912_576 = arith.constant 6912 : index
    %641 = vector.load %arg10[%c0_575, %c6912_576] : memref<32x8192xf32, #tpu.memory_space<vmem>>, vector<32x128xf32>
    %c0_577 = arith.constant 0 : index
    %c7040_578 = arith.constant 7040 : index
    %642 = vector.load %arg10[%c0_577, %c7040_578] : memref<32x8192xf32, #tpu.memory_space<vmem>>, vector<32x128xf32>
    %643 = arith.addf %641, %642 : vector<32x128xf32>
    %c0_579 = arith.constant 0 : index
    %c7936_580 = arith.constant 7936 : index
    %644 = vector.load %arg10[%c0_579, %c7936_580] : memref<32x8192xf32, #tpu.memory_space<vmem>>, vector<32x128xf32>
    %645 = arith.addf %643, %644 : vector<32x128xf32>
    %c0_581 = arith.constant 0 : index
    %c8064 = arith.constant 8064 : index
    %646 = vector.load %arg10[%c0_581, %c8064] : memref<32x8192xf32, #tpu.memory_space<vmem>>, vector<32x128xf32>
    %647 = arith.addf %645, %646 : vector<32x128xf32>
    %cst_582 = arith.constant 2.500000e-01 : f32
    %648 = vector.broadcast %cst_582 : f32 to vector<32x128xf32>
    %649 = arith.mulf %648, %647 : vector<32x128xf32>
    %650 = arith.truncf %649 : vector<32x128xf32> to vector<32x128xbf16>
    %c96_583 = arith.constant 96 : index
    %c1920_584 = arith.constant 1920 : index
    %651 = vector.load %arg11[%c96_583, %c1920_584] : memref<128x2048xbf16, #tpu.memory_space<vmem>>, vector<32x128xbf16>
    tpu.vector_store %arg11[%c96_583, %c1920_584], %650 {strides = array<i32>} : memref<128x2048xbf16, #tpu.memory_space<vmem>>, vector<32x128xbf16>,
    %c0_585 = arith.constant 0 : index
    %c0_586 = arith.constant 0 : index
    %652 = vector.load %arg4[%c0_585, %c0_586] : memref<48x128xbf16, #tpu.memory_space<vmem>>, vector<48x128xbf16>
    %c0_587 = arith.constant 0 : index
    %c0_588 = arith.constant 0 : index
    %653 = vector.load %arg11[%c0_587, %c0_588] : memref<128x2048xbf16, #tpu.memory_space<vmem>>, vector<128x2048xbf16>
    %cst_589 = arith.constant dense<0.000000e+00> : vector<48x2048xf32>
    %654 = tpu.matmul %652, %653, %cst_589 {dimension_numbers = #tpu.dot_dimension_numbers<[1], [0], [0], [1], [0, 0, 1, 1], [], []>} : vector<48x128xbf16>, vector<128x2048xbf16>, vector<48x2048xf32> -> vector<48x2048xf32>
    %c0_590 = arith.constant 0 : index
    %c0_591 = arith.constant 0 : index
    %655 = vector.load %arg5[%c0_590, %c0_591] : memref<48x1xf32, #tpu.memory_space<vmem>>, vector<48x1xf32>
    %656 = vector.broadcast %655 : vector<48x1xf32> to vector<48x2048xf32>
    %657 = arith.addf %654, %656 : vector<48x2048xf32>
    %cst_592 = arith.constant 0.000000e+00 : f32
    %658 = vector.broadcast %cst_592 : f32 to vector<48x2048xf32>
    %659 = arith.maximumf %657, %658 : vector<48x2048xf32>
    %c0_593 = arith.constant 0 : index
    %c0_594 = arith.constant 0 : index
    %660 = vector.load %arg12[%c0_593, %c0_594] : memref<48x2048xf32, #tpu.memory_space<vmem>>, vector<48x2048xf32>
    tpu.vector_store %arg12[%c0_593, %c0_594], %659 {strides = array<i32>} : memref<48x2048xf32, #tpu.memory_space<vmem>>, vector<48x2048xf32>,
    %c0_595 = arith.constant 0 : index
    %c0_596 = arith.constant 0 : index
    %661 = vector.load %arg12[%c0_595, %c0_596] : memref<48x2048xf32, #tpu.memory_space<vmem>>, vector<48x128xf32>
    %c0_597 = arith.constant 0 : index
    %c128_598 = arith.constant 128 : index
    %662 = vector.load %arg12[%c0_597, %c128_598] : memref<48x2048xf32, #tpu.memory_space<vmem>>, vector<48x128xf32>
    %663 = arith.addf %661, %662 : vector<48x128xf32>
    %c0_599 = arith.constant 0 : index
    %c512_600 = arith.constant 512 : index
    %664 = vector.load %arg12[%c0_599, %c512_600] : memref<48x2048xf32, #tpu.memory_space<vmem>>, vector<48x128xf32>
    %665 = arith.addf %663, %664 : vector<48x128xf32>
    %c0_601 = arith.constant 0 : index
    %c640_602 = arith.constant 640 : index
    %666 = vector.load %arg12[%c0_601, %c640_602] : memref<48x2048xf32, #tpu.memory_space<vmem>>, vector<48x128xf32>
    %667 = arith.addf %665, %666 : vector<48x128xf32>
    %cst_603 = arith.constant 2.500000e-01 : f32
    %668 = vector.broadcast %cst_603 : f32 to vector<48x128xf32>
    %669 = arith.mulf %668, %667 : vector<48x128xf32>
    %670 = arith.truncf %669 : vector<48x128xf32> to vector<48x128xbf16>
    %c0_604 = arith.constant 0 : index
    %c0_605 = arith.constant 0 : index
    %671 = vector.load %arg13[%c0_604, %c0_605] : memref<192x128xbf16, #tpu.memory_space<vmem>>, vector<48x128xbf16>
    tpu.vector_store %arg13[%c0_604, %c0_605], %670 {strides = array<i32>} : memref<192x128xbf16, #tpu.memory_space<vmem>>, vector<48x128xbf16>,
    %c0_606 = arith.constant 0 : index
    %c256_607 = arith.constant 256 : index
    %672 = vector.load %arg12[%c0_606, %c256_607] : memref<48x2048xf32, #tpu.memory_space<vmem>>, vector<48x128xf32>
    %c0_608 = arith.constant 0 : index
    %c384_609 = arith.constant 384 : index
    %673 = vector.load %arg12[%c0_608, %c384_609] : memref<48x2048xf32, #tpu.memory_space<vmem>>, vector<48x128xf32>
    %674 = arith.addf %672, %673 : vector<48x128xf32>
    %c0_610 = arith.constant 0 : index
    %c768_611 = arith.constant 768 : index
    %675 = vector.load %arg12[%c0_610, %c768_611] : memref<48x2048xf32, #tpu.memory_space<vmem>>, vector<48x128xf32>
    %676 = arith.addf %674, %675 : vector<48x128xf32>
    %c0_612 = arith.constant 0 : index
    %c896_613 = arith.constant 896 : index
    %677 = vector.load %arg12[%c0_612, %c896_613] : memref<48x2048xf32, #tpu.memory_space<vmem>>, vector<48x128xf32>
    %678 = arith.addf %676, %677 : vector<48x128xf32>
    %cst_614 = arith.constant 2.500000e-01 : f32
    %679 = vector.broadcast %cst_614 : f32 to vector<48x128xf32>
    %680 = arith.mulf %679, %678 : vector<48x128xf32>
    %681 = arith.truncf %680 : vector<48x128xf32> to vector<48x128xbf16>
    %c48 = arith.constant 48 : index
    %c0_615 = arith.constant 0 : index
    %682 = vector.load %arg13[%c48, %c0_615] : memref<192x128xbf16, #tpu.memory_space<vmem>>, vector<48x128xbf16>
    tpu.vector_store %arg13[%c48, %c0_615], %681 {strides = array<i32>} : memref<192x128xbf16, #tpu.memory_space<vmem>>, vector<48x128xbf16>,
    %c0_616 = arith.constant 0 : index
    %c1024_617 = arith.constant 1024 : index
    %683 = vector.load %arg12[%c0_616, %c1024_617] : memref<48x2048xf32, #tpu.memory_space<vmem>>, vector<48x128xf32>
    %c0_618 = arith.constant 0 : index
    %c1152_619 = arith.constant 1152 : index
    %684 = vector.load %arg12[%c0_618, %c1152_619] : memref<48x2048xf32, #tpu.memory_space<vmem>>, vector<48x128xf32>
    %685 = arith.addf %683, %684 : vector<48x128xf32>
    %c0_620 = arith.constant 0 : index
    %c1536_621 = arith.constant 1536 : index
    %686 = vector.load %arg12[%c0_620, %c1536_621] : memref<48x2048xf32, #tpu.memory_space<vmem>>, vector<48x128xf32>
    %687 = arith.addf %685, %686 : vector<48x128xf32>
    %c0_622 = arith.constant 0 : index
    %c1664_623 = arith.constant 1664 : index
    %688 = vector.load %arg12[%c0_622, %c1664_623] : memref<48x2048xf32, #tpu.memory_space<vmem>>, vector<48x128xf32>
    %689 = arith.addf %687, %688 : vector<48x128xf32>
    %cst_624 = arith.constant 2.500000e-01 : f32
    %690 = vector.broadcast %cst_624 : f32 to vector<48x128xf32>
    %691 = arith.mulf %690, %689 : vector<48x128xf32>
    %692 = arith.truncf %691 : vector<48x128xf32> to vector<48x128xbf16>
    %c96_625 = arith.constant 96 : index
    %c0_626 = arith.constant 0 : index
    %693 = vector.load %arg13[%c96_625, %c0_626] : memref<192x128xbf16, #tpu.memory_space<vmem>>, vector<48x128xbf16>
    tpu.vector_store %arg13[%c96_625, %c0_626], %692 {strides = array<i32>} : memref<192x128xbf16, #tpu.memory_space<vmem>>, vector<48x128xbf16>,
    %c0_627 = arith.constant 0 : index
    %c1280_628 = arith.constant 1280 : index
    %694 = vector.load %arg12[%c0_627, %c1280_628] : memref<48x2048xf32, #tpu.memory_space<vmem>>, vector<48x128xf32>
    %c0_629 = arith.constant 0 : index
    %c1408_630 = arith.constant 1408 : index
    %695 = vector.load %arg12[%c0_629, %c1408_630] : memref<48x2048xf32, #tpu.memory_space<vmem>>, vector<48x128xf32>
    %696 = arith.addf %694, %695 : vector<48x128xf32>
    %c0_631 = arith.constant 0 : index
    %c1792_632 = arith.constant 1792 : index
    %697 = vector.load %arg12[%c0_631, %c1792_632] : memref<48x2048xf32, #tpu.memory_space<vmem>>, vector<48x128xf32>
    %698 = arith.addf %696, %697 : vector<48x128xf32>
    %c0_633 = arith.constant 0 : index
    %c1920_634 = arith.constant 1920 : index
    %699 = vector.load %arg12[%c0_633, %c1920_634] : memref<48x2048xf32, #tpu.memory_space<vmem>>, vector<48x128xf32>
    %700 = arith.addf %698, %699 : vector<48x128xf32>
    %cst_635 = arith.constant 2.500000e-01 : f32
    %701 = vector.broadcast %cst_635 : f32 to vector<48x128xf32>
    %702 = arith.mulf %701, %700 : vector<48x128xf32>
    %703 = arith.truncf %702 : vector<48x128xf32> to vector<48x128xbf16>
    %c144 = arith.constant 144 : index
    %c0_636 = arith.constant 0 : index
    %704 = vector.load %arg13[%c144, %c0_636] : memref<192x128xbf16, #tpu.memory_space<vmem>>, vector<48x128xbf16>
    tpu.vector_store %arg13[%c144, %c0_636], %703 {strides = array<i32>} : memref<192x128xbf16, #tpu.memory_space<vmem>>, vector<48x128xbf16>,
    %c0_637 = arith.constant 0 : index
    %c0_638 = arith.constant 0 : index
    %705 = vector.load %arg6[%c0_637, %c0_638] : memref<64x192xbf16, #tpu.memory_space<vmem>>, vector<64x192xbf16>
    %c0_639 = arith.constant 0 : index
    %c0_640 = arith.constant 0 : index
    %706 = vector.load %arg13[%c0_639, %c0_640] : memref<192x128xbf16, #tpu.memory_space<vmem>>, vector<192x128xbf16>
    %cst_641 = arith.constant dense<0.000000e+00> : vector<64x128xf32>
    %707 = tpu.matmul %705, %706, %cst_641 {dimension_numbers = #tpu.dot_dimension_numbers<[1], [0], [0], [1], [0, 0, 1, 1], [], []>} : vector<64x192xbf16>, vector<192x128xbf16>, vector<64x128xf32> -> vector<64x128xf32>
    %c0_642 = arith.constant 0 : index
    %c0_643 = arith.constant 0 : index
    %708 = vector.load %arg7[%c0_642, %c0_643] : memref<64x1xf32, #tpu.memory_space<vmem>>, vector<64x1xf32>
    %709 = vector.broadcast %708 : vector<64x1xf32> to vector<64x128xf32>
    %710 = arith.addf %707, %709 : vector<64x128xf32>
    %cst_644 = arith.constant 0.000000e+00 : f32
    %711 = vector.broadcast %cst_644 : f32 to vector<64x128xf32>
    %712 = arith.maximumf %710, %711 : vector<64x128xf32>
    %c0_645 = arith.constant 0 : index
    %c0_646 = arith.constant 0 : index
    %713 = vector.load %arg8[%c0_645, %c0_646] : memref<10x64xbf16, #tpu.memory_space<vmem>>, vector<10x64xbf16>
    %714 = arith.truncf %712 : vector<64x128xf32> to vector<64x128xbf16>
    %cst_647 = arith.constant dense<0.000000e+00> : vector<10x128xf32>
    %715 = tpu.matmul %713, %714, %cst_647 {dimension_numbers = #tpu.dot_dimension_numbers<[1], [0], [0], [1], [0, 0, 1, 1], [], []>} : vector<10x64xbf16>, vector<64x128xbf16>, vector<10x128xf32> -> vector<10x128xf32>
    %c0_648 = arith.constant 0 : index
    %c0_649 = arith.constant 0 : index
    %716 = vector.load %arg9[%c0_648, %c0_649] : memref<10x128xf32, #tpu.memory_space<vmem>>, vector<10x128xf32>
    tpu.vector_store %arg9[%c0_648, %c0_649], %715 {strides = array<i32>} : memref<10x128xf32, #tpu.memory_space<vmem>>, vector<10x128xf32>,
    return
  }
  func.func @transform_0(%arg0: i32) -> (i32, i32, i32) {
    %c0_i32 = arith.constant 0 : i32
    %c0_i32_0 = arith.constant 0 : i32
    %c0_i32_1 = arith.constant 0 : i32
    return %arg0, %c0_i32, %c0_i32_0 : i32, i32, i32
  }
  func.func @transform_1(%arg0: i32) -> (i32, i32) {
    %c0_i32 = arith.constant 0 : i32
    %c0_i32_0 = arith.constant 0 : i32
    %c0_i32_1 = arith.constant 0 : i32
    return %c0_i32, %c0_i32_0 : i32, i32
  }
  func.func @transform_2(%arg0: i32) -> (i32, i32) {
    %c0_i32 = arith.constant 0 : i32
    %c0_i32_0 = arith.constant 0 : i32
    %c0_i32_1 = arith.constant 0 : i32
    return %c0_i32, %c0_i32_0 : i32, i32
  }
  func.func @transform_3(%arg0: i32) -> (i32, i32) {
    %c0_i32 = arith.constant 0 : i32
    %c0_i32_0 = arith.constant 0 : i32
    %c0_i32_1 = arith.constant 0 : i32
    return %c0_i32, %c0_i32_0 : i32, i32
  }
  func.func @transform_4(%arg0: i32) -> (i32, i32) {
    %c0_i32 = arith.constant 0 : i32
    %c0_i32_0 = arith.constant 0 : i32
    %c0_i32_1 = arith.constant 0 : i32
    return %c0_i32, %c0_i32_0 : i32, i32
  }
  func.func @transform_5(%arg0: i32) -> (i32, i32) {
    %c0_i32 = arith.constant 0 : i32
    %c0_i32_0 = arith.constant 0 : i32
    %c0_i32_1 = arith.constant 0 : i32
    return %c0_i32, %c0_i32_0 : i32, i32
  }
  func.func @transform_6(%arg0: i32) -> (i32, i32) {
    %c0_i32 = arith.constant 0 : i32
    %c0_i32_0 = arith.constant 0 : i32
    %c0_i32_1 = arith.constant 0 : i32
    return %c0_i32, %c0_i32_0 : i32, i32
  }
  func.func @transform_7(%arg0: i32) -> (i32, i32) {
    %c0_i32 = arith.constant 0 : i32
    %c0_i32_0 = arith.constant 0 : i32
    %c0_i32_1 = arith.constant 0 : i32
    return %c0_i32, %c0_i32_0 : i32, i32
  }
  func.func @transform_8(%arg0: i32) -> (i32, i32) {
    %c0_i32 = arith.constant 0 : i32
    %c0_i32_0 = arith.constant 0 : i32
    return %c0_i32, %arg0 : i32, i32
  }
}

</mosaic_0001>

<bundles_post_ra>
// kernel: cnn3_forward.1
= control target key start
LH: loop header
LB: loop body
LE: loop exit
PB: predicated region body
PF: predicated region fallthrough
CT: control target
= control target key end

     0   :  { %13 = vsyncpa [#allocation7], 0  ;;  %s10874_s0 = inlined_call_operand.vmem [shape: bf16[2,9,8192], index: 0, kind: input, shape index: {}]   ;;  %s10875_s1 = inlined_call_operand.vmem [shape: bf16[32,9], index: 1, kind: input, shape index: {}]   ;;  %s10876_s2 = inlined_call_operand.vmem [shape: f32[32,1], index: 2, kind: input, shape index: {}]   ;;  %s10877_s3 = inlined_call_operand.vmem [shape: bf16[48,128], index: 3, kind: input, shape index: {}]   ;;  %s10878_s4 = inlined_call_operand.vmem [shape: f32[48,1], index: 4, kind: input, shape index: {}]   ;;  %s10879_s5 = inlined_call_operand.vmem [shape: bf16[64,192], index: 5, kind: input, shape index: {}]   ;;  %s10880_s6 = inlined_call_operand.vmem [shape: f32[64,1], index: 6, kind: input, shape index: {}]   ;;  %s10881_s7 = inlined_call_operand.vmem [shape: bf16[10,64], index: 7, kind: input, shape index: {}]   ;;  %s10882_s8 = inlined_call_operand.hbm [shape: f32[10,256], index: 8, kind: output, shape index: {}]  }
   0x1   :  { %15 = vsyncpa [#allocation7 + $0x1], 0  ;;  %s6921_s27 = smov 0   ;;  %s6923_s28 = smov 0  }
   0x2   :  { %s6925_s29 = smov 0   ;;  %s6927_s30 = smov 0  }
   0x3 LB: > { %s6942_s9 = sadd.s32 4294967295, %s6866_s30   ;;  %s6552_s10 = sadd.s32 4294967294, %s6866_s30   ;;  %s6866_s30 = sphi %s6927_s30, %s11888_s30   ;;  %s6862_s29 = sphi %s6925_s29, %s11887_s29   ;;  %s6858_s28 = sphi %s6923_s28, %s11886_s28   ;;  %s6854_s27 = sphi %s6921_s27, %s11885_s27  }
   0x4   : > { %s6946_s11 = sadd.s32 1, %s6866_s30   ;;  %s201_s12 = sadd.s32 1, %s6862_s29 }
   0x5   : > { %s198_s13 = ssub.s32 %s6866_s30, %s6946_s11  ;;  %p211_p0 = scmp.ne.s32.totalorder %s6862_s29, %s6858_s28 }
   0x6   : > { %p199_p1 = scmp.eq.s32.totalorder %s198_s13, 0  ;;  %p212_p2 = scmp.eq.s32.totalorder %s6942_s9, 1 }
   0x7   : > { %p217_p3 = scmp.ne.s32.totalorder %s6858_s28, %s6854_s27  ;;  %p218_p4 = scmp.eq.s32.totalorder %s6552_s10, 1 }
   0x8   : > { %s6957_s14 = scalar_select %p199_p1, %s6862_s29, %s201_s12  }
   0x9   : > { %p6959_p5 = por %p212_p2, %p211_p0  ;;  %p6963_p6 = por %p218_p4, %p217_p3 }
   0xa   : > { %p6555_p7 = scmp.ge.s32.totalorder %s6866_s30, 1  ;;  %p265_p8 = scmp.lt.s32.totalorder %s6866_s30, 3 }
   0xc   : > { %p266_p9 = pnand %p6555_p7, %p265_p8 }
   0xe   : > { %269 = sbr.rel (%p266_p9) target bundleno = 1398 (0x576), region = 52 }
  0x15   : > { %p299_p10 = scmp.lt.s32.totalorder %s6942_s9, 1  ;;  %vm670_vm0 = vcmask 1043456   ;;  %v10886_v0 = vmov 0   ;;  %vm671_vm1 = vcmask 1044480   ;;  %v6869_v1 = vmov 65535   ;;  %v373_v3 = vld [vmem:[%s10876_s2] sm:$0xff] }
  0x16   : > { %898 = vmatprep.mubr.bf16.mxu1 %v10886_v0  ;;  %1004 = vmatprep.mubr.bf16.mxu0 %v10886_v0  ;;  %v672_v2 = vsel %vm670_vm0, 4294967295, %v6869_v1  ;;  %v374_v4 = vld [vmem:[%s10876_s2 + $0x8] sm:$0xff]  ;;  %v375_v5 = vld [vmem:[%s10876_s2 + $0x10] sm:$0xff]  ;;  %v376_v6 = vld [vmem:[%s10876_s2 + $0x18] sm:$0xff]  ;;  %vm663_vm2 = vcmask 72704   ;;  %vm6334_vm3 = vcmask 523264  }
  0x17   : > { %s300_s17 = scalar_select %p299_p10, %s6942_s9, 1  ;;  %6776 = vset.pattern.permute.xlu0 %v10886_v0  ;;  %6777 = vset.pattern.permute.xlu1 %v10886_v0  ;;  %v6994_v9 = vsel %vm671_vm1, %v672_v2, 0  ;;  %v7012_v31 = vld [vmem:[%s10875_s1] sm:$0xff]   ;;  %v7029_v40 = vld [vmem:[%s10875_s1 + $0x8] sm:$0xff]   ;;  %vm6871_vm4 = vmmov 0  }
  0x18   : > { %379 = vperm.xlu0 %6776, %v373_v3   ;;  %389 = vperm.xlu1 %6777, %v375_v5   ;;  %s296_s25 = sand.u32 1, %s6858_s28  }
  0x19   : > { %s6710_s22 = sshll.u32 %s300_s17, 9  ;;  %s6556_s26 = sshll.u32 %s296_s25, 4 }
  0x1a   : > { %s6990_s13 = scalar_lea.vmem %s10874_s0, %s6710_s22  ;;  %s298_s10 = scalar_lea.vmem [#allocation6], %s6556_s26 }
  0x1b   : > { %v309_v7 = vld [vmem:[%s6990_s13] sm:$0xff]  ;;  %v311_v10 = vld [vmem:[%s6990_s13 + $0x10] sm:$0xff]  ;;  %v310_v14 = vld [vmem:[%s6990_s13 + $0x8] sm:$0xff]  ;;  %s6490_s12 = sshll.u32 %s298_s10, 4  ;;  %s6707_s17 = sshll.u32 %s6942_s9, 7  ;;  %s10826_s12 = int_to_ptr.vmem [resolvable:$true] %s6490_s12 }
  0x1c   : > { %v341_v8 = vld [vmem:[%s6990_s13 + $0x100] sm:$0x11]  ;;  %v343_v12 = vld [vmem:[%s6990_s13 + $0x110] sm:$0x11]  ;;  %v342_v15 = vld [vmem:[%s6990_s13 + $0x108] sm:$0x11]  ;;  %384 = vperm.xlu0 %6776, %v374_v4   ;;  %394 = vperm.xlu1 %6777, %v376_v6   ;;  %s10831_s20 = scalar_lea.hbm %s10882_s8, %s6707_s17 }
  0x1d   : > { %v6562_v11 = vcombine.high %v309_v7, %v341_v8  ;;  %v6561_v13 = vcombine.low %v309_v7, %v341_v8  ;;  %v6566_v16 = vcombine.high %v311_v10, %v343_v12  ;;  %v6565_v17 = vcombine.low %v311_v10, %v343_v12  ;;  %v313_v20 = vld [vmem:[%s6990_s13 + $0x20] sm:$0xff]  ;;  %v315_v22 = vld [vmem:[%s6990_s13 + $0x30] sm:$0xff]  ;;  %v312_v44 = vld [vmem:[%s6990_s13 + $0x18] sm:$0xff]  ;;  %s10833_s21 = scalar_lea.sflag [#allocation7], %s296_s25  ;;  %s6804_s22 = scalar_lea.vmem %s10826_s12, 256 }
  0x1e   : > { %v6563_v18 = vcombine.low %v310_v14, %v342_v15  ;;  %v6564_v19 = vcombine.high %v310_v14, %v342_v15  ;;  %v345_v21 = vld [vmem:[%s6990_s13 + $0x120] sm:$0x11]  ;;  %v347_v27 = vld [vmem:[%s6990_s13 + $0x130] sm:$0x11]  ;;  %v344_v45 = vld [vmem:[%s6990_s13 + $0x118] sm:$0x11]  ;;  %p6805_p11 = scmp.ne.s32.totalorder %s10826_s12, %s6804_s22 }
  0x1f   : > { %v678_v23 = vand.u32 %v6562_v11, %v6994_v9  ;;  %v675_v24 = vand.u32 %v6561_v13, %v6994_v9  ;;  %v6569_v25 = vcombine.low %v313_v20, %v345_v21  ;;  %v6570_v26 = vcombine.high %v313_v20, %v345_v21  ;;  %v317_v37 = vld [vmem:[%s6990_s13 + $0x40] sm:$0xff]  ;;  %v319_v48 = vld [vmem:[%s6990_s13 + $0x50] sm:$0xff]  ;;  %v314_v54 = vld [vmem:[%s6990_s13 + $0x28] sm:$0xff]  ;;  %s6872_s9 = smov [#allocation6]  }
  0x20   : > { %v690_v28 = vand.u32 %v6566_v16, %v6994_v9  ;;  %v687_v29 = vand.u32 %v6565_v17, %v6994_v9  ;;  %v684_v30 = vand.u32 %v6564_v19, %v6994_v9  ;;  %v6574_v33 = vcombine.high %v315_v22, %v347_v27  ;;  %v349_v38 = vld [vmem:[%s6990_s13 + $0x140] sm:$0x11]  ;;  %v351_v49 = vld [vmem:[%s6990_s13 + $0x150] sm:$0x11]  ;;  %v346_v55 = vld [vmem:[%s6990_s13 + $0x128] sm:$0x11]  ;;  %p6806_p12 = pnand %p6805_p11, %p6959_p5 }
  0x21   : > { %866 = vmatprep.subr.bf16.mxu1 %v678_v23  ;;  %v702_v32 = vand.u32 %v6570_v26, %v6994_v9  ;;  %v681_v34 = vand.u32 %v6563_v18, %v6994_v9  ;;  %v699_v35 = vand.u32 %v6569_v25, %v6994_v9  ;;  %v6573_v39 = vcombine.low %v315_v22, %v347_v27  ;;  %v316_v60 = vld [vmem:[%s6990_s13 + $0x38] sm:$0xff]  ;;  %v321_v63 = vld [vmem:[%s6990_s13 + $0x60] sm:$0xff]  ;;  %v318_v10 = vld [vmem:[%s6990_s13 + $0x48] sm:$0xff]  ;;  %s6808_s23 = sshll.u32 %s6872_s9, 4  ;;  %s6809_s23 = int_to_ptr.vmem [resolvable:$false] %s6808_s23 }
  0x22   : > { %972 = vmatprep.subr.bf16.mxu0 %v690_v28  ;;  %867 = vmatpush1.bf16.msra.mxu1 %v675_v24  ;;  %v714_v36 = vand.u32 %v6574_v33, %v6994_v9  ;;  %v6578_v41 = vcombine.high %v317_v37, %v349_v38  ;;  %v6568_v46 = vcombine.high %v312_v44, %v344_v45  ;;  %v348_v61 = vld [vmem:[%s6990_s13 + $0x138] sm:$0x11]  ;;  %v353_v1 = vld [vmem:[%s6990_s13 + $0x160] sm:$0x11]  ;;  %v350_v11 = vld [vmem:[%s6990_s13 + $0x148] sm:$0x11]  ;;  %p6807_p13 = pneg %p6806_p12  ;;  %p6811_p0 = scmp.lt.s32.totalorder %s10826_s12, %s6809_s23 }
  0x23   : > { %973 = vmatpush1.bf16.msra.mxu0 %v687_v29  ;;  %919 = vmatprep.subr.bf16.mxu1 %v684_v30  ;;  %v711_v42 = vand.u32 %v6573_v39, %v6994_v9  ;;  %v6577_v50 = vcombine.low %v317_v37, %v349_v38  ;;  %v6582_v51 = vcombine.high %v319_v48, %v351_v49  ;;  %v323_v13 = vld [vmem:[%s6990_s13 + $0x70] sm:$0xff]  ;;  %v320_v22 = vld [vmem:[%s6990_s13 + $0x58] sm:$0xff]  ;;  %v325_v25 = vld [vmem:[%s6990_s13 + $0x80] sm:$0xff]  ;;  %s6810_s24 = scalar_lea.vmem %s6809_s23, 512 }
  0x24   : > { %1078 = vmatprep.subr.bf16.mxu0 %v702_v32  ;;  %v726_v43 = vand.u32 %v6578_v41, %v6994_v9  ;;  %v696_v47 = vand.u32 %v6568_v46, %v6994_v9  ;;  %v6567_v56 = vcombine.low %v312_v44, %v344_v45  ;;  %v6572_v57 = vcombine.high %v314_v54, %v346_v55  ;;  %v355_v14 = vld [vmem:[%s6990_s13 + $0x170] sm:$0x11]  ;;  %v352_v23 = vld [vmem:[%s6990_s13 + $0x158] sm:$0x11]  ;;  %v357_v26 = vld [vmem:[%s6990_s13 + $0x180] sm:$0x11]  ;;  %p6812_p1 = scmp.lt.s32.totalorder %s6810_s24, %s6804_s22 }
  0x25   : > { %6625 = vmatmul.mubr.msk.bf16.vlgmr.msra.gmra.mrb[0].mxu1 %vm663_vm2, %v7012_v31  ;;  %v723_v52 = vand.u32 %v6577_v50, %v6994_v9  ;;  %v738_v53 = vand.u32 %v6582_v51, %v6994_v9  ;;  %v6571_v62 = vcombine.low %v314_v54, %v346_v55  ;;  %v6581_v2 = vcombine.low %v319_v48, %v351_v49  ;;  %v5266_v37 = vld [vmem:[%s10878_s4 + $0x10] sm:$0xff]  ;;  %v322_v38 = vld [vmem:[%s6990_s13 + $0x68] sm:$0xff]  ;;  %v5267_v44 = vld [vmem:[%s10878_s4 + $0x18] sm:$0xff] }
  0x26   : > { %6629 = vmatmul.mubr.msk.bf16.vlgmr.msra.gmra.mrb[0].mxu0 %vm663_vm2, %v7012_v31  ;;  %920 = vmatpush1.bf16.msra.mxu1 %v681_v34  ;;  %v693_v58 = vand.u32 %v6567_v56, %v6994_v9  ;;  %v708_v59 = vand.u32 %v6572_v57, %v6994_v9  ;;  %v6576_v3 = vcombine.high %v316_v60, %v348_v61  ;;  %v354_v39 = vld [vmem:[%s6990_s13 + $0x168] sm:$0x11]  ;;  %v327_v41 = vld [vmem:[%s6990_s13 + $0x90] sm:$0xff]  ;;  %v5268_v45 = vld [vmem:[%s10878_s4 + $0x20] sm:$0xff]  ;;  %p6813_p2 = por %p6812_p1, %p6811_p0 }
  0x27   : > { %1079 = vmatpush1.bf16.msra.mxu0 %v699_v35  ;;  %908 = vmatprep.mubr.bf16.mxu1 %v10886_v0  ;;  %v6586_v4 = vcombine.high %v321_v63, %v353_v1  ;;  %v705_v5 = vand.u32 %v6571_v62, %v6994_v9  ;;  %v735_v6 = vand.u32 %v6581_v2, %v6994_v9  ;;  %v5264_v35 = vld [vmem:[%s10878_s4] sm:$0xff]  ;;  %v5269_v50 = vld [vmem:[%s10878_s4 + $0x28] sm:$0xff]  ;;  %v6252_v56 = vld [vmem:[%s10880_s6 + $0x10] sm:$0xff] }
  0x28   : > { %1110 = vmatprep.mubr.bf16.mxu0 %v10886_v0  ;;  %6728 = vmatprep.subr.bf16.mxu1 %v690_v28  ;;  %v720_v7 = vand.u32 %v6576_v3, %v6994_v9  ;;  %v6575_v12 = vcombine.low %v316_v60, %v348_v61  ;;  %v6585_v15 = vcombine.low %v321_v63, %v353_v1  ;;  %v6250_v51 = vld [vmem:[%s10880_s6] sm:$0xff]  ;;  %v6251_v55 = vld [vmem:[%s10880_s6 + $0x8] sm:$0xff]  ;;  %v6253_v57 = vld [vmem:[%s10880_s6 + $0x18] sm:$0xff]  ;;  %p6814_p3 = pnand %p6813_p2, %p6807_p13 }
  0x29   : > { %1184 = vmatprep.subr.bf16.mxu0 %v714_v36  ;;  %v750_v8 = vand.u32 %v6586_v4, %v6994_v9  ;;  %v6580_v16 = vcombine.high %v318_v10, %v350_v11  ;;  %v6590_v17 = vcombine.high %v323_v13, %v355_v14  ;;  %v6579_v24 = vcombine.low %v318_v10, %v350_v11  ;;  %v5265_v36 = vld [vmem:[%s10878_s4 + $0x8] sm:$0xff]  ;;  %v356_v60 = vld [vmem:[%s6990_s13 + $0x178] sm:$0x11]  ;;  %v329_v62 = vld [vmem:[%s6990_s13 + $0xa0] sm:$0xff] }
  0x2a   : > { %v717_v18 = vand.u32 %v6575_v12, %v6994_v9  ;;  %v747_v19 = vand.u32 %v6585_v15, %v6994_v9  ;;  %v6589_v27 = vcombine.low %v323_v13, %v355_v14  ;;  %v6584_v28 = vcombine.high %v320_v22, %v352_v23  ;;  %5272 = vperm.xlu0 %6776, %v5264_v35   ;;  %v361_v63 = vld [vmem:[%s6990_s13 + $0x1a0] sm:$0x11]  ;;  %v6255_v4 = vld [vmem:[%s10880_s6 + $0x28] sm:$0xff]  ;;  %v6257_v11 = vld [vmem:[%s10880_s6 + $0x38] sm:$0xff] }
  0x2b   : > { %v732_v20 = vand.u32 %v6580_v16, %v6994_v9  ;;  %v762_v21 = vand.u32 %v6590_v17, %v6994_v9  ;;  %v729_v30 = vand.u32 %v6579_v24, %v6994_v9  ;;  %5277 = vperm.xlu1 %6777, %v5265_v36   ;;  %v6593_v46 = vcombine.low %v325_v25, %v357_v26  ;;  %v326_v12 = vld [vmem:[%s6990_s13 + $0x88] sm:$0xff]  ;;  %v331_v15 = vld [vmem:[%s6990_s13 + $0xb0] sm:$0xff]  ;;  %v328_v24 = vld [vmem:[%s6990_s13 + $0x98] sm:$0xff] }
  0x2c   : > { %v759_v32 = vand.u32 %v6589_v27, %v6994_v9  ;;  %v744_v33 = vand.u32 %v6584_v28, %v6994_v9  ;;  %v6587_v61 = vcombine.low %v322_v38, %v354_v39  ;;  %v6602_v3 = vcombine.high %v329_v62, %v361_v63  ;;  %v358_v13 = vld [vmem:[%s6990_s13 + $0x188] sm:$0x11]  ;;  %v363_v16 = vld [vmem:[%s6990_s13 + $0x1b0] sm:$0x11]  ;;  %v333_v27 = vld [vmem:[%s6990_s13 + $0xc0] sm:$0xff] }
  0x2d   : > { %6626 = vmatmul.mubr.msk.bf16.gmra.mrb[4].mxu1 %vm663_vm2, %v7029_v40  ;;  %v6601_v17 = vcombine.low %v329_v62, %v361_v63  ;;  %v365_v28 = vld [vmem:[%s6990_s13 + $0x1c0] sm:$0x11]  ;;  %v334_v62 = vld [vmem:[%s6990_s13 + $0xc8] sm:$0xff] }
  0x2e   : > { %6633 = vmatmul.mubr.msk.bf16.vlgmr.msra.gmra.mrb[4].mxu0 %vm663_vm2, %v7012_v31  ;;  %951 = vmatprep.mubr.bf16.mxu1 %v10886_v0  ;;  %v798_v10 = vand.u32 %v6602_v3, %v6994_v9  ;;  %v366_v63 = vld [vmem:[%s6990_s13 + $0x1c8] sm:$0x11]  ;;  %v371_v3 = vld [vmem:[%s6990_s13 + $0x1f0] sm:$0x11] }
  0x2f   : > { %1120 = vmatprep.mubr.bf16.mxu0 %v10886_v0  ;;  %1185 = vmatpush1.bf16.msra.mxu0 %v711_v42  ;;  %v6583_v42 = vcombine.low %v320_v22, %v352_v23 }
  0x30   : > { %1290 = vmatprep.subr.bf16.mxu0 %v726_v43  ;;  %5282 = vperm.xlu0 %6776, %v5266_v37   ;;  %v359_v43 = vld [vmem:[%s6990_s13 + $0x190] sm:$0x11]  ;;  %v330_v37 = vld [vmem:[%s6990_s13 + $0xa8] sm:$0xff] }
  0x31   : > { %5287 = vperm.xlu1 %6777, %v5267_v44   ;;  %v6598_v48 = vcombine.high %v327_v41, %v359_v43  ;;  %v741_v49 = vand.u32 %v6583_v42, %v6994_v9  ;;  %v6597_v1 = vcombine.low %v327_v41, %v359_v43  ;;  %v335_v41 = vld [vmem:[%s6990_s13 + $0xd0] sm:$0xff]  ;;  %v6609_v43 = vcombine.low %v333_v27, %v365_v28 }
  0x32   : > { %v367_v42 = vld [vmem:[%s6990_s13 + $0x1d0] sm:$0x11] }
  0x33   : > { %v786_v54 = vand.u32 %v6598_v48, %v6994_v9 }
  0x34   : > { %5292 = vperm.xlu0 %6776, %v5268_v45   ;;  %v6614_v45 = vcombine.high %v335_v41, %v367_v42 }
  0x35   : > { %6627 = vmatmul.mubr.msk.bf16.vlgmr.msra.gmra.mrb[8].mxu1 %vm663_vm2, %v7012_v31  ;;  %5297 = vperm.xlu1 %6777, %v5269_v50   ;;  %v332_v50 = vld [vmem:[%s6990_s13 + $0xb8] sm:$0xff] }
  0x36   : > { %6634 = vmatmul.mubr.msk.bf16.gmra.mrb[8].mxu0 %vm663_vm2, %v7029_v40  ;;  %6729 = vmatpush1.bf16.msra.mxu1 %v687_v29  ;;  %v6594_v29 = vcombine.high %v325_v25, %v357_v26  ;;  %v360_v25 = vld [vmem:[%s6990_s13 + $0x198] sm:$0x11]  ;;  %v6595_v26 = vcombine.low %v326_v12, %v358_v13 }
  0x37   : > { %961 = vmatprep.mubr.bf16.mxu1 %v10886_v0  ;;  %1216 = vmatprep.mubr.bf16.mxu0 %v10886_v0 }
  0x38   : > { %1025 = vmatprep.subr.bf16.mxu1 %v696_v47  ;;  %v774_v34 = vand.u32 %v6594_v29, %v6994_v9  ;;  %v6588_v47 = vcombine.high %v322_v38, %v354_v39  ;;  %6260 = vperm.xlu0 %6776, %v6250_v51   ;;  %v6605_v29 = vcombine.low %v331_v15, %v363_v16  ;;  %v362_v38 = vld [vmem:[%s6990_s13 + $0x1a8] sm:$0x11]  ;;  %v364_v51 = vld [vmem:[%s6990_s13 + $0x1b8] sm:$0x11] }
  0x39   : > { %6265 = vperm.xlu1 %6777, %v6251_v55   ;;  %v6599_v39 = vcombine.low %v328_v24, %v360_v25  ;;  %v6604_v44 = vcombine.high %v330_v37, %v362_v38  ;;  %v6613_v55 = vcombine.low %v335_v41, %v367_v42 }
  0x3b   : > { %v804_v48 = vand.u32 %v6604_v44, %v6994_v9 }
  0x3c   : > { %6270 = vperm.xlu0 %6776, %v6252_v56   ;;  %v6608_v56 = vcombine.high %v332_v50, %v364_v51 }
  0x3d   : > { %6628 = vmatmul.mubr.msk.bf16.gmra.mrb[12].mxu1 %vm663_vm2, %v7029_v40  ;;  %6275 = vperm.xlu1 %6777, %v6253_v57  }
  0x3e   : > { %6637 = vmatmul.mubr.msk.bf16.vlgmr.msra.gmra.mrb[12].mxu0 %vm663_vm2, %v7012_v31  ;;  %1014 = vmatprep.mubr.bf16.mxu1 %v10886_v0 }
  0x3f   : > { %1226 = vmatprep.mubr.bf16.mxu0 %v10886_v0  ;;  %1291 = vmatpush1.bf16.msra.mxu0 %v723_v52  ;;  %v771_v52 = vand.u32 %v6593_v46, %v6994_v9  ;;  %v789_v46 = vand.u32 %v6599_v39, %v6994_v9 }
  0x40   : > { %1396 = vmatprep.subr.bf16.mxu0 %v738_v53  ;;  %v756_v53 = vand.u32 %v6588_v47, %v6994_v9  ;;  %v819_v47 = vand.u32 %v6609_v43, %v6994_v9 }
  0x41   : > { %6285 = vperm.xlu1 %6777, %v6255_v4  }
  0x45   : > { %6630 = vmatmul.mubr.msk.bf16.vlgmr.msra.gmra.mrb[16].mxu1 %vm663_vm2, %v7029_v40  ;;  %6295 = vperm.xlu1 %6777, %v6257_v11  }
  0x46   : > { %6638 = vmatmul.mubr.msk.bf16.gmra.mrb[16].mxu0 %vm663_vm2, %v7029_v40  ;;  %1026 = vmatpush1.bf16.msra.mxu1 %v693_v58  ;;  %v6254_v58 = vld [vmem:[%s10880_s6 + $0x20] sm:$0xff] }
  0x47   : > { %1057 = vmatprep.mubr.bf16.mxu1 %v10886_v0  ;;  %1322 = vmatprep.mubr.bf16.mxu0 %v10886_v0 }
  0x48   : > { %1131 = vmatprep.subr.bf16.mxu1 %v708_v59  ;;  %v324_v59 = vld [vmem:[%s6990_s13 + $0x78] sm:$0xff]  ;;  %6280 = vperm.xlu0 %6776, %v6254_v58  }
  0x49   : > { %v6592_v2 = vcombine.high %v324_v59, %v356_v60  ;;  %v6591_v14 = vcombine.low %v324_v59, %v356_v60  ;;  %v831_v59 = vand.u32 %v6613_v55, %v6994_v9  ;;  %v816_v60 = vand.u32 %v6608_v56, %v6994_v9 }
  0x4d   : > { %6631 = vmatmul.mubr.msk.bf16.vlgmr.msra.gmra.mrb[20].mxu1 %vm663_vm2, %v7012_v31 }
  0x4e   : > { %6641 = vmatmul.mubr.msk.bf16.vlgmr.msra.gmra.mrb[20].mxu0 %vm663_vm2, %v7012_v31  ;;  %1132 = vmatpush1.bf16.msra.mxu1 %v705_v5  ;;  %v6256_v5 = vld [vmem:[%s10880_s6 + $0x30] sm:$0xff] }
  0x4f   : > { %1067 = vmatprep.mubr.bf16.mxu1 %v10886_v0  ;;  %1332 = vmatprep.mubr.bf16.mxu0 %v10886_v0 }
  0x50   : > { %1397 = vmatpush1.bf16.msra.mxu0 %v735_v6  ;;  %1237 = vmatprep.subr.bf16.mxu1 %v720_v7  ;;  %v753_v6 = vand.u32 %v6587_v61, %v6994_v9  ;;  %v783_v7 = vand.u32 %v6597_v1, %v6994_v9  ;;  %v6607_v1 = vcombine.low %v332_v50, %v364_v51 }
  0x51   : > { %1502 = vmatprep.subr.bf16.mxu0 %v750_v8  ;;  %6290 = vperm.xlu0 %6776, %v6256_v5   ;;  %v768_v8 = vand.u32 %v6592_v2, %v6994_v9  ;;  %v339_v2 = vld [vmem:[%s6990_s13 + $0xf0] sm:$0xff]  ;;  %v6612_v5 = vcombine.high %v334_v62, %v366_v63 }
  0x55   : > { %6632 = vmatmul.mubr.msk.bf16.gmra.mrb[24].mxu1 %vm663_vm2, %v7029_v40 }
  0x56   : > { %6642 = vmatmul.mubr.msk.bf16.gmra.mrb[24].mxu0 %vm663_vm2, %v7029_v40  ;;  %1163 = vmatprep.mubr.bf16.mxu1 %v10886_v0 }
  0x57   : > { %1428 = vmatprep.mubr.bf16.mxu0 %v10886_v0 }
  0x5d   : > { %6635 = vmatmul.mubr.msk.bf16.vlgmr.msra.gmra.mrb[28].mxu1 %vm663_vm2, %v7012_v31 }
  0x5e   : > { %6645 = vmatmul.mubr.msk.bf16.vlgmr.msra.gmra.mrb[28].mxu0 %vm663_vm2, %v7012_v31  ;;  %1238 = vmatpush1.bf16.msra.mxu1 %v717_v18  ;;  %v6596_v18 = vcombine.high %v326_v12, %v358_v13  ;;  %v336_v12 = vld [vmem:[%s6990_s13 + $0xd8] sm:$0xff] }
  0x5f   : > { %1173 = vmatprep.mubr.bf16.mxu1 %v10886_v0  ;;  %1438 = vmatprep.mubr.bf16.mxu0 %v10886_v0  ;;  %v368_v13 = vld [vmem:[%s6990_s13 + $0x1d8] sm:$0x11] }
  0x60   : > { %1503 = vmatpush1.bf16.msra.mxu0 %v747_v19  ;;  %1343 = vmatprep.subr.bf16.mxu1 %v732_v20  ;;  %v6606_v19 = vcombine.high %v331_v15, %v363_v16  ;;  %v765_v20 = vand.u32 %v6591_v14, %v6994_v9  ;;  %v780_v22 = vand.u32 %v6596_v18, %v6994_v9 }
  0x61   : > { %1608 = vmatprep.subr.bf16.mxu0 %v762_v21  ;;  %v795_v21 = vand.u32 %v6601_v17, %v6994_v9  ;;  %v6611_v14 = vcombine.low %v334_v62, %v366_v63  ;;  %v6621_v15 = vcombine.low %v339_v2, %v371_v3  ;;  %v6616_v16 = vcombine.high %v336_v12, %v368_v13 }
  0x62   : > { %v810_v23 = vand.u32 %v6606_v19, %v6994_v9 }
  0x63   : > { %v825_v17 = vand.u32 %v6611_v14, %v6994_v9  ;;  %v855_v18 = vand.u32 %v6621_v15, %v6994_v9  ;;  %v840_v19 = vand.u32 %v6616_v16, %v6994_v9 }
  0x65   : > { %6636 = vmatmul.mubr.msk.bf16.gmra.mrb[32].mxu1 %vm663_vm2, %v7029_v40 }
  0x66   : > { %6646 = vmatmul.mubr.msk.bf16.gmra.mrb[32].mxu0 %vm663_vm2, %v7029_v40  ;;  %1269 = vmatprep.mubr.bf16.mxu1 %v10886_v0 }
  0x67   : > { %1534 = vmatprep.mubr.bf16.mxu0 %v10886_v0 }
  0x6d   : > { %6639 = vmatmul.mubr.msk.bf16.vlgmr.msra.gmra.mrb[36].mxu1 %vm663_vm2, %v7012_v31 }
  0x6e   : > { %6649 = vmatmul.mubr.msk.bf16.vlgmr.msra.gmra.mrb[36].mxu0 %vm663_vm2, %v7012_v31  ;;  %1344 = vmatpush1.bf16.msra.mxu1 %v729_v30  ;;  %v6600_v30 = vcombine.high %v328_v24, %v360_v25 }
  0x6f   : > { %1279 = vmatprep.mubr.bf16.mxu1 %v10886_v0  ;;  %1544 = vmatprep.mubr.bf16.mxu0 %v10886_v0 }
  0x70   : > { %1609 = vmatpush1.bf16.msra.mxu0 %v759_v32  ;;  %1449 = vmatprep.subr.bf16.mxu1 %v744_v33  ;;  %v6610_v32 = vcombine.high %v333_v27, %v365_v28  ;;  %v777_v33 = vand.u32 %v6595_v26, %v6994_v9  ;;  %v792_v35 = vand.u32 %v6600_v30, %v6994_v9  ;;  %v340_v28 = vld [vmem:[%s6990_s13 + $0xf8] sm:$0xff] }
  0x71   : > { %1714 = vmatprep.subr.bf16.mxu0 %v774_v34  ;;  %v807_v34 = vand.u32 %v6605_v29, %v6994_v9  ;;  %v372_v29 = vld [vmem:[%s6990_s13 + $0x1f8] sm:$0x11] }
  0x72   : > { %v822_v36 = vand.u32 %v6610_v32, %v6994_v9 }
  0x75   : > { %6640 = vmatmul.mubr.msk.bf16.gmra.mrb[40].mxu1 %vm663_vm2, %v7029_v40 }
  0x76   : > { %6650 = vmatmul.mubr.msk.bf16.gmra.mrb[40].mxu0 %vm663_vm2, %v7029_v40  ;;  %1375 = vmatprep.mubr.bf16.mxu1 %v10886_v0 }
  0x77   : > { %1640 = vmatprep.mubr.bf16.mxu0 %v10886_v0 }
  0x7d   : > { %6643 = vmatmul.mubr.msk.bf16.vlgmr.msra.gmra.mrb[44].mxu1 %vm663_vm2, %v7012_v31 }
  0x7e   : > { %6653 = vmatmul.mubr.msk.bf16.vlgmr.msra.gmra.mrb[44].mxu0 %vm663_vm2, %v7012_v31  ;;  %1450 = vmatpush1.bf16.msra.mxu1 %v741_v49  ;;  %v834_v49 = vand.u32 %v6614_v45, %v6994_v9 }
  0x7f   : > { %1385 = vmatprep.mubr.bf16.mxu1 %v10886_v0  ;;  %1650 = vmatprep.mubr.bf16.mxu0 %v10886_v0 }
  0x80   : > { %1715 = vmatpush1.bf16.msra.mxu0 %v771_v52  ;;  %1555 = vmatprep.subr.bf16.mxu1 %v756_v53  ;;  %v6603_v52 = vcombine.low %v330_v37, %v362_v38  ;;  %v337_v53 = vld [vmem:[%s6990_s13 + $0xe0] sm:$0xff] }
  0x81   : > { %1820 = vmatprep.subr.bf16.mxu0 %v786_v54  ;;  %v369_v54 = vld [vmem:[%s6990_s13 + $0x1e0] sm:$0x11] }
  0x82   : > { %v6618_v57 = vcombine.high %v337_v53, %v369_v54  ;;  %v801_v58 = vand.u32 %v6603_v52, %v6994_v9  ;;  %v6617_v4 = vcombine.low %v337_v53, %v369_v54  ;;  %v6624_v52 = vcombine.high %v340_v28, %v372_v29 }
  0x84   : > { %v846_v61 = vand.u32 %v6618_v57, %v6994_v9 }
  0x85   : > { %6644 = vmatmul.mubr.msk.bf16.gmra.mrb[48].mxu1 %vm663_vm2, %v7029_v40 }
  0x86   : > { %6654 = vmatmul.mubr.msk.bf16.gmra.mrb[48].mxu0 %vm663_vm2, %v7029_v40  ;;  %1481 = vmatprep.mubr.bf16.mxu1 %v10886_v0 }
  0x87   : > { %1746 = vmatprep.mubr.bf16.mxu0 %v10886_v0 }
  0x8d   : > { %6647 = vmatmul.mubr.msk.bf16.vlgmr.msra.gmra.mrb[52].mxu1 %vm663_vm2, %v7012_v31 }
  0x8e   : > { %6657 = vmatmul.mubr.msk.bf16.vlgmr.msra.gmra.mrb[52].mxu0 %vm663_vm2, %v7012_v31  ;;  %1556 = vmatpush1.bf16.msra.mxu1 %v753_v6  ;;  %v6622_v6 = vcombine.high %v339_v2, %v371_v3 }
  0x8f   : > { %1491 = vmatprep.mubr.bf16.mxu1 %v10886_v0  ;;  %1756 = vmatprep.mubr.bf16.mxu0 %v10886_v0 }
  0x90   : > { %1821 = vmatpush1.bf16.msra.mxu0 %v783_v7  ;;  %1661 = vmatprep.subr.bf16.mxu1 %v768_v8  ;;  %v813_v7 = vand.u32 %v6607_v1, %v6994_v9  ;;  %v843_v8 = vand.u32 %v6617_v4, %v6994_v9  ;;  %v858_v11 = vand.u32 %v6622_v6, %v6994_v9 }
  0x91   : > { %1926 = vmatprep.subr.bf16.mxu0 %v798_v10  ;;  %v828_v10 = vand.u32 %v6612_v5, %v6994_v9  ;;  %v7395_v5 = vand.u32 %v6624_v52, %v6994_v9 }
  0x95   : > { %6648 = vmatmul.mubr.msk.bf16.gmra.mrb[56].mxu1 %vm663_vm2, %v7029_v40 }
  0x96   : > { %6658 = vmatmul.mubr.msk.bf16.gmra.mrb[56].mxu0 %vm663_vm2, %v7029_v40  ;;  %1587 = vmatprep.mubr.bf16.mxu1 %v10886_v0 }
  0x97   : > { %1852 = vmatprep.mubr.bf16.mxu0 %v10886_v0  ;;  %v7331_v25 = vpop.permute.xlu1 %389 }
  0x9b   : > { %v7389_v3 = vpop.permute.xlu1 %394 }
  0x9d   : > { %6651 = vmatmul.mubr.msk.bf16.vlgmr.msra.gmra.mrb[60].mxu1 %vm663_vm2, %v7012_v31 }
  0x9e   : > { %6661 = vmatmul.mubr.msk.bf16.vlgmr.msra.gmra.mrb[60].mxu0 %vm663_vm2, %v7012_v31  ;;  %1662 = vmatpush1.bf16.msra.mxu1 %v765_v20  ;;  %v7321_v20 = vpop.permute.xlu0 %379 }
  0x9f   : > { %1597 = vmatprep.mubr.bf16.mxu1 %v10886_v0  ;;  %1862 = vmatprep.mubr.bf16.mxu0 %v10886_v0 }
  0xa0   : > { %1927 = vmatpush1.bf16.msra.mxu0 %v795_v21  ;;  %1767 = vmatprep.subr.bf16.mxu1 %v780_v22  ;;  %v338_v21 = vld [vmem:[%s6990_s13 + $0xe8] sm:$0xff] }
  0xa1   : > { %2032 = vmatprep.subr.bf16.mxu0 %v810_v23  ;;  %v370_v22 = vld [vmem:[%s6990_s13 + $0x1e8] sm:$0x11]  ;;  %v6615_v23 = vcombine.low %v336_v12, %v368_v13 }
  0xa2   : > { %v6620_v24 = vcombine.high %v338_v21, %v370_v22  ;;  %v7333_v27 = vpop.permute.xlu0 %384  ;;  %v6619_v39 = vcombine.low %v338_v21, %v370_v22 }
  0xa4   : > { %v852_v41 = vand.u32 %v6620_v24, %v6994_v9  ;;  %v7392_v4 = vand.u32 %v6619_v39, %v6994_v9 }
  0xa5   : > { %6652 = vmatmul.mubr.msk.bf16.gmra.mrb[64].mxu1 %vm663_vm2, %v7029_v40 }
  0xa6   : > { %6662 = vmatmul.mubr.msk.bf16.gmra.mrb[64].mxu0 %vm663_vm2, %v7029_v40  ;;  %1693 = vmatprep.mubr.bf16.mxu1 %v10886_v0 }
  0xa7   : > { %1958 = vmatprep.mubr.bf16.mxu0 %v10886_v0 }
  0xad   : > { %6655 = vmatmul.mubr.msk.bf16.vlgmr.msra.gmra.mrb[68].mxu1 %vm663_vm2, %v7012_v31 }
  0xae   : > { %6665 = vmatmul.mubr.msk.bf16.vlgmr.msra.gmra.mrb[68].mxu0 %vm663_vm2, %v7012_v31  ;;  %1768 = vmatpush1.bf16.msra.mxu1 %v777_v33 }
  0xaf   : > { %1703 = vmatprep.mubr.bf16.mxu1 %v10886_v0  ;;  %1968 = vmatprep.mubr.bf16.mxu0 %v10886_v0 }
  0xb0   : > { %2033 = vmatpush1.bf16.msra.mxu0 %v807_v34  ;;  %1873 = vmatprep.subr.bf16.mxu1 %v792_v35  ;;  %v837_v34 = vand.u32 %v6615_v23, %v6994_v9 }
  0xb1   : > { %2138 = vmatprep.subr.bf16.mxu0 %v822_v36 }
  0xb5   : > { %6656 = vmatmul.mubr.msk.bf16.gmra.mrb[72].mxu1 %vm663_vm2, %v7029_v40 }
  0xb6   : > { %6666 = vmatmul.mubr.msk.bf16.gmra.mrb[72].mxu0 %vm663_vm2, %v7029_v40  ;;  %1799 = vmatprep.mubr.bf16.mxu1 %v10886_v0 }
  0xb7   : > { %2064 = vmatprep.mubr.bf16.mxu0 %v10886_v0 }
  0xbd   : > { %6659 = vmatmul.mubr.msk.bf16.vlgmr.msra.gmra.mrb[76].mxu1 %vm663_vm2, %v7012_v31 }
  0xbe   : > { %6669 = vmatmul.mubr.msk.bf16.vlgmr.msra.gmra.mrb[76].mxu0 %vm663_vm2, %v7012_v31  ;;  %1874 = vmatpush1.bf16.msra.mxu1 %v789_v46 }
  0xbf   : > { %1809 = vmatprep.mubr.bf16.mxu1 %v10886_v0  ;;  %2074 = vmatprep.mubr.bf16.mxu0 %v10886_v0 }
  0xc0   : > { %2139 = vmatpush1.bf16.msra.mxu0 %v819_v47  ;;  %1979 = vmatprep.subr.bf16.mxu1 %v804_v48  ;;  %v6623_v47 = vcombine.low %v340_v28, %v372_v29 }
  0xc1   : > { %2244 = vmatprep.subr.bf16.mxu0 %v834_v49 }
  0xc2   : > { %v7398_v6 = vand.u32 %v6623_v47, %v6994_v9 }
  0xc5   : > { %6660 = vmatmul.mubr.msk.bf16.gmra.mrb[80].mxu1 %vm663_vm2, %v7029_v40 }
  0xc6   : > { %6670 = vmatmul.mubr.msk.bf16.gmra.mrb[80].mxu0 %vm663_vm2, %v7029_v40  ;;  %1905 = vmatprep.mubr.bf16.mxu1 %v10886_v0 }
  0xc7   : > { %2170 = vmatprep.mubr.bf16.mxu0 %v10886_v0 }
  0xcd   : > { %6663 = vmatmul.mubr.msk.bf16.vlgmr.msra.gmra.mrb[84].mxu1 %vm663_vm2, %v7012_v31 }
  0xce   : > { %6673 = vmatmul.mubr.msk.bf16.vlgmr.msra.gmra.mrb[84].mxu0 %vm663_vm2, %v7012_v31  ;;  %1980 = vmatpush1.bf16.msra.mxu1 %v801_v58 }
  0xcf   : > { %1915 = vmatprep.mubr.bf16.mxu1 %v10886_v0  ;;  %2180 = vmatprep.mubr.bf16.mxu0 %v10886_v0 }
  0xd0   : > { %2245 = vmatpush1.bf16.msra.mxu0 %v831_v59  ;;  %2085 = vmatprep.subr.bf16.mxu1 %v816_v60 }
  0xd1   : > { %2350 = vmatprep.subr.bf16.mxu0 %v846_v61 }
  0xd5   : > { %6664 = vmatmul.mubr.msk.bf16.gmra.mrb[88].mxu1 %vm663_vm2, %v7029_v40 }
  0xd6   : > { %6674 = vmatmul.mubr.msk.bf16.gmra.mrb[88].mxu0 %vm663_vm2, %v7029_v40  ;;  %2011 = vmatprep.mubr.bf16.mxu1 %v10886_v0 }
  0xd7   : > { %2276 = vmatprep.mubr.bf16.mxu0 %v10886_v0 }
  0xdd   : > { %6667 = vmatmul.mubr.msk.bf16.vlgmr.msra.gmra.mrb[92].mxu1 %vm663_vm2, %v7012_v31 }
  0xde   : > { %6677 = vmatmul.mubr.msk.bf16.vlgmr.msra.gmra.mrb[92].mxu0 %vm663_vm2, %v7012_v31  ;;  %2086 = vmatpush1.bf16.msra.mxu1 %v813_v7 }
  0xdf   : > { %2021 = vmatprep.mubr.bf16.mxu1 %v10886_v0  ;;  %2286 = vmatprep.mubr.bf16.mxu0 %v10886_v0 }
  0xe0   : > { %2351 = vmatpush1.bf16.msra.mxu0 %v843_v8  ;;  %2191 = vmatprep.subr.bf16.mxu1 %v828_v10 }
  0xe1   : > { %2456 = vmatprep.subr.bf16.mxu0 %v858_v11 }
  0xe5   : > { %6668 = vmatmul.mubr.msk.bf16.gmra.mrb[96].mxu1 %vm663_vm2, %v7029_v40 }
  0xe6   : > { %6678 = vmatmul.mubr.msk.bf16.gmra.mrb[96].mxu0 %vm663_vm2, %v7029_v40  ;;  %2117 = vmatprep.mubr.bf16.mxu1 %v10886_v0 }
  0xe7   : > { %2382 = vmatprep.mubr.bf16.mxu0 %v10886_v0 }
  0xed   : > { %6671 = vmatmul.mubr.msk.bf16.vlgmr.msra.gmra.mrb[100].mxu1 %vm663_vm2, %v7012_v31 }
  0xee   : > { %6681 = vmatmul.mubr.msk.bf16.vlgmr.msra.gmra.mrb[100].mxu0 %vm663_vm2, %v7012_v31  ;;  %2192 = vmatpush1.bf16.msra.mxu1 %v825_v17 }
  0xef   : > { %2127 = vmatprep.mubr.bf16.mxu1 %v10886_v0  ;;  %2392 = vmatprep.mubr.bf16.mxu0 %v10886_v0 }
  0xf0   : > { %2457 = vmatpush1.bf16.msra.mxu0 %v855_v18  ;;  %2297 = vmatprep.subr.bf16.mxu1 %v840_v19 }
  0xf5   : > { %6672 = vmatmul.mubr.msk.bf16.gmra.mrb[104].mxu1 %vm663_vm2, %v7029_v40 }
  0xf6   : > { %6682 = vmatmul.mubr.msk.bf16.gmra.mrb[104].mxu0 %vm663_vm2, %v7029_v40  ;;  %2223 = vmatprep.mubr.bf16.mxu1 %v10886_v0 }
  0xf7   : > { %2488 = vmatprep.mubr.bf16.mxu0 %v10886_v0 }
  0xf8   : > { %v900_v26 = vpop.f32.mrb[0].mxu1 }
  0xf9   : > { %v901_v30 = vadd.f32 %v900_v26, %v7321_v20  ;;  %v902_v32 = vpop.f32.mrb[1].mxu1  ;;  %v1006_v33 = vpop.f32.mrb[0].mxu0 }
  0xfa   : > { %v7340_v35 = vadd.f32 %v902_v32, %v7321_v20  ;;  %v904_v36 = vpop.f32.mrb[2].mxu1  ;;  %v7343_v37 = vadd.f32 %v1006_v33, %v7321_v20  ;;  %v1008_v38 = vpop.f32.mrb[1].mxu0 }
  0xfb   : > { %v2562_v42 = vmax.f32 %v901_v30, 0.0  ;;  %v905_v43 = vadd.f32 %v904_v36, %v7333_v27  ;;  %v906_v44 = vpop.f32.mrb[3].mxu1  ;;  %v7348_v45 = vadd.f32 %v1008_v38, %v7321_v20  ;;  %v1010_v46 = vpop.f32.mrb[2].mxu0 }
  0xfc   : > { %v2563_v48 = vmax.f32 %v7340_v35, 0.0  ;;  %v7352_v49 = vadd.f32 %v906_v44, %v7333_v27  ;;  %v7355_v50 = vadd.f32 %v1010_v46, %v7333_v27  ;;  %v1012_v51 = vpop.f32.mrb[3].mxu0  ;;  %v2566_v54 = vmax.f32 %v7343_v37, 0.0 }
  0xfd   : > { %v7357_v53 = vmax.f32 %v905_v43, 0.0  ;;  %v10884_v55 = vmax.f32 %v7348_v45, 0.0  ;;  %6675 = vmatmul.mubr.msk.bf16.vlgmr.msra.gmra.mrb[108].mxu1 %vm663_vm2, %v7012_v31  ;;  %v7364_v56 = vadd.f32 %v1012_v51, %v7333_v27  ;;  %v7366_v57 = vmul.f32 0.25, %v2562_v42 }
  0xfe   : > { %v3538_v58 = vadd.f32 %v2563_v48, %v2562_v42  ;;  %v2627_v59 = vmax.f32 %v7352_v49, 0.0  ;;  %6685 = vmatmul.mubr.msk.bf16.vlgmr.msra.gmra.mrb[108].mxu0 %vm663_vm2, %v7012_v31  ;;  %2298 = vmatpush1.bf16.msra.mxu1 %v837_v34  ;;  %v2630_v62 = vmax.f32 %v7355_v50, 0.0 }
  0xff   : > { %v7374_v60 = vmul.f32 0.25, %v7357_v53  ;;  %v7380_v61 = vadd.f32 %v10884_v55, %v2566_v54  ;;  %v10883_v63 = vmax.f32 %v7364_v56, 0.0  ;;  %2233 = vmatprep.mubr.bf16.mxu1 %v10886_v0  ;;  %2498 = vmatprep.mubr.bf16.mxu0 %v10886_v0 }
 0x100   : > { %v3539_v1 = vadd.f32 %v2627_v59, %v7357_v53  ;;  %v910_v2 = vpop.f32.mrb[4].mxu1  ;;  %2403 = vmatprep.subr.bf16.mxu1 %v852_v41  ;;  %v7412_v14 = vmul.f32 0.25, %v3538_v58 }
 0x101   : > { %v7401_v7 = vmul.f32 0.25, %v7380_v61  ;;  %v7407_v8 = vadd.f32 %v10883_v63, %v2630_v62  ;;  %v911_v10 = vadd.f32 %v910_v2, %v7331_v25  ;;  %v1112_v11 = vpop.f32.mrb[4].mxu0  ;;  %v912_v12 = vpop.f32.mrb[5].mxu1 }
 0x102   : > { %v7414_v9 = vmul.f32 0.25, %v3539_v1  ;;  %v1113_v15 = vadd.f32 %v1112_v11, %v7321_v20  ;;  %v7418_v16 = vadd.f32 %v912_v12, %v7331_v25  ;;  %v1114_v17 = vpop.f32.mrb[5].mxu0  ;;  %v914_v18 = vpop.f32.mrb[6].mxu1 }
 0x103   : > { %11028 = vst [vmem:[#allocation9_spill] sm:$0xff] %v7401_v7  ;;  %v7421_v19 = vmul.f32 0.25, %v7407_v8  ;;  %v2690_v21 = vmax.f32 %v911_v10, 0.0  ;;  %v1115_v22 = vadd.f32 %v1114_v17, %v7321_v20  ;;  %v915_v23 = vadd.f32 %v914_v18, %v7389_v3  ;;  %v1116_v24 = vpop.f32.mrb[6].mxu0  ;;  %v916_v26 = vpop.f32.mrb[7].mxu1 }
 0x104   : > { %v7427_v29 = vmax.f32 %v1113_v15, 0.0  ;;  %v10888_v30 = vmax.f32 %v7418_v16, 0.0  ;;  %v1117_v32 = vadd.f32 %v1116_v24, %v7333_v27  ;;  %v1118_v33 = vpop.f32.mrb[7].mxu0 }
 0x105   : > { %11029 = vst [vmem:[#allocation10_spill] sm:$0xff] %v7421_v19  ;;  %v7433_v36 = vmul.f32 0.25, %v2690_v21  ;;  %v7435_v38 = vmax.f32 %v1115_v22, 0.0  ;;  %v7437_v39 = vmax.f32 %v915_v23, 0.0  ;;  %6676 = vmatmul.mubr.msk.bf16.gmra.mrb[112].mxu1 %vm663_vm2, %v7029_v40  ;;  %v1119_v52 = vadd.f32 %v1118_v33, %v7333_v27 }
 0x106   : > { %v4050_v41 = vadd.f32 %v7427_v29, %v2562_v42  ;;  %v4570_v43 = vadd.f32 %v3538_v58, %v7427_v29  ;;  %v3540_v44 = vadd.f32 %v10888_v30, %v2690_v21  ;;  %v7445_v46 = vmax.f32 %v1117_v32, 0.0  ;;  %6686 = vmatmul.mubr.msk.bf16.gmra.mrb[112].mxu0 %vm663_vm2, %v7029_v40  ;;  %2329 = vmatprep.mubr.bf16.mxu1 %v10886_v0 }
 0x107   : > { %v7452_v47 = vadd.f32 %v7435_v38, %v7427_v29  ;;  %v7455_v51 = vmul.f32 0.25, %v7437_v39  ;;  %v7458_v42 = vadd.f32 %v916_v26, %v7389_v3  ;;  %5350 = vmatprep.mubr.bf16.mxu0 %v10886_v0  ;;  %v7471_v15 = vmax.f32 %v1119_v52, 0.0 }
 0x108   : > { %v7462_v58 = vmul.f32 0.25, %v3540_v44  ;;  %v7465_v40 = vadd.f32 %v4570_v43, %v7435_v38  ;;  %v4051_v2 = vadd.f32 %v7445_v46, %v7357_v53  ;;  %v4571_v10 = vadd.f32 %v3539_v1, %v7445_v46  ;;  %v953_v11 = vpop.f32.mrb[8].mxu1 }
 0x109   : > { %v10885_v12 = vmax.f32 %v7458_v42, 0.0  ;;  %v954_v17 = vadd.f32 %v953_v11, %v7321_v20  ;;  %v1122_v18 = vpop.f32.mrb[8].mxu0  ;;  %v955_v22 = vpop.f32.mrb[9].mxu1  ;;  %v7478_v33 = vmul.f32 0.25, %v4050_v41  ;;  %v7487_v52 = vadd.f32 %v7471_v15, %v7445_v46 }
 0x10a   : > { %11030 = vst [vmem:[#allocation11_spill] sm:$0xff] %v7465_v40  ;;  %v1123_v24 = vadd.f32 %v1122_v18, %v7331_v25  ;;  %v956_v26 = vadd.f32 %v955_v22, %v7321_v20  ;;  %v1124_v32 = vpop.f32.mrb[9].mxu0  ;;  %v957_v53 = vpop.f32.mrb[10].mxu1  ;;  %v7480_v1 = vmul.f32 0.25, %v4051_v2  ;;  %v7490_v11 = vadd.f32 %v4571_v10, %v7471_v15 }
 0x10b   : > { %11031 = vst [vmem:[#allocation12_spill] sm:$0xff] %v7478_v33  ;;  %v3541_v43 = vadd.f32 %v10885_v12, %v7437_v39  ;;  %v2564_v18 = vmax.f32 %v954_v17, 0.0  ;;  %v1126_v34 = vpop.f32.mrb[10].mxu0  ;;  %v959_v22 = vpop.f32.mrb[11].mxu1  ;;  %v1125_v2 = vadd.f32 %v1124_v32, %v7331_v25  ;;  %v958_v28 = vadd.f32 %v957_v53, %v7333_v27 }
 0x10c   : > { %11032 = vst [vmem:[#allocation13_spill] sm:$0xff] %v7480_v1  ;;  %11033 = vst [vmem:[#allocation14_spill] sm:$0xff] %v7490_v11  ;;  %v7492_v63 = vmax.f32 %v1123_v24, 0.0  ;;  %v2565_v41 = vmax.f32 %v956_v26, 0.0  ;;  %v1128_v55 = vpop.f32.mrb[11].mxu0  ;;  %v1127_v12 = vadd.f32 %v1126_v34, %v7389_v3  ;;  %v960_v10 = vadd.f32 %v959_v22, %v7333_v27 }
 0x10d   : > { %v7496_v23 = vmul.f32 0.25, %v3541_v43  ;;  %v3094_v13 = vadd.f32 %v2564_v18, %v2563_v48  ;;  %6679 = vmatmul.mubr.msk.bf16.vlgmr.msra.gmra.mrb[116].mxu1 %vm663_vm2, %v7012_v31  ;;  %v7520_v31 = vmax.f32 %v1125_v2, 0.0 }
 0x10e   : > { %v7505_v17 = vadd.f32 %v7492_v63, %v2690_v21  ;;  %v4572_v24 = vadd.f32 %v3540_v44, %v7492_v63  ;;  %v7510_v26 = vadd.f32 %v2566_v54, %v2565_v41  ;;  %v7512_v32 = vadd.f32 %v2565_v41, %v2564_v18  ;;  %2404 = vmatpush1.bf16.msra.mxu1 %v7392_v4 }
 0x10f   : > { %v3098_v48 = vmul.f32 0.25, %v3094_v13  ;;  %v7518_v34 = vadd.f32 %v3094_v13, %v7435_v38  ;;  %11037 = vst [vmem:[#allocation18_spill] sm:$0xff] %v7520_v31  ;;  %2339 = vmatprep.mubr.bf16.mxu1 %v10886_v0  ;;  %2509 = vmatprep.subr.bf16.mxu1 %v7395_v5  ;;  %v2628_v4 = vmax.f32 %v958_v28, 0.0  ;;  %v7530_v21 = vmax.f32 %v1127_v12, 0.0 }
 0x110   : > { %11034 = vst [vmem:[#allocation15_spill] sm:$0xff] %v7505_v17  ;;  %11035 = vst [vmem:[#allocation16_spill] sm:$0xff] %v7512_v32  ;;  %v7525_v37 = vmul.f32 0.25, %v7510_v26  ;;  %v7528_v54 = vmul.f32 0.25, %v7512_v32  ;;  %v963_v44 = vpop.f32.mrb[12].mxu1  ;;  %v7534_v13 = vadd.f32 %v7520_v31, %v7492_v63  ;;  %v7537_v53 = vadd.f32 %v4572_v24, %v7520_v31 }
 0x111   : > { %11036 = vst [vmem:[#allocation17_spill] sm:$0xff] %v7518_v34  ;;  %v2629_v18 = vmax.f32 %v960_v10, 0.0  ;;  %v1129_v5 = vadd.f32 %v1128_v55, %v7389_v3  ;;  %v965_v22 = vpop.f32.mrb[13].mxu1  ;;  %v1218_v41 = vpop.f32.mrb[12].mxu0  ;;  %v3095_v2 = vadd.f32 %v2628_v4, %v2627_v59  ;;  %v7544_v28 = vadd.f32 %v7530_v21, %v7437_v39 }
 0x112   : > { %11038 = vst [vmem:[#allocation19_spill] sm:$0xff] %v7537_v53  ;;  %v4573_v12 = vadd.f32 %v3541_v43, %v7530_v21  ;;  %v964_v35 = vadd.f32 %v963_v44, %v7331_v25  ;;  %v967_v0 = vpop.f32.mrb[14].mxu1  ;;  %v1220_v30 = vpop.f32.mrb[13].mxu0  ;;  %v966_v49 = vadd.f32 %v965_v22, %v7331_v25  ;;  %v11046_v32 = vmov 0  }
 0x113   : > { %11039 = vst [vmem:[#allocation20_spill] sm:$0xff] %v7544_v28  ;;  %v7550_v10 = vadd.f32 %v2630_v62, %v2629_v18  ;;  %v7552_v55 = vadd.f32 %v2629_v18, %v2628_v4  ;;  %v7554_v24 = vmax.f32 %v1129_v5, 0.0  ;;  %v969_v59 = vpop.f32.mrb[15].mxu1  ;;  %v1222_v53 = vpop.f32.mrb[14].mxu0  ;;  %v3099_v39 = vmul.f32 0.25, %v3095_v2 }
 0x114   : > { %v7558_v11 = vadd.f32 %v3095_v2, %v7471_v15  ;;  %v2692_v43 = vmax.f32 %v964_v35, 0.0  ;;  %v968_v44 = vadd.f32 %v967_v0, %v7389_v3  ;;  %v1224_v40 = vpop.f32.mrb[15].mxu0  ;;  %v7577_v35 = vld [vmem:[%s10875_s1 + $0x8] sm:$0xff]   ;;  %v11045_v0 = vmax.f32 %v7418_v16, 0.0 }
 0x115   : > { %11040 = vst [vmem:[#allocation21_spill] sm:$0xff] %v7552_v55  ;;  %11041 = vst [vmem:[#allocation22_spill] sm:$0xff] %v7554_v24  ;;  %v7562_v50 = vmul.f32 0.25, %v7550_v10  ;;  %v7565_v62 = vmul.f32 0.25, %v7552_v55  ;;  %v7569_v4 = vadd.f32 %v7554_v24, %v7530_v21  ;;  %v7572_v18 = vadd.f32 %v4573_v12, %v7554_v24  ;;  %6680 = vmatmul.mubr.msk.bf16.gmra.mrb[120].mxu1 %vm663_vm2, %v7577_v35 }
 0x116   : > { %11042 = vst [vmem:[#allocation23_spill] sm:$0xff] %v7558_v11  ;;  %v3096_v5 = vadd.f32 %v2692_v43, %v11045_v0  ;;  %v2693_v22 = vmax.f32 %v966_v49, 0.0  ;;  %v2756_v2 = vmax.f32 %v968_v44, 0.0  ;;  %v970_v55 = vadd.f32 %v969_v59, %v7389_v3  ;;  %2435 = vmatprep.mubr.bf16.mxu1 %v11046_v32 }
 0x117   : > { %11043 = vst [vmem:[#allocation24_spill] sm:$0xff] %v7569_v4  ;;  %11044 = vst [vmem:[#allocation25_spill] sm:$0xff] %v7572_v18  ;;  %v3102_v18 = vpack.c.bf16 %v3099_v39, %v3098_v48  ;;  %v1219_v28 = vadd.f32 %v1218_v41, %v7321_v20  ;;  %v1221_v17 = vadd.f32 %v1220_v30, %v7321_v20  ;;  %v11049_v49 = vmax.f32 %v7458_v42, 0.0 }
 0x118   : > { %v7589_v1 = vmul.f32 0.25, %v3096_v5  ;;  %v7592_v33 = vadd.f32 %v3096_v5, %v7520_v31  ;;  %v7594_v16 = vadd.f32 %v2693_v22, %v2692_v43  ;;  %v1016_v44 = vpop.f32.mrb[16].mxu1  ;;  %v2757_v0 = vmax.f32 %v970_v55, 0.0 }
 0x119   : > { %v3097_v59 = vadd.f32 %v2756_v2, %v11049_v49  ;;  %5318 = vmatprep.subr.bf16.mxu0 %v3102_v18  ;;  %v7598_v7 = vmax.f32 %v1219_v28, 0.0  ;;  %v1017_v48 = vadd.f32 %v1016_v44, %v7331_v25  ;;  %v7601_v41 = vmax.f32 %v1221_v17, 0.0  ;;  %v1018_v30 = vpop.f32.mrb[17].mxu1  ;;  %v1228_v39 = vpop.f32.mrb[16].mxu0 }
 0x11a   : > { %11047 = vst [vmem:[#allocation26_spill] sm:$0xff] %v7592_v33  ;;  %11048 = vst [vmem:[#allocation27_spill] sm:$0xff] %v7594_v16  ;;  %v7604_v12 = vmul.f32 0.25, %v7594_v16  ;;  %v11051_v42 = vpack.c.bf16 %v7374_v60, %v7366_v57  ;;  %v7613_v28 = vadd.f32 %v1018_v30, %v7331_v25  ;;  %v1020_v55 = vpop.f32.mrb[18].mxu1  ;;  %v1230_v18 = vpop.f32.mrb[17].mxu0  ;;  %v7615_v17 = vadd.f32 %v2757_v0, %v2756_v2 }
 0x11b   : > { %v3101_v5 = vmul.f32 0.25, %v3097_v59  ;;  %v7607_v43 = vadd.f32 %v3097_v59, %v7554_v24  ;;  %v4642_v49 = vadd.f32 %v7380_v61, %v7598_v7  ;;  %v2694_v44 = vmax.f32 %v1017_v48, 0.0  ;;  %v1022_v59 = vpop.f32.mrb[19].mxu1 }
 0x11c   : > { %5319 = vmatpush1.bf16.msra.mxu0 %v11051_v42  ;;  %11052 = vst [vmem:[#allocation29_spill] sm:$0xff] %v7615_v17  ;;  %v7621_v16 = vadd.f32 %v7601_v41, %v7598_v7  ;;  %v10896_v57 = vmax.f32 %v7613_v28, 0.0  ;;  %v1223_v60 = vadd.f32 %v1222_v53, %v7333_v27  ;;  %v1021_v30 = vadd.f32 %v1020_v55, %v7389_v3  ;;  %v7641_v53 = vld [vmem:[%s10875_s1] sm:$0xff]  }
 0x11d   : > { %11050 = vst [vmem:[#allocation28_spill] sm:$0xff] %v7607_v43  ;;  %v1232_v43 = vpop.f32.mrb[18].mxu0  ;;  %v1225_v42 = vadd.f32 %v1224_v40, %v7333_v27  ;;  %v7628_v33 = vmul.f32 0.25, %v7615_v17  ;;  %v7630_v61 = vadd.f32 %v2694_v44, %v2693_v22  ;;  %v7633_v48 = vadd.f32 %v4642_v49, %v7601_v41  ;;  %6683 = vmatmul.mubr.msk.bf16.vlgmr.msra.gmra.mrb[124].mxu1 %vm663_vm2, %v7641_v53 }
 0x11e   : > { %11053 = vst [vmem:[#allocation30_spill] sm:$0xff] %v7621_v16  ;;  %v1234_v2 = vpop.f32.mrb[19].mxu0  ;;  %v7636_v16 = vadd.f32 %v1022_v59, %v7389_v3  ;;  %v3580_v40 = vadd.f32 %v10896_v57, %v2694_v44  ;;  %v7647_v55 = vmax.f32 %v1223_v60, 0.0  ;;  %v2758_v22 = vmax.f32 %v1021_v30, 0.0  ;;  %2510 = vmatpush1.bf16.msra.mxu1 %v7398_v6  ;;  %2445 = vmatprep.mubr.bf16.mxu1 %v11046_v32 }
 0x11f   : > { %11054 = vst [vmem:[#allocation31_spill] sm:$0xff] %v7630_v61  ;;  %11055 = vst [vmem:[#allocation32_spill] sm:$0xff] %v7633_v48  ;;  %v7649_v17 = vmax.f32 %v1225_v42, 0.0  ;;  %v7654_v49 = vmul.f32 0.25, %v7630_v61  ;;  %v1229_v48 = vadd.f32 %v1228_v39, %v7331_v25  ;;  %v1231_v19 = vadd.f32 %v1230_v18, %v7331_v25 }
 0x120   : > { %v10899_v59 = vmax.f32 %v7636_v16, 0.0  ;;  %v7659_v24 = vmul.f32 0.25, %v3580_v40  ;;  %v4643_v44 = vadd.f32 %v7407_v8, %v7647_v55  ;;  %v7663_v60 = vadd.f32 %v2758_v22, %v2757_v0  ;;  %v1059_v30 = vpop.f32.mrb[20].mxu1 }
 0x121   : > { %v7667_v6 = vadd.f32 %v7649_v17, %v7647_v55  ;;  %v7671_v57 = vmax.f32 %v1229_v48, 0.0  ;;  %v7673_v39 = vmax.f32 %v1231_v19, 0.0  ;;  %v1233_v18 = vadd.f32 %v1232_v43, %v7389_v3  ;;  %v1061_v61 = vpop.f32.mrb[21].mxu1  ;;  %v1324_v31 = vpop.f32.mrb[20].mxu0 }
 0x122   : > { %11056 = vst [vmem:[#allocation33_spill] sm:$0xff] %v7663_v60  ;;  %v3581_v42 = vadd.f32 %v10899_v59, %v2758_v22  ;;  %v7677_v8 = vmul.f32 0.25, %v7663_v60  ;;  %v7680_v0 = vadd.f32 %v4643_v44, %v7649_v17  ;;  %v1235_v11 = vadd.f32 %v1234_v2, %v7389_v3  ;;  %v1063_v34 = vpop.f32.mrb[22].mxu1  ;;  %v1326_v22 = vpop.f32.mrb[21].mxu0 }
 0x123   : > { %11057 = vst [vmem:[#allocation34_spill] sm:$0xff] %v7667_v6  ;;  %11058 = vst [vmem:[#allocation35_spill] sm:$0xff] %v7671_v57  ;;  %v3103_v6 = vpack.c.bf16 %v3101_v5, %v7589_v1  ;;  %v4644_v19 = vadd.f32 %v3580_v40, %v7671_v57  ;;  %v7689_v43 = vadd.f32 %v7673_v39, %v7671_v57  ;;  %v7691_v59 = vmax.f32 %v1233_v18, 0.0  ;;  %v1065_v60 = vpop.f32.mrb[23].mxu1  ;;  %v1328_v4 = vpop.f32.mrb[22].mxu0 }
 0x124   : > { %11059 = vst [vmem:[#allocation36_spill] sm:$0xff] %v7680_v0  ;;  %v7684_v48 = vmul.f32 0.25, %v3581_v42  ;;  %v7695_v1 = vmax.f32 %v1235_v11, 0.0  ;;  %v3566_v5 = vpack.c.bf16 %v7565_v62, %v7528_v54  ;;  %v1060_v2 = vadd.f32 %v1059_v30, %v7321_v20  ;;  %v7700_v40 = vpop.f32.mrb[23].mxu0 }
 0x125   : > { %11060 = vst [vmem:[#allocation37_spill] sm:$0xff] %v7689_v43  ;;  %11061 = vst [vmem:[#allocation38_spill] sm:$0xff] %v7691_v59  ;;  %5320 = vmatprep.subr.bf16.mxu0 %v3103_v6  ;;  %v7705_v18 = vadd.f32 %v4644_v19, %v7673_v39  ;;  %v4645_v43 = vadd.f32 %v3581_v42, %v7691_v59  ;;  %v11063_v6 = vpack.c.bf16 %v7455_v51, %v7433_v36 }
 0x126   : > { %v1062_v11 = vadd.f32 %v1061_v61, %v7321_v20  ;;  %v7714_v54 = vadd.f32 %v7695_v1, %v7691_v59  ;;  %v2568_v62 = vmax.f32 %v1060_v2, 0.0  ;;  %v1064_v30 = vadd.f32 %v1063_v34, %v7333_v27  ;;  %6684 = vmatmul.mubr.msk.bf16.gmra.mrb[128].mxu1 %vm663_vm2, %v7577_v35 }
 0x127   : > { %11062 = vst [vmem:[#allocation39_spill] sm:$0xff] %v7705_v18  ;;  %5321 = vmatpush1.bf16.msra.mxu0 %v11063_v6  ;;  %v1066_v0 = vadd.f32 %v1065_v60, %v7333_v27  ;;  %v7721_v42 = vadd.f32 %v4645_v43, %v7695_v1  ;;  %v3567_v51 = vpack.c.bf16 %v7628_v33, %v7604_v12  ;;  %v11066_v19 = vmax.f32 %v7348_v45, 0.0 }
 0x128   : > { %11064 = vst [vmem:[#allocation40_spill] sm:$0xff] %v7714_v54  ;;  %5322 = vmatprep.subr.bf16.mxu0 %v3566_v5  ;;  %v2569_v36 = vmax.f32 %v1062_v11, 0.0  ;;  %v1325_v61 = vadd.f32 %v1324_v31, %v7321_v20  ;;  %2541 = vmatprep.mubr.bf16.mxu1 %v11046_v32  ;;  %v2632_v34 = vmax.f32 %v1064_v30, 0.0  ;;  %v1069_v60 = vpop.f32.mrb[24].mxu1  ;;  %v1327_v6 = vadd.f32 %v1326_v22, %v7321_v20 }
 0x129   : > { %11065 = vst [vmem:[#allocation41_spill] sm:$0xff] %v7721_v42  ;;  %v3134_v5 = vadd.f32 %v2568_v62, %v11066_v19  ;;  %v2633_v2 = vmax.f32 %v1066_v0, 0.0  ;;  %v11067_v43 = vpack.c.bf16 %v7414_v9, %v7412_v14  ;;  %v1070_v33 = vadd.f32 %v1069_v60, %v7331_v25  ;;  %v1071_v12 = vpop.f32.mrb[25].mxu1  ;;  %v1334_v45 = vpop.f32.mrb[24].mxu0 }
 0x12a   : > { %v7730_v44 = vadd.f32 %v2569_v36, %v2568_v62  ;;  %v7736_v31 = vmax.f32 %v1325_v61, 0.0  ;;  %v1329_v11 = vadd.f32 %v1328_v4, %v7333_v27  ;;  %v11069_v22 = vmax.f32 %v7364_v56, 0.0  ;;  %v1073_v14 = vpop.f32.mrb[26].mxu1  ;;  %v1336_v9 = vpop.f32.mrb[25].mxu0 }
 0x12b   : > { %5323 = vmatpush1.bf16.msra.mxu0 %v11067_v43  ;;  %v3138_v19 = vmul.f32 0.25, %v3134_v5  ;;  %v7740_v0 = vadd.f32 %v3134_v5, %v7601_v41  ;;  %v7744_v30 = vadd.f32 %v2633_v2, %v2632_v34  ;;  %v2696_v61 = vmax.f32 %v1070_v33, 0.0  ;;  %v1075_v43 = vpop.f32.mrb[27].mxu1  ;;  %v1338_v42 = vpop.f32.mrb[26].mxu0 }
 0x12c   : > { %v3135_v62 = vadd.f32 %v2632_v34, %v11069_v22  ;;  %5324 = vmatprep.subr.bf16.mxu0 %v3567_v51  ;;  %v7747_v36 = vmul.f32 0.25, %v7730_v44  ;;  %v1072_v60 = vadd.f32 %v1071_v12, %v7331_v25  ;;  %v1074_v4 = vadd.f32 %v1073_v14, %v7389_v3  ;;  %v7758_v34 = vpop.f32.mrb[27].mxu0 }
 0x12d   : > { %11068 = vst [vmem:[#allocation42_spill] sm:$0xff] %v7740_v0  ;;  %v7755_v56 = vmul.f32 0.25, %v7744_v30  ;;  %v1076_v51 = vadd.f32 %v1075_v43, %v7389_v3  ;;  %v11071_v2 = vpack.c.bf16 %v7496_v23, %v7462_v58  ;;  %v11072_v33 = vmax.f32 %v7613_v28, 0.0 }
 0x12e   : > { %v3139_v5 = vmul.f32 0.25, %v3135_v62  ;;  %v7752_v18 = vadd.f32 %v3135_v62, %v7649_v17  ;;  %v2697_v22 = vmax.f32 %v1072_v60, 0.0  ;;  %v2760_v14 = vmax.f32 %v1074_v4, 0.0  ;;  %6687 = vmatmul.mubr.msk.bf16.vlgmr.msra.gmra.mrb[132].mxu1 %vm663_vm2, %v7641_v53 }
 0x12f   : > { %5325 = vmatpush1.bf16.msra.mxu0 %v11071_v2  ;;  %v3136_v12 = vadd.f32 %v2696_v61, %v11072_v33  ;;  %v7767_v62 = vadd.f32 %v7736_v31, %v7427_v29  ;;  %v3626_v0 = vadd.f32 %v7452_v47, %v7736_v31  ;;  %v7771_v43 = vmax.f32 %v1327_v6, 0.0  ;;  %2551 = vmatprep.mubr.bf16.mxu1 %v11046_v32 }
 0x130   : > { %11070 = vst [vmem:[#allocation43_spill] sm:$0xff] %v7752_v18  ;;  %v2761_v18 = vmax.f32 %v1076_v51, 0.0  ;;  %v7773_v54 = vmax.f32 %v1329_v11, 0.0  ;;  %v7782_v28 = vadd.f32 %v2697_v22, %v2696_v61  ;;  %v11075_v29 = vmax.f32 %v7636_v16, 0.0  ;;  %v1165_v61 = vpop.f32.mrb[28].mxu1 }
 0x131   : > { %11073 = vst [vmem:[#allocation44_spill] sm:$0xff] %v7767_v62  ;;  %v7777_v58 = vmul.f32 0.25, %v3136_v12  ;;  %v7780_v23 = vadd.f32 %v3136_v12, %v7673_v39  ;;  %v7790_v6 = vadd.f32 %v3626_v0, %v7771_v43  ;;  %v7794_v53 = vadd.f32 %v7771_v43, %v7736_v31  ;;  %v1167_v0 = vpop.f32.mrb[29].mxu1  ;;  %v1430_v2 = vpop.f32.mrb[28].mxu0 }
 0x132   : > { %v3137_v60 = vadd.f32 %v2760_v14, %v11075_v29  ;;  %v7787_v47 = vadd.f32 %v2761_v18, %v2760_v14  ;;  %v7798_v11 = vadd.f32 %v7773_v54, %v7445_v46  ;;  %v7801_v4 = vmul.f32 0.25, %v7782_v28  ;;  %v1169_v14 = vpop.f32.mrb[30].mxu1  ;;  %v7813_v29 = vpop.f32.mrb[29].mxu0 }
 0x133   : > { %11074 = vst [vmem:[#allocation45_spill] sm:$0xff] %v7780_v23  ;;  %11076 = vst [vmem:[#allocation46_spill] sm:$0xff] %v7790_v6  ;;  %v3627_v18 = vadd.f32 %v7487_v52, %v7773_v54  ;;  %v3142_v12 = vpack.c.bf16 %v3139_v5, %v3138_v19  ;;  %v1166_v46 = vadd.f32 %v1165_v61, %v7321_v20 }
 0x134   : > { %11077 = vst [vmem:[#allocation47_spill] sm:$0xff] %v7798_v11  ;;  %v3141_v16 = vmul.f32 0.25, %v3137_v60  ;;  %v7804_v51 = vadd.f32 %v3137_v60, %v7695_v1  ;;  %v7809_v33 = vmul.f32 0.25, %v7787_v47  ;;  %v1168_v22 = vadd.f32 %v1167_v0, %v7321_v20  ;;  %v1171_v11 = vpop.f32.mrb[31].mxu1 }
 0x135   : > { %v1331_v60 = vadd.f32 %v7700_v40, %v7333_v27  ;;  %v1170_v6 = vadd.f32 %v1169_v14, %v7333_v27  ;;  %v1335_v52 = vadd.f32 %v1334_v45, %v7331_v25  ;;  %v1337_v62 = vadd.f32 %v1336_v9, %v7331_v25  ;;  %5381 = vmatprep.subr.bf16.mxu1 %v3142_v12 }
 0x136   : > { %11078 = vst [vmem:[#allocation48_spill] sm:$0xff] %v7804_v51  ;;  %v7820_v51 = vpop.f32.mrb[30].mxu0  ;;  %v7822_v19 = vmax.f32 %v1166_v46, 0.0  ;;  %v7824_v5 = vmax.f32 %v1168_v22, 0.0  ;;  %v1172_v61 = vadd.f32 %v1171_v11, %v7333_v27  ;;  %v1339_v0 = vadd.f32 %v1338_v42, %v7389_v3  ;;  %6688 = vmatmul.mubr.msk.bf16.gmra.mrb[136].mxu1 %vm663_vm2, %v7577_v35 }
 0x137   : > { %v7828_v23 = vpop.f32.mrb[31].mxu0  ;;  %v11079_v40 = vpack.c.bf16 %v7562_v50, %v7525_v37  ;;  %v7833_v45 = vmax.f32 %v1331_v60, 0.0  ;;  %v7835_v9 = vmax.f32 %v1170_v6, 0.0  ;;  %v7837_v14 = vmax.f32 %v1335_v52, 0.0  ;;  %5413 = vmatprep.mubr.bf16.mxu1 %v11046_v32 }
 0x138   : > { %v7839_v12 = vmax.f32 %v1337_v62, 0.0  ;;  %v7843_v46 = vadd.f32 %v7822_v19, %v7435_v38  ;;  %v7847_v42 = vadd.f32 %v7598_v7, %v7824_v5  ;;  %v7851_v37 = vadd.f32 %v7824_v5, %v7822_v19  ;;  %v1175_v60 = vpop.f32.mrb[32].mxu1 }
 0x139   : > { %5382 = vmatpush1.bf16.msra.mxu1 %v11079_v40  ;;  %11080 = vst [vmem:[#allocation49_spill] sm:$0xff] %v7837_v14  ;;  %v7855_v50 = vadd.f32 %v7510_v26, %v7824_v5  ;;  %v7860_v62 = vadd.f32 %v3627_v18, %v7833_v45  ;;  %v7864_v38 = vadd.f32 %v7833_v45, %v7773_v54  ;;  %v7870_v11 = vmax.f32 %v1172_v61, 0.0  ;;  %v1177_v61 = vpop.f32.mrb[33].mxu1  ;;  %v7898_v40 = vpop.f32.mrb[32].mxu0 }
 0x13a   : > { %11081 = vst [vmem:[#allocation50_spill] sm:$0xff] %v7839_v12  ;;  %11082 = vst [vmem:[#allocation51_spill] sm:$0xff] %v7843_v46  ;;  %v7868_v6 = vadd.f32 %v7835_v9, %v7471_v15  ;;  %v7875_v26 = vadd.f32 %v7837_v14, %v7492_v63  ;;  %v3628_v35 = vadd.f32 %v7534_v13, %v7837_v14  ;;  %v7883_v22 = vmax.f32 %v1339_v0, 0.0 }
 0x13b   : > { %11083 = vst [vmem:[#allocation52_spill] sm:$0xff] %v7851_v37  ;;  %11084 = vst [vmem:[#allocation53_spill] sm:$0xff] %v7860_v62  ;;  %v7881_v18 = vadd.f32 %v7839_v12, %v7837_v14  ;;  %v7887_v15 = vadd.f32 %v7647_v55, %v7870_v11  ;;  %v7891_v52 = vadd.f32 %v7870_v11, %v7835_v9  ;;  %v11092_v37 = vld [vmem:[#allocation24_spill] sm:$0xff] }
 0x13c   : > { %11085 = vst [vmem:[#allocation54_spill] sm:$0xff] %v7868_v6  ;;  %11086 = vst [vmem:[#allocation55_spill] sm:$0xff] %v7875_v26  ;;  %v7895_v63 = vadd.f32 %v7550_v10, %v7870_v11  ;;  %v3143_v13 = vpack.c.bf16 %v3141_v16, %v7777_v58  ;;  %v7901_v0 = vadd.f32 %v3628_v35, %v7839_v12  ;;  %v1179_v10 = vpop.f32.mrb[34].mxu1  ;;  %v7911_v6 = vpop.f32.mrb[33].mxu0 }
 0x13d   : > { %11087 = vst [vmem:[#allocation56_spill] sm:$0xff] %v7881_v18  ;;  %11088 = vst [vmem:[#allocation57_spill] sm:$0xff] %v7883_v22  ;;  %v7905_v62 = vadd.f32 %v7883_v22, %v7530_v21  ;;  %v3629_v26 = vadd.f32 %v11092_v37, %v7883_v22  ;;  %v1176_v58 = vadd.f32 %v1175_v60, %v7331_v25 }
 0x13e   : > { %11089 = vst [vmem:[#allocation58_spill] sm:$0xff] %v7891_v52  ;;  %11090 = vst [vmem:[#allocation59_spill] sm:$0xff] %v7901_v0  ;;  %v3606_v52 = vpack.c.bf16 %v7755_v56, %v7747_v36  ;;  %5383 = vmatprep.subr.bf16.mxu1 %v3143_v13  ;;  %v1178_v16 = vadd.f32 %v1177_v61, %v7331_v25  ;;  %v1341_v35 = vadd.f32 %v7758_v34, %v7389_v3  ;;  %v1181_v0 = vpop.f32.mrb[35].mxu1  ;;  %v11094_v13 = vld [vmem:[#allocation17_spill] sm:$0xff] }
 0x13f   : > { %11091 = vst [vmem:[#allocation60_spill] sm:$0xff] %v7905_v62  ;;  %v1180_v21 = vadd.f32 %v1179_v10, %v7389_v3  ;;  %v7918_v62 = vpop.f32.mrb[34].mxu0  ;;  %v11093_v37 = vpack.c.bf16 %v7677_v8, %v7654_v49  ;;  %v1182_v36 = vadd.f32 %v1181_v0, %v7389_v3  ;;  %v3607_v56 = vpack.c.bf16 %v7809_v33, %v7801_v4  ;;  %v11096_v4 = vld [vmem:[#allocation23_spill] sm:$0xff] }
 0x140   : > { %v1431_v60 = vadd.f32 %v1430_v2, %v7321_v20  ;;  %v4086_v61 = vadd.f32 %v11094_v13, %v7822_v19  ;;  %v7929_v34 = vpop.f32.mrb[35].mxu0  ;;  %v7931_v10 = vmax.f32 %v1176_v58, 0.0  ;;  %v7933_v46 = vmax.f32 %v1178_v16, 0.0  ;;  %v11101_v16 = vld [vmem:[#allocation31_spill] sm:$0xff] }
 0x141   : > { %5384 = vmatpush1.bf16.msra.mxu1 %v11093_v37  ;;  %v7935_v12 = vmax.f32 %v1341_v35, 0.0  ;;  %v7937_v49 = vmax.f32 %v1180_v21, 0.0  ;;  %v7939_v8 = vmax.f32 %v1182_v36, 0.0  ;;  %v4087_v2 = vadd.f32 %v11096_v4, %v7835_v9  ;;  %v11097_v37 = vld [vmem:[#allocation18_spill] sm:$0xff] }
 0x142   : > { %5385 = vmatprep.subr.bf16.mxu1 %v3606_v52  ;;  %v7941_v0 = vmax.f32 %v1431_v60, 0.0  ;;  %v4090_v33 = vmul.f32 0.25, %v4086_v61  ;;  %v7947_v13 = vadd.f32 %v7931_v10, %v11097_v37  ;;  %v7951_v52 = vadd.f32 %v7671_v57, %v7933_v46  ;;  %v11105_v60 = vld [vmem:[#allocation22_spill] sm:$0xff]  ;;  %v11108_v37 = vld [vmem:[#allocation9_spill] sm:$0xff] }
 0x143   : > { %11095 = vst [vmem:[#allocation24_spill] sm:$0xff] %v7935_v12  ;;  %v7955_v58 = vadd.f32 %v7933_v46, %v7931_v10  ;;  %v7959_v35 = vadd.f32 %v11101_v16, %v7933_v46  ;;  %v7962_v21 = vadd.f32 %v3629_v26, %v7935_v12  ;;  %v7966_v36 = vadd.f32 %v7935_v12, %v7883_v22  ;;  %v11107_v4 = vld [vmem:[#allocation10_spill] sm:$0xff]  ;;  %v1271_v16 = vpop.f32.mrb[36].mxu1 }
 0x144   : > { %11098 = vst [vmem:[#allocation17_spill] sm:$0xff] %v7947_v13  ;;  %11099 = vst [vmem:[#allocation23_spill] sm:$0xff] %v7951_v52  ;;  %v7970_v61 = vadd.f32 %v7937_v49, %v11105_v60  ;;  %v11109_v13 = vpack.c.bf16 %v11107_v4, %v11108_v37  ;;  %v7981_v26 = vadd.f32 %v7939_v8, %v7937_v49  ;;  %v11114_v60 = vld [vmem:[#allocation30_spill] sm:$0xff]  ;;  %v4091_v52 = vmul.f32 0.25, %v4087_v2  ;;  %v1273_v4 = vpop.f32.mrb[37].mxu1 }
 0x145   : > { %11100 = vst [vmem:[#allocation18_spill] sm:$0xff] %v7955_v58  ;;  %11102 = vst [vmem:[#allocation31_spill] sm:$0xff] %v7959_v35  ;;  %v7977_v58 = vadd.f32 %v7691_v59, %v7939_v8  ;;  %v1433_v37 = vadd.f32 %v7813_v29, %v7321_v20  ;;  %v1274_v2 = vadd.f32 %v1273_v4, %v7321_v20 }
 0x146   : > { %11103 = vst [vmem:[#allocation61_spill] sm:$0xff] %v7962_v21  ;;  %11104 = vst [vmem:[#allocation62_spill] sm:$0xff] %v7966_v36  ;;  %5386 = vmatpush1.bf16.msra.mxu1 %v11109_v13  ;;  %v11112_v21 = vld [vmem:[#allocation33_spill] sm:$0xff]  ;;  %v7989_v13 = vpop.f32.mrb[36].mxu0  ;;  %v4094_v59 = vpack.c.bf16 %v4091_v52, %v4090_v33 }
 0x147   : > { %11106 = vst [vmem:[#allocation22_spill] sm:$0xff] %v7970_v61  ;;  %11110 = vst [vmem:[#allocation10_spill] sm:$0xff] %v7977_v58  ;;  %v7985_v12 = vadd.f32 %v11112_v21, %v7939_v8  ;;  %5387 = vmatprep.subr.bf16.mxu1 %v3607_v56  ;;  %v3698_v61 = vadd.f32 %v11114_v60, %v7941_v0  ;;  %v11115_v58 = vld [vmem:[#allocation12_spill] sm:$0xff]  ;;  %v11116_v36 = vld [vmem:[#allocation13_spill] sm:$0xff]  ;;  %v1272_v21 = vadd.f32 %v1271_v16, %v7321_v20  ;;  %v7998_v56 = vpop.f32.mrb[37].mxu0 }
 0x148   : > { %11111 = vst [vmem:[#allocation9_spill] sm:$0xff] %v7981_v26  ;;  %v4058_v22 = vpack.c.bf16 %v11116_v36, %v11115_v58  ;;  %v1435_v26 = vadd.f32 %v7820_v51, %v7333_v27  ;;  %v1437_v60 = vadd.f32 %v7828_v23, %v7333_v27  ;;  %v8004_v57 = vpop.f32.mrb[38].mxu0  ;;  %v8006_v58 = vmax.f32 %v1433_v37, 0.0  ;;  %5326 = vmatprep.subr.bf16.mxu0 %v4094_v59 }
 0x149   : > { %11113 = vst [vmem:[#allocation33_spill] sm:$0xff] %v7985_v12  ;;  %v1275_v12 = vpop.f32.mrb[38].mxu1  ;;  %v11118_v51 = vpack.c.bf16 %v7684_v48, %v7659_v24  ;;  %v8013_v16 = vmax.f32 %v1272_v21, 0.0  ;;  %v8016_v52 = vpop.f32.mrb[39].mxu0  ;;  %v2577_v23 = vmax.f32 %v1274_v2, 0.0  ;;  %v1441_v37 = vadd.f32 %v7898_v40, %v7331_v25 }
 0x14a   : > { %v1276_v35 = vadd.f32 %v1275_v12, %v7333_v27  ;;  %v1277_v29 = vpop.f32.mrb[39].mxu1  ;;  %11117 = vst [vmem:[#allocation30_spill] sm:$0xff] %v8006_v58  ;;  %v8011_v36 = vmax.f32 %v1435_v26, 0.0  ;;  %v8018_v12 = vmax.f32 %v1437_v60, 0.0  ;;  %v8025_v24 = vadd.f32 %v3698_v61, %v8006_v58  ;;  %5327 = vmatpush1.bf16.msra.mxu0 %v4058_v22  ;;  %v11123_v26 = vld [vmem:[#allocation34_spill] sm:$0xff] }
 0x14b   : > { %5388 = vmatpush1.bf16.msra.mxu1 %v11118_v51  ;;  %v1278_v33 = vadd.f32 %v1277_v29, %v7333_v27  ;;  %v8029_v48 = vadd.f32 %v8006_v58, %v7941_v0  ;;  %v8035_v59 = vadd.f32 %v8013_v16, %v7601_v41  ;;  %v4678_v40 = vadd.f32 %v7730_v44, %v8013_v16  ;;  %v1281_v51 = vpop.f32.mrb[40].mxu1  ;;  %v11130_v44 = vld [vmem:[#allocation26_spill] sm:$0xff] }
 0x14c   : > { %11119 = vst [vmem:[#allocation12_spill] sm:$0xff] %v8011_v36  ;;  %11120 = vst [vmem:[#allocation13_spill] sm:$0xff] %v8018_v12  ;;  %v8020_v4 = vmax.f32 %v1276_v35, 0.0  ;;  %v3699_v21 = vadd.f32 %v11123_v26, %v8011_v36  ;;  %v8038_v35 = vadd.f32 %v2577_v23, %v8013_v16  ;;  %v8044_v61 = vadd.f32 %v8018_v12, %v8011_v36 }
 0x14d   : > { %11121 = vst [vmem:[#allocation63_spill] sm:$0xff] %v8025_v24  ;;  %11122 = vst [vmem:[#allocation64_spill] sm:$0xff] %v8029_v48  ;;  %v2641_v60 = vmax.f32 %v1278_v33, 0.0  ;;  %v8055_v29 = vmax.f32 %v1441_v37, 0.0  ;;  %v4686_v26 = vadd.f32 %v4678_v40, %v2577_v23  ;;  %v4088_v24 = vadd.f32 %v11130_v44, %v7931_v10  ;;  %v11133_v37 = vld [vmem:[#allocation37_spill] sm:$0xff]  ;;  %v11134_v23 = vld [vmem:[#allocation15_spill] sm:$0xff] }
 0x14e   : > { %11124 = vst [vmem:[#allocation34_spill] sm:$0xff] %v8035_v59  ;;  %11125 = vst [vmem:[#allocation65_spill] sm:$0xff] %v8038_v35  ;;  %v8048_v22 = vadd.f32 %v8020_v4, %v7649_v17  ;;  %v8051_v2 = vadd.f32 %v3699_v21, %v8018_v12  ;;  %v4679_v41 = vadd.f32 %v7744_v30, %v8020_v4  ;;  %v11131_v59 = vld [vmem:[#allocation28_spill] sm:$0xff]  ;;  %v8063_v21 = vpop.f32.mrb[40].mxu0  ;;  %v4056_v40 = vmul.f32 0.25, %v11134_v23 }
 0x14f   : > { %11126 = vst [vmem:[#allocation66_spill] sm:$0xff] %v8044_v61  ;;  %11129 = vst [vmem:[#allocation69_spill] sm:$0xff] %v8055_v29  ;;  %v4089_v35 = vadd.f32 %v11131_v59, %v7937_v49  ;;  %v1443_v17 = vadd.f32 %v7911_v6, %v7331_v25  ;;  %v8066_v33 = vadd.f32 %v2641_v60, %v8020_v4  ;;  %v8071_v44 = vpop.f32.mrb[41].mxu0  ;;  %v8073_v58 = vmul.f32 0.25, %v4686_v26  ;;  %v11138_v23 = vld [vmem:[#allocation16_spill] sm:$0xff] }
 0x150   : > { %11127 = vst [vmem:[#allocation67_spill] sm:$0xff] %v8048_v22  ;;  %11128 = vst [vmem:[#allocation68_spill] sm:$0xff] %v8051_v2  ;;  %v1283_v22 = vpop.f32.mrb[41].mxu1  ;;  %v4687_v30 = vadd.f32 %v4679_v41, %v2641_v60  ;;  %v3700_v2 = vadd.f32 %v11133_v37, %v8055_v29  ;;  %v4092_v59 = vmul.f32 0.25, %v4088_v24  ;;  %v8077_v18 = vpop.f32.mrb[42].mxu0  ;;  %v11137_v60 = vld [vmem:[#allocation20_spill] sm:$0xff]  ;;  %v1445_v37 = vadd.f32 %v7918_v62, %v7389_v3 }
 0x151   : > { %11132 = vst [vmem:[#allocation26_spill] sm:$0xff] %v8066_v33  ;;  %v1285_v12 = vpop.f32.mrb[42].mxu1  ;;  %v4093_v61 = vmul.f32 0.25, %v4089_v35  ;;  %v8075_v6 = vmax.f32 %v1443_v17, 0.0  ;;  %v4057_v41 = vmul.f32 0.25, %v11137_v60  ;;  %v4606_v33 = vadd.f32 %v11138_v23, %v7822_v19  ;;  %v8086_v32 = vpop.f32.mrb[43].mxu0 }
 0x152   : > { %v1287_v48 = vpop.f32.mrb[43].mxu1  ;;  %v8079_v14 = vmul.f32 0.25, %v4687_v30  ;;  %v11140_v17 = vld [vmem:[#allocation21_spill] sm:$0xff]  ;;  %v1282_v19 = vadd.f32 %v1281_v51, %v7331_v25  ;;  %v1286_v23 = vadd.f32 %v1285_v12, %v7389_v3  ;;  %v8119_v12 = vpop.f32.mrb[44].mxu0 }
 0x153   : > { %11135 = vst [vmem:[#allocation28_spill] sm:$0xff] %v8075_v6  ;;  %v4095_v26 = vpack.c.bf16 %v4093_v61, %v4092_v59  ;;  %v8089_v24 = vadd.f32 %v3700_v2, %v8075_v6  ;;  %v8093_v35 = vadd.f32 %v8075_v6, %v8055_v29  ;;  %v4607_v30 = vadd.f32 %v11140_v17, %v7835_v9  ;;  %v11142_v9 = vld [vmem:[#allocation40_spill] sm:$0xff]  ;;  %v8111_v51 = vpop.f32.mrb[44].mxu1 }
 0x154   : > { %11136 = vst [vmem:[#allocation37_spill] sm:$0xff] %v8079_v14  ;;  %v4059_v60 = vpack.c.bf16 %v4057_v41, %v4056_v40  ;;  %v8097_v14 = vmax.f32 %v1445_v37, 0.0  ;;  %v4614_v62 = vadd.f32 %v4606_v33, %v7824_v5  ;;  %v1284_v2 = vadd.f32 %v1283_v22, %v7331_v25  ;;  %v11143_v5 = vld [vmem:[#allocation11_spill] sm:$0xff] }
 0x155   : > { %11139 = vst [vmem:[#allocation15_spill] sm:$0xff] %v8089_v24  ;;  %5328 = vmatprep.subr.bf16.mxu0 %v4095_v26  ;;  %v4615_v61 = vadd.f32 %v4607_v30, %v7870_v11  ;;  %v1447_v59 = vadd.f32 %v7929_v34, %v7389_v3  ;;  %v8108_v37 = vmax.f32 %v1282_v19, 0.0  ;;  %v4582_v33 = vmul.f32 0.25, %v11143_v5  ;;  %v8117_v34 = vpop.f32.mrb[45].mxu1 }
 0x156   : > { %11141 = vst [vmem:[#allocation20_spill] sm:$0xff] %v8097_v14  ;;  %5329 = vmatpush1.bf16.msra.mxu0 %v4059_v60  ;;  %v3701_v40 = vadd.f32 %v11142_v9, %v8097_v14  ;;  %v4618_v41 = vmul.f32 0.25, %v4614_v62  ;;  %v2705_v11 = vmax.f32 %v1284_v2, 0.0  ;;  %v8115_v22 = vmax.f32 %v1286_v23, 0.0  ;;  %v11146_v62 = vld [vmem:[#allocation14_spill] sm:$0xff]  ;;  %v8129_v2 = vpop.f32.mrb[46].mxu1 }
 0x157   : > { %v4619_v26 = vmul.f32 0.25, %v4615_v61  ;;  %v8113_v17 = vmax.f32 %v1447_v59, 0.0  ;;  %v8123_v30 = vadd.f32 %v8108_v37, %v7673_v39  ;;  %v4680_v60 = vadd.f32 %v7782_v28, %v8108_v37  ;;  %v8131_v59 = vpop.f32.mrb[45].mxu0  ;;  %v8143_v28 = vpop.f32.mrb[47].mxu1 }
 0x158   : > { %v4583_v19 = vmul.f32 0.25, %v11146_v62  ;;  %v1288_v61 = vadd.f32 %v1287_v48, %v7389_v3  ;;  %v8134_v9 = vadd.f32 %v2705_v11, %v8108_v37  ;;  %v8145_v62 = vpop.f32.mrb[46].mxu0  ;;  %v8149_v24 = vadd.f32 %v8115_v22, %v7695_v1 }
 0x159   : > { %11144 = vst [vmem:[#allocation16_spill] sm:$0xff] %v8113_v17  ;;  %11145 = vst [vmem:[#allocation21_spill] sm:$0xff] %v8123_v30  ;;  %v4622_v23 = vpack.c.bf16 %v4619_v26, %v4618_v41  ;;  %v8137_v5 = vadd.f32 %v3701_v40, %v8113_v17  ;;  %v8141_v39 = vadd.f32 %v8113_v17, %v8097_v14  ;;  %v8151_v30 = vpop.f32.mrb[47].mxu0  ;;  %v11150_v17 = vld [vmem:[#allocation27_spill] sm:$0xff] }
 0x15a   : > { %11147 = vst [vmem:[#allocation40_spill] sm:$0xff] %v8134_v9  ;;  %v4688_v48 = vadd.f32 %v4680_v60, %v2705_v11  ;;  %11149 = vst [vmem:[#allocation14_spill] sm:$0xff] %v8149_v24  ;;  %v4586_v41 = vpack.c.bf16 %v4583_v19, %v4582_v33  ;;  %v2769_v26 = vmax.f32 %v1288_v61, 0.0  ;;  %v4681_v40 = vadd.f32 %v7787_v47, %v8115_v22  ;;  %v11151_v11 = vld [vmem:[#allocation29_spill] sm:$0xff] }
 0x15b   : > { %11148 = vst [vmem:[#allocation11_spill] sm:$0xff] %v8137_v5  ;;  %5330 = vmatprep.subr.bf16.mxu0 %v4622_v23  ;;  %v1537_v5 = vadd.f32 %v7989_v13, %v7321_v20  ;;  %v4608_v9 = vadd.f32 %v11150_v17, %v7931_v10  ;;  %v4609_v60 = vadd.f32 %v11151_v11, %v7937_v49  ;;  %v11153_v23 = vld [vmem:[#allocation42_spill] sm:$0xff]  ;;  %v8182_v11 = vpop.f32.mrb[48].mxu1 }
 0x15c   : > { %v8161_v6 = vmul.f32 0.25, %v4688_v48  ;;  %5331 = vmatpush1.bf16.msra.mxu0 %v4586_v41  ;;  %v8164_v1 = vadd.f32 %v2769_v26, %v8115_v22  ;;  %v1539_v33 = vadd.f32 %v7998_v56, %v7321_v20  ;;  %v1541_v47 = vadd.f32 %v8004_v57, %v7333_v27  ;;  %v11154_v41 = vld [vmem:[#allocation43_spill] sm:$0xff] }
 0x15d   : > { %v4689_v19 = vadd.f32 %v4681_v40, %v2769_v26  ;;  %v8170_v13 = vmax.f32 %v1537_v5, 0.0  ;;  %v4616_v10 = vadd.f32 %v4608_v9, %v7933_v46  ;;  %v4617_v17 = vadd.f32 %v4609_v60, %v7939_v8  ;;  %v8192_v9 = vpop.f32.mrb[49].mxu1  ;;  %v8194_v26 = vpop.f32.mrb[48].mxu0 }
 0x15e   : > { %v8174_v49 = vmax.f32 %v1539_v33, 0.0  ;;  %v8176_v61 = vmax.f32 %v1541_v47, 0.0  ;;  %v4158_v48 = vadd.f32 %v11153_v23, %v8013_v16  ;;  %v4159_v56 = vadd.f32 %v11154_v41, %v8020_v4  ;;  %v8206_v60 = vpop.f32.mrb[50].mxu1 }
 0x15f   : > { %v8184_v57 = vmul.f32 0.25, %v4689_v19  ;;  %v8188_v5 = vadd.f32 %v8170_v13, %v7736_v31  ;;  %v4714_v46 = vadd.f32 %v7794_v53, %v8170_v13  ;;  %v4620_v8 = vmul.f32 0.25, %v4616_v10  ;;  %v8208_v53 = vpop.f32.mrb[49].mxu0  ;;  %v11159_v10 = vld [vmem:[#allocation19_spill] sm:$0xff]  ;;  %v8214_v23 = vpop.f32.mrb[51].mxu1 }
 0x160   : > { %11152 = vst [vmem:[#allocation27_spill] sm:$0xff] %v8174_v49  ;;  %v4621_v16 = vmul.f32 0.25, %v4617_v17  ;;  %v8198_v4 = vadd.f32 %v8174_v49, %v8170_v13  ;;  %v8202_v40 = vadd.f32 %v8176_v61, %v7773_v54  ;;  %v4715_v31 = vadd.f32 %v7864_v38, %v8176_v61  ;;  %v8216_v41 = vpop.f32.mrb[50].mxu0 }
 0x161   : > { %11155 = vst [vmem:[#allocation29_spill] sm:$0xff] %v8188_v5  ;;  %v8211_v33 = vadd.f32 %v4714_v46, %v8174_v49  ;;  %v4162_v47 = vmul.f32 0.25, %v4158_v48  ;;  %v4163_v19 = vmul.f32 0.25, %v4159_v56  ;;  %v4584_v17 = vmul.f32 0.25, %v11159_v10 }
 0x162   : > { %11156 = vst [vmem:[#allocation42_spill] sm:$0xff] %v8198_v4  ;;  %11157 = vst [vmem:[#allocation43_spill] sm:$0xff] %v8202_v40  ;;  %v4623_v54 = vpack.c.bf16 %v4621_v16, %v4620_v8  ;;  %v11160_v40 = vld [vmem:[#allocation25_spill] sm:$0xff]  ;;  %v4122_v38 = vadd.f32 %v7855_v50, %v7598_v7  ;;  %v4123_v24 = vadd.f32 %v7895_v63, %v7647_v55  ;;  %v8223_v4 = vpop.f32.mrb[51].mxu0 }
 0x163   : > { %11158 = vst [vmem:[#allocation70_spill] sm:$0xff] %v8211_v33  ;;  %v4585_v5 = vmul.f32 0.25, %v11160_v40  ;;  %v4166_v46 = vpack.c.bf16 %v4163_v19, %v4162_v47  ;;  %v1378_v48 = vadd.f32 %v8111_v51, %v7321_v20  ;;  %v1380_v56 = vadd.f32 %v8117_v34, %v7321_v20  ;;  %v8242_v51 = vld [vmem:[%s10877_s3] sm:$0xff]   ;;  %v8252_v47 = vpop.f32.mrb[52].mxu1 }
 0x164   : > { %v1543_v8 = vadd.f32 %v8016_v52, %v7333_v27  ;;  %5332 = vmatprep.subr.bf16.mxu0 %v4623_v54  ;;  %v4126_v40 = vmul.f32 0.25, %v4122_v38  ;;  %v4127_v10 = vmul.f32 0.25, %v4123_v24  ;;  %v1382_v7 = vadd.f32 %v8129_v2, %v7333_v27  ;;  %v8270_v54 = vpop.f32.mrb[53].mxu1 }
 0x165   : > { %v4587_v16 = vpack.c.bf16 %v4585_v5, %v4584_v17  ;;  %5389 = vmatprep.subr.bf16.mxu1 %v4166_v46  ;;  %v8233_v55 = vmax.f32 %v1378_v48, 0.0  ;;  %v8235_v50 = vmax.f32 %v1380_v56, 0.0  ;;  %v1384_v52 = vadd.f32 %v8143_v28, %v7333_v27  ;;  %v8287_v56 = vpop.f32.mrb[54].mxu1 }
 0x166   : > { %v8237_v63 = vmax.f32 %v1543_v8, 0.0  ;;  %v4130_v24 = vpack.c.bf16 %v4127_v10, %v4126_v40  ;;  %v8246_v34 = vmax.f32 %v1382_v7, 0.0  ;;  %v1547_v2 = vadd.f32 %v8063_v21, %v7331_v25  ;;  %v11169_v10 = vld [vmem:[#allocation45_spill] sm:$0xff] }
 0x167   : > { %5333 = vmatpush1.bf16.msra.mxu0 %v4587_v16  ;;  %v1549_v5 = vadd.f32 %v8071_v44, %v7331_v25  ;;  %v8256_v19 = vadd.f32 %v8233_v55, %v7771_v43  ;;  %v8260_v17 = vadd.f32 %v7847_v42, %v8235_v50  ;;  %v8264_v28 = vadd.f32 %v7941_v0, %v8235_v50  ;;  %v8272_v44 = vpop.f32.mrb[52].mxu0 }
 0x168   : > { %11161 = vst [vmem:[#allocation19_spill] sm:$0xff] %v8237_v63  ;;  %v8268_v21 = vadd.f32 %v8235_v50, %v8233_v55  ;;  %5390 = vmatpush1.bf16.msra.mxu1 %v4130_v24  ;;  %v8276_v38 = vadd.f32 %v8237_v63, %v8176_v61  ;;  %v8279_v42 = vadd.f32 %v4715_v31, %v8237_v63  ;;  %v8285_v48 = vmax.f32 %v1384_v52, 0.0  ;;  %v8289_v8 = vpop.f32.mrb[53].mxu0  ;;  %v8300_v24 = vpop.f32.mrb[55].mxu1 }
 0x169   : > { %11162 = vst [vmem:[#allocation25_spill] sm:$0xff] %v8256_v19  ;;  %11163 = vst [vmem:[#allocation71_spill] sm:$0xff] %v8264_v28  ;;  %v8283_v46 = vadd.f32 %v8246_v34, %v7833_v45  ;;  %v8292_v16 = vmax.f32 %v1547_v2, 0.0  ;;  %v8294_v40 = vmax.f32 %v1549_v5, 0.0  ;;  %v1551_v31 = vadd.f32 %v8077_v18, %v7389_v3  ;;  %v8302_v52 = vpop.f32.mrb[54].mxu0  ;;  %v11173_v18 = vld [vmem:[#allocation48_spill] sm:$0xff] }
 0x16a   : > { %11164 = vst [vmem:[#allocation72_spill] sm:$0xff] %v8268_v21  ;;  %11165 = vst [vmem:[#allocation73_spill] sm:$0xff] %v8279_v42  ;;  %5351 = vmatmul.mubr.bf16.vlgmr.msra.gmra.mrb[116].mxu0 %v8242_v51  ;;  %v4160_v7 = vadd.f32 %v11169_v10, %v8108_v37  ;;  %v8306_v42 = vadd.f32 %v7887_v15, %v8285_v48  ;;  %v8310_v2 = vadd.f32 %v8011_v36, %v8285_v48  ;;  %v11174_v37 = vmov 0   ;;  %v8319_v10 = vpop.f32.mrb[55].mxu0  ;;  %v11176_v21 = vld [vmem:[#allocation49_spill] sm:$0xff]  ;;  %v11178_v15 = vld [vmem:[#allocation56_spill] sm:$0xff] }
 0x16b   : > { %11166 = vst [vmem:[#allocation74_spill] sm:$0xff] %v8283_v46  ;;  %11167 = vst [vmem:[#allocation75_spill] sm:$0xff] %v8292_v16  ;;  %v8314_v5 = vadd.f32 %v8285_v48, %v8246_v34  ;;  %v4161_v33 = vadd.f32 %v11173_v18, %v8115_v22  ;;  %5360 = vmatprep.mubr.bf16.mxu0 %v11174_v37  ;;  %v8323_v46 = vadd.f32 %v8292_v16, %v11176_v21  ;;  %v11181_v22 = vld [vmem:[#allocation35_spill] sm:$0xff] }
 0x16c   : > { %11168 = vst [vmem:[#allocation76_spill] sm:$0xff] %v8294_v40  ;;  %11170 = vst [vmem:[#allocation45_spill] sm:$0xff] %v8306_v42  ;;  %v4716_v19 = vadd.f32 %v11178_v15, %v8292_v16  ;;  %v8331_v63 = vmax.f32 %v1551_v31, 0.0  ;;  %v11182_v18 = vld [vmem:[#allocation31_spill] sm:$0xff]  ;;  %v11183_v42 = vld [vmem:[#allocation38_spill] sm:$0xff] }
 0x16d   : > { %11171 = vst [vmem:[#allocation77_spill] sm:$0xff] %v8310_v2  ;;  %11172 = vst [vmem:[#allocation78_spill] sm:$0xff] %v8314_v5  ;;  %v8329_v2 = vadd.f32 %v8294_v40, %v8292_v16  ;;  %v4164_v5 = vmul.f32 0.25, %v4160_v7  ;;  %v4165_v28 = vmul.f32 0.25, %v4161_v33  ;;  %v4124_v49 = vadd.f32 %v11182_v18, %v11181_v22  ;;  %v11188_v16 = vld [vmem:[#allocation62_spill] sm:$0xff]  ;;  %v11189_v31 = vld [vmem:[#allocation37_spill] sm:$0xff] }
 0x16e   : > { %11175 = vst [vmem:[#allocation48_spill] sm:$0xff] %v8319_v10  ;;  %11177 = vst [vmem:[#allocation49_spill] sm:$0xff] %v8323_v46  ;;  %v11184_v10 = vld [vmem:[#allocation33_spill] sm:$0xff]  ;;  %v8338_v21 = vadd.f32 %v4716_v19, %v8294_v40  ;;  %v4694_v7 = vpack.c.bf16 %v11189_v31, %v8073_v58  ;;  %v8351_v33 = vld [vmem:[%s10877_s3 + $0x8] sm:$0xff]   ;;  %v1388_v19 = vadd.f32 %v8182_v11, %v7331_v25  ;;  %v8355_v18 = vpop.f32.mrb[56].mxu1 }
 0x16f   : > { %11179 = vst [vmem:[#allocation56_spill] sm:$0xff] %v8329_v2  ;;  %11180 = vst [vmem:[#allocation79_spill] sm:$0xff] %v8331_v63  ;;  %v4125_v36 = vadd.f32 %v11184_v10, %v11183_v42  ;;  %v11186_v46 = vld [vmem:[#allocation57_spill] sm:$0xff]  ;;  %v4717_v2 = vadd.f32 %v11188_v16, %v8331_v63  ;;  %v4167_v22 = vpack.c.bf16 %v4165_v28, %v4164_v5  ;;  %v4128_v42 = vmul.f32 0.25, %v4124_v49  ;;  %v11190_v31 = vld [vmem:[#allocation32_spill] sm:$0xff]  ;;  %v8366_v49 = vpop.f32.mrb[56].mxu0 }
 0x170   : > { %11185 = vst [vmem:[#allocation35_spill] sm:$0xff] %v8338_v21  ;;  %v8342_v15 = vadd.f32 %v8331_v63, %v11186_v46  ;;  %v1390_v46 = vadd.f32 %v8192_v9, %v7331_v25  ;;  %v1553_v16 = vadd.f32 %v8086_v32, %v7389_v3  ;;  %v1392_v58 = vadd.f32 %v8206_v60, %v7389_v3  ;;  %v11192_v28 = vld [vmem:[#allocation36_spill] sm:$0xff]  ;;  %v8375_v32 = vpop.f32.mrb[57].mxu0 }
 0x171   : > { %v4129_v10 = vmul.f32 0.25, %v4125_v36  ;;  %v4654_v21 = vmul.f32 0.25, %v11190_v31  ;;  %11191 = vst [vmem:[#allocation38_spill] sm:$0xff] %v8366_v49  ;;  %5391 = vmatprep.subr.bf16.mxu1 %v4167_v22  ;;  %v8368_v11 = vmax.f32 %v1388_v19, 0.0  ;;  %v4655_v5 = vmul.f32 0.25, %v11192_v28  ;;  %11193 = vst [vmem:[#allocation33_spill] sm:$0xff] %v8375_v32 }
 0x172   : > { %11187 = vst [vmem:[#allocation31_spill] sm:$0xff] %v8342_v15  ;;  %v8364_v15 = vpop.f32.mrb[57].mxu1  ;;  %v1394_v9 = vadd.f32 %v8214_v23, %v7389_v3  ;;  %v8377_v60 = vmax.f32 %v1390_v46, 0.0  ;;  %v8379_v31 = vmax.f32 %v1553_v16, 0.0  ;;  %5361 = vmatmul.mubr.bf16.gmra.mrb[120].mxu0 %v8351_v33  ;;  %v8382_v49 = vmax.f32 %v1392_v58, 0.0  ;;  %v11196_v23 = vld [vmem:[#allocation50_spill] sm:$0xff] }
 0x173   : > { %v4131_v36 = vpack.c.bf16 %v4129_v10, %v4128_v42  ;;  %v8373_v40 = vpop.f32.mrb[58].mxu1  ;;  %v4695_v22 = vpack.c.bf16 %v8184_v57, %v8161_v6  ;;  %v8388_v10 = vpop.f32.mrb[58].mxu0  ;;  %v8392_v19 = vadd.f32 %v8368_v11, %v11196_v23  ;;  %v4658_v46 = vpack.c.bf16 %v4655_v5, %v4654_v21  ;;  %5370 = vmatprep.mubr.bf16.mxu0 %v11174_v37  ;;  %v11199_v6 = vld [vmem:[#allocation23_spill] sm:$0xff] }
 0x174   : > { %11194 = vst [vmem:[#allocation57_spill] sm:$0xff] %v8379_v31  ;;  %v8386_v42 = vpop.f32.mrb[59].mxu1  ;;  %11195 = vst [vmem:[#allocation62_spill] sm:$0xff] %v8388_v10  ;;  %v8394_v28 = vmax.f32 %v1394_v9, 0.0  ;;  %v1643_v16 = vadd.f32 %v8119_v12, %v7321_v20  ;;  %v8399_v58 = vpop.f32.mrb[59].mxu0  ;;  %v8403_v57 = vadd.f32 %v11199_v6, %v8377_v60  ;;  %v8411_v21 = vadd.f32 %v8377_v60, %v8368_v11  ;;  %v11207_v6 = vld [vmem:[#allocation10_spill] sm:$0xff] }
 0x175   : > { %5392 = vmatpush1.bf16.msra.mxu1 %v4131_v36  ;;  %11197 = vst [vmem:[#allocation37_spill] sm:$0xff] %v8392_v19  ;;  %11198 = vst [vmem:[#allocation32_spill] sm:$0xff] %v8399_v58  ;;  %v8407_v36 = vadd.f32 %v8055_v29, %v8377_v60  ;;  %v8415_v12 = vadd.f32 %v8379_v31, %v8331_v63  ;;  %v8418_v5 = vadd.f32 %v4717_v2, %v8379_v31  ;;  %v11211_v2 = vld [vmem:[#allocation51_spill] sm:$0xff]  ;;  %v11212_v31 = vld [vmem:[#allocation54_spill] sm:$0xff] }
 0x176   : > { %5393 = vmatprep.subr.bf16.mxu1 %v4694_v7  ;;  %11200 = vst [vmem:[#allocation36_spill] sm:$0xff] %v8403_v57  ;;  %11202 = vst [vmem:[#allocation23_spill] sm:$0xff] %v8411_v21  ;;  %v11205_v7 = vld [vmem:[#allocation24_spill] sm:$0xff]  ;;  %v8426_v19 = vadd.f32 %v11207_v6, %v8394_v28  ;;  %v8434_v21 = vadd.f32 %v8394_v28, %v8382_v49  ;;  %v8436_v58 = vmax.f32 %v1643_v16, 0.0  ;;  %v8445_v6 = vld [vmem:[%s10877_s3 + $0x10] sm:$0xff]   ;;  %v8452_v57 = vpop.f32.mrb[60].mxu1 }
 0x177   : > { %11201 = vst [vmem:[#allocation50_spill] sm:$0xff] %v8407_v36  ;;  %11203 = vst [vmem:[#allocation80_spill] sm:$0xff] %v8415_v12  ;;  %v8422_v9 = vadd.f32 %v8382_v49, %v11205_v7  ;;  %v8430_v36 = vadd.f32 %v8097_v14, %v8394_v28  ;;  %v11213_v12 = vld [vmem:[#allocation39_spill] sm:$0xff]  ;;  %v8459_v10 = vpop.f32.mrb[61].mxu1 }
 0x178   : > { %11204 = vst [vmem:[#allocation81_spill] sm:$0xff] %v8418_v5  ;;  %11208 = vst [vmem:[#allocation10_spill] sm:$0xff] %v8426_v19  ;;  %v3182_v5 = vadd.f32 %v11211_v2, %v7771_v43  ;;  %v4656_v63 = vmul.f32 0.25, %v11213_v12  ;;  %v11215_v19 = vld [vmem:[#allocation44_spill] sm:$0xff] }
 0x179   : > { %11206 = vst [vmem:[#allocation24_spill] sm:$0xff] %v8422_v9  ;;  %11209 = vst [vmem:[#allocation82_spill] sm:$0xff] %v8430_v36  ;;  %v3183_v9 = vadd.f32 %v11212_v31, %v7833_v45  ;;  %5394 = vmatpush1.bf16.msra.mxu1 %v4658_v46  ;;  %v1645_v36 = vadd.f32 %v8131_v59, %v7321_v20  ;;  %v3158_v14 = vmul.f32 0.25, %v11215_v19  ;;  %v11216_v43 = vld [vmem:[#allocation64_spill] sm:$0xff]  ;;  %v11217_v46 = vld [vmem:[#allocation47_spill] sm:$0xff]  ;;  %v8461_v59 = vpop.f32.mrb[60].mxu0 }
 0x17a   : > { %11210 = vst [vmem:[#allocation83_spill] sm:$0xff] %v8434_v21  ;;  %v11214_v21 = vld [vmem:[#allocation41_spill] sm:$0xff]  ;;  %5395 = vmatprep.subr.bf16.mxu1 %v4695_v22  ;;  %v4786_v45 = vadd.f32 %v11216_v43, %v8436_v58  ;;  %v3190_v31 = vadd.f32 %v3182_v5, %v8233_v55  ;;  %v3159_v29 = vmul.f32 0.25, %v11217_v46  ;;  %11218 = vst [vmem:[#allocation51_spill] sm:$0xff] %v8459_v10  ;;  %v8469_v43 = vpop.f32.mrb[62].mxu1  ;;  %v8471_v5 = vpop.f32.mrb[61].mxu0  ;;  %5371 = vmatmul.mubr.bf16.gmra.mrb[124].mxu0 %v8445_v6 }
 0x17b   : > { %v4657_v16 = vmul.f32 0.25, %v11214_v21  ;;  %v3191_v2 = vadd.f32 %v3183_v9, %v8246_v34  ;;  %11219 = vst [vmem:[#allocation54_spill] sm:$0xff] %v8461_v59  ;;  %v8463_v12 = vmax.f32 %v1645_v36, 0.0  ;;  %v1647_v19 = vadd.f32 %v8145_v62, %v7333_v27  ;;  %11221 = vst [vmem:[#allocation41_spill] sm:$0xff] %v8471_v5  ;;  %v8476_v36 = vpop.f32.mrb[63].mxu1  ;;  %5476 = vmatprep.mubr.bf16.mxu0 %v11174_v37 }
 0x17c   : > { %v1484_v22 = vadd.f32 %v8252_v47, %v7321_v20  ;;  %v3194_v9 = vmul.f32 0.25, %v3190_v31  ;;  %v3162_v46 = vpack.c.bf16 %v3159_v29, %v3158_v14  ;;  %v1486_v10 = vadd.f32 %v8270_v54, %v7321_v20 }
 0x17d   : > { %11220 = vst [vmem:[#allocation39_spill] sm:$0xff] %v8463_v12  ;;  %v4659_v21 = vpack.c.bf16 %v4657_v16, %v4656_v63  ;;  %v3195_v32 = vmul.f32 0.25, %v3191_v2  ;;  %v8478_v63 = vpop.f32.mrb[62].mxu0  ;;  %v8482_v62 = vadd.f32 %v8463_v12, %v8436_v58  ;;  %v8485_v47 = vadd.f32 %v4786_v45, %v8463_v12  ;;  %v11227_v45 = vld [vmem:[#allocation66_spill] sm:$0xff] }
 0x17e   : > { %11222 = vst [vmem:[#allocation44_spill] sm:$0xff] %v8478_v63  ;;  %v8487_v16 = vmax.f32 %v1647_v19, 0.0  ;;  %v8489_v14 = vmax.f32 %v1484_v22, 0.0  ;;  %v8491_v29 = vpop.f32.mrb[63].mxu0  ;;  %v2585_v31 = vmax.f32 %v1486_v10, 0.0  ;;  %v1649_v2 = vadd.f32 %v8151_v30, %v7333_v27  ;;  %v11230_v22 = vld [vmem:[#allocation65_spill] sm:$0xff] }
 0x17f   : > { %11223 = vst [vmem:[#allocation64_spill] sm:$0xff] %v8482_v62  ;;  %11224 = vst [vmem:[#allocation47_spill] sm:$0xff] %v8485_v47  ;;  %5396 = vmatpush1.bf16.msra.mxu1 %v4659_v21  ;;  %v3198_v54 = vpack.c.bf16 %v3195_v32, %v3194_v9  ;;  %v1488_v63 = vadd.f32 %v8287_v56, %v7333_v27  ;;  %v11228_v21 = vld [vmem:[#allocation30_spill] sm:$0xff]  ;;  %v1490_v32 = vadd.f32 %v8300_v24, %v7333_v27 }
 0x180   : > { %11225 = vst [vmem:[#allocation84_spill] sm:$0xff] %v8487_v16  ;;  %11226 = vst [vmem:[#allocation85_spill] sm:$0xff] %v8491_v29  ;;  %v4787_v47 = vadd.f32 %v11227_v45, %v8487_v16  ;;  %v8502_v19 = vadd.f32 %v8489_v14, %v11228_v21  ;;  %v3734_v12 = vadd.f32 %v11230_v22, %v8489_v14  ;;  %v8511_v30 = vmax.f32 %v1649_v2, 0.0  ;;  %v11233_v22 = vld [vmem:[#allocation17_spill] sm:$0xff]  ;;  %v11234_v24 = vld [vmem:[#allocation22_spill] sm:$0xff]  ;;  %v8523_v2 = vpop.f32.mrb[64].mxu1 }
 0x181   : > { %5444 = vmatprep.subr.bf16.mxu0 %v3198_v54  ;;  %v8509_v10 = vadd.f32 %v2585_v31, %v8489_v14  ;;  %v8514_v56 = vmax.f32 %v1488_v63, 0.0  ;;  %v1653_v9 = vadd.f32 %v8194_v26, %v7331_v25  ;;  %v3184_v29 = vadd.f32 %v11233_v22, %v11196_v23  ;;  %v11237_v26 = vld [vmem:[#allocation13_spill] sm:$0xff]  ;;  %v11239_v23 = vld [vmem:[#allocation26_spill] sm:$0xff] }
 0x182   : > { %11229 = vst [vmem:[#allocation66_spill] sm:$0xff] %v8502_v19  ;;  %11232 = vst [vmem:[#allocation65_spill] sm:$0xff] %v8511_v30  ;;  %5414 = vmatmul.mubr.bf16.vlgmr.msra.gmra.mrb[140].mxu1 %v8242_v51  ;;  %5445 = vmatpush1.bf16.msra.mxu0 %v3162_v46  ;;  %v3742_v45 = vadd.f32 %v3734_v12, %v2585_v31  ;;  %v2649_v19 = vmax.f32 %v1490_v32, 0.0  ;;  %v3185_v54 = vadd.f32 %v11234_v24, %v11205_v7  ;;  %v8538_v31 = vpop.f32.mrb[65].mxu1  ;;  %v8540_v7 = vpop.f32.mrb[64].mxu0 }
 0x183   : > { %11231 = vst [vmem:[#allocation30_spill] sm:$0xff] %v8509_v10  ;;  %5423 = vmatprep.mubr.bf16.mxu1 %v11174_v37  ;;  %v8527_v51 = vadd.f32 %v8511_v30, %v8487_v16  ;;  %v8530_v63 = vadd.f32 %v4787_v47, %v8511_v30  ;;  %v8534_v12 = vadd.f32 %v8514_v56, %v11237_v26  ;;  %11240 = vst [vmem:[#allocation26_spill] sm:$0xff] %v8540_v7  ;;  %v8552_v30 = vpop.f32.mrb[65].mxu0 }
 0x184   : > { %v3735_v46 = vadd.f32 %v11239_v23, %v8514_v56  ;;  %v8542_v32 = vmul.f32 0.25, %v3742_v45  ;;  %v8545_v22 = vadd.f32 %v2649_v19, %v8514_v56  ;;  %v8547_v24 = vmax.f32 %v1653_v9, 0.0  ;;  %11243 = vst [vmem:[#allocation88_spill] sm:$0xff] %v8552_v30  ;;  %v8560_v5 = vpop.f32.mrb[66].mxu0 }
 0x185   : > { %11235 = vst [vmem:[#allocation17_spill] sm:$0xff] %v8527_v51  ;;  %11236 = vst [vmem:[#allocation22_spill] sm:$0xff] %v8530_v63  ;;  %v3192_v47 = vadd.f32 %v3184_v29, %v8368_v11  ;;  %v8550_v63 = vpop.f32.mrb[66].mxu1  ;;  %v3193_v23 = vadd.f32 %v3185_v54, %v8382_v49  ;;  %v1655_v10 = vadd.f32 %v8208_v53, %v7331_v25  ;;  %v11244_v51 = vld [vmem:[#allocation55_spill] sm:$0xff] }
 0x186   : > { %11238 = vst [vmem:[#allocation13_spill] sm:$0xff] %v8534_v12  ;;  %11241 = vst [vmem:[#allocation86_spill] sm:$0xff] %v8545_v22  ;;  %v3743_v12 = vadd.f32 %v3735_v46, %v2649_v19  ;;  %v3160_v45 = vmul.f32 0.25, %v11244_v51  ;;  %v8558_v7 = vpop.f32.mrb[67].mxu1  ;;  %v4788_v9 = vadd.f32 %v8093_v35, %v8547_v24  ;;  %v11247_v22 = vld [vmem:[#allocation60_spill] sm:$0xff]  ;;  %v1657_v19 = vadd.f32 %v8216_v41, %v7389_v3  ;;  %v8567_v46 = vpop.f32.mrb[67].mxu0 }
 0x187   : > { %11242 = vst [vmem:[#allocation87_spill] sm:$0xff] %v8547_v24  ;;  %11245 = vst [vmem:[#allocation55_spill] sm:$0xff] %v8558_v7  ;;  %v3196_v29 = vmul.f32 0.25, %v3192_v47  ;;  %v3161_v62 = vmul.f32 0.25, %v11247_v22  ;;  %v3197_v53 = vmul.f32 0.25, %v3193_v23  ;;  %v8571_v30 = vmax.f32 %v1655_v10, 0.0 }
 0x188   : > { %11246 = vst [vmem:[#allocation89_spill] sm:$0xff] %v8560_v5  ;;  %v8569_v54 = vmul.f32 0.25, %v3743_v12  ;;  %v11249_v51 = vld [vmem:[#allocation52_spill] sm:$0xff]  ;;  %v8575_v59 = vmax.f32 %v1657_v19, 0.0  ;;  %v11251_v35 = vld [vmem:[#allocation58_spill] sm:$0xff]  ;;  %v1494_v22 = vadd.f32 %v8355_v18, %v7331_v25  ;;  %v1496_v18 = vadd.f32 %v8364_v15, %v7331_v25 }
 0x189   : > { %11248 = vst [vmem:[#allocation60_spill] sm:$0xff] %v8571_v30  ;;  %v3662_v7 = vadd.f32 %v11249_v51, %v8233_v55  ;;  %v3163_v5 = vpack.c.bf16 %v3161_v62, %v3160_v45  ;;  %v3663_v47 = vadd.f32 %v11251_v35, %v8246_v34  ;;  %v3199_v41 = vpack.c.bf16 %v3197_v53, %v3196_v29  ;;  %v8598_v45 = vpop.f32.mrb[68].mxu1  ;;  %v8607_v29 = vpop.f32.mrb[68].mxu0  ;;  %v11254_v19 = vld [vmem:[#allocation28_spill] sm:$0xff] }
 0x18a   : > { %11250 = vst [vmem:[#allocation52_spill] sm:$0xff] %v8575_v59  ;;  %v8583_v12 = vadd.f32 %v8571_v30, %v8547_v24  ;;  %v8586_v10 = vadd.f32 %v4788_v9, %v8571_v30  ;;  %5424 = vmatmul.mubr.bf16.gmra.mrb[144].mxu1 %v8351_v33  ;;  %v4789_v55 = vadd.f32 %v8141_v39, %v8575_v59  ;;  %v8593_v62 = vmax.f32 %v1494_v22, 0.0  ;;  %v11253_v39 = vld [vmem:[#allocation46_spill] sm:$0xff]  ;;  %v11256_v35 = vld [vmem:[#allocation40_spill] sm:$0xff]  ;;  %v8617_v22 = vpop.f32.mrb[69].mxu0 }
 0x18b   : > { %v3670_v23 = vadd.f32 %v3662_v7, %v8235_v50  ;;  %v3671_v34 = vadd.f32 %v3663_v47, %v8285_v48  ;;  %5433 = vmatprep.mubr.bf16.mxu1 %v11174_v37  ;;  %5446 = vmatprep.subr.bf16.mxu0 %v3199_v41  ;;  %v1659_v50 = vadd.f32 %v8223_v4, %v7389_v3  ;;  %v3638_v7 = vmul.f32 0.25, %v11253_v39  ;;  %v8605_v48 = vpop.f32.mrb[69].mxu1 }
 0x18c   : > { %11252 = vst [vmem:[#allocation58_spill] sm:$0xff] %v8586_v10  ;;  %v1498_v33 = vadd.f32 %v8373_v40, %v7389_v3  ;;  %5447 = vmatpush1.bf16.msra.mxu0 %v3163_v5  ;;  %v8611_v53 = vadd.f32 %v8593_v62, %v11254_v19  ;;  %v2713_v51 = vmax.f32 %v1496_v18, 0.0  ;;  %v3736_v47 = vadd.f32 %v11256_v35, %v8593_v62  ;;  %v8615_v4 = vpop.f32.mrb[70].mxu1  ;;  %v8628_v10 = vpop.f32.mrb[70].mxu0 }
 0x18d   : > { %v3674_v9 = vmul.f32 0.25, %v3670_v23  ;;  %v3675_v15 = vmul.f32 0.25, %v3671_v34  ;;  %v8619_v40 = vmax.f32 %v1659_v50, 0.0  ;;  %v11257_v23 = vld [vmem:[#allocation53_spill] sm:$0xff]  ;;  %v1500_v5 = vadd.f32 %v8386_v42, %v7389_v3  ;;  %v8626_v34 = vpop.f32.mrb[71].mxu1  ;;  %11258 = vst [vmem:[#allocation28_spill] sm:$0xff] %v8628_v10 }
 0x18e   : > { %11255 = vst [vmem:[#allocation46_spill] sm:$0xff] %v8611_v53  ;;  %v8621_v41 = vmax.f32 %v1498_v33, 0.0  ;;  %v3639_v39 = vmul.f32 0.25, %v11257_v23  ;;  %v3744_v53 = vadd.f32 %v3736_v47, %v2713_v51  ;;  %v8631_v35 = vadd.f32 %v2713_v51, %v8593_v62  ;;  %v8635_v30 = vpop.f32.mrb[71].mxu0  ;;  %v11262_v23 = vld [vmem:[#allocation16_spill] sm:$0xff] }
 0x18f   : > { %v3678_v18 = vpack.c.bf16 %v3675_v15, %v3674_v9  ;;  %v1749_v50 = vadd.f32 %v8272_v44, %v7321_v20  ;;  %11260 = vst [vmem:[#allocation53_spill] sm:$0xff] %v8635_v30  ;;  %v8639_v33 = vadd.f32 %v8619_v40, %v8575_v59  ;;  %v8642_v42 = vadd.f32 %v4789_v55, %v8619_v40  ;;  %v11265_v55 = vld [vmem:[#allocation9_spill] sm:$0xff] }
 0x190   : > { %11259 = vst [vmem:[#allocation40_spill] sm:$0xff] %v8631_v35  ;;  %v8646_v10 = vadd.f32 %v8621_v41, %v11262_v23  ;;  %v3642_v9 = vpack.c.bf16 %v3639_v39, %v3638_v7  ;;  %v8648_v15 = vmul.f32 0.25, %v3744_v53  ;;  %v2777_v51 = vmax.f32 %v1500_v5, 0.0  ;;  %v11264_v35 = vld [vmem:[#allocation18_spill] sm:$0xff] }
 0x191   : > { %11261 = vst [vmem:[#allocation90_spill] sm:$0xff] %v8642_v42  ;;  %5448 = vmatprep.subr.bf16.mxu0 %v3678_v18  ;;  %v3737_v44 = vadd.f32 %v8164_v1, %v8621_v41  ;;  %v8652_v47 = vmax.f32 %v1749_v50, 0.0  ;;  %v3664_v30 = vadd.f32 %v11264_v35, %v8368_v11  ;;  %v3665_v42 = vadd.f32 %v11265_v55, %v8382_v49  ;;  %v11268_v5 = vld [vmem:[#allocation42_spill] sm:$0xff]  ;;  %v8672_v49 = vpop.f32.mrb[72].mxu1  ;;  %v8680_v50 = vpop.f32.mrb[72].mxu0 }
 0x192   : > { %11263 = vst [vmem:[#allocation16_spill] sm:$0xff] %v8646_v10  ;;  %5449 = vmatpush1.bf16.msra.mxu0 %v3642_v9  ;;  %v1751_v10 = vadd.f32 %v8289_v8, %v7321_v20  ;;  %v1753_v7 = vadd.f32 %v8302_v52, %v7333_v27  ;;  %v8663_v39 = vadd.f32 %v2777_v51, %v8621_v41  ;;  %v8682_v9 = vpop.f32.mrb[73].mxu1 }
 0x193   : > { %v3745_v53 = vadd.f32 %v3737_v44, %v2777_v51  ;;  %v8667_v1 = vadd.f32 %v8652_v47, %v8170_v13  ;;  %v3770_v11 = vadd.f32 %v11268_v5, %v8652_v47  ;;  %5434 = vmatmul.mubr.bf16.gmra.mrb[148].mxu1 %v8445_v6  ;;  %v3672_v8 = vadd.f32 %v3664_v30, %v8377_v60  ;;  %v11270_v6 = vld [vmem:[#allocation34_spill] sm:$0xff]  ;;  %v11271_v44 = vld [vmem:[#allocation67_spill] sm:$0xff] }
 0x194   : > { %11266 = vst [vmem:[#allocation18_spill] sm:$0xff] %v8663_v39  ;;  %v3673_v18 = vadd.f32 %v3665_v42, %v8394_v28  ;;  %v8676_v52 = vmax.f32 %v1751_v10, 0.0  ;;  %v8678_v35 = vmax.f32 %v1753_v7, 0.0  ;;  %5539 = vmatprep.mubr.bf16.mxu1 %v11174_v37  ;;  %v3254_v51 = vadd.f32 %v11270_v6, %v11228_v21  ;;  %v11272_v30 = vld [vmem:[#allocation59_spill] sm:$0xff]  ;;  %v8692_v10 = vpop.f32.mrb[73].mxu0  ;;  %v8694_v42 = vpop.f32.mrb[74].mxu1 }
 0x195   : > { %11267 = vst [vmem:[#allocation9_spill] sm:$0xff] %v8667_v1  ;;  %v8685_v13 = vmul.f32 0.25, %v3745_v53  ;;  %v3255_v60 = vadd.f32 %v11271_v44, %v11237_v26  ;;  %v3640_v28 = vmul.f32 0.25, %v11272_v30  ;;  %v3676_v55 = vmul.f32 0.25, %v3672_v8  ;;  %v8703_v1 = vpop.f32.mrb[74].mxu0  ;;  %v8705_v21 = vpop.f32.mrb[75].mxu1 }
 0x196   : > { %11269 = vst [vmem:[#allocation42_spill] sm:$0xff] %v8676_v52  ;;  %v3677_v7 = vmul.f32 0.25, %v3673_v18  ;;  %v8697_v5 = vadd.f32 %v3770_v11, %v8676_v52  ;;  %v8701_v53 = vadd.f32 %v8676_v52, %v8652_v47  ;;  %11274 = vst [vmem:[#allocation67_spill] sm:$0xff] %v8705_v21  ;;  %v8709_v26 = vadd.f32 %v8678_v35, %v8176_v61  ;;  %v8715_v18 = vpop.f32.mrb[75].mxu0  ;;  %v11277_v30 = vld [vmem:[#allocation61_spill] sm:$0xff]  ;;  %v11278_v52 = vld [vmem:[#allocation12_spill] sm:$0xff] }
 0x197   : > { %v3771_v6 = vadd.f32 %v8276_v38, %v8678_v35  ;;  %v3262_v8 = vadd.f32 %v3254_v51, %v8489_v14  ;;  %v3263_v11 = vadd.f32 %v3255_v60, %v8514_v56  ;;  %11276 = vst [vmem:[#allocation91_spill] sm:$0xff] %v8715_v18  ;;  %v3226_v37 = vadd.f32 %v8260_v17, %v7941_v0  ;;  %v11279_v39 = vld [vmem:[#allocation45_spill] sm:$0xff]  ;;  %v11280_v14 = vld [vmem:[#allocation51_spill] sm:$0xff] }
 0x198   : > { %11273 = vst [vmem:[#allocation34_spill] sm:$0xff] %v8697_v5  ;;  %11275 = vst [vmem:[#allocation59_spill] sm:$0xff] %v8709_v26  ;;  %v3679_v44 = vpack.c.bf16 %v3677_v7, %v3676_v55  ;;  %v3641_v5 = vmul.f32 0.25, %v11277_v30  ;;  %v3227_v21 = vadd.f32 %v11279_v39, %v11278_v52  ;;  %v1590_v38 = vadd.f32 %v8452_v57, %v7321_v20  ;;  %v11281_v7 = vld [vmem:[#allocation48_spill] sm:$0xff]  ;;  %v8734_v52 = vpop.f32.mrb[76].mxu1 }
 0x199   : > { %v3266_v61 = vmul.f32 0.25, %v3262_v8  ;;  %v3267_v26 = vmul.f32 0.25, %v3263_v11  ;;  %v1592_v51 = vadd.f32 %v11280_v14, %v7321_v20  ;;  %v3230_v60 = vmul.f32 0.25, %v3226_v37  ;;  %11282 = vst [vmem:[#allocation61_spill] sm:$0xff] %v8734_v52  ;;  %v11287_v11 = vld [vmem:[#allocation27_spill] sm:$0xff]  ;;  %v11315_v52 = vld [vmem:[#allocation10_spill] sm:$0xff] }
 0x19a   : > { %5450 = vmatprep.subr.bf16.mxu0 %v3679_v44  ;;  %v3643_v56 = vpack.c.bf16 %v3641_v5, %v3640_v28  ;;  %v3231_v55 = vmul.f32 0.25, %v3227_v21  ;;  %v1755_v30 = vadd.f32 %v11281_v7, %v7333_v27  ;;  %v8728_v0 = vmax.f32 %v1590_v38, 0.0  ;;  %v11284_v28 = vld [vmem:[#allocation38_spill] sm:$0xff]  ;;  %v8742_v21 = vpop.f32.mrb[76].mxu0 }
 0x19b   : > { %v3270_v18 = vpack.c.bf16 %v3267_v26, %v3266_v61  ;;  %v8730_v17 = vmax.f32 %v1592_v51, 0.0  ;;  %v1594_v39 = vadd.f32 %v8469_v43, %v7333_v27  ;;  %v1596_v37 = vadd.f32 %v8476_v36, %v7333_v27  ;;  %11285 = vst [vmem:[#allocation45_spill] sm:$0xff] %v8742_v21  ;;  %v8744_v26 = vpop.f32.mrb[77].mxu1  ;;  %v11291_v36 = vld [vmem:[#allocation71_spill] sm:$0xff]  ;;  %v8762_v14 = vpop.f32.mrb[77].mxu0  ;;  %v11314_v21 = vld [vmem:[#allocation20_spill] sm:$0xff] }
 0x19c   : > { %5451 = vmatpush1.bf16.msra.mxu0 %v3643_v56  ;;  %v3234_v57 = vpack.c.bf16 %v3231_v55, %v3230_v60  ;;  %v8736_v8 = vmax.f32 %v1755_v30, 0.0  ;;  %v1759_v5 = vadd.f32 %v11284_v28, %v7331_v25  ;;  %11286 = vst [vmem:[#allocation51_spill] sm:$0xff] %v8744_v26  ;;  %v8748_v43 = vadd.f32 %v8728_v0, %v11287_v11  ;;  %v8764_v51 = vpop.f32.mrb[78].mxu1  ;;  %v8777_v7 = vpop.f32.mrb[78].mxu0  ;;  %v11313_v26 = vld [vmem:[#allocation36_spill] sm:$0xff] }
 0x19d   : > { %5507 = vmatprep.subr.bf16.mxu1 %v3270_v18  ;;  %v8752_v44 = vadd.f32 %v8436_v58, %v8730_v17  ;;  %v8756_v61 = vadd.f32 %v8730_v17, %v8728_v0  ;;  %v8760_v38 = vadd.f32 %v11291_v36, %v8730_v17  ;;  %11292 = vst [vmem:[#allocation71_spill] sm:$0xff] %v8762_v14  ;;  %11293 = vst [vmem:[#allocation92_spill] sm:$0xff] %v8764_v51  ;;  %v8779_v30 = vpop.f32.mrb[79].mxu1  ;;  %v11297_v36 = vld [vmem:[#allocation33_spill] sm:$0xff] }
 0x19e   : > { %11283 = vst [vmem:[#allocation12_spill] sm:$0xff] %v8736_v8  ;;  %11288 = vst [vmem:[#allocation48_spill] sm:$0xff] %v8748_v43  ;;  %5508 = vmatpush1.bf16.msra.mxu1 %v3234_v57  ;;  %v8767_v18 = vadd.f32 %v3771_v6, %v8736_v8  ;;  %v8771_v56 = vadd.f32 %v8736_v8, %v8678_v35  ;;  %v8773_v60 = vmax.f32 %v1594_v39, 0.0  ;;  %v8775_v55 = vmax.f32 %v1596_v37, 0.0  ;;  %v11298_v6 = vld [vmem:[#allocation62_spill] sm:$0xff]  ;;  %v8789_v8 = vpop.f32.mrb[79].mxu0 }
 0x19f   : > { %11289 = vst [vmem:[#allocation38_spill] sm:$0xff] %v8752_v44  ;;  %11290 = vst [vmem:[#allocation27_spill] sm:$0xff] %v8756_v61  ;;  %v8781_v28 = vmax.f32 %v1759_v5, 0.0  ;;  %v1761_v57 = vadd.f32 %v11297_v36, %v7331_v25  ;;  %v11299_v61 = vld [vmem:[#allocation21_spill] sm:$0xff]  ;;  %v11301_v39 = vld [vmem:[#allocation19_spill] sm:$0xff] }
 0x1a0   : > { %11294 = vst [vmem:[#allocation93_spill] sm:$0xff] %v8767_v18  ;;  %11295 = vst [vmem:[#allocation94_spill] sm:$0xff] %v8777_v7  ;;  %v1763_v18 = vadd.f32 %v11298_v6, %v7389_v3  ;;  %v3256_v43 = vadd.f32 %v11299_v61, %v11254_v19  ;;  %v8793_v37 = vadd.f32 %v8773_v60, %v11301_v39  ;;  %v11305_v36 = vld [vmem:[#allocation77_spill] sm:$0xff]  ;;  %v11309_v61 = vld [vmem:[#allocation56_spill] sm:$0xff] }
 0x1a1   : > { %11296 = vst [vmem:[#allocation95_spill] sm:$0xff] %v8779_v30  ;;  %11300 = vst [vmem:[#allocation33_spill] sm:$0xff] %v8789_v8  ;;  %v8797_v44 = vadd.f32 %v8487_v16, %v8775_v55  ;;  %v8801_v5 = vadd.f32 %v8775_v55, %v8773_v60  ;;  %v8805_v6 = vadd.f32 %v11305_v36, %v8775_v55  ;;  %v11307_v30 = vld [vmem:[#allocation75_spill] sm:$0xff]  ;;  %v11312_v14 = vld [vmem:[#allocation69_spill] sm:$0xff] }
 0x1a2   : > { %11302 = vst [vmem:[#allocation62_spill] sm:$0xff] %v8793_v37  ;;  %v8809_v19 = vadd.f32 %v8781_v28, %v11307_v30  ;;  %v3772_v8 = vadd.f32 %v11309_v61, %v8781_v28  ;;  %v8813_v37 = vmax.f32 %v1761_v57, 0.0  ;;  %v8815_v7 = vmax.f32 %v1763_v18, 0.0  ;;  %v11317_v18 = vld [vmem:[#allocation79_spill] sm:$0xff] }
 0x1a3   : > { %11303 = vst [vmem:[#allocation21_spill] sm:$0xff] %v8797_v44  ;;  %11304 = vst [vmem:[#allocation19_spill] sm:$0xff] %v8801_v5  ;;  %v11311_v44 = vld [vmem:[#allocation14_spill] sm:$0xff]  ;;  %v3264_v5 = vadd.f32 %v3256_v43, %v8593_v62  ;;  %v3228_v36 = vadd.f32 %v11313_v26, %v11312_v14  ;;  %v8837_v43 = vpop.f32.mrb[80].mxu1 }
 0x1a4   : > { %11306 = vst [vmem:[#allocation77_spill] sm:$0xff] %v8805_v6  ;;  %11308 = vst [vmem:[#allocation75_spill] sm:$0xff] %v8809_v19  ;;  %v3257_v51 = vadd.f32 %v11311_v44, %v11262_v23  ;;  %v3229_v6 = vadd.f32 %v11315_v52, %v11314_v21  ;;  %v8825_v30 = vadd.f32 %v3772_v8, %v8813_v37  ;;  %v11319_v23 = vld [vmem:[#allocation80_spill] sm:$0xff]  ;;  %v8840_v8 = vpop.f32.mrb[80].mxu0  ;;  %v8842_v14 = vpop.f32.mrb[81].mxu1 }
 0x1a5   : > { %11310 = vst [vmem:[#allocation56_spill] sm:$0xff] %v8813_v37  ;;  %v8829_v57 = vadd.f32 %v8813_v37, %v8781_v28  ;;  %v8833_v61 = vadd.f32 %v8815_v7, %v11317_v18  ;;  %v3773_v62 = vadd.f32 %v11319_v23, %v8815_v7  ;;  %11320 = vst [vmem:[#allocation36_spill] sm:$0xff] %v8837_v43  ;;  %v3268_v44 = vmul.f32 0.25, %v3264_v5  ;;  %v11347_v43 = vld [vmem:[#allocation85_spill] sm:$0xff] }
 0x1a6   : > { %11316 = vst [vmem:[#allocation14_spill] sm:$0xff] %v8825_v30  ;;  %v3265_v26 = vadd.f32 %v3257_v51, %v8621_v41  ;;  %v3232_v52 = vmul.f32 0.25, %v3228_v36  ;;  %v3233_v21 = vmul.f32 0.25, %v3229_v6  ;;  %11321 = vst [vmem:[#allocation20_spill] sm:$0xff] %v8840_v8  ;;  %v3750_v30 = vpack.c.bf16 %v8569_v54, %v8542_v32  ;;  %v8852_v41 = vpop.f32.mrb[81].mxu0  ;;  %v8854_v51 = vpop.f32.mrb[82].mxu1 }
 0x1a7   : > { %11318 = vst [vmem:[#allocation69_spill] sm:$0xff] %v8833_v61  ;;  %11322 = vst [vmem:[#allocation10_spill] sm:$0xff] %v8842_v14  ;;  %v1600_v18 = vadd.f32 %v8523_v2, %v7331_v25  ;;  %v1602_v23 = vadd.f32 %v8538_v31, %v7331_v25  ;;  %v11323_v61 = vld [vmem:[#allocation32_spill] sm:$0xff]  ;;  %v1604_v36 = vadd.f32 %v8550_v63, %v7389_v3  ;;  %v11326_v32 = vld [vmem:[#allocation54_spill] sm:$0xff]  ;;  %v8860_v37 = vpop.f32.mrb[82].mxu0  ;;  %v8862_v2 = vpop.f32.mrb[83].mxu1 }
 0x1a8   : > { %v1765_v19 = vadd.f32 %v11323_v61, %v7389_v3  ;;  %11324 = vst [vmem:[#allocation79_spill] sm:$0xff] %v8852_v41  ;;  %11325 = vst [vmem:[#allocation80_spill] sm:$0xff] %v8854_v51  ;;  %v3269_v5 = vmul.f32 0.25, %v3265_v26  ;;  %v3235_v6 = vpack.c.bf16 %v3233_v21, %v3232_v52  ;;  %v1855_v54 = vadd.f32 %v11326_v32, %v7321_v20  ;;  %v11330_v41 = vld [vmem:[#allocation63_spill] sm:$0xff]  ;;  %v8871_v26 = vpop.f32.mrb[83].mxu0  ;;  %v11332_v32 = vld [vmem:[#allocation68_spill] sm:$0xff] }
 0x1a9   : > { %11327 = vst [vmem:[#allocation32_spill] sm:$0xff] %v8860_v37  ;;  %11328 = vst [vmem:[#allocation54_spill] sm:$0xff] %v8862_v2  ;;  %v8864_v31 = vmax.f32 %v1600_v18, 0.0  ;;  %v8866_v14 = vmax.f32 %v1602_v23, 0.0  ;;  %v3710_v51 = vmul.f32 0.25, %v11330_v41  ;;  %v8873_v21 = vmax.f32 %v1604_v36, 0.0 }
 0x1aa   : > { %v8868_v61 = vmax.f32 %v1765_v19, 0.0  ;;  %11331 = vst [vmem:[#allocation63_spill] sm:$0xff] %v8871_v26  ;;  %v3271_v52 = vpack.c.bf16 %v3269_v5, %v3268_v44  ;;  %v8875_v63 = vmax.f32 %v1855_v54, 0.0  ;;  %v3711_v8 = vmul.f32 0.25, %v11332_v32  ;;  %v11333_v37 = vld [vmem:[#allocation76_spill] sm:$0xff]  ;;  %v11337_v44 = vld [vmem:[#allocation50_spill] sm:$0xff] }
 0x1ab   : > { %v8880_v2 = vadd.f32 %v8864_v31, %v11333_v37  ;;  %v8884_v18 = vadd.f32 %v8547_v24, %v8866_v14  ;;  %v8888_v19 = vadd.f32 %v8866_v14, %v8864_v31  ;;  %v8892_v23 = vadd.f32 %v11337_v44, %v8866_v14  ;;  %v11340_v36 = vld [vmem:[#allocation57_spill] sm:$0xff]  ;;  %v11342_v32 = vld [vmem:[#allocation64_spill] sm:$0xff]  ;;  %v11343_v44 = vld [vmem:[#allocation55_spill] sm:$0xff] }
 0x1ac   : > { %11329 = vst [vmem:[#allocation96_spill] sm:$0xff] %v8868_v61  ;;  %5509 = vmatprep.subr.bf16.mxu1 %v3271_v52  ;;  %v8895_v41 = vadd.f32 %v3773_v62, %v8868_v61  ;;  %v8899_v5 = vadd.f32 %v8868_v61, %v8815_v7  ;;  %v8903_v54 = vadd.f32 %v8873_v21, %v11340_v36  ;;  %v11344_v52 = vld [vmem:[#allocation41_spill] sm:$0xff]  ;;  %v8913_v61 = vpop.f32.mrb[84].mxu1 }
 0x1ad   : > { %11334 = vst [vmem:[#allocation68_spill] sm:$0xff] %v8880_v2  ;;  %11335 = vst [vmem:[#allocation76_spill] sm:$0xff] %v8884_v18  ;;  %v3842_v2 = vadd.f32 %v11342_v32, %v8875_v63  ;;  %5510 = vmatpush1.bf16.msra.mxu1 %v3235_v6  ;;  %v1606_v26 = vadd.f32 %v11343_v44, %v7389_v3  ;;  %v1857_v62 = vadd.f32 %v11344_v52, %v7321_v20  ;;  %v11346_v18 = vld [vmem:[#allocation44_spill] sm:$0xff]  ;;  %v11349_v6 = vld [vmem:[#allocation74_spill] sm:$0xff]  ;;  %v8925_v52 = vpop.f32.mrb[85].mxu1 }
 0x1ae   : > { %11336 = vst [vmem:[#allocation97_spill] sm:$0xff] %v8888_v19  ;;  %11338 = vst [vmem:[#allocation50_spill] sm:$0xff] %v8892_v23  ;;  %v3714_v19 = vpack.c.bf16 %v3711_v8, %v3710_v51  ;;  %5511 = vmatprep.subr.bf16.mxu1 %v3750_v30  ;;  %v1861_v32 = vadd.f32 %v11347_v43, %v7333_v27  ;;  %v11348_v8 = vld [vmem:[#allocation25_spill] sm:$0xff]  ;;  %v4207_v44 = vadd.f32 %v11349_v6, %v11301_v39  ;;  %v8923_v23 = vpop.f32.mrb[84].mxu0  ;;  %v11353_v30 = vld [vmem:[#allocation26_spill] sm:$0xff]  ;;  %v8936_v16 = vpop.f32.mrb[86].mxu1 }
 0x1af   : > { %11339 = vst [vmem:[#allocation98_spill] sm:$0xff] %v8895_v41  ;;  %11341 = vst [vmem:[#allocation57_spill] sm:$0xff] %v8903_v54  ;;  %v3751_v41 = vpack.c.bf16 %v8685_v13, %v8648_v15  ;;  %v1859_v54 = vadd.f32 %v11346_v18, %v7333_v27  ;;  %v4206_v51 = vadd.f32 %v11348_v8, %v11287_v11  ;;  %v8927_v15 = vmax.f32 %v1606_v26, 0.0  ;;  %v8934_v43 = vpop.f32.mrb[85].mxu0 }
 0x1b0   : > { %11345 = vst [vmem:[#allocation64_spill] sm:$0xff] %v8913_v61  ;;  %11350 = vst [vmem:[#allocation55_spill] sm:$0xff] %v8923_v23  ;;  %v8929_v13 = vmax.f32 %v1857_v62, 0.0  ;;  %v1865_v18 = vadd.f32 %v11353_v30, %v7331_v25  ;;  %v11354_v61 = vld [vmem:[#allocation29_spill] sm:$0xff]  ;;  %v8940_v39 = vmax.f32 %v1861_v32, 0.0  ;;  %v4215_v26 = vadd.f32 %v4207_v44, %v8773_v60  ;;  %v8944_v6 = vpop.f32.mrb[86].mxu0 }
 0x1b1   : > { %11351 = vst [vmem:[#allocation41_spill] sm:$0xff] %v8925_v52  ;;  %v4182_v24 = vmul.f32 0.25, %v11354_v61  ;;  %11355 = vst [vmem:[#allocation85_spill] sm:$0xff] %v8934_v43  ;;  %v8938_v11 = vmax.f32 %v1859_v54, 0.0  ;;  %v4214_v8 = vadd.f32 %v4206_v51, %v8728_v0  ;;  %v8946_v62 = vpop.f32.mrb[87].mxu1  ;;  %5512 = vmatpush1.bf16.msra.mxu1 %v3714_v19  ;;  %v8950_v61 = vadd.f32 %v8575_v59, %v8927_v15  ;;  %v11362_v54 = vld [vmem:[#allocation82_spill] sm:$0xff] }
 0x1b2   : > { %11352 = vst [vmem:[#allocation44_spill] sm:$0xff] %v8929_v13  ;;  %11356 = vst [vmem:[#allocation25_spill] sm:$0xff] %v8936_v16  ;;  %v8954_v30 = vadd.f32 %v8927_v15, %v8873_v21  ;;  %v8958_v32 = vadd.f32 %v11362_v54, %v8927_v15  ;;  %v8961_v51 = vadd.f32 %v3842_v2, %v8929_v13  ;;  %v8963_v44 = vpop.f32.mrb[87].mxu0  ;;  %5513 = vmatprep.subr.bf16.mxu1 %v3751_v41  ;;  %v11368_v2 = vld [vmem:[#allocation43_spill] sm:$0xff] }
 0x1b3   : > { %11357 = vst [vmem:[#allocation74_spill] sm:$0xff] %v8940_v39  ;;  %11358 = vst [vmem:[#allocation26_spill] sm:$0xff] %v8944_v6  ;;  %v8967_v19 = vadd.f32 %v8929_v13, %v8875_v63  ;;  %v4218_v16 = vmul.f32 0.25, %v4214_v8  ;;  %v4219_v54 = vmul.f32 0.25, %v4215_v26  ;;  %v8975_v43 = vmax.f32 %v1865_v18, 0.0  ;;  %v11369_v52 = vld [vmem:[#allocation15_spill] sm:$0xff] }
 0x1b4   : > { %11359 = vst [vmem:[#allocation29_spill] sm:$0xff] %v8946_v62  ;;  %11360 = vst [vmem:[#allocation99_spill] sm:$0xff] %v8950_v61  ;;  %v11366_v62 = vld [vmem:[#allocation17_spill] sm:$0xff]  ;;  %v11371_v13 = vld [vmem:[#allocation11_spill] sm:$0xff] }
 0x1b5   : > { %11361 = vst [vmem:[#allocation100_spill] sm:$0xff] %v8954_v30  ;;  %11363 = vst [vmem:[#allocation82_spill] sm:$0xff] %v8958_v32  ;;  %v3843_v6 = vadd.f32 %v11366_v62, %v8938_v11  ;;  %v8973_v30 = vadd.f32 %v8940_v39, %v8938_v11  ;;  %v3713_v41 = vmul.f32 0.25, %v11371_v13  ;;  %v11372_v61 = vld [vmem:[#allocation88_spill] sm:$0xff]  ;;  %v1696_v32 = vadd.f32 %v8598_v45, %v7321_v20  ;;  %v11373_v26 = vld [vmem:[#allocation89_spill] sm:$0xff] }
 0x1b6   : > { %11364 = vst [vmem:[#allocation101_spill] sm:$0xff] %v8961_v51  ;;  %11365 = vst [vmem:[#allocation102_spill] sm:$0xff] %v8963_v44  ;;  %v4183_v51 = vmul.f32 0.25, %v11368_v2  ;;  %v3712_v44 = vmul.f32 0.25, %v11369_v52  ;;  %v1867_v62 = vadd.f32 %v11372_v61, %v7331_v25  ;;  %v4222_v59 = vpack.c.bf16 %v4219_v54, %v4218_v16  ;;  %v8991_v52 = vpop.f32.mrb[88].mxu1 }
 0x1b7   : > { %11367 = vst [vmem:[#allocation17_spill] sm:$0xff] %v8975_v43  ;;  %v8980_v23 = vadd.f32 %v3843_v6, %v8940_v39  ;;  %v3844_v18 = vadd.f32 %v8583_v12, %v8975_v43  ;;  %v1869_v2 = vadd.f32 %v11373_v26, %v7389_v3  ;;  %v8995_v13 = vmax.f32 %v1696_v32, 0.0  ;;  %v8999_v39 = vpop.f32.mrb[88].mxu0  ;;  %v9001_v16 = vpop.f32.mrb[89].mxu1 }
 0x1b8   : > { %v4186_v8 = vpack.c.bf16 %v4183_v51, %v4182_v24  ;;  %v3715_v6 = vpack.c.bf16 %v3713_v41, %v3712_v44  ;;  %v1698_v61 = vadd.f32 %v8605_v48, %v7321_v20  ;;  %11375 = vst [vmem:[#allocation11_spill] sm:$0xff] %v9001_v16  ;;  %5452 = vmatprep.subr.bf16.mxu0 %v4222_v59  ;;  %v9011_v51 = vpop.f32.mrb[89].mxu0  ;;  %v9013_v44 = vpop.f32.mrb[90].mxu1 }
 0x1b9   : > { %11370 = vst [vmem:[#allocation43_spill] sm:$0xff] %v8980_v23  ;;  %v8993_v23 = vmax.f32 %v1867_v62, 0.0  ;;  %v9003_v12 = vmax.f32 %v1869_v2, 0.0  ;;  %v1871_v24 = vadd.f32 %v8567_v46, %v7389_v3  ;;  %v1700_v45 = vadd.f32 %v8615_v4, %v7333_v27  ;;  %11376 = vst [vmem:[#allocation88_spill] sm:$0xff] %v9011_v51  ;;  %v11379_v46 = vld [vmem:[#allocation39_spill] sm:$0xff]  ;;  %v9026_v41 = vpop.f32.mrb[90].mxu0 }
 0x1ba   : > { %v1961_v32 = vadd.f32 %v8607_v29, %v7321_v20  ;;  %11377 = vst [vmem:[#allocation89_spill] sm:$0xff] %v9013_v44  ;;  %5453 = vmatpush1.bf16.msra.mxu0 %v4186_v8  ;;  %5514 = vmatpush1.bf16.msra.mxu1 %v3715_v6  ;;  %v9024_v54 = vadd.f32 %v8995_v13, %v11379_v46  ;;  %v2593_v4 = vmax.f32 %v1698_v61, 0.0  ;;  %11381 = vst [vmem:[#allocation104_spill] sm:$0xff] %v9026_v41  ;;  %v9028_v29 = vpop.f32.mrb[91].mxu1  ;;  %v11383_v8 = vld [vmem:[#allocation30_spill] sm:$0xff]  ;;  %v9038_v6 = vpop.f32.mrb[91].mxu0 }
 0x1bb   : > { %11374 = vst [vmem:[#allocation15_spill] sm:$0xff] %v8993_v23  ;;  %v9016_v48 = vadd.f32 %v3844_v18, %v8993_v23  ;;  %v9020_v59 = vadd.f32 %v8993_v23, %v8975_v43  ;;  %11382 = vst [vmem:[#allocation105_spill] sm:$0xff] %v9028_v29  ;;  %v3845_v62 = vadd.f32 %v8639_v33, %v9003_v12  ;;  %v9034_v26 = vmax.f32 %v1871_v24, 0.0  ;;  %v9076_v23 = vpop.f32.mrb[92].mxu1 }
 0x1bc   : > { %11380 = vst [vmem:[#allocation39_spill] sm:$0xff] %v9024_v54  ;;  %v4822_v18 = vadd.f32 %v11383_v8, %v8995_v13  ;;  %v9036_v2 = vmax.f32 %v1700_v45, 0.0  ;;  %11385 = vst [vmem:[#allocation106_spill] sm:$0xff] %v9038_v6  ;;  %v9043_v61 = vmax.f32 %v1961_v32, 0.0  ;;  %v1702_v54 = vadd.f32 %v8626_v34, %v7333_v27  ;;  %v11387_v45 = vld [vmem:[#allocation65_spill] sm:$0xff]  ;;  %v9087_v51 = vpop.f32.mrb[93].mxu1 }
 0x1bd   : > { %11378 = vst [vmem:[#allocation103_spill] sm:$0xff] %v9016_v48  ;;  %11384 = vst [vmem:[#allocation30_spill] sm:$0xff] %v9034_v26  ;;  %v9041_v48 = vadd.f32 %v2593_v4, %v8995_v13  ;;  %v1963_v33 = vadd.f32 %v8617_v22, %v7321_v20  ;;  %v9050_v8 = vadd.f32 %v3845_v62, %v9034_v26 }
 0x1be   : > { %v4830_v29 = vadd.f32 %v4822_v18, %v2593_v4  ;;  %v9054_v24 = vadd.f32 %v9034_v26, %v9003_v12  ;;  %v9058_v6 = vadd.f32 %v9036_v2, %v11387_v45  ;;  %v9062_v32 = vadd.f32 %v9043_v61, %v8652_v47  ;;  %v11390_v4 = vld [vmem:[#allocation86_spill] sm:$0xff]  ;;  %v11392_v26 = vld [vmem:[#allocation28_spill] sm:$0xff] }
 0x1bf   : > { %11386 = vst [vmem:[#allocation107_spill] sm:$0xff] %v9050_v8  ;;  %v4858_v34 = vadd.f32 %v8701_v53, %v9043_v61  ;;  %v2657_v22 = vmax.f32 %v1702_v54, 0.0  ;;  %v4823_v62 = vadd.f32 %v11390_v4, %v9036_v2  ;;  %v9070_v8 = vmax.f32 %v1963_v33, 0.0  ;;  %11394 = vst [vmem:[#allocation28_spill] sm:$0xff] %v9076_v23  ;;  %v11395_v54 = vld [vmem:[#allocation24_spill] sm:$0xff]  ;;  %v9085_v33 = vpop.f32.mrb[92].mxu0 }
 0x1c0   : > { %11388 = vst [vmem:[#allocation65_spill] sm:$0xff] %v9058_v6  ;;  %11389 = vst [vmem:[#allocation108_spill] sm:$0xff] %v9062_v32  ;;  %v9068_v18 = vmul.f32 0.25, %v4830_v29  ;;  %v1965_v41 = vadd.f32 %v11392_v26, %v7333_v27  ;;  %v11393_v6 = vld [vmem:[#allocation37_spill] sm:$0xff]  ;;  %v4209_v32 = vadd.f32 %v11395_v54, %v11340_v36  ;;  %v9101_v36 = vpop.f32.mrb[94].mxu1 }
 0x1c1   : > { %11391 = vst [vmem:[#allocation86_spill] sm:$0xff] %v9070_v8  ;;  %v4208_v44 = vadd.f32 %v11393_v6, %v11333_v37  ;;  %v9079_v47 = vadd.f32 %v2657_v22, %v9036_v2  ;;  %v4831_v53 = vadd.f32 %v4823_v62, %v2657_v22  ;;  %v11396_v29 = vld [vmem:[#allocation53_spill] sm:$0xff]  ;;  %11397 = vst [vmem:[#allocation37_spill] sm:$0xff] %v9085_v33  ;;  %v9099_v62 = vpop.f32.mrb[93].mxu0 }
 0x1c2   : > { %v1967_v4 = vadd.f32 %v11396_v29, %v7333_v27  ;;  %11398 = vst [vmem:[#allocation24_spill] sm:$0xff] %v9087_v51  ;;  %v9091_v26 = vadd.f32 %v9070_v8, %v9043_v61  ;;  %v9094_v37 = vadd.f32 %v4858_v34, %v9070_v8  ;;  %v9096_v6 = vmax.f32 %v1965_v41, 0.0  ;;  %11400 = vst [vmem:[#allocation109_spill] sm:$0xff] %v9099_v62  ;;  %v11403_v33 = vld [vmem:[#allocation49_spill] sm:$0xff]  ;;  %v9109_v16 = vpop.f32.mrb[94].mxu0  ;;  %v9111_v34 = vpop.f32.mrb[95].mxu1 }
 0x1c3   : > { %v4216_v22 = vadd.f32 %v4208_v44, %v8864_v31  ;;  %11401 = vst [vmem:[#allocation110_spill] sm:$0xff] %v9101_v36  ;;  %v9103_v54 = vmul.f32 0.25, %v4831_v53  ;;  %v4217_v29 = vadd.f32 %v4209_v32, %v8873_v21  ;;  %v4184_v23 = vmul.f32 0.25, %v11403_v33  ;;  %11404 = vst [vmem:[#allocation49_spill] sm:$0xff] %v9109_v16  ;;  %v11407_v53 = vld [vmem:[#allocation31_spill] sm:$0xff]  ;;  %v9120_v36 = vpop.f32.mrb[95].mxu0 }
 0x1c4   : > { %11399 = vst [vmem:[#allocation53_spill] sm:$0xff] %v9094_v37  ;;  %v9106_v51 = vmax.f32 %v1967_v4, 0.0  ;;  %11405 = vst [vmem:[#allocation112_spill] sm:$0xff] %v9111_v34  ;;  %v9115_v41 = vadd.f32 %v9096_v6, %v8678_v35  ;;  %v4859_v44 = vadd.f32 %v8771_v56, %v9096_v6  ;;  %v4185_v8 = vmul.f32 0.25, %v11407_v53  ;;  %v11409_v33 = vld [vmem:[#allocation72_spill] sm:$0xff]  ;;  %v11410_v16 = vld [vmem:[#allocation78_spill] sm:$0xff] }
 0x1c5   : > { %v4220_v37 = vmul.f32 0.25, %v4216_v22  ;;  %11408 = vst [vmem:[#allocation31_spill] sm:$0xff] %v9120_v36  ;;  %v4221_v32 = vmul.f32 0.25, %v4217_v29  ;;  %v4750_v34 = vadd.f32 %v11409_v33, %v8728_v0  ;;  %v4751_v35 = vadd.f32 %v11410_v16, %v8773_v60  ;;  %v9149_v16 = vpop.f32.mrb[96].mxu1 }
 0x1c6   : > { %11402 = vst [vmem:[#allocation111_spill] sm:$0xff] %v9106_v51  ;;  %11406 = vst [vmem:[#allocation113_spill] sm:$0xff] %v9115_v41  ;;  %v9124_v4 = vadd.f32 %v9106_v51, %v9096_v6  ;;  %v9131_v41 = vadd.f32 %v4859_v44, %v9106_v51  ;;  %v4187_v56 = vpack.c.bf16 %v4185_v8, %v4184_v23 }
 0x1c7   : > { %v1706_v22 = vadd.f32 %v8672_v49, %v7331_v25  ;;  %v1971_v29 = vadd.f32 %v8680_v50, %v7331_v25  ;;  %v4223_v53 = vpack.c.bf16 %v4221_v32, %v4220_v37  ;;  %v4758_v36 = vadd.f32 %v4750_v34, %v8730_v17  ;;  %11412 = vst [vmem:[#allocation78_spill] sm:$0xff] %v9149_v16  ;;  %v9155_v37 = vpop.f32.mrb[97].mxu1  ;;  %v11415_v34 = vld [vmem:[#allocation60_spill] sm:$0xff] }
 0x1c8   : > { %11411 = vst [vmem:[#allocation72_spill] sm:$0xff] %v9131_v41  ;;  %v4759_v62 = vadd.f32 %v4751_v35, %v8775_v55  ;;  %v1708_v0 = vadd.f32 %v8682_v9, %v7331_v25  ;;  %v1973_v23 = vadd.f32 %v8692_v10, %v7331_v25  ;;  %v1710_v49 = vadd.f32 %v8694_v42, %v7389_v3  ;;  %v9153_v9 = vpop.f32.mrb[96].mxu0  ;;  %v9171_v32 = vpop.f32.mrb[98].mxu1 }
 0x1c9   : > { %v9141_v33 = vmax.f32 %v1706_v22, 0.0  ;;  %v9143_v60 = vmax.f32 %v1971_v29, 0.0  ;;  %5454 = vmatprep.subr.bf16.mxu0 %v4223_v53  ;;  %v4762_v50 = vmul.f32 0.25, %v4758_v36  ;;  %v1975_v55 = vadd.f32 %v8703_v1, %v7389_v3  ;;  %11413 = vst [vmem:[#allocation114_spill] sm:$0xff] %v9153_v9  ;;  %11414 = vst [vmem:[#allocation115_spill] sm:$0xff] %v9155_v37  ;;  %v11417_v36 = vld [vmem:[#allocation40_spill] sm:$0xff] }
 0x1ca   : > { %v4763_v17 = vmul.f32 0.25, %v4759_v62  ;;  %v2721_v8 = vmax.f32 %v1708_v0, 0.0  ;;  %5455 = vmatpush1.bf16.msra.mxu0 %v4187_v56  ;;  %v9169_v1 = vpop.f32.mrb[97].mxu0  ;;  %11419 = vst [vmem:[#allocation116_spill] sm:$0xff] %v9171_v32  ;;  %v9176_v22 = vmax.f32 %v1973_v23, 0.0  ;;  %v9178_v29 = vmax.f32 %v1710_v49, 0.0 }
 0x1cb   : > { %v9159_v10 = vadd.f32 %v9141_v33, %v11415_v34  ;;  %v9163_v42 = vadd.f32 %v9143_v60, %v8781_v28  ;;  %v4860_v62 = vadd.f32 %v8829_v57, %v9143_v60  ;;  %v4824_v44 = vadd.f32 %v11417_v36, %v9141_v33  ;;  %11418 = vst [vmem:[#allocation40_spill] sm:$0xff] %v9169_v1  ;;  %v9180_v28 = vpop.f32.mrb[98].mxu0  ;;  %v9182_v53 = vpop.f32.mrb[99].mxu1  ;;  %v11423_v36 = vld [vmem:[#allocation70_spill] sm:$0xff] }
 0x1cc   : > { %v4766_v35 = vpack.c.bf16 %v4763_v17, %v4762_v50  ;;  %v9174_v56 = vadd.f32 %v2721_v8, %v9141_v33  ;;  %11420 = vst [vmem:[#allocation117_spill] sm:$0xff] %v9176_v22  ;;  %11421 = vst [vmem:[#allocation118_spill] sm:$0xff] %v9180_v28  ;;  %v9184_v0 = vmax.f32 %v1975_v55, 0.0  ;;  %v4726_v41 = vmul.f32 0.25, %v11423_v36  ;;  %v9188_v32 = vpop.f32.mrb[99].mxu0  ;;  %v11428_v17 = vld [vmem:[#allocation67_spill] sm:$0xff] }
 0x1cd   : > { %11416 = vst [vmem:[#allocation60_spill] sm:$0xff] %v9163_v42  ;;  %11422 = vst [vmem:[#allocation119_spill] sm:$0xff] %v9182_v53  ;;  %v4832_v57 = vadd.f32 %v4824_v44, %v2721_v8  ;;  %v11424_v42 = vld [vmem:[#allocation73_spill] sm:$0xff]  ;;  %v9192_v23 = vadd.f32 %v9176_v22, %v9143_v60  ;;  %v9195_v49 = vadd.f32 %v4860_v62, %v9176_v22  ;;  %v11430_v62 = vld [vmem:[#allocation18_spill] sm:$0xff]  ;;  %v9224_v37 = vpop.f32.mrb[100].mxu1 }
 0x1ce   : > { %v4727_v1 = vmul.f32 0.25, %v11424_v42  ;;  %11425 = vst [vmem:[#allocation70_spill] sm:$0xff] %v9188_v32  ;;  %5456 = vmatprep.subr.bf16.mxu0 %v4766_v35  ;;  %v9199_v50 = vadd.f32 %v9178_v29, %v8619_v40  ;;  %v1712_v8 = vadd.f32 %v11428_v17, %v7389_v3  ;;  %v9207_v42 = vadd.f32 %v9184_v0, %v8815_v7  ;;  %v11431_v32 = vld [vmem:[#allocation91_spill] sm:$0xff]  ;;  %v11434_v7 = vld [vmem:[#allocation66_spill] sm:$0xff] }
 0x1cf   : > { %11426 = vst [vmem:[#allocation73_spill] sm:$0xff] %v9195_v49  ;;  %v9203_v55 = vmul.f32 0.25, %v4832_v57  ;;  %v4861_v44 = vadd.f32 %v8899_v5, %v9184_v0  ;;  %v4825_v49 = vadd.f32 %v11430_v62, %v9178_v29  ;;  %v1977_v53 = vadd.f32 %v11431_v32, %v7389_v3  ;;  %v11432_v22 = vld [vmem:[#allocation23_spill] sm:$0xff]  ;;  %v11435_v5 = vld [vmem:[#allocation13_spill] sm:$0xff]  ;;  %11437 = vst [vmem:[#allocation18_spill] sm:$0xff] %v9224_v37 }
 0x1d0   : > { %11427 = vst [vmem:[#allocation120_spill] sm:$0xff] %v9199_v50  ;;  %11429 = vst [vmem:[#allocation67_spill] sm:$0xff] %v9207_v42  ;;  %v4730_v35 = vpack.c.bf16 %v4727_v1, %v4726_v41  ;;  %v2785_v36 = vmax.f32 %v1712_v8, 0.0  ;;  %v4752_v17 = vadd.f32 %v11432_v22, %v8864_v31  ;;  %v11433_v57 = vld [vmem:[#allocation83_spill] sm:$0xff]  ;;  %v4278_v42 = vadd.f32 %v11434_v7, %v11379_v46  ;;  %v9232_v22 = vpop.f32.mrb[100].mxu0 }
 0x1d1   : > { %v4753_v28 = vadd.f32 %v11433_v57, %v8873_v21  ;;  %v4279_v41 = vadd.f32 %v11435_v5, %v11387_v45  ;;  %v11436_v1 = vld [vmem:[#allocation35_spill] sm:$0xff]  ;;  %v9229_v9 = vmax.f32 %v1977_v53, 0.0  ;;  %11439 = vst [vmem:[#allocation23_spill] sm:$0xff] %v9232_v22  ;;  %v9234_v21 = vpop.f32.mrb[101].mxu1  ;;  %v11441_v57 = vld [vmem:[#allocation81_spill] sm:$0xff]  ;;  %v9240_v5 = vpop.f32.mrb[101].mxu0 }
 0x1d2   : > { %5457 = vmatpush1.bf16.msra.mxu0 %v4730_v35  ;;  %v4728_v8 = vmul.f32 0.25, %v11436_v1  ;;  %v9227_v62 = vadd.f32 %v2785_v36, %v9178_v29  ;;  %v4833_v32 = vadd.f32 %v4825_v49, %v2785_v36  ;;  %v4760_v31 = vadd.f32 %v4752_v17, %v8866_v14  ;;  %11440 = vst [vmem:[#allocation83_spill] sm:$0xff] %v9234_v21  ;;  %v9242_v1 = vpop.f32.mrb[102].mxu1 }
 0x1d3   : > { %11438 = vst [vmem:[#allocation91_spill] sm:$0xff] %v9229_v9  ;;  %v4761_v46 = vadd.f32 %v4753_v28, %v8927_v15  ;;  %v4286_v45 = vadd.f32 %v4278_v42, %v8995_v13  ;;  %v4287_v35 = vadd.f32 %v4279_v41, %v9036_v2  ;;  %v4729_v7 = vmul.f32 0.25, %v11441_v57  ;;  %11442 = vst [vmem:[#allocation66_spill] sm:$0xff] %v9240_v5  ;;  %v9253_v28 = vpop.f32.mrb[102].mxu0  ;;  %v9255_v13 = vpop.f32.mrb[103].mxu1  ;;  %v11448_v57 = vld [vmem:[#allocation84_spill] sm:$0xff] }
 0x1d4   : > { %11443 = vst [vmem:[#allocation13_spill] sm:$0xff] %v9242_v1  ;;  %v9244_v53 = vmul.f32 0.25, %v4833_v32  ;;  %v9248_v14 = vadd.f32 %v9229_v9, %v9184_v0  ;;  %v9251_v49 = vadd.f32 %v4861_v44, %v9229_v9  ;;  %v4764_v15 = vmul.f32 0.25, %v4760_v31  ;;  %11445 = vst [vmem:[#allocation81_spill] sm:$0xff] %v9253_v28  ;;  %v9257_v41 = vpop.f32.mrb[103].mxu0  ;;  %v11449_v1 = vld [vmem:[#allocation77_spill] sm:$0xff] }
 0x1d5   : > { %11446 = vst [vmem:[#allocation121_spill] sm:$0xff] %v9255_v13  ;;  %v4765_v2 = vmul.f32 0.25, %v4761_v46  ;;  %v4290_v42 = vmul.f32 0.25, %v4286_v45  ;;  %v4291_v36 = vmul.f32 0.25, %v4287_v35  ;;  %v4731_v17 = vpack.c.bf16 %v4729_v7, %v4728_v8  ;;  %11447 = vst [vmem:[#allocation122_spill] sm:$0xff] %v9257_v41  ;;  %v11450_v44 = vld [vmem:[#allocation61_spill] sm:$0xff] }
 0x1d6   : > { %11444 = vst [vmem:[#allocation35_spill] sm:$0xff] %v9251_v49  ;;  %v4250_v32 = vadd.f32 %v8760_v38, %v8436_v58  ;;  %v4251_v5 = vadd.f32 %v11449_v1, %v11448_v57  ;;  %v1802_v49 = vadd.f32 %v11450_v44, %v7321_v20  ;;  %v11451_v31 = vld [vmem:[#allocation45_spill] sm:$0xff]  ;;  %v11452_v46 = vld [vmem:[#allocation51_spill] sm:$0xff]  ;;  %v9283_v44 = vpop.f32.mrb[104].mxu1  ;;  %v11487_v9 = vld [vmem:[#allocation36_spill] sm:$0xff] }
 0x1d7   : > { %v2067_v28 = vadd.f32 %v11451_v31, %v7321_v20  ;;  %v4767_v21 = vpack.c.bf16 %v4765_v2, %v4764_v15  ;;  %v4294_v13 = vpack.c.bf16 %v4291_v36, %v4290_v42  ;;  %v1804_v45 = vadd.f32 %v11452_v46, %v7321_v20  ;;  %v11453_v8 = vld [vmem:[#allocation71_spill] sm:$0xff]  ;;  %v11455_v15 = vld [vmem:[#allocation92_spill] sm:$0xff]  ;;  %v11456_v42 = vld [vmem:[#allocation94_spill] sm:$0xff]  ;;  %11457 = vst [vmem:[#allocation77_spill] sm:$0xff] %v9283_v44  ;;  %v9293_v31 = vpop.f32.mrb[104].mxu0  ;;  %v9295_v46 = vpop.f32.mrb[105].mxu1 }
 0x1d8   : > { %v2069_v35 = vadd.f32 %v11453_v8, %v7321_v20  ;;  %v4254_v7 = vmul.f32 0.25, %v4250_v32  ;;  %v4255_v41 = vmul.f32 0.25, %v4251_v5  ;;  %v9271_v58 = vmax.f32 %v1802_v49, 0.0  ;;  %v11458_v49 = vld [vmem:[#allocation42_spill] sm:$0xff]  ;;  %11461 = vst [vmem:[#allocation45_spill] sm:$0xff] %v9293_v31  ;;  %11462 = vst [vmem:[#allocation51_spill] sm:$0xff] %v9295_v46 }
 0x1d9   : > { %v9273_v38 = vmax.f32 %v2067_v28, 0.0  ;;  %5458 = vmatprep.subr.bf16.mxu0 %v4767_v21  ;;  %5515 = vmatprep.subr.bf16.mxu1 %v4294_v13  ;;  %v9275_v1 = vmax.f32 %v1804_v45, 0.0  ;;  %v1806_v2 = vadd.f32 %v11455_v15, %v7333_v27  ;;  %v2071_v36 = vadd.f32 %v11456_v42, %v7333_v27  ;;  %v11460_v13 = vld [vmem:[#allocation95_spill] sm:$0xff]  ;;  %v11463_v45 = vld [vmem:[#allocation38_spill] sm:$0xff] }
 0x1da   : > { %v9277_v57 = vmax.f32 %v2069_v35, 0.0  ;;  %5459 = vmatpush1.bf16.msra.mxu0 %v4731_v17  ;;  %v4258_v5 = vpack.c.bf16 %v4255_v41, %v4254_v7  ;;  %v9287_v28 = vadd.f32 %v9271_v58, %v11458_v49  ;;  %v1808_v32 = vadd.f32 %v11460_v13, %v7333_v27  ;;  %v9313_v35 = vpop.f32.mrb[105].mxu0  ;;  %v9315_v7 = vpop.f32.mrb[106].mxu1 }
 0x1db   : > { %v4930_v21 = vadd.f32 %v8967_v19, %v9273_v38  ;;  %v9299_v8 = vadd.f32 %v11463_v45, %v9275_v1  ;;  %v9303_v17 = vadd.f32 %v8875_v63, %v9275_v1  ;;  %v9307_v41 = vadd.f32 %v9275_v1, %v9271_v58  ;;  %11465 = vst [vmem:[#allocation92_spill] sm:$0xff] %v9313_v35  ;;  %v9326_v46 = vpop.f32.mrb[106].mxu0  ;;  %v9328_v31 = vpop.f32.mrb[107].mxu1  ;;  %v9333_v35 = vld [vmem:[%s10877_s3] sm:$0xff]  }
 0x1dc   : > { %11454 = vst [vmem:[#allocation84_spill] sm:$0xff] %v9277_v57  ;;  %11459 = vst [vmem:[#allocation61_spill] sm:$0xff] %v9287_v28  ;;  %v9311_v19 = vadd.f32 %v9277_v57, %v9273_v38  ;;  %5516 = vmatpush1.bf16.msra.mxu1 %v4258_v5  ;;  %v9320_v42 = vmax.f32 %v1806_v2, 0.0  ;;  %v9322_v13 = vmax.f32 %v2071_v36, 0.0  ;;  %v9324_v45 = vmax.f32 %v1808_v32, 0.0  ;;  %v11472_v5 = vld [vmem:[#allocation33_spill] sm:$0xff] }
 0x1dd   : > { %11464 = vst [vmem:[#allocation71_spill] sm:$0xff] %v9307_v41  ;;  %11466 = vst [vmem:[#allocation94_spill] sm:$0xff] %v9315_v7  ;;  %v9318_v15 = vadd.f32 %v4930_v21, %v9277_v57  ;;  %5477 = vmatmul.mubr.bf16.vlgmr.msra.gmra.mrb[128].mxu0 %v9333_v35  ;;  %v2073_v21 = vadd.f32 %v11472_v5, %v7333_v27  ;;  %v11473_v2 = vld [vmem:[#allocation46_spill] sm:$0xff]  ;;  %v11474_v32 = vld [vmem:[#allocation16_spill] sm:$0xff]  ;;  %v4838_v28 = vpack.c.bf16 %v9103_v54, %v9068_v18 }
 0x1de   : > { %11468 = vst [vmem:[#allocation95_spill] sm:$0xff] %v9322_v13  ;;  %11469 = vst [vmem:[#allocation38_spill] sm:$0xff] %v9326_v46  ;;  %v4280_v36 = vadd.f32 %v11473_v2, %v11415_v34  ;;  %v11475_v7 = vld [vmem:[#allocation87_spill] sm:$0xff]  ;;  %v11476_v46 = vld [vmem:[#allocation50_spill] sm:$0xff]  ;;  %v4931_v22 = vadd.f32 %v8973_v30, %v9322_v13  ;;  %v9358_v34 = vadd.f32 %v8938_v11, %v9324_v45 }
 0x1df   : > { %11467 = vst [vmem:[#allocation42_spill] sm:$0xff] %v9318_v15  ;;  %11470 = vst [vmem:[#allocation123_spill] sm:$0xff] %v9328_v31  ;;  %v4281_v15 = vadd.f32 %v11474_v32, %v8619_v40  ;;  %v4252_v44 = vadd.f32 %v11476_v46, %v11475_v7  ;;  %v9344_v31 = vpop.f32.mrb[107].mxu0  ;;  %v11478_v41 = vld [vmem:[#allocation12_spill] sm:$0xff]  ;;  %v11480_v5 = vld [vmem:[#allocation21_spill] sm:$0xff]  ;;  %v11482_v40 = vmov 0   ;;  %v9363_v46 = vadd.f32 %v9324_v45, %v9320_v42 }
 0x1e0   : > { %11471 = vst [vmem:[#allocation124_spill] sm:$0xff] %v9333_v35  ;;  %11477 = vst [vmem:[#allocation33_spill] sm:$0xff] %v9344_v31  ;;  %v9348_v57 = vadd.f32 %v9320_v42, %v11478_v41  ;;  %v9354_v37 = vadd.f32 %v11480_v5, %v9324_v45  ;;  %5486 = vmatprep.mubr.bf16.mxu0 %v11482_v40  ;;  %v9365_v7 = vmax.f32 %v2073_v21, 0.0  ;;  %v11485_v32 = vld [vmem:[#allocation52_spill] sm:$0xff]  ;;  %v11486_v31 = vld [vmem:[#allocation82_spill] sm:$0xff] }
 0x1e1   : > { %11481 = vst [vmem:[#allocation16_spill] sm:$0xff] %v9358_v34  ;;  %11483 = vst [vmem:[#allocation87_spill] sm:$0xff] %v9363_v46  ;;  %v4288_v2 = vadd.f32 %v4280_v36, %v9141_v33  ;;  %v4289_v30 = vadd.f32 %v4281_v15, %v9178_v29  ;;  %v4253_v5 = vadd.f32 %v11486_v31, %v11485_v32  ;;  %v9382_v29 = vpop.f32.mrb[108].mxu1  ;;  %v11492_v54 = vld [vmem:[#allocation10_spill] sm:$0xff]  ;;  %v9390_v32 = vpop.f32.mrb[108].mxu0 }
 0x1e2   : > { %11479 = vst [vmem:[#allocation46_spill] sm:$0xff] %v9348_v57  ;;  %11484 = vst [vmem:[#allocation50_spill] sm:$0xff] %v9365_v7  ;;  %v4256_v57 = vmul.f32 0.25, %v4252_v44  ;;  %v1812_v16 = vadd.f32 %v11487_v9, %v7331_v25  ;;  %v9377_v34 = vadd.f32 %v9365_v7, %v9322_v13  ;;  %v9380_v21 = vadd.f32 %v4931_v22, %v9365_v7  ;;  %v11491_v44 = vld [vmem:[#allocation20_spill] sm:$0xff]  ;;  %v9392_v46 = vpop.f32.mrb[109].mxu1  ;;  %v11495_v22 = vld [vmem:[#allocation79_spill] sm:$0xff] }
 0x1e3   : > { %v4292_v33 = vmul.f32 0.25, %v4288_v2  ;;  %v4293_v36 = vmul.f32 0.25, %v4289_v30  ;;  %11490 = vst [vmem:[#allocation52_spill] sm:$0xff] %v9382_v29  ;;  %v4257_v15 = vmul.f32 0.25, %v4253_v5  ;;  %v2077_v18 = vadd.f32 %v11491_v44, %v7331_v25  ;;  %11493 = vst [vmem:[#allocation82_spill] sm:$0xff] %v9390_v32  ;;  %v11496_v30 = vld [vmem:[#allocation80_spill] sm:$0xff] }
 0x1e4   : > { %11488 = vst [vmem:[#allocation12_spill] sm:$0xff] %v9377_v34  ;;  %11489 = vst [vmem:[#allocation21_spill] sm:$0xff] %v9380_v21  ;;  %v9384_v31 = vmax.f32 %v1812_v16, 0.0  ;;  %v1814_v9 = vadd.f32 %v11492_v54, %v7331_v25  ;;  %v2079_v2 = vadd.f32 %v11495_v22, %v7331_v25  ;;  %v1816_v21 = vadd.f32 %v11496_v30, %v7389_v3  ;;  %v11497_v16 = vld [vmem:[#allocation32_spill] sm:$0xff]  ;;  %v9400_v29 = vpop.f32.mrb[109].mxu0  ;;  %v9402_v44 = vpop.f32.mrb[110].mxu1 }
 0x1e5   : > { %11494 = vst [vmem:[#allocation36_spill] sm:$0xff] %v9392_v46  ;;  %v4295_v13 = vpack.c.bf16 %v4293_v36, %v4292_v33  ;;  %v2081_v5 = vadd.f32 %v11497_v16, %v7389_v3  ;;  %11498 = vst [vmem:[#allocation20_spill] sm:$0xff] %v9400_v29  ;;  %v4259_v7 = vpack.c.bf16 %v4257_v15, %v4256_v57  ;;  %v11500_v54 = vld [vmem:[#allocation56_spill] sm:$0xff]  ;;  %v9408_v46 = vmax.f32 %v2077_v18, 0.0  ;;  %v9412_v36 = vpop.f32.mrb[110].mxu0  ;;  %v9414_v22 = vpop.f32.mrb[111].mxu1 }
 0x1e6   : > { %11499 = vst [vmem:[#allocation10_spill] sm:$0xff] %v9402_v44  ;;  %v9406_v32 = vadd.f32 %v9384_v31, %v11500_v54  ;;  %v9410_v33 = vmax.f32 %v1814_v9, 0.0  ;;  %11503 = vst [vmem:[#allocation32_spill] sm:$0xff] %v9412_v36  ;;  %v9416_v30 = vmax.f32 %v2079_v2, 0.0  ;;  %v9421_v16 = vld [vmem:[%s10877_s3 + $0x8] sm:$0xff]   ;;  %v9424_v57 = vmax.f32 %v1816_v21, 0.0 }
 0x1e7   : > { %11502 = vst [vmem:[#allocation80_spill] sm:$0xff] %v9408_v46  ;;  %11504 = vst [vmem:[#allocation56_spill] sm:$0xff] %v9414_v22  ;;  %5517 = vmatprep.subr.bf16.mxu1 %v4295_v13  ;;  %5487 = vmatmul.mubr.bf16.gmra.mrb[132].mxu0 %v9421_v16  ;;  %v9426_v15 = vmax.f32 %v2081_v5, 0.0  ;;  %v11507_v18 = vld [vmem:[#allocation47_spill] sm:$0xff]  ;;  %v9429_v44 = vpop.f32.mrb[111].mxu0  ;;  %v4932_v13 = vadd.f32 %v9020_v59, %v9408_v46  ;;  %v11509_v2 = vld [vmem:[#allocation76_spill] sm:$0xff] }
 0x1e8   : > { %11501 = vst [vmem:[#allocation79_spill] sm:$0xff] %v9406_v32  ;;  %11505 = vst [vmem:[#allocation125_spill] sm:$0xff] %v9416_v30  ;;  %v4798_v9 = vmul.f32 0.25, %v11507_v18  ;;  %5518 = vmatpush1.bf16.msra.mxu1 %v4259_v7  ;;  %v9435_v22 = vadd.f32 %v11509_v2, %v9410_v33  ;;  %v9439_v36 = vadd.f32 %v8975_v43, %v9410_v33  ;;  %v11514_v7 = vld [vmem:[#allocation96_spill] sm:$0xff]  ;;  %v11516_v2 = vld [vmem:[#allocation22_spill] sm:$0xff]  ;;  %5496 = vmatprep.mubr.bf16.mxu0 %v11482_v40 }
 0x1e9   : > { %11506 = vst [vmem:[#allocation126_spill] sm:$0xff] %v9421_v16  ;;  %11508 = vst [vmem:[#allocation47_spill] sm:$0xff] %v9429_v44  ;;  %v9443_v21 = vadd.f32 %v9410_v33, %v9384_v31  ;;  %5519 = vmatprep.subr.bf16.mxu1 %v4838_v28  ;;  %v9447_v5 = vadd.f32 %v9416_v30, %v9408_v46  ;;  %v9451_v59 = vadd.f32 %v9424_v57, %v11514_v7  ;;  %v11518_v28 = vld [vmem:[#allocation54_spill] sm:$0xff]  ;;  %v11519_v32 = vld [vmem:[#allocation63_spill] sm:$0xff] }
 0x1ea   : > { %11510 = vst [vmem:[#allocation76_spill] sm:$0xff] %v9435_v22  ;;  %11511 = vst [vmem:[#allocation127_spill] sm:$0xff] %v9439_v36  ;;  %v4933_v18 = vadd.f32 %v9054_v24, %v9426_v15  ;;  %v4799_v44 = vmul.f32 0.25, %v11516_v2  ;;  %v9458_v29 = vadd.f32 %v4932_v13, %v9416_v30  ;;  %v2083_v36 = vadd.f32 %v11519_v32, %v7389_v3  ;;  %v11521_v2 = vld [vmem:[#allocation62_spill] sm:$0xff]  ;;  %v9471_v13 = vpop.f32.mrb[112].mxu1  ;;  %v11526_v34 = vld [vmem:[#allocation9_spill] sm:$0xff] }
 0x1eb   : > { %11512 = vst [vmem:[#allocation128_spill] sm:$0xff] %v9443_v21  ;;  %11513 = vst [vmem:[#allocation129_spill] sm:$0xff] %v9447_v5  ;;  %v1818_v21 = vadd.f32 %v11518_v28, %v7389_v3  ;;  %v4839_v46 = vpack.c.bf16 %v9244_v53, %v9203_v55  ;;  %v11520_v5 = vld [vmem:[#allocation48_spill] sm:$0xff]  ;;  %v3311_v22 = vadd.f32 %v11521_v2, %v11478_v41  ;;  %v11522_v43 = vld [vmem:[#allocation58_spill] sm:$0xff]  ;;  %v3286_v51 = vmul.f32 0.25, %v11526_v34  ;;  %v9479_v55 = vpop.f32.mrb[112].mxu0 }
 0x1ec   : > { %11515 = vst [vmem:[#allocation96_spill] sm:$0xff] %v9451_v59  ;;  %11517 = vst [vmem:[#allocation22_spill] sm:$0xff] %v9458_v29  ;;  %v4802_v59 = vpack.c.bf16 %v4799_v44, %v4798_v9  ;;  %v3310_v24 = vadd.f32 %v11520_v5, %v11458_v49  ;;  %v4800_v50 = vmul.f32 0.25, %v11522_v43  ;;  %v9475_v28 = vmax.f32 %v2083_v36, 0.0  ;;  %v11525_v30 = vld [vmem:[#allocation90_spill] sm:$0xff]  ;;  %v9481_v53 = vpop.f32.mrb[113].mxu1 }
 0x1ed   : > { %11523 = vst [vmem:[#allocation54_spill] sm:$0xff] %v9471_v13  ;;  %v9473_v29 = vmax.f32 %v1818_v21, 0.0  ;;  %v4801_v32 = vmul.f32 0.25, %v11525_v30  ;;  %11527 = vst [vmem:[#allocation48_spill] sm:$0xff] %v9479_v55  ;;  %v3319_v41 = vadd.f32 %v3311_v22, %v9320_v42  ;;  %v11529_v43 = vld [vmem:[#allocation59_spill] sm:$0xff]  ;;  %v11530_v9 = vld [vmem:[#allocation64_spill] sm:$0xff] }
 0x1ee   : > { %11524 = vst [vmem:[#allocation63_spill] sm:$0xff] %v9475_v28  ;;  %11528 = vst [vmem:[#allocation62_spill] sm:$0xff] %v9481_v53  ;;  %5520 = vmatpush1.bf16.msra.mxu1 %v4802_v59  ;;  %v3318_v49 = vadd.f32 %v3310_v24, %v9271_v58  ;;  %v3287_v44 = vmul.f32 0.25, %v11529_v43  ;;  %v1908_v21 = vadd.f32 %v11530_v9, %v7321_v20  ;;  %v9488_v36 = vpop.f32.mrb[113].mxu0  ;;  %v9490_v5 = vpop.f32.mrb[114].mxu1  ;;  %v11533_v34 = vld [vmem:[#allocation99_spill] sm:$0xff] }
 0x1ef   : > { %11531 = vst [vmem:[#allocation58_spill] sm:$0xff] %v9488_v36  ;;  %11532 = vst [vmem:[#allocation90_spill] sm:$0xff] %v9490_v5  ;;  %v9494_v30 = vadd.f32 %v11533_v34, %v9473_v29  ;;  %v9498_v59 = vadd.f32 %v9003_v12, %v9473_v29  ;;  %v9502_v22 = vadd.f32 %v9473_v29, %v9424_v57  ;;  %5521 = vmatprep.subr.bf16.mxu1 %v4839_v46  ;;  %v9508_v2 = vpop.f32.mrb[114].mxu0  ;;  %v9510_v43 = vpop.f32.mrb[115].mxu1  ;;  %v9518_v53 = vld [vmem:[%s10877_s3 + $0x10] sm:$0xff]  }
 0x1f0   : > { %v9506_v24 = vadd.f32 %v9475_v28, %v9426_v15  ;;  %11535 = vst [vmem:[#allocation59_spill] sm:$0xff] %v9508_v2  ;;  %11536 = vst [vmem:[#allocation64_spill] sm:$0xff] %v9510_v43  ;;  %v9513_v9 = vadd.f32 %v4933_v18, %v9475_v28  ;;  %v3322_v34 = vmul.f32 0.25, %v3318_v49  ;;  %v3323_v5 = vmul.f32 0.25, %v3319_v41  ;;  %5497 = vmatmul.mubr.bf16.gmra.mrb[136].mxu0 %v9518_v53  ;;  %v9521_v55 = vpop.f32.mrb[115].mxu0  ;;  %v11540_v43 = vld [vmem:[#allocation55_spill] sm:$0xff] }
 0x1f1   : > { %11534 = vst [vmem:[#allocation9_spill] sm:$0xff] %v9502_v22  ;;  %v4803_v36 = vpack.c.bf16 %v4801_v32, %v4800_v50  ;;  %11538 = vst [vmem:[#allocation130_spill] sm:$0xff] %v9518_v53  ;;  %v3290_v46 = vpack.c.bf16 %v3287_v44, %v3286_v51  ;;  %v9523_v13 = vmax.f32 %v1908_v21, 0.0  ;;  %v2173_v2 = vadd.f32 %v11540_v43, %v7321_v20  ;;  %v11541_v18 = vld [vmem:[#allocation41_spill] sm:$0xff]  ;;  %v11544_v51 = vld [vmem:[#allocation26_spill] sm:$0xff]  ;;  %v9552_v28 = vpop.f32.mrb[116].mxu1 }
 0x1f2   : > { %11537 = vst [vmem:[#allocation99_spill] sm:$0xff] %v9513_v9  ;;  %11539 = vst [vmem:[#allocation131_spill] sm:$0xff] %v9521_v55  ;;  %v1910_v49 = vadd.f32 %v11541_v18, %v7321_v20  ;;  %5602 = vmatprep.mubr.bf16.mxu0 %v11482_v40  ;;  %v3326_v50 = vpack.c.bf16 %v3323_v5, %v3322_v34  ;;  %v11542_v32 = vld [vmem:[#allocation85_spill] sm:$0xff]  ;;  %v2177_v44 = vadd.f32 %v11544_v51, %v7333_v27  ;;  %v11545_v21 = vld [vmem:[#allocation44_spill] sm:$0xff] }
 0x1f3   : > { %5522 = vmatpush1.bf16.msra.mxu1 %v4803_v36  ;;  %v2175_v41 = vadd.f32 %v11542_v32, %v7321_v20  ;;  %v11543_v9 = vld [vmem:[#allocation25_spill] sm:$0xff]  ;;  %v9538_v55 = vadd.f32 %v9523_v13, %v11545_v21  ;;  %v9540_v43 = vmax.f32 %v2173_v2, 0.0  ;;  %v3878_v5 = vadd.f32 %v9041_v48, %v9523_v13 }
 0x1f4   : > { %v1912_v22 = vadd.f32 %v11543_v9, %v7333_v27  ;;  %v2601_v18 = vmax.f32 %v1910_v49, 0.0  ;;  %5570 = vmatprep.subr.bf16.mxu0 %v3326_v50  ;;  %v9548_v32 = vmax.f32 %v2177_v44, 0.0  ;;  %v11549_v9 = vld [vmem:[#allocation29_spill] sm:$0xff]  ;;  %11550 = vst [vmem:[#allocation25_spill] sm:$0xff] %v9552_v28  ;;  %v11559_v28 = vld [vmem:[#allocation102_spill] sm:$0xff] }
 0x1f5   : > { %11546 = vst [vmem:[#allocation55_spill] sm:$0xff] %v9538_v55  ;;  %v9544_v36 = vmax.f32 %v2175_v41, 0.0  ;;  %v1914_v51 = vadd.f32 %v11549_v9, %v7333_v27  ;;  %5571 = vmatpush1.bf16.msra.mxu0 %v3290_v46  ;;  %v9556_v2 = vadd.f32 %v9540_v43, %v9043_v61  ;;  %v3914_v48 = vadd.f32 %v9091_v26, %v9540_v43  ;;  %v11554_v41 = vld [vmem:[#allocation74_spill] sm:$0xff]  ;;  %v11567_v55 = vld [vmem:[#allocation27_spill] sm:$0xff] }
 0x1f6   : > { %v9546_v34 = vmax.f32 %v1912_v22, 0.0  ;;  %11548 = vst [vmem:[#allocation85_spill] sm:$0xff] %v9548_v32  ;;  %v3886_v49 = vadd.f32 %v3878_v5, %v2601_v18  ;;  %v9561_v50 = vadd.f32 %v2601_v18, %v9523_v13  ;;  %v9563_v22 = vpop.f32.mrb[117].mxu1  ;;  %5540 = vmatmul.mubr.bf16.vlgmr.msra.gmra.mrb[152].mxu1 %v9333_v35  ;;  %v9572_v46 = vadd.f32 %v9548_v32, %v9096_v6 }
 0x1f7   : > { %11547 = vst [vmem:[#allocation41_spill] sm:$0xff] %v9544_v36  ;;  %11551 = vst [vmem:[#allocation26_spill] sm:$0xff] %v9556_v2  ;;  %v3915_v61 = vadd.f32 %v9124_v4, %v9548_v32  ;;  %v2665_v26 = vmax.f32 %v1914_v51, 0.0  ;;  %v9576_v5 = vpop.f32.mrb[118].mxu1  ;;  %v9581_v9 = vadd.f32 %v3914_v48, %v9544_v36  ;;  %v2179_v2 = vadd.f32 %v11559_v28, %v7333_v27  ;;  %v11562_v51 = vld [vmem:[#allocation68_spill] sm:$0xff]  ;;  %v11568_v32 = vld [vmem:[#allocation19_spill] sm:$0xff] }
 0x1f8   : > { %11552 = vst [vmem:[#allocation44_spill] sm:$0xff] %v9561_v50  ;;  %11553 = vst [vmem:[#allocation29_spill] sm:$0xff] %v9563_v22  ;;  %v9568_v44 = vadd.f32 %v9546_v34, %v11554_v41  ;;  %v9578_v18 = vmul.f32 0.25, %v3886_v49  ;;  %v3879_v22 = vadd.f32 %v9079_v47, %v9546_v34  ;;  %5549 = vmatprep.mubr.bf16.mxu1 %v11482_v40  ;;  %v9588_v6 = vpop.f32.mrb[119].mxu1 }
 0x1f9   : > { %11556 = vst [vmem:[#allocation132_spill] sm:$0xff] %v9572_v46  ;;  %11557 = vst [vmem:[#allocation133_spill] sm:$0xff] %v9576_v5  ;;  %v9591_v4 = vadd.f32 %v2665_v26, %v9546_v34  ;;  %v3312_v49 = vadd.f32 %v11562_v51, %v11500_v54  ;;  %v11563_v5 = vld [vmem:[#allocation57_spill] sm:$0xff]  ;;  %v9598_v47 = vmax.f32 %v2179_v2, 0.0  ;;  %v3806_v50 = vadd.f32 %v11567_v55, %v9271_v58  ;;  %v9618_v51 = vpop.f32.mrb[120].mxu1 }
 0x1fa   : > { %11555 = vst [vmem:[#allocation74_spill] sm:$0xff] %v9568_v44  ;;  %11558 = vst [vmem:[#allocation134_spill] sm:$0xff] %v9581_v9  ;;  %v3313_v48 = vadd.f32 %v11563_v5, %v11514_v7  ;;  %v11564_v9 = vld [vmem:[#allocation75_spill] sm:$0xff]  ;;  %v3887_v35 = vadd.f32 %v3879_v22, %v2665_v26  ;;  %v11566_v44 = vld [vmem:[#allocation69_spill] sm:$0xff]  ;;  %v3807_v54 = vadd.f32 %v11568_v32, %v9320_v42 }
 0x1fb   : > { %11560 = vst [vmem:[#allocation102_spill] sm:$0xff] %v9588_v6  ;;  %11561 = vst [vmem:[#allocation135_spill] sm:$0xff] %v9591_v4  ;;  %v3288_v46 = vmul.f32 0.25, %v11564_v9  ;;  %v3289_v28 = vmul.f32 0.25, %v11566_v44  ;;  %v3320_v6 = vadd.f32 %v3312_v49, %v9384_v31  ;;  %v1918_v7 = vadd.f32 %v8991_v52, %v7331_v25  ;;  %v9626_v49 = vpop.f32.mrb[121].mxu1 }
 0x1fc   : > { %11565 = vst [vmem:[#allocation68_spill] sm:$0xff] %v9598_v47  ;;  %v3321_v4 = vadd.f32 %v3313_v48, %v9424_v57  ;;  %v9609_v5 = vmul.f32 0.25, %v3887_v35  ;;  %v9612_v2 = vadd.f32 %v3915_v61, %v9598_v47  ;;  %v3814_v44 = vadd.f32 %v3806_v50, %v9275_v1  ;;  %11570 = vst [vmem:[#allocation75_spill] sm:$0xff] %v9618_v51  ;;  %v11571_v35 = vld [vmem:[#allocation11_spill] sm:$0xff]  ;;  %v11572_v61 = vld [vmem:[#allocation88_spill] sm:$0xff] }
 0x1fd   : > { %v3291_v22 = vpack.c.bf16 %v3289_v28, %v3288_v46  ;;  %v3324_v26 = vmul.f32 0.25, %v3320_v6  ;;  %v3815_v55 = vadd.f32 %v3807_v54, %v9324_v45  ;;  %v9616_v9 = vmax.f32 %v1918_v7, 0.0  ;;  %11573 = vst [vmem:[#allocation69_spill] sm:$0xff] %v9626_v49  ;;  %v11574_v6 = vld [vmem:[#allocation15_spill] sm:$0xff]  ;;  %v11576_v7 = vld [vmem:[#allocation89_spill] sm:$0xff]  ;;  %v11625_v49 = vld [vmem:[#allocation114_spill] sm:$0xff] }
 0x1fe   : > { %11569 = vst [vmem:[#allocation57_spill] sm:$0xff] %v9612_v2  ;;  %v3325_v58 = vmul.f32 0.25, %v3321_v4  ;;  %v3818_v42 = vmul.f32 0.25, %v3814_v44  ;;  %v2183_v52 = vadd.f32 %v8999_v39, %v7331_v25  ;;  %v1920_v32 = vadd.f32 %v11571_v35, %v7331_v25  ;;  %5550 = vmatmul.mubr.bf16.gmra.mrb[156].mxu1 %v9421_v16  ;;  %v9635_v39 = vpop.f32.mrb[122].mxu1  ;;  %v11579_v35 = vld [vmem:[#allocation34_spill] sm:$0xff]  ;;  %v11580_v2 = vld [vmem:[#allocation93_spill] sm:$0xff] }
 0x1ff   : > { %v2185_v46 = vadd.f32 %v11572_v61, %v7331_v25  ;;  %v3819_v50 = vmul.f32 0.25, %v3815_v55  ;;  %v9630_v45 = vadd.f32 %v9616_v9, %v11574_v6  ;;  %v3880_v4 = vadd.f32 %v9174_v56, %v9616_v9  ;;  %11575 = vst [vmem:[#allocation27_spill] sm:$0xff] %v9635_v39  ;;  %5559 = vmatprep.mubr.bf16.mxu1 %v11482_v40  ;;  %v11578_v56 = vld [vmem:[#allocation104_spill] sm:$0xff]  ;;  %v11593_v39 = vld [vmem:[#allocation14_spill] sm:$0xff]  ;;  %v11654_v16 = vld [vmem:[#allocation113_spill] sm:$0xff] }
 0x200   : > { %v3327_v1 = vpack.c.bf16 %v3325_v58, %v3324_v26  ;;  %v9637_v48 = vmax.f32 %v2183_v52, 0.0  ;;  %v2729_v28 = vmax.f32 %v1920_v32, 0.0  ;;  %v1922_v44 = vadd.f32 %v11576_v7, %v7389_v3  ;;  %v9644_v26 = vpop.f32.mrb[123].mxu1 }
 0x201   : > { %v9639_v54 = vmax.f32 %v2185_v46, 0.0  ;;  %11577 = vst [vmem:[#allocation19_spill] sm:$0xff] %v9644_v26  ;;  %v3822_v58 = vpack.c.bf16 %v3819_v50, %v3818_v42  ;;  %v2187_v55 = vadd.f32 %v11578_v56, %v7389_v3  ;;  %v3782_v61 = vmul.f32 0.25, %v11579_v35 }
 0x202   : > { %5572 = vmatprep.subr.bf16.mxu0 %v3327_v1  ;;  %v3783_v52 = vmul.f32 0.25, %v11580_v2  ;;  %v9652_v32 = vadd.f32 %v9637_v48, %v9143_v60  ;;  %v3916_v46 = vadd.f32 %v9192_v23, %v9637_v48  ;;  %v3888_v7 = vadd.f32 %v3880_v4, %v2729_v28  ;;  %v11582_v2 = vld [vmem:[#allocation105_spill] sm:$0xff]  ;;  %v11584_v23 = vld [vmem:[#allocation106_spill] sm:$0xff] }
 0x203   : > { %5573 = vmatpush1.bf16.msra.mxu0 %v3291_v22  ;;  %v9657_v26 = vadd.f32 %v2729_v28, %v9616_v9  ;;  %v9659_v42 = vmax.f32 %v1922_v44, 0.0  ;;  %v9661_v1 = vmax.f32 %v2187_v55, 0.0  ;;  %v1924_v22 = vadd.f32 %v11582_v2, %v7389_v3  ;;  %v11585_v28 = vld [vmem:[#allocation97_spill] sm:$0xff] }
 0x204   : > { %11581 = vst [vmem:[#allocation11_spill] sm:$0xff] %v9652_v32  ;;  %5574 = vmatprep.subr.bf16.mxu0 %v3822_v58  ;;  %v3786_v50 = vpack.c.bf16 %v3783_v52, %v3782_v61  ;;  %v9665_v56 = vmul.f32 0.25, %v3888_v7  ;;  %v9668_v60 = vadd.f32 %v3916_v46, %v9639_v54  ;;  %v2189_v4 = vadd.f32 %v11584_v23, %v7389_v3  ;;  %v11586_v58 = vld [vmem:[#allocation30_spill] sm:$0xff]  ;;  %v9684_v46 = vpop.f32.mrb[124].mxu1 }
 0x205   : > { %v3808_v35 = vadd.f32 %v11585_v28, %v9384_v31  ;;  %v9676_v44 = vadd.f32 %v9659_v42, %v11586_v58  ;;  %v9680_v55 = vadd.f32 %v9661_v1, %v9184_v0  ;;  %v3917_v61 = vadd.f32 %v9248_v14, %v9661_v1  ;;  %11588 = vst [vmem:[#allocation89_spill] sm:$0xff] %v9684_v46  ;;  %v11589_v31 = vld [vmem:[#allocation100_spill] sm:$0xff]  ;;  %v11591_v14 = vld [vmem:[#allocation39_spill] sm:$0xff] }
 0x206   : > { %11583 = vst [vmem:[#allocation88_spill] sm:$0xff] %v9668_v60  ;;  %v2793_v52 = vmax.f32 %v1924_v22, 0.0  ;;  %v3881_v7 = vadd.f32 %v9227_v62, %v9659_v42  ;;  %v9688_v2 = vmax.f32 %v2189_v4, 0.0  ;;  %v3809_v23 = vadd.f32 %v11589_v31, %v9424_v57  ;;  %v9693_v60 = vpop.f32.mrb[125].mxu1  ;;  %5560 = vmatmul.mubr.bf16.gmra.mrb[160].mxu1 %v9518_v53  ;;  %v11648_v53 = vld [vmem:[#allocation119_spill] sm:$0xff] }
 0x207   : > { %11587 = vst [vmem:[#allocation15_spill] sm:$0xff] %v9680_v55  ;;  %5575 = vmatpush1.bf16.msra.mxu0 %v3786_v50  ;;  %v3816_v28 = vadd.f32 %v3808_v35, %v9410_v33  ;;  %11590 = vst [vmem:[#allocation104_spill] sm:$0xff] %v9693_v60  ;;  %v3382_v22 = vadd.f32 %v11591_v14, %v11545_v21  ;;  %v11592_v50 = vld [vmem:[#allocation65_spill] sm:$0xff]  ;;  %v3784_v62 = vmul.f32 0.25, %v11593_v39  ;;  %v9704_v4 = vpop.f32.mrb[126].mxu1  ;;  %5665 = vmatprep.mubr.bf16.mxu1 %v11482_v40  ;;  %v11597_v39 = vld [vmem:[#allocation98_spill] sm:$0xff] }
 0x208   : > { %v9696_v0 = vadd.f32 %v2793_v52, %v9659_v42  ;;  %v3383_v46 = vadd.f32 %v11592_v50, %v11554_v41  ;;  %11594 = vst [vmem:[#allocation34_spill] sm:$0xff] %v9704_v4  ;;  %v3889_v57 = vadd.f32 %v3881_v7, %v2793_v52  ;;  %v9707_v33 = vadd.f32 %v3917_v61, %v9688_v2  ;;  %v9711_v60 = vpop.f32.mrb[127].mxu1  ;;  %v11598_v7 = vld [vmem:[#allocation28_spill] sm:$0xff] }
 0x209   : > { %v3817_v35 = vadd.f32 %v3809_v23, %v9473_v29  ;;  %v3820_v31 = vmul.f32 0.25, %v3816_v28  ;;  %11596 = vst [vmem:[#allocation105_spill] sm:$0xff] %v9711_v60  ;;  %v3390_v21 = vadd.f32 %v3382_v22, %v9523_v13  ;;  %v3785_v14 = vmul.f32 0.25, %v11597_v39  ;;  %v11599_v39 = vld [vmem:[#allocation37_spill] sm:$0xff] }
 0x20a   : > { %11595 = vst [vmem:[#allocation93_spill] sm:$0xff] %v9707_v33  ;;  %v3391_v41 = vadd.f32 %v3383_v46, %v9546_v34  ;;  %v3354_v50 = vadd.f32 %v9299_v8, %v8875_v63  ;;  %v9718_v52 = vmul.f32 0.25, %v3889_v57  ;;  %v3355_v29 = vadd.f32 %v9354_v37, %v8938_v11  ;;  %v11600_v57 = vld [vmem:[#allocation24_spill] sm:$0xff]  ;;  %v11601_v11 = vld [vmem:[#allocation109_spill] sm:$0xff] }
 0x20b   : > { %v3821_v61 = vmul.f32 0.25, %v3817_v35  ;;  %v2014_v23 = vadd.f32 %v11598_v7, %v7321_v20  ;;  %v3394_v28 = vmul.f32 0.25, %v3390_v21  ;;  %v3787_v4 = vpack.c.bf16 %v3785_v14, %v3784_v62  ;;  %v11602_v7 = vld [vmem:[#allocation110_spill] sm:$0xff] }
 0x20c   : > { %v3395_v60 = vmul.f32 0.25, %v3391_v41  ;;  %v3358_v13 = vmul.f32 0.25, %v3354_v50  ;;  %v3359_v34 = vmul.f32 0.25, %v3355_v29  ;;  %v2279_v63 = vadd.f32 %v11599_v39, %v7321_v20  ;;  %v11603_v41 = vld [vmem:[#allocation86_spill] sm:$0xff]  ;;  %v11605_v50 = vld [vmem:[#allocation49_spill] sm:$0xff] }
 0x20d   : > { %v3823_v22 = vpack.c.bf16 %v3821_v61, %v3820_v31  ;;  %v9724_v46 = vmax.f32 %v2014_v23, 0.0  ;;  %v2016_v35 = vadd.f32 %v11600_v57, %v7321_v20  ;;  %v2281_v37 = vadd.f32 %v11601_v11, %v7321_v20  ;;  %v9742_v61 = vpop.f32.mrb[128].mxu1 }
 0x20e   : > { %v3398_v8 = vpack.c.bf16 %v3395_v60, %v3394_v28  ;;  %v2018_v21 = vadd.f32 %v11602_v7, %v7333_v27  ;;  %v3362_v62 = vpack.c.bf16 %v3359_v34, %v3358_v13  ;;  %v9738_v14 = vmax.f32 %v2279_v63, 0.0  ;;  %11606 = vst [vmem:[#allocation97_spill] sm:$0xff] %v9742_v61  ;;  %v11607_v13 = vld [vmem:[#allocation112_spill] sm:$0xff]  ;;  %v9752_v34 = vpop.f32.mrb[129].mxu1  ;;  %v11612_v7 = vld [vmem:[#allocation111_spill] sm:$0xff] }
 0x20f   : > { %5576 = vmatprep.subr.bf16.mxu0 %v3823_v22  ;;  %v9736_v31 = vadd.f32 %v9724_v46, %v11603_v41  ;;  %v2283_v60 = vadd.f32 %v11605_v50, %v7333_v27  ;;  %v9744_v29 = vmax.f32 %v2016_v35, 0.0  ;;  %v9746_v23 = vmax.f32 %v2281_v37, 0.0  ;;  %11608 = vst [vmem:[#allocation30_spill] sm:$0xff] %v9752_v34  ;;  %v9762_v35 = vpop.f32.mrb[130].mxu1  ;;  %v11618_v34 = vld [vmem:[#allocation17_spill] sm:$0xff]  ;;  %v11619_v61 = vld [vmem:[#allocation76_spill] sm:$0xff] }
 0x210   : > { %5633 = vmatprep.subr.bf16.mxu1 %v3398_v8  ;;  %5577 = vmatpush1.bf16.msra.mxu0 %v3787_v4  ;;  %v9748_v28 = vmax.f32 %v2018_v21, 0.0  ;;  %v2020_v22 = vadd.f32 %v11607_v13, %v7333_v27  ;;  %v3986_v39 = vadd.f32 %v9311_v19, %v9738_v14  ;;  %v11609_v8 = vld [vmem:[#allocation31_spill] sm:$0xff]  ;;  %v3384_v57 = vadd.f32 %v9159_v10, %v11574_v6  ;;  %v11616_v6 = vld [vmem:[#allocation12_spill] sm:$0xff] }
 0x211   : > { %11604 = vst [vmem:[#allocation106_spill] sm:$0xff] %v9736_v31  ;;  %5634 = vmatpush1.bf16.msra.mxu1 %v3362_v62  ;;  %v9756_v63 = vmax.f32 %v2283_v60, 0.0  ;;  %v2285_v4 = vadd.f32 %v11609_v8, %v7333_v27  ;;  %11610 = vst [vmem:[#allocation100_spill] sm:$0xff] %v9762_v35  ;;  %v9766_v11 = vadd.f32 %v9273_v38, %v9744_v29  ;;  %v9780_v62 = vpop.f32.mrb[131].mxu1  ;;  %v11617_v8 = vld [vmem:[#allocation120_spill] sm:$0xff] }
 0x212   : > { %v9770_v37 = vadd.f32 %v9744_v29, %v9724_v46  ;;  %v9774_v19 = vadd.f32 %v9303_v17, %v9744_v29  ;;  %v9778_v21 = vadd.f32 %v9748_v28, %v11612_v7  ;;  %11614 = vst [vmem:[#allocation14_spill] sm:$0xff] %v9780_v62  ;;  %v9783_v10 = vadd.f32 %v3986_v39, %v9746_v23  ;;  %v11620_v39 = vld [vmem:[#allocation95_spill] sm:$0xff] }
 0x213   : > { %v3987_v50 = vadd.f32 %v11616_v6, %v9756_v63  ;;  %v9787_v60 = vmax.f32 %v2020_v22, 0.0  ;;  %v9789_v13 = vmax.f32 %v2285_v4, 0.0  ;;  %v3385_v17 = vadd.f32 %v11617_v8, %v11586_v58  ;;  %v11622_v4 = vld [vmem:[#allocation16_spill] sm:$0xff] }
 0x214   : > { %11611 = vst [vmem:[#allocation39_spill] sm:$0xff] %v9770_v37  ;;  %11613 = vst [vmem:[#allocation65_spill] sm:$0xff] %v9778_v21  ;;  %v3392_v35 = vadd.f32 %v3384_v57, %v9616_v9  ;;  %v3356_v33 = vadd.f32 %v11619_v61, %v11618_v34  ;;  %v3357_v62 = vadd.f32 %v9494_v30, %v9003_v12  ;;  %v11624_v57 = vld [vmem:[#allocation78_spill] sm:$0xff]  ;;  %v9822_v37 = vpop.f32.mrb[132].mxu1 }
 0x215   : > { %11615 = vst [vmem:[#allocation98_spill] sm:$0xff] %v9783_v10  ;;  %v9800_v10 = vadd.f32 %v11620_v39, %v9787_v60  ;;  %v9804_v22 = vadd.f32 %v9787_v60, %v9748_v28  ;;  %v9808_v6 = vadd.f32 %v11622_v4, %v9787_v60  ;;  %v9811_v9 = vadd.f32 %v3987_v50, %v9789_v13  ;;  %v11626_v4 = vld [vmem:[#allocation115_spill] sm:$0xff] }
 0x216   : > { %v3393_v58 = vadd.f32 %v3385_v17, %v9659_v42  ;;  %v3396_v61 = vmul.f32 0.25, %v3392_v35  ;;  %v3360_v34 = vmul.f32 0.25, %v3356_v33  ;;  %v3361_v12 = vmul.f32 0.25, %v3357_v62  ;;  %11627 = vst [vmem:[#allocation24_spill] sm:$0xff] %v9822_v37  ;;  %v11628_v42 = vld [vmem:[#allocation40_spill] sm:$0xff] }
 0x217   : > { %11621 = vst [vmem:[#allocation28_spill] sm:$0xff] %v9804_v22  ;;  %11623 = vst [vmem:[#allocation37_spill] sm:$0xff] %v9811_v9  ;;  %v3894_v30 = vpack.c.bf16 %v9609_v5, %v9578_v18  ;;  %v2024_v8 = vadd.f32 %v11624_v57, %v7331_v25  ;;  %v2289_v51 = vadd.f32 %v11625_v49, %v7331_v25  ;;  %v11629_v35 = vld [vmem:[#allocation116_spill] sm:$0xff]  ;;  %v9828_v18 = vpop.f32.mrb[133].mxu1  ;;  %v11631_v57 = vld [vmem:[#allocation118_spill] sm:$0xff] }
 0x218   : > { %v2026_v22 = vadd.f32 %v11626_v4, %v7331_v25  ;;  %v3397_v50 = vmul.f32 0.25, %v3393_v58  ;;  %v3363_v9 = vpack.c.bf16 %v3361_v12, %v3360_v34  ;;  %v2291_v33 = vadd.f32 %v11628_v42, %v7331_v25  ;;  %11630 = vst [vmem:[#allocation109_spill] sm:$0xff] %v9828_v18  ;;  %v9838_v37 = vpop.f32.mrb[134].mxu1  ;;  %v11634_v42 = vld [vmem:[#allocation101_spill] sm:$0xff] }
 0x219   : > { %v2028_v62 = vadd.f32 %v11629_v35, %v7389_v3  ;;  %v9830_v5 = vmax.f32 %v2024_v8, 0.0  ;;  %v9832_v17 = vmax.f32 %v2289_v51, 0.0  ;;  %v2293_v4 = vadd.f32 %v11631_v57, %v7389_v3  ;;  %11632 = vst [vmem:[#allocation110_spill] sm:$0xff] %v9838_v37  ;;  %v9845_v55 = vpop.f32.mrb[135].mxu1  ;;  %v11636_v8 = vld [vmem:[#allocation117_spill] sm:$0xff]  ;;  %v11639_v57 = vld [vmem:[#allocation80_spill] sm:$0xff] }
 0x21a   : > { %v9834_v49 = vmax.f32 %v2026_v22, 0.0  ;;  %v3399_v58 = vpack.c.bf16 %v3397_v50, %v3396_v61  ;;  %v9840_v34 = vmax.f32 %v2291_v33, 0.0  ;;  %v3854_v35 = vmul.f32 0.25, %v11634_v42  ;;  %11635 = vst [vmem:[#allocation49_spill] sm:$0xff] %v9845_v55  ;;  %v11638_v22 = vld [vmem:[#allocation129_spill] sm:$0xff]  ;;  %v11642_v50 = vld [vmem:[#allocation127_spill] sm:$0xff] }
 0x21b   : > { %v9842_v12 = vmax.f32 %v2028_v62, 0.0  ;;  %v9849_v51 = vadd.f32 %v9830_v5, %v11636_v8  ;;  %v3988_v18 = vadd.f32 %v11638_v22, %v9832_v17  ;;  %v11643_v62 = vld [vmem:[#allocation91_spill] sm:$0xff]  ;;  %v9869_v55 = vmax.f32 %v2293_v4, 0.0 }
 0x21c   : > { %11633 = vst [vmem:[#allocation86_spill] sm:$0xff] %v9840_v34  ;;  %v9855_v32 = vadd.f32 %v11639_v57, %v9834_v49  ;;  %v9859_v61 = vadd.f32 %v9834_v49, %v9830_v5  ;;  %5635 = vmatprep.subr.bf16.mxu1 %v3399_v58  ;;  %v9863_v33 = vadd.f32 %v11642_v50, %v9834_v49  ;;  %v11646_v22 = vld [vmem:[#allocation43_spill] sm:$0xff]  ;;  %v11649_v58 = vld [vmem:[#allocation70_spill] sm:$0xff] }
 0x21d   : > { %11637 = vst [vmem:[#allocation112_spill] sm:$0xff] %v9849_v51  ;;  %v9867_v42 = vadd.f32 %v9842_v12, %v11643_v62  ;;  %11645 = vst [vmem:[#allocation120_spill] sm:$0xff] %v9869_v55  ;;  %v3855_v37 = vmul.f32 0.25, %v11646_v22  ;;  %5636 = vmatpush1.bf16.msra.mxu1 %v3363_v9  ;;  %v9873_v51 = vadd.f32 %v3988_v18, %v9840_v34  ;;  %v11650_v22 = vld [vmem:[#allocation61_spill] sm:$0xff]  ;;  %v11651_v18 = vld [vmem:[#allocation46_spill] sm:$0xff]  ;;  %v4311_v34 = vmul.f32 0.25, %v11654_v16 }
 0x21e   : > { %11640 = vst [vmem:[#allocation31_spill] sm:$0xff] %v9855_v32  ;;  %11641 = vst [vmem:[#allocation111_spill] sm:$0xff] %v9859_v61  ;;  %v2030_v61 = vadd.f32 %v11648_v53, %v7389_v3  ;;  %v2295_v21 = vadd.f32 %v11649_v58, %v7389_v3  ;;  %v3895_v50 = vpack.c.bf16 %v9718_v52, %v9665_v56  ;;  %5637 = vmatprep.subr.bf16.mxu1 %v3894_v30  ;;  %v11653_v32 = vld [vmem:[#allocation108_spill] sm:$0xff]  ;;  %v9893_v56 = vpop.f32.mrb[136].mxu1 }
 0x21f   : > { %11644 = vst [vmem:[#allocation12_spill] sm:$0xff] %v9867_v42  ;;  %11647 = vst [vmem:[#allocation17_spill] sm:$0xff] %v9873_v51  ;;  %v3989_v4 = vadd.f32 %v9506_v24, %v9869_v55  ;;  %v3858_v42 = vpack.c.bf16 %v3855_v37, %v3854_v35  ;;  %v4334_v9 = vadd.f32 %v11650_v22, %v11603_v41  ;;  %v4310_v58 = vmul.f32 0.25, %v11653_v32  ;;  %v11656_v37 = vld [vmem:[#allocation103_spill] sm:$0xff]  ;;  %v9899_v22 = vpop.f32.mrb[137].mxu1 }
 0x220   : > { %v4335_v51 = vadd.f32 %v11651_v18, %v11612_v7  ;;  %v9887_v31 = vmax.f32 %v2030_v61, 0.0  ;;  %v9889_v53 = vmax.f32 %v2295_v21, 0.0  ;;  %11655 = vst [vmem:[#allocation95_spill] sm:$0xff] %v9893_v56  ;;  %v3856_v30 = vmul.f32 0.25, %v11656_v37  ;;  %v11657_v41 = vld [vmem:[#allocation107_spill] sm:$0xff]  ;;  %11658 = vst [vmem:[#allocation16_spill] sm:$0xff] %v9899_v22 }
 0x221   : > { %v4342_v52 = vadd.f32 %v4334_v9, %v9724_v46  ;;  %v3857_v35 = vmul.f32 0.25, %v11657_v41  ;;  %5638 = vmatpush1.bf16.msra.mxu1 %v3858_v42  ;;  %v4314_v9 = vpack.c.bf16 %v4311_v34, %v4310_v58  ;;  %v11664_v41 = vld [vmem:[#allocation18_spill] sm:$0xff]  ;;  %v11665_v56 = vld [vmem:[#allocation23_spill] sm:$0xff]  ;;  %v11669_v34 = vld [vmem:[#allocation13_spill] sm:$0xff] }
 0x222   : > { %11652 = vst [vmem:[#allocation76_spill] sm:$0xff] %v9889_v53  ;;  %v4343_v24 = vadd.f32 %v4335_v51, %v9748_v28  ;;  %v9903_v7 = vadd.f32 %v9426_v15, %v9887_v31  ;;  %v9907_v16 = vadd.f32 %v9887_v31, %v9842_v12  ;;  %v9911_v32 = vadd.f32 %v9498_v59, %v9887_v31  ;;  %v9916_v51 = vpop.f32.mrb[138].mxu1 }
 0x223   : > { %v9914_v21 = vadd.f32 %v3989_v4, %v9889_v53  ;;  %11662 = vst [vmem:[#allocation40_spill] sm:$0xff] %v9916_v51  ;;  %5639 = vmatprep.subr.bf16.mxu1 %v3895_v50  ;;  %v4346_v61 = vmul.f32 0.25, %v4342_v52  ;;  %v3859_v18 = vpack.c.bf16 %v3857_v35, %v3856_v30  ;;  %v9918_v37 = vpop.f32.mrb[139].mxu1  ;;  %v2120_v22 = vadd.f32 %v11664_v41, %v7321_v20  ;;  %v11666_v4 = vld [vmem:[#allocation83_spill] sm:$0xff]  ;;  %v11667_v50 = vld [vmem:[#allocation66_spill] sm:$0xff] }
 0x224   : > { %11659 = vst [vmem:[#allocation78_spill] sm:$0xff] %v9903_v7  ;;  %11660 = vst [vmem:[#allocation114_spill] sm:$0xff] %v9907_v16  ;;  %v4347_v42 = vmul.f32 0.25, %v4343_v24  ;;  %v2385_v16 = vadd.f32 %v11665_v56, %v7321_v20  ;;  %v4994_v59 = vadd.f32 %v9544_v36, %v9540_v43  ;;  %v9930_v52 = vadd.f32 %v11667_v50, %v7321_v20  ;;  %v11670_v24 = vld [vmem:[#allocation81_spill] sm:$0xff]  ;;  %v11673_v36 = vld [vmem:[#allocation84_spill] sm:$0xff] }
 0x225   : > { %11661 = vst [vmem:[#allocation115_spill] sm:$0xff] %v9914_v21  ;;  %11663 = vst [vmem:[#allocation116_spill] sm:$0xff] %v9918_v37  ;;  %v2122_v21 = vadd.f32 %v11666_v4, %v7321_v20  ;;  %v2124_v58 = vadd.f32 %v11669_v34, %v7333_v27  ;;  %v2389_v30 = vadd.f32 %v11670_v24, %v7333_v27  ;;  %5640 = vmatpush1.bf16.msra.mxu1 %v3859_v18  ;;  %v11671_v37 = vld [vmem:[#allocation85_spill] sm:$0xff] }
 0x226   : > { %v4350_v51 = vpack.c.bf16 %v4347_v42, %v4346_v61  ;;  %11668 = vst [vmem:[#allocation118_spill] sm:$0xff] %v9930_v52  ;;  %v9936_v35 = vmax.f32 %v2120_v22, 0.0  ;;  %v2618_v56 = vmax.f32 %v2385_v16, 0.0  ;;  %v4995_v7 = vadd.f32 %v9598_v47, %v11671_v37  ;;  %v11672_v50 = vld [vmem:[#allocation121_spill] sm:$0xff] }
 0x227   : > { %v2609_v41 = vmax.f32 %v2122_v21, 0.0  ;;  %v9941_v42 = vmax.f32 %v2124_v58, 0.0  ;;  %v2682_v4 = vmax.f32 %v2389_v30, 0.0  ;;  %v2126_v34 = vadd.f32 %v11672_v50, %v7333_v27  ;;  %v11677_v58 = vld [vmem:[#allocation50_spill] sm:$0xff] }
 0x228   : > { %5578 = vmatprep.subr.bf16.mxu0 %v4350_v51  ;;  %v9947_v18 = vadd.f32 %v9936_v35, %v11673_v36  ;;  %v4434_v22 = vadd.f32 %v2618_v56, %v9540_v43  ;;  %v5002_v16 = vadd.f32 %v4994_v59, %v2618_v56  ;;  %v11676_v51 = vld [vmem:[#allocation44_spill] sm:$0xff]  ;;  %v11681_v59 = vld [vmem:[#allocation135_spill] sm:$0xff] }
 0x229   : > { %5579 = vmatpush1.bf16.msra.mxu0 %v4314_v9  ;;  %v9951_v21 = vadd.f32 %v2609_v41, %v9936_v35  ;;  %v4966_v24 = vadd.f32 %v11676_v51, %v9936_v35  ;;  %v9957_v30 = vadd.f32 %v9941_v42, %v11677_v58  ;;  %v4435_v50 = vadd.f32 %v2682_v4, %v11671_v37  ;;  %v11683_v51 = vld [vmem:[#allocation122_spill] sm:$0xff] }
 0x22a   : > { %11674 = vst [vmem:[#allocation101_spill] sm:$0xff] %v9947_v18  ;;  %v5003_v9 = vadd.f32 %v4995_v7, %v2682_v4  ;;  %v9960_v61 = vmul.f32 0.25, %v4434_v22  ;;  %v11680_v18 = vmax.f32 %v9930_v52, 0.0  ;;  %v2673_v43 = vmax.f32 %v2126_v34, 0.0  ;;  %v11687_v34 = vld [vmem:[#allocation96_spill] sm:$0xff] }
 0x22b   : > { %11675 = vst [vmem:[#allocation117_spill] sm:$0xff] %v9951_v21  ;;  %11678 = vst [vmem:[#allocation129_spill] sm:$0xff] %v9957_v30  ;;  %v4967_v56 = vadd.f32 %v11681_v59, %v9941_v42  ;;  %v4974_v21 = vadd.f32 %v4966_v24, %v2609_v41  ;;  %v9966_v53 = vmul.f32 0.25, %v4435_v50  ;;  %v9970_v55 = vadd.f32 %v11683_v51, %v7333_v27  ;;  %v11684_v30 = vld [vmem:[#allocation79_spill] sm:$0xff] }
 0x22c   : > { %11679 = vst [vmem:[#allocation80_spill] sm:$0xff] %v9960_v61  ;;  %v5010_v47 = vadd.f32 %v5002_v16, %v11680_v18  ;;  %v4336_v37 = vadd.f32 %v11684_v30, %v11636_v8  ;;  %v9977_v4 = vadd.f32 %v2673_v43, %v9941_v42  ;;  %v4337_v22 = vadd.f32 %v11687_v34, %v11643_v62  ;;  %v11688_v8 = vld [vmem:[#allocation60_spill] sm:$0xff]  ;;  %v11689_v51 = vld [vmem:[#allocation67_spill] sm:$0xff] }
 0x22d   : > { %11682 = vst [vmem:[#allocation127_spill] sm:$0xff] %v9966_v53  ;;  %v4975_v18 = vadd.f32 %v4967_v56, %v2673_v43  ;;  %v9981_v16 = vmul.f32 0.25, %v4974_v21  ;;  %v10996_v24 = vmax.f32 %v9970_v55, 0.0  ;;  %v4312_v30 = vmul.f32 0.25, %v11688_v8  ;;  %v11690_v56 = vld [vmem:[#allocation71_spill] sm:$0xff] }
 0x22e   : > { %v9974_v7 = vmul.f32 0.25, %v5010_v47  ;;  %11686 = vst [vmem:[#allocation43_spill] sm:$0xff] %v9977_v4  ;;  %v4344_v50 = vadd.f32 %v4336_v37, %v9830_v5  ;;  %v4345_v47 = vadd.f32 %v4337_v22, %v9842_v12  ;;  %v4313_v43 = vmul.f32 0.25, %v11689_v51  ;;  %v11691_v41 = vld [vmem:[#allocation87_spill] sm:$0xff]  ;;  %v11693_v22 = vld [vmem:[#allocation45_spill] sm:$0xff] }
 0x22f   : > { %v9987_v59 = vmul.f32 0.25, %v4975_v18  ;;  %v5011_v62 = vadd.f32 %v5003_v9, %v10996_v24  ;;  %v4894_v34 = vadd.f32 %v11690_v56, %v9724_v46  ;;  %v4895_v61 = vadd.f32 %v11691_v41, %v9748_v28  ;;  %v11692_v18 = vld [vmem:[#allocation77_spill] sm:$0xff]  ;;  %v11695_v41 = vld [vmem:[#allocation51_spill] sm:$0xff] }
 0x230   : > { %11685 = vst [vmem:[#allocation91_spill] sm:$0xff] %v9974_v7  ;;  %v4348_v21 = vmul.f32 0.25, %v4344_v50  ;;  %v4349_v53 = vmul.f32 0.25, %v4345_v47  ;;  %v4315_v37 = vpack.c.bf16 %v4313_v43, %v4312_v30  ;;  %v2130_v52 = vadd.f32 %v11692_v18, %v7331_v25  ;;  %v11696_v18 = vld [vmem:[#allocation92_spill] sm:$0xff]  ;;  %v11705_v30 = vld [vmem:[#allocation123_spill] sm:$0xff] }
 0x231   : > { %v2395_v8 = vadd.f32 %v11693_v22, %v7331_v25  ;;  %v10002_v4 = vmul.f32 0.25, %v5011_v62  ;;  %v4902_v51 = vadd.f32 %v4894_v34, %v9744_v29  ;;  %v4903_v9 = vadd.f32 %v4895_v61, %v9787_v60  ;;  %v11698_v60 = vld [vmem:[#allocation125_spill] sm:$0xff] }
 0x232   : > { %v4996_v46 = vadd.f32 %v9639_v54, %v9637_v48  ;;  %v4351_v50 = vpack.c.bf16 %v4349_v53, %v4348_v21  ;;  %v10008_v56 = vmax.f32 %v2130_v52, 0.0  ;;  %v2132_v47 = vadd.f32 %v11695_v41, %v7331_v25 }
 0x233   : > { %11694 = vst [vmem:[#allocation119_spill] sm:$0xff] %v10002_v4  ;;  %v2746_v28 = vmax.f32 %v2395_v8, 0.0  ;;  %v4906_v43 = vmul.f32 0.25, %v4902_v51  ;;  %v4907_v62 = vmul.f32 0.25, %v4903_v9  ;;  %v10016_v29 = vadd.f32 %v11696_v18, %v7331_v25  ;;  %v11700_v51 = vld [vmem:[#allocation94_spill] sm:$0xff] }
 0x234   : > { %5580 = vmatprep.subr.bf16.mxu0 %v4351_v50  ;;  %v10020_v61 = vadd.f32 %v10008_v56, %v11698_v60  ;;  %v2737_v21 = vmax.f32 %v2132_v47, 0.0  ;;  %v4968_v22 = vadd.f32 %v9657_v26, %v10008_v56  ;;  %v2134_v9 = vadd.f32 %v11700_v51, %v7389_v3  ;;  %v11702_v18 = vld [vmem:[#allocation38_spill] sm:$0xff]  ;;  %v11703_v47 = vld [vmem:[#allocation53_spill] sm:$0xff] }
 0x235   : > { %11697 = vst [vmem:[#allocation70_spill] sm:$0xff] %v10016_v29  ;;  %v4436_v53 = vadd.f32 %v2746_v28, %v9637_v48  ;;  %v5004_v52 = vadd.f32 %v4996_v46, %v2746_v28  ;;  %5581 = vmatpush1.bf16.msra.mxu0 %v4315_v37  ;;  %v4910_v34 = vpack.c.bf16 %v4907_v62, %v4906_v43  ;;  %v10999_v8 = vmax.f32 %v10016_v29, 0.0  ;;  %v11712_v29 = vld [vmem:[#allocation55_spill] sm:$0xff] }
 0x236   : > { %11699 = vst [vmem:[#allocation61_spill] sm:$0xff] %v10020_v61  ;;  %v10031_v50 = vadd.f32 %v2737_v21, %v10008_v56  ;;  %v2399_v48 = vadd.f32 %v11702_v18, %v7389_v3  ;;  %v4997_v37 = vadd.f32 %v9688_v2, %v9661_v1  ;;  %v4976_v46 = vadd.f32 %v4968_v22, %v2737_v21  ;;  %v11706_v18 = vld [vmem:[#allocation33_spill] sm:$0xff] }
 0x237   : > { %v10028_v41 = vmul.f32 0.25, %v4436_v53  ;;  %5582 = vmatprep.subr.bf16.mxu0 %v4910_v34  ;;  %v5012_v26 = vadd.f32 %v5004_v52, %v10999_v8  ;;  %v10039_v28 = vmax.f32 %v2134_v9, 0.0  ;;  %v4870_v43 = vmul.f32 0.25, %v11703_v47  ;;  %v11704_v53 = vld [vmem:[#allocation72_spill] sm:$0xff]  ;;  %v11708_v34 = vld [vmem:[#allocation63_spill] sm:$0xff] }
 0x238   : > { %v2810_v62 = vmax.f32 %v2399_v48, 0.0  ;;  %v4871_v51 = vmul.f32 0.25, %v11704_v53  ;;  %v2136_v24 = vadd.f32 %v11705_v30, %v7389_v3  ;;  %v10047_v7 = vadd.f32 %v11706_v18, %v7389_v3  ;;  %v11710_v18 = vld [vmem:[#allocation128_spill] sm:$0xff] }
 0x239   : > { %11701 = vst [vmem:[#allocation46_spill] sm:$0xff] %v10028_v41  ;;  %v10049_v4 = vmul.f32 0.25, %v4976_v46  ;;  %v10051_v21 = vmul.f32 0.25, %v5012_v26  ;;  %v10055_v52 = vadd.f32 %v10039_v28, %v11708_v34  ;;  %v4969_v22 = vadd.f32 %v9696_v0, %v10039_v28  ;;  %v11711_v26 = vld [vmem:[#allocation9_spill] sm:$0xff] }
 0x23a   : > { %v4437_v9 = vadd.f32 %v2810_v62, %v9661_v1  ;;  %v5005_v48 = vadd.f32 %v4997_v37, %v2810_v62  ;;  %v4874_v47 = vpack.c.bf16 %v4871_v51, %v4870_v43  ;;  %v2801_v30 = vmax.f32 %v2136_v24, 0.0  ;;  %v11714_v24 = vld [vmem:[#allocation74_spill] sm:$0xff] }
 0x23b   : > { %11707 = vst [vmem:[#allocation108_spill] sm:$0xff] %v10051_v21  ;;  %11709 = vst [vmem:[#allocation113_spill] sm:$0xff] %v10055_v52  ;;  %v11003_v53 = vmax.f32 %v10047_v7, 0.0  ;;  %v4896_v46 = vadd.f32 %v11710_v18, %v9830_v5  ;;  %v4897_v8 = vadd.f32 %v11711_v26, %v9842_v12  ;;  %v4406_v61 = vadd.f32 %v11712_v29, %v11673_v36 }
 0x23c   : > { %v10067_v52 = vmul.f32 0.25, %v4437_v9  ;;  %5583 = vmatpush1.bf16.msra.mxu0 %v4874_v47  ;;  %v10070_v0 = vadd.f32 %v2801_v30, %v10039_v28  ;;  %v4977_v1 = vadd.f32 %v4969_v22, %v2801_v30  ;;  %v4407_v37 = vadd.f32 %v11714_v24, %v11677_v58  ;;  %v11715_v22 = vld [vmem:[#allocation73_spill] sm:$0xff] }
 0x23d   : > { %v5013_v43 = vadd.f32 %v5005_v48, %v11003_v53  ;;  %v4904_v5 = vadd.f32 %v4896_v46, %v9834_v49  ;;  %v4905_v12 = vadd.f32 %v4897_v8, %v9887_v31  ;;  %v4414_v62 = vadd.f32 %v4406_v61, %v9936_v35  ;;  %v11717_v49 = vld [vmem:[#allocation35_spill] sm:$0xff]  ;;  %v11718_v8 = vld [vmem:[#allocation52_spill] sm:$0xff] }
 0x23e   : > { %11713 = vst [vmem:[#allocation103_spill] sm:$0xff] %v10067_v52  ;;  %v10081_v29 = vmul.f32 0.25, %v4977_v1  ;;  %v4415_v51 = vadd.f32 %v4407_v37, %v9941_v42  ;;  %v4872_v9 = vmul.f32 0.25, %v11715_v22  ;;  %v4873_v46 = vmul.f32 0.25, %v11717_v49  ;;  %v11719_v1 = vld [vmem:[#allocation82_spill] sm:$0xff]  ;;  %v11721_v22 = vld [vmem:[#allocation20_spill] sm:$0xff] }
 0x23f   : > { %v10085_v47 = vmul.f32 0.25, %v5013_v43  ;;  %v4908_v58 = vmul.f32 0.25, %v4904_v5  ;;  %v4909_v30 = vmul.f32 0.25, %v4905_v12  ;;  %v4418_v48 = vmul.f32 0.25, %v4414_v62 }
 0x240   : > { %v4419_v18 = vmul.f32 0.25, %v4415_v51  ;;  %v4378_v31 = vadd.f32 %v9774_v19, %v9273_v38  ;;  %v4379_v35 = vadd.f32 %v9808_v6, %v11620_v39  ;;  %v2226_v26 = vadd.f32 %v11718_v8, %v7321_v20  ;;  %v11720_v6 = vld [vmem:[#allocation36_spill] sm:$0xff] }
 0x241   : > { %11716 = vst [vmem:[#allocation107_spill] sm:$0xff] %v10085_v47  ;;  %v4911_v42 = vpack.c.bf16 %v4909_v30, %v4908_v58  ;;  %v10098_v24 = vadd.f32 %v11719_v1, %v7321_v20  ;;  %v4875_v43 = vpack.c.bf16 %v4873_v46, %v4872_v9  ;;  %v5066_v39 = vadd.f32 %v9746_v23, %v9738_v14  ;;  %v11722_v9 = vld [vmem:[#allocation10_spill] sm:$0xff]  ;;  %v11725_v1 = vld [vmem:[#allocation56_spill] sm:$0xff] }
 0x242   : > { %v4422_v37 = vpack.c.bf16 %v4419_v18, %v4418_v48  ;;  %v4382_v5 = vmul.f32 0.25, %v4378_v31  ;;  %v4383_v12 = vmul.f32 0.25, %v4379_v35  ;;  %v10100_v38 = vmax.f32 %v2226_v26, 0.0  ;;  %v11723_v48 = vld [vmem:[#allocation42_spill] sm:$0xff]  ;;  %v11724_v31 = vld [vmem:[#allocation32_spill] sm:$0xff] }
 0x243   : > { %5584 = vmatprep.subr.bf16.mxu0 %v4911_v42  ;;  %v11006_v19 = vmax.f32 %v10098_v24, 0.0  ;;  %v2228_v62 = vadd.f32 %v11720_v6, %v7321_v20  ;;  %v10109_v58 = vadd.f32 %v11721_v22, %v7321_v20  ;;  %v2230_v30 = vadd.f32 %v11722_v9, %v7333_v27 }
 0x244   : > { %5641 = vmatprep.subr.bf16.mxu1 %v4422_v37  ;;  %5585 = vmatpush1.bf16.msra.mxu0 %v4875_v43  ;;  %v4386_v51 = vpack.c.bf16 %v4383_v12, %v4382_v5  ;;  %v10114_v18 = vmul.f32 0.25, %v11723_v48  ;;  %v10122_v35 = vadd.f32 %v11724_v31, %v7333_v27  ;;  %v5067_v42 = vadd.f32 %v9789_v13, %v9756_v63  ;;  %v11726_v43 = vld [vmem:[#allocation47_spill] sm:$0xff] }
 0x245   : > { %v5074_v49 = vadd.f32 %v5066_v39, %v11006_v19  ;;  %v10118_v46 = vmax.f32 %v2228_v62, 0.0  ;;  %v11002_v8 = vmax.f32 %v10109_v58, 0.0  ;;  %v10127_v26 = vmax.f32 %v2230_v30, 0.0  ;;  %v11728_v39 = vld [vmem:[#allocation124_spill] sm:$0xff]  ;;  %v11752_v19 = vld [vmem:[#allocation106_spill] sm:$0xff] }
 0x246   : > { %5642 = vmatpush1.bf16.msra.mxu1 %v4386_v51  ;;  %v2232_v37 = vadd.f32 %v11725_v1, %v7333_v27  ;;  %v10133_v5 = vadd.f32 %v11726_v43, %v7333_v27  ;;  %v11005_v6 = vmax.f32 %v10122_v35, 0.0  ;;  %v4408_v62 = vadd.f32 %v9630_v45, %v11698_v60 }
 0x247   : > { %v10137_v12 = vadd.f32 %v9766_v11, %v10118_v46  ;;  %5603 = vmatmul.mubr.bf16.vlgmr.msra.gmra.mrb[140].mxu0 %v11728_v39  ;;  %v4409_v51 = vadd.f32 %v9676_v44, %v11708_v34  ;;  %v5082_v22 = vadd.f32 %v5074_v49, %v11002_v8  ;;  %v4380_v11 = vadd.f32 %v9863_v33, %v11639_v57  ;;  %v11733_v39 = vld [vmem:[#allocation62_spill] sm:$0xff]  ;;  %v11754_v8 = vld [vmem:[#allocation65_spill] sm:$0xff] }
 0x248   : > { %11727 = vst [vmem:[#allocation18_spill] sm:$0xff] %v10133_v5  ;;  %v10147_v9 = vmax.f32 %v2232_v37, 0.0  ;;  %v11001_v30 = vmax.f32 %v10133_v5, 0.0  ;;  %5612 = vmatprep.mubr.bf16.mxu0 %v11482_v40  ;;  %v5075_v48 = vadd.f32 %v5067_v42, %v11005_v6  ;;  %v4416_v45 = vadd.f32 %v4408_v62, %v10008_v56  ;;  %v11751_v6 = vld [vmem:[#allocation41_spill] sm:$0xff] }
 0x249   : > { %v4417_v60 = vadd.f32 %v4409_v51, %v10039_v28  ;;  %v4381_v44 = vadd.f32 %v9911_v32, %v9426_v15  ;;  %v10159_v34 = vmul.f32 0.25, %v5082_v22  ;;  %v4384_v31 = vmul.f32 0.25, %v4380_v11  ;;  %v11730_v28 = vld [vmem:[#allocation54_spill] sm:$0xff]  ;;  %v11731_v15 = vld [vmem:[#allocation48_spill] sm:$0xff] }
 0x24a   : > { %v10163_v49 = vadd.f32 %v9800_v10, %v10147_v9  ;;  %v4982_v57 = vpack.c.bf16 %v9987_v59, %v9981_v16  ;;  %v5083_v33 = vadd.f32 %v5075_v48, %v11001_v30  ;;  %v4420_v42 = vmul.f32 0.25, %v4416_v45  ;;  %v11732_v10 = vld [vmem:[#allocation86_spill] sm:$0xff]  ;;  %v10185_v48 = vpop.f32.mrb[116].mxu0 }
 0x24b   : > { %11729 = vst [vmem:[#allocation23_spill] sm:$0xff] %v10159_v34  ;;  %v4421_v56 = vmul.f32 0.25, %v4417_v60  ;;  %v4385_v1 = vmul.f32 0.25, %v4381_v44  ;;  %v2236_v37 = vadd.f32 %v11730_v28, %v7331_v25  ;;  %v10173_v32 = vadd.f32 %v11731_v15, %v7331_v25  ;;  %v11735_v22 = vld [vmem:[#allocation58_spill] sm:$0xff]  ;;  %11737 = vst [vmem:[#allocation13_spill] sm:$0xff] %v10185_v48  ;;  %v11753_v34 = vld [vmem:[#allocation68_spill] sm:$0xff] }
 0x24c   : > { %v5068_v43 = vadd.f32 %v11732_v10, %v9832_v17  ;;  %v2238_v62 = vadd.f32 %v11733_v39, %v7331_v25  ;;  %v10179_v16 = vmul.f32 0.25, %v5083_v33  ;;  %v10183_v11 = vadd.f32 %v11735_v22, %v7331_v25  ;;  %v11738_v28 = vld [vmem:[#allocation90_spill] sm:$0xff]  ;;  %v10194_v39 = vpop.f32.mrb[117].mxu0 }
 0x24d   : > { %v4423_v59 = vpack.c.bf16 %v4421_v56, %v4420_v42  ;;  %v4387_v51 = vpack.c.bf16 %v4385_v1, %v4384_v31  ;;  %v10187_v45 = vmax.f32 %v2236_v37, 0.0  ;;  %v11004_v60 = vmax.f32 %v10173_v32, 0.0  ;;  %11739 = vst [vmem:[#allocation81_spill] sm:$0xff] %v10194_v39  ;;  %v11740_v42 = vld [vmem:[#allocation126_spill] sm:$0xff]  ;;  %v11741_v56 = vld [vmem:[#allocation59_spill] sm:$0xff]  ;;  %v11742_v37 = vld [vmem:[#allocation120_spill] sm:$0xff] }
 0x24e   : > { %11734 = vst [vmem:[#allocation83_spill] sm:$0xff] %v10179_v16  ;;  %11736 = vst [vmem:[#allocation66_spill] sm:$0xff] %v10183_v11  ;;  %v10190_v44 = vmax.f32 %v2238_v62, 0.0  ;;  %v2240_v15 = vadd.f32 %v11738_v28, %v7389_v3  ;;  %v11011_v33 = vmax.f32 %v10183_v11, 0.0  ;;  %v10202_v1 = vadd.f32 %v11741_v56, %v7389_v3  ;;  %v11743_v62 = vld [vmem:[#allocation76_spill] sm:$0xff]  ;;  %v10206_v61 = vpop.f32.mrb[118].mxu0 }
 0x24f   : > { %5643 = vmatprep.subr.bf16.mxu1 %v4423_v59  ;;  %5613 = vmatmul.mubr.bf16.gmra.mrb[144].mxu0 %v11740_v42  ;;  %v5069_v22 = vadd.f32 %v11743_v62, %v11742_v37  ;;  %11744 = vst [vmem:[#allocation85_spill] sm:$0xff] %v10206_v61  ;;  %v5076_v28 = vadd.f32 %v5068_v43, %v11004_v60  ;;  %v11745_v31 = vld [vmem:[#allocation31_spill] sm:$0xff]  ;;  %v11746_v42 = vld [vmem:[#allocation21_spill] sm:$0xff]  ;;  %v10218_v56 = vpop.f32.mrb[119].mxu0 }
 0x250   : > { %5644 = vmatpush1.bf16.msra.mxu1 %v4387_v51  ;;  %v10212_v59 = vadd.f32 %v11745_v31, %v10190_v44  ;;  %v10214_v36 = vmax.f32 %v2240_v15, 0.0  ;;  %v4943_v30 = vmul.f32 0.25, %v11746_v42  ;;  %5622 = vmatprep.mubr.bf16.mxu0 %v11482_v40  ;;  %11747 = vst [vmem:[#allocation121_spill] sm:$0xff] %v10218_v56  ;;  %v11748_v51 = vld [vmem:[#allocation64_spill] sm:$0xff]  ;;  %v11749_v43 = vld [vmem:[#allocation131_spill] sm:$0xff]  ;;  %v4983_v15 = vpack.c.bf16 %v10081_v29, %v10049_v4  ;;  %v11756_v56 = vld [vmem:[#allocation22_spill] sm:$0xff] }
 0x251   : > { %5645 = vmatprep.subr.bf16.mxu1 %v4982_v57  ;;  %v2242_v53 = vadd.f32 %v11748_v51, %v7389_v3  ;;  %v10225_v60 = vadd.f32 %v11749_v43, %v7389_v3  ;;  %v5084_v31 = vadd.f32 %v5076_v28, %v11011_v33  ;;  %v3438_v57 = vadd.f32 %v11752_v19, %v11751_v6  ;;  %v11758_v19 = vld [vmem:[#allocation99_spill] sm:$0xff]  ;;  %v10255_v61 = vpop.f32.mrb[120].mxu0 }
 0x252   : > { %v4946_v42 = vpack.c.bf16 %v4943_v30, %v10114_v18  ;;  %v3439_v16 = vadd.f32 %v11754_v8, %v11753_v34  ;;  %v11755_v51 = vmax.f32 %v10202_v1, 0.0  ;;  %v4944_v4 = vmul.f32 0.25, %v11756_v56  ;;  %v11759_v8 = vld [vmem:[#allocation78_spill] sm:$0xff]  ;;  %v11761_v56 = vld [vmem:[#allocation132_spill] sm:$0xff]  ;;  %11762 = vst [vmem:[#allocation50_spill] sm:$0xff] %v10255_v61  ;;  %v10259_v48 = vpop.f32.mrb[121].mxu0 }
 0x253   : > { %11750 = vst [vmem:[#allocation84_spill] sm:$0xff] %v10225_v60  ;;  %v10238_v47 = vmax.f32 %v2242_v53, 0.0  ;;  %v11013_v43 = vmax.f32 %v10225_v60, 0.0  ;;  %v10242_v29 = vmul.f32 0.25, %v5084_v31  ;;  %v3446_v18 = vadd.f32 %v3438_v57, %v10100_v38  ;;  %11764 = vst [vmem:[#allocation135_spill] sm:$0xff] %v10259_v48  ;;  %v10268_v61 = vpop.f32.mrb[122].mxu0 }
 0x254   : > { %v5077_v21 = vadd.f32 %v5069_v22, %v11755_v51  ;;  %5646 = vmatpush1.bf16.msra.mxu1 %v4946_v42  ;;  %v3447_v30 = vadd.f32 %v3439_v16, %v10127_v26  ;;  %v4945_v28 = vmul.f32 0.25, %v11758_v19  ;;  %v11760_v22 = vld [vmem:[#allocation26_spill] sm:$0xff]  ;;  %v3415_v31 = vmul.f32 0.25, %v11761_v56  ;;  %v11763_v16 = vld [vmem:[#allocation25_spill] sm:$0xff]  ;;  %11769 = vst [vmem:[#allocation79_spill] sm:$0xff] %v10268_v61  ;;  %v11781_v60 = vld [vmem:[#allocation28_spill] sm:$0xff] }
 0x255   : > { %11757 = vst [vmem:[#allocation44_spill] sm:$0xff] %v10242_v29  ;;  %v10249_v33 = vadd.f32 %v11759_v8, %v10238_v47  ;;  %5647 = vmatprep.subr.bf16.mxu1 %v4983_v15  ;;  %v3414_v51 = vmul.f32 0.25, %v11760_v22  ;;  %v3450_v42 = vmul.f32 0.25, %v3446_v18  ;;  %v2332_v19 = vadd.f32 %v11763_v16, %v7321_v20  ;;  %v11768_v22 = vld [vmem:[#allocation133_spill] sm:$0xff] }
 0x256   : > { %v5085_v53 = vadd.f32 %v5077_v21, %v11013_v43  ;;  %v3451_v57 = vmul.f32 0.25, %v3447_v30  ;;  %v4947_v39 = vpack.c.bf16 %v4945_v28, %v4944_v4  ;;  %v11766_v21 = vld [vmem:[#allocation29_spill] sm:$0xff]  ;;  %v11767_v43 = vld [vmem:[#allocation130_spill] sm:$0xff]  ;;  %v2336_v56 = vadd.f32 %v11768_v22, %v7333_v27 }
 0x257   : > { %v3418_v11 = vpack.c.bf16 %v3415_v31, %v3414_v51  ;;  %v2334_v15 = vadd.f32 %v11766_v21, %v7321_v20  ;;  %5623 = vmatmul.mubr.bf16.gmra.mrb[148].mxu0 %v11767_v43  ;;  %v10270_v4 = vmax.f32 %v2332_v19, 0.0  ;;  %v11770_v30 = vld [vmem:[#allocation102_spill] sm:$0xff]  ;;  %v10277_v31 = vpop.f32.mrb[123].mxu0  ;;  %v11780_v43 = vld [vmem:[#allocation39_spill] sm:$0xff] }
 0x258   : > { %v10261_v8 = vmul.f32 0.25, %v5085_v53  ;;  %v3454_v18 = vpack.c.bf16 %v3451_v57, %v3450_v42  ;;  %5648 = vmatpush1.bf16.msra.mxu1 %v4947_v39  ;;  %v2338_v28 = vadd.f32 %v11770_v30, %v7333_v27  ;;  %v11771_v53 = vld [vmem:[#allocation112_spill] sm:$0xff]  ;;  %5728 = vmatprep.mubr.bf16.mxu0 %v11482_v40  ;;  %11772 = vst [vmem:[#allocation96_spill] sm:$0xff] %v10277_v31  ;;  %v10281_v21 = vmax.f32 %v2336_v56, 0.0  ;;  %v11774_v57 = vld [vmem:[#allocation117_spill] sm:$0xff]  ;;  %v11777_v56 = vld [vmem:[#allocation43_spill] sm:$0xff] }
 0x259   : > { %v3440_v51 = vadd.f32 %v11771_v53, %v9639_v54  ;;  %v2617_v16 = vmax.f32 %v2334_v15, 0.0  ;;  %v11773_v39 = vld [vmem:[#allocation12_spill] sm:$0xff]  ;;  %v4022_v19 = vadd.f32 %v11774_v57, %v10270_v4  ;;  %v11775_v53 = vld [vmem:[#allocation11_spill] sm:$0xff]  ;;  %v10295_v15 = vld [vmem:[%s10877_s3] sm:$0xff]   ;;  %v3950_v29 = vadd.f32 %v11780_v43, %v10100_v38  ;;  %v10310_v41 = vpop.f32.mrb[124].mxu0 }
 0x25a   : > { %11765 = vst [vmem:[#allocation122_spill] sm:$0xff] %v10261_v8  ;;  %v3441_v42 = vadd.f32 %v11773_v39, %v9688_v2  ;;  %5696 = vmatprep.subr.bf16.mxu0 %v3454_v18  ;;  %v2681_v22 = vmax.f32 %v2338_v28, 0.0  ;;  %v3416_v61 = vmul.f32 0.25, %v11775_v53  ;;  %11776 = vst [vmem:[#allocation60_spill] sm:$0xff] %v10295_v15  ;;  %v4023_v18 = vadd.f32 %v11777_v56, %v10281_v21  ;;  %v11778_v39 = vld [vmem:[#allocation15_spill] sm:$0xff]  ;;  %v10319_v52 = vpop.f32.mrb[125].mxu0 }
 0x25b   : > { %v3448_v30 = vadd.f32 %v3440_v51, %v10187_v45  ;;  %5697 = vmatpush1.bf16.msra.mxu0 %v3418_v11  ;;  %v10290_v31 = vadd.f32 %v2617_v16, %v10270_v4  ;;  %5666 = vmatmul.mubr.bf16.vlgmr.msra.gmra.mrb[164].mxu1 %v10295_v15  ;;  %v3417_v51 = vmul.f32 0.25, %v11778_v39  ;;  %v4030_v57 = vadd.f32 %v4022_v19, %v2617_v16  ;;  %v11783_v19 = vld [vmem:[#allocation75_spill] sm:$0xff]  ;;  %v11784_v39 = vld [vmem:[#allocation69_spill] sm:$0xff] }
 0x25c   : > { %v3449_v28 = vadd.f32 %v3441_v42, %v10214_v36  ;;  %v10303_v11 = vadd.f32 %v2681_v22, %v10281_v21  ;;  %5675 = vmatprep.mubr.bf16.mxu1 %v11482_v40  ;;  %v4031_v8 = vadd.f32 %v4023_v18, %v2681_v22  ;;  %v3951_v56 = vadd.f32 %v11781_v60, %v10127_v26  ;;  %v11786_v60 = vld [vmem:[#allocation27_spill] sm:$0xff] }
 0x25d   : > { %v3452_v53 = vmul.f32 0.25, %v3448_v30  ;;  %v3419_v15 = vpack.c.bf16 %v3417_v51, %v3416_v61  ;;  %11782 = vst [vmem:[#allocation71_spill] sm:$0xff] %v10310_v41  ;;  %v10312_v42 = vmul.f32 0.25, %v4030_v57  ;;  %v3958_v16 = vadd.f32 %v3950_v29, %v10118_v46  ;;  %11785 = vst [vmem:[#allocation87_spill] sm:$0xff] %v10319_v52  ;;  %v10326_v51 = vpop.f32.mrb[126].mxu0 }
 0x25e   : > { %11779 = vst [vmem:[#allocation67_spill] sm:$0xff] %v10303_v11  ;;  %v3453_v48 = vmul.f32 0.25, %v3449_v28  ;;  %v2342_v30 = vadd.f32 %v11783_v19, %v7331_v25  ;;  %v2344_v43 = vadd.f32 %v11784_v39, %v7331_v25  ;;  %v10321_v22 = vmul.f32 0.25, %v4031_v8  ;;  %11787 = vst [vmem:[#allocation77_spill] sm:$0xff] %v10326_v51  ;;  %v11788_v19 = vld [vmem:[#allocation134_spill] sm:$0xff]  ;;  %v10331_v5 = vpop.f32.mrb[127].mxu0 }
 0x25f   : > { %v3959_v18 = vadd.f32 %v3951_v56, %v10147_v9  ;;  %v2346_v28 = vadd.f32 %v11786_v60, %v7389_v3  ;;  %v3962_v57 = vmul.f32 0.25, %v3958_v16  ;;  %v3926_v11 = vmul.f32 0.25, %v11788_v19  ;;  %11789 = vst [vmem:[#allocation45_spill] sm:$0xff] %v10331_v5  ;;  %v11791_v56 = vld [vmem:[#allocation19_spill] sm:$0xff]  ;;  %v10338_v60 = vpop.f32.mrb[140].mxu1 }
 0x260   : > { %v3455_v61 = vpack.c.bf16 %v3453_v48, %v3452_v53  ;;  %v10328_v29 = vmax.f32 %v2342_v30, 0.0  ;;  %v2745_v41 = vmax.f32 %v2344_v43, 0.0  ;;  %v11790_v48 = vld [vmem:[#allocation57_spill] sm:$0xff]  ;;  %v2348_v52 = vadd.f32 %v11791_v56, %v7389_v3  ;;  %11792 = vst [vmem:[#allocation51_spill] sm:$0xff] %v10338_v60  ;;  %v11794_v43 = vld [vmem:[#allocation111_spill] sm:$0xff]  ;;  %v10349_v19 = vpop.f32.mrb[141].mxu1 }
 0x261   : > { %v3963_v39 = vmul.f32 0.25, %v3959_v18  ;;  %v10333_v8 = vmax.f32 %v2346_v28, 0.0  ;;  %v3927_v53 = vmul.f32 0.25, %v11790_v48  ;;  %v11795_v18 = vld [vmem:[#allocation114_spill] sm:$0xff]  ;;  %11796 = vst [vmem:[#allocation125_spill] sm:$0xff] %v10349_v19  ;;  %v10359_v51 = vpop.f32.mrb[142].mxu1 }
 0x262   : > { %5698 = vmatprep.subr.bf16.mxu0 %v3455_v61  ;;  %v4024_v16 = vadd.f32 %v10031_v50, %v10328_v29  ;;  %v10343_v30 = vadd.f32 %v2745_v41, %v10328_v29  ;;  %v3952_v61 = vadd.f32 %v11794_v43, %v10187_v45  ;;  %v3953_v28 = vadd.f32 %v11795_v18, %v10214_v36  ;;  %v10354_v56 = vld [vmem:[%s10877_s3 + $0x8] sm:$0xff]   ;;  %v10366_v60 = vpop.f32.mrb[143].mxu1 }
 0x263   : > { %5699 = vmatpush1.bf16.msra.mxu0 %v3419_v15  ;;  %v3966_v48 = vpack.c.bf16 %v3963_v39, %v3962_v57  ;;  %11797 = vst [vmem:[#allocation94_spill] sm:$0xff] %v10354_v56  ;;  %5676 = vmatmul.mubr.bf16.gmra.mrb[168].mxu1 %v10354_v56  ;;  %v3930_v50 = vpack.c.bf16 %v3927_v53, %v3926_v11  ;;  %v2809_v15 = vmax.f32 %v2348_v52, 0.0  ;;  %11798 = vst [vmem:[#allocation38_spill] sm:$0xff] %v10359_v51  ;;  %v11799_v57 = vld [vmem:[#allocation101_spill] sm:$0xff] }
 0x264   : > { %11793 = vst [vmem:[#allocation92_spill] sm:$0xff] %v10343_v30  ;;  %v4025_v5 = vadd.f32 %v10070_v0, %v10333_v8  ;;  %v4032_v43 = vadd.f32 %v4024_v16, %v2745_v41  ;;  %v3960_v18 = vadd.f32 %v3952_v61, %v10190_v44  ;;  %v3961_v19 = vadd.f32 %v3953_v28, %v10238_v47  ;;  %v11802_v0 = vld [vmem:[#allocation129_spill] sm:$0xff]  ;;  %v11803_v41 = vld [vmem:[#allocation88_spill] sm:$0xff] }
 0x265   : > { %v3510_v39 = vadd.f32 %v11799_v57, %v9746_v23  ;;  %5685 = vmatprep.mubr.bf16.mxu1 %v11482_v40  ;;  %11800 = vst [vmem:[#allocation53_spill] sm:$0xff] %v10366_v60  ;;  %5700 = vmatprep.subr.bf16.mxu0 %v3966_v48  ;;  %v10369_v52 = vadd.f32 %v2809_v15, %v10333_v8  ;;  %v3928_v16 = vmul.f32 0.25, %v11803_v41 }
 0x266   : > { %v4033_v11 = vadd.f32 %v4025_v5, %v2809_v15  ;;  %v3511_v53 = vadd.f32 %v11802_v0, %v9789_v13  ;;  %v10374_v61 = vmul.f32 0.25, %v4032_v43  ;;  %v3964_v28 = vmul.f32 0.25, %v3960_v18  ;;  %v11804_v5 = vld [vmem:[#allocation93_spill] sm:$0xff] }
 0x267   : > { %11801 = vst [vmem:[#allocation72_spill] sm:$0xff] %v10369_v52  ;;  %5701 = vmatpush1.bf16.msra.mxu0 %v3930_v50  ;;  %v3965_v56 = vmul.f32 0.25, %v3961_v19  ;;  %v3518_v57 = vadd.f32 %v3510_v39, %v10270_v4  ;;  %v3929_v60 = vmul.f32 0.25, %v11804_v5  ;;  %v3482_v15 = vadd.f32 %v10137_v12, %v9738_v14  ;;  %v11805_v50 = vld [vmem:[#allocation89_spill] sm:$0xff] }
 0x268   : > { %v10377_v51 = vmul.f32 0.25, %v4033_v11  ;;  %v3519_v48 = vadd.f32 %v3511_v53, %v10281_v21  ;;  %v3483_v43 = vadd.f32 %v10163_v49, %v9756_v63  ;;  %v2438_v18 = vadd.f32 %v11805_v50, %v7321_v20  ;;  %v10389_v53 = vpop.f32.mrb[144].mxu1 }
 0x269   : > { %v3967_v52 = vpack.c.bf16 %v3965_v56, %v3964_v28  ;;  %v3522_v0 = vmul.f32 0.25, %v3518_v57  ;;  %v3931_v41 = vpack.c.bf16 %v3929_v60, %v3928_v16  ;;  %v3486_v39 = vmul.f32 0.25, %v3482_v15  ;;  %v11806_v56 = vld [vmem:[#allocation104_spill] sm:$0xff]  ;;  %v10395_v28 = vpop.f32.mrb[145].mxu1  ;;  %v11807_v60 = vld [vmem:[#allocation118_spill] sm:$0xff] }
 0x26a   : > { %v3523_v19 = vmul.f32 0.25, %v3519_v48  ;;  %v4454_v11 = vadd.f32 %v10100_v38, %v11751_v6  ;;  %v3487_v5 = vmul.f32 0.25, %v3483_v43  ;;  %v2620_v30 = vmax.f32 %v2438_v18, 0.0  ;;  %v10410_v43 = vpop.f32.mrb[146].mxu1 }
 0x26b   : > { %5702 = vmatprep.subr.bf16.mxu0 %v3967_v52  ;;  %v5030_v12 = vadd.f32 %v10118_v46, %v10100_v38  ;;  %v2440_v49 = vadd.f32 %v11806_v56, %v7321_v20  ;;  %v11808_v16 = vmax.f32 %v11807_v60, 0.0  ;;  %v4490_v6 = vadd.f32 %v9738_v14, %v10118_v46  ;;  %v10404_v52 = vld [vmem:[%s10877_s3 + $0x10] sm:$0xff]   ;;  %v11810_v38 = vld [vmem:[#allocation98_spill] sm:$0xff]  ;;  %v10415_v14 = vpop.f32.mrb[147].mxu1  ;;  %v11812_v60 = vld [vmem:[#allocation105_spill] sm:$0xff] }
 0x26c   : > { %v3526_v57 = vpack.c.bf16 %v3523_v19, %v3522_v0  ;;  %5703 = vmatpush1.bf16.msra.mxu0 %v3931_v41  ;;  %11809 = vst [vmem:[#allocation123_spill] sm:$0xff] %v10404_v52  ;;  %5686 = vmatmul.mubr.bf16.gmra.mrb[172].mxu1 %v10404_v52  ;;  %v10408_v15 = vmul.f32 0.25, %v11810_v38  ;;  %v3490_v0 = vpack.c.bf16 %v3487_v5, %v3486_v39  ;;  %v11811_v19 = vld [vmem:[#allocation34_spill] sm:$0xff] }
 0x26d   : > { %v4462_v48 = vadd.f32 %v4454_v11, %v11808_v16  ;;  %v5038_v50 = vadd.f32 %v5030_v12, %v2620_v30  ;;  %v2621_v18 = vmax.f32 %v2440_v49, 0.0  ;;  %v2442_v41 = vadd.f32 %v11811_v19, %v7333_v27  ;;  %5791 = vmatprep.mubr.bf16.mxu1 %v11482_v40 }
 0x26e   : > { %5759 = vmatprep.subr.bf16.mxu1 %v3526_v57  ;;  %v4455_v11 = vadd.f32 %v10127_v26, %v11753_v34  ;;  %v5031_v56 = vadd.f32 %v10147_v9, %v10127_v26  ;;  %v2444_v39 = vadd.f32 %v11812_v60, %v7333_v27  ;;  %v4491_v16 = vadd.f32 %v9756_v63, %v10147_v9  ;;  %v11814_v34 = vld [vmem:[#allocation61_spill] sm:$0xff] }
 0x26f   : > { %v4470_v46 = vadd.f32 %v4462_v48, %v2620_v30  ;;  %5760 = vmatpush1.bf16.msra.mxu1 %v3490_v0  ;;  %v4498_v5 = vadd.f32 %v4490_v6, %v2621_v18  ;;  %v5046_v12 = vadd.f32 %v5038_v50, %v2621_v18  ;;  %v2684_v49 = vmax.f32 %v2442_v41, 0.0  ;;  %v11816_v0 = vld [vmem:[#allocation113_spill] sm:$0xff] }
 0x270   : > { %v11813_v30 = vmax.f32 %v9970_v55, 0.0  ;;  %v2685_v48 = vmax.f32 %v2444_v39, 0.0  ;;  %v3512_v19 = vadd.f32 %v11814_v34, %v11732_v10  ;;  %v11815_v26 = vmax.f32 %v10098_v24, 0.0  ;;  %v10445_v39 = vpop.f32.mrb[148].mxu1 }
 0x271   : > { %v10425_v38 = vmul.f32 0.25, %v4470_v46  ;;  %v10433_v60 = vmul.f32 0.25, %v5046_v12  ;;  %v5039_v6 = vadd.f32 %v5031_v56, %v2684_v49  ;;  %v3513_v50 = vadd.f32 %v11816_v0, %v11743_v62 }
 0x272   : > { %v4463_v57 = vadd.f32 %v4455_v11, %v11813_v30  ;;  %v4506_v52 = vadd.f32 %v4498_v5, %v11815_v26  ;;  %v4499_v63 = vadd.f32 %v4491_v16, %v2685_v48  ;;  %v3520_v9 = vadd.f32 %v3512_v19, %v10328_v29  ;;  %v10449_v30 = vpop.f32.mrb[149].mxu1  ;;  %v11818_v19 = vld [vmem:[#allocation97_spill] sm:$0xff] }
 0x273   : > { %v3484_v55 = vadd.f32 %v10212_v59, %v9832_v17  ;;  %v5047_v46 = vadd.f32 %v5039_v6, %v2685_v48  ;;  %v3521_v11 = vadd.f32 %v3513_v50, %v10333_v8  ;;  %v3485_v24 = vadd.f32 %v10249_v33, %v11742_v37  ;;  %v10455_v34 = vpop.f32.mrb[150].mxu1 }
 0x274   : > { %v4471_v18 = vadd.f32 %v4463_v57, %v2684_v49  ;;  %v10440_v41 = vmul.f32 0.25, %v4506_v52  ;;  %v11817_v5 = vmax.f32 %v10122_v35, 0.0  ;;  %v3524_v49 = vmul.f32 0.25, %v3520_v9  ;;  %v10465_v0 = vpop.f32.mrb[151].mxu1 }
 0x275   : > { %v3488_v16 = vmul.f32 0.25, %v3484_v55  ;;  %v10451_v57 = vmul.f32 0.25, %v5047_v46  ;;  %v3525_v59 = vmul.f32 0.25, %v3521_v11  ;;  %v3489_v52 = vmul.f32 0.25, %v3485_v24  ;;  %v11820_v55 = vld [vmem:[#allocation70_spill] sm:$0xff]  ;;  %v11822_v24 = vld [vmem:[#allocation100_spill] sm:$0xff] }
 0x276   : > { %v4475_v56 = vmul.f32 0.25, %v4471_v18  ;;  %v4507_v12 = vadd.f32 %v4499_v63, %v11817_v5  ;;  %v4038_v48 = vpack.c.bf16 %v10321_v22, %v10312_v42  ;;  %v2448_v26 = vadd.f32 %v11818_v19, %v7331_v25  ;;  %v11819_v63 = vld [vmem:[#allocation30_spill] sm:$0xff] }
 0x277   : > { %v4456_v35 = vadd.f32 %v10187_v45, %v9639_v54  ;;  %v5032_v6 = vadd.f32 %v10190_v44, %v10187_v45  ;;  %v3527_v50 = vpack.c.bf16 %v3525_v59, %v3524_v49  ;;  %v3491_v18 = vpack.c.bf16 %v3489_v52, %v3488_v16  ;;  %v11823_v49 = vld [vmem:[#allocation37_spill] sm:$0xff]  ;;  %v11824_v59 = vld [vmem:[#allocation14_spill] sm:$0xff] }
 0x278   : > { %v10457_v33 = vmul.f32 0.25, %v4507_v12  ;;  %v2450_v42 = vadd.f32 %v11819_v63, %v7331_v25  ;;  %v4492_v22 = vadd.f32 %v9832_v17, %v10190_v44  ;;  %v2748_v9 = vmax.f32 %v2448_v26, 0.0 }
 0x279   : > { %v11821_v46 = vmax.f32 %v11820_v55, 0.0  ;;  %v2452_v54 = vadd.f32 %v11822_v24, %v7389_v3  ;;  %v4457_v45 = vadd.f32 %v10214_v36, %v9688_v2  ;;  %5761 = vmatprep.subr.bf16.mxu1 %v3527_v50  ;;  %v5033_v12 = vadd.f32 %v10238_v47, %v10214_v36 }
 0x27a   : > { %v2749_v5 = vmax.f32 %v2450_v42, 0.0  ;;  %v3999_v16 = vmul.f32 0.25, %v11823_v49  ;;  %v2454_v17 = vadd.f32 %v11824_v59, %v7389_v3  ;;  %5762 = vmatpush1.bf16.msra.mxu1 %v3491_v18  ;;  %v5040_v52 = vadd.f32 %v5032_v6, %v2748_v9  ;;  %v11832_v49 = vld [vmem:[#allocation80_spill] sm:$0xff] }
 0x27b   : > { %v4464_v11 = vadd.f32 %v4456_v35, %v11821_v46  ;;  %v2812_v19 = vmax.f32 %v2452_v54, 0.0  ;;  %v11825_v26 = vmax.f32 %v10047_v7, 0.0  ;;  %5763 = vmatprep.subr.bf16.mxu1 %v4038_v48  ;;  %v4493_v36 = vadd.f32 %v11742_v37, %v10238_v47  ;;  %v11827_v54 = vld [vmem:[#allocation17_spill] sm:$0xff] }
 0x27c   : > { %v4500_v63 = vadd.f32 %v4492_v22, %v2749_v5  ;;  %v4002_v2 = vpack.c.bf16 %v3999_v16, %v10408_v15  ;;  %v2813_v50 = vmax.f32 %v2454_v17, 0.0  ;;  %v5048_v55 = vadd.f32 %v5040_v52, %v2749_v5  ;;  %v11834_v17 = vld [vmem:[#allocation109_spill] sm:$0xff] }
 0x27d   : > { %v4472_v44 = vadd.f32 %v4464_v11, %v2748_v9  ;;  %v4465_v35 = vadd.f32 %v4457_v45, %v11825_v26  ;;  %v5041_v24 = vadd.f32 %v5033_v12, %v2812_v19  ;;  %v11826_v18 = vmax.f32 %v10173_v32, 0.0  ;;  %v11829_v32 = vld [vmem:[#allocation115_spill] sm:$0xff] }
 0x27e   : > { %v4501_v6 = vadd.f32 %v4493_v36, %v2813_v50  ;;  %v4039_v7 = vpack.c.bf16 %v10377_v51, %v10374_v61  ;;  %v4478_v48 = vpack.c.bf16 %v4475_v56, %v10425_v38  ;;  %v10492_v22 = vmul.f32 0.25, %v5048_v55  ;;  %5764 = vmatpush1.bf16.msra.mxu1 %v4002_v2  ;;  %v11830_v51 = vld [vmem:[#allocation24_spill] sm:$0xff]  ;;  %v11831_v56 = vld [vmem:[#allocation127_spill] sm:$0xff] }
 0x27f   : > { %v4476_v42 = vmul.f32 0.25, %v4472_v44  ;;  %v4473_v46 = vadd.f32 %v4465_v35, %v2812_v19  ;;  %v4508_v11 = vadd.f32 %v4500_v63, %v11826_v18  ;;  %v5049_v9 = vadd.f32 %v5041_v24, %v2813_v50 }
 0x280   : > { %v4000_v47 = vmul.f32 0.25, %v11827_v54  ;;  %v11828_v45 = vmax.f32 %v10202_v1, 0.0  ;;  %5765 = vmatprep.subr.bf16.mxu1 %v4039_v7  ;;  %5704 = vmatprep.subr.bf16.mxu0 %v4478_v48  ;;  %v4001_v12 = vmul.f32 0.25, %v11829_v32  ;;  %v2544_v61 = vadd.f32 %v11830_v51, %v7321_v20  ;;  %v11835_v1 = vld [vmem:[#allocation110_spill] sm:$0xff]  ;;  %v10524_v7 = vpop.permute.xlu0 %5272 }
 0x281   : > { %v4477_v15 = vmul.f32 0.25, %v4473_v46  ;;  %v10495_v37 = vmul.f32 0.25, %v4508_v11  ;;  %v5053_v38 = vmul.f32 0.25, %v5049_v9  ;;  %v11833_v16 = vpack.c.bf16 %v11831_v56, %v11832_v49  ;;  %v11838_v46 = vld [vmem:[#allocation18_spill] sm:$0xff]  ;;  %v11841_v9 = vld [vmem:[#allocation95_spill] sm:$0xff] }
 0x282   : > { %v4509_v5 = vadd.f32 %v4501_v6, %v11828_v45  ;;  %v4526_v59 = vadd.f32 %v10270_v4, %v9746_v23  ;;  %v2546_v44 = vadd.f32 %v11834_v17, %v7321_v20  ;;  %v2548_v52 = vadd.f32 %v11835_v1, %v7333_v27  ;;  %v11837_v23 = vld [vmem:[#allocation49_spill] sm:$0xff]  ;;  %v10533_v45 = vpop.permute.xlu1 %5277  ;;  %v11844_v32 = vld [vmem:[#allocation46_spill] sm:$0xff] }
 0x283   : > { %5705 = vmatpush1.bf16.msra.mxu0 %v11833_v16  ;;  %v4003_v26 = vpack.c.bf16 %v4001_v12, %v4000_v47  ;;  %v2624_v35 = vmax.f32 %v2544_v61, 0.0  ;;  %v4527_v63 = vadd.f32 %v10281_v21, %v9789_v13  ;;  %v11836_v2 = vmax.f32 %v10109_v58, 0.0  ;;  %v11840_v58 = vld [vmem:[#allocation67_spill] sm:$0xff]  ;;  %v11846_v61 = vld [vmem:[#allocation40_spill] sm:$0xff] }
 0x284   : > { %v10511_v19 = vmul.f32 0.25, %v4509_v5  ;;  %v2625_v36 = vmax.f32 %v2546_v44, 0.0  ;;  %v2688_v55 = vmax.f32 %v2548_v52, 0.0  ;;  %v2550_v4 = vadd.f32 %v11837_v23, %v7333_v27  ;;  %v11843_v5 = vld [vmem:[#allocation103_spill] sm:$0xff]  ;;  %v11849_v44 = vld [vmem:[#allocation92_spill] sm:$0xff] }
 0x285   : > { %v4534_v50 = vadd.f32 %v4526_v59, %v11836_v2  ;;  %5766 = vmatpush1.bf16.msra.mxu1 %v4003_v26  ;;  %v5110_v20 = vadd.f32 %v10290_v31, %v2624_v35  ;;  %v11839_v24 = vmax.f32 %v11838_v46, 0.0  ;;  %v4479_v11 = vpack.c.bf16 %v4477_v15, %v4476_v42  ;;  %v11842_v42 = vld [vmem:[#allocation16_spill] sm:$0xff] }
 0x286   : > { %v5054_v6 = vpack.c.bf16 %v10451_v57, %v10433_v60  ;;  %v5111_v21 = vadd.f32 %v11840_v58, %v2688_v55  ;;  %v2689_v48 = vmax.f32 %v2550_v4, 0.0  ;;  %v2554_v54 = vadd.f32 %v11841_v9, %v7331_v25  ;;  %v11851_v4 = vld [vmem:[#allocation84_spill] sm:$0xff]  ;;  %v10563_v58 = vpop.permute.xlu1 %5287  ;;  %v11857_v9 = vld [vmem:[#allocation13_spill] sm:$0xff] }
 0x287   : > { %v4535_v18 = vadd.f32 %v4527_v63, %v11839_v24  ;;  %v4542_v13 = vadd.f32 %v4534_v50, %v2624_v35  ;;  %v5118_v27 = vadd.f32 %v5110_v20, %v2625_v36  ;;  %5706 = vmatprep.subr.bf16.mxu0 %v4479_v11  ;;  %v4528_v31 = vadd.f32 %v10328_v29, %v11732_v10  ;;  %v11847_v10 = vld [vmem:[#allocation66_spill] sm:$0xff]  ;;  %v11850_v63 = vld [vmem:[#allocation116_spill] sm:$0xff]  ;;  %v11854_v11 = vld [vmem:[#allocation119_spill] sm:$0xff] }
 0x288   : > { %v2556_v15 = vadd.f32 %v11842_v42, %v7331_v25  ;;  %v5119_v57 = vadd.f32 %v5111_v21, %v2689_v48  ;;  %v11845_v12 = vpack.c.bf16 %v11843_v5, %v11844_v32  ;;  %v2752_v51 = vmax.f32 %v2554_v54, 0.0  ;;  %v11853_v24 = vld [vmem:[#allocation72_spill] sm:$0xff]  ;;  %v11860_v42 = vld [vmem:[#allocation121_spill] sm:$0xff] }
 0x289   : > { %v4543_v47 = vadd.f32 %v4535_v18, %v2688_v55  ;;  %v4546_v60 = vmul.f32 0.25, %v4542_v13  ;;  %v2558_v56 = vadd.f32 %v11846_v61, %v7389_v3  ;;  %v10540_v49 = vmul.f32 0.25, %v5118_v27  ;;  %v10550_v55 = vpop.permute.xlu0 %5282  ;;  %v11858_v27 = vld [vmem:[#allocation81_spill] sm:$0xff]  ;;  %v11863_v5 = vld [vmem:[#allocation108_spill] sm:$0xff]  ;;  %v11865_v61 = vld [vmem:[#allocation135_spill] sm:$0xff] }
 0x28a   : > { %5707 = vmatpush1.bf16.msra.mxu0 %v11845_v12  ;;  %v11848_v29 = vmax.f32 %v11847_v10, 0.0  ;;  %v2753_v25 = vmax.f32 %v2556_v15, 0.0  ;;  %v5123_v17 = vmul.f32 0.25, %v5119_v57  ;;  %v5112_v1 = vadd.f32 %v11849_v44, %v2752_v51  ;;  %v11862_v57 = vld [vmem:[#allocation107_spill] sm:$0xff] }
 0x28b   : > { %v4547_v16 = vmul.f32 0.25, %v4543_v47  ;;  %5708 = vmatprep.subr.bf16.mxu0 %v5054_v6  ;;  %v2816_v52 = vmax.f32 %v2558_v56, 0.0  ;;  %v4529_v26 = vadd.f32 %v10333_v8, %v11743_v62  ;;  %v2560_v2 = vadd.f32 %v11850_v63, %v7389_v3  ;;  %v11855_v6 = vld [vmem:[#allocation91_spill] sm:$0xff]  ;;  %v11859_v47 = vld [vmem:[#allocation85_spill] sm:$0xff] }
 0x28c   : > { %v4536_v59 = vadd.f32 %v4528_v31, %v11848_v29  ;;  %v5055_v50 = vpack.c.bf16 %v5053_v38, %v10492_v22  ;;  %v5120_v23 = vadd.f32 %v5112_v1, %v2753_v25  ;;  %v11852_v20 = vmax.f32 %v11851_v4, 0.0  ;;  %v11866_v1 = vld [vmem:[#allocation79_spill] sm:$0xff]  ;;  %v10594_v4 = vpop.permute.xlu1 %5297 }
 0x28d   : > { %v4550_v36 = vpack.c.bf16 %v4547_v16, %v4546_v60  ;;  %v5113_v18 = vadd.f32 %v11853_v24, %v2816_v52  ;;  %v11856_v13 = vpack.c.bf16 %v11854_v11, %v11855_v6  ;;  %v4514_v62 = vpack.c.bf16 %v10457_v33, %v10440_v41  ;;  %v11870_v24 = vld [vmem:[#allocation51_spill] sm:$0xff] }
 0x28e   : > { %v4544_v35 = vadd.f32 %v4536_v59, %v2752_v51  ;;  %v4537_v46 = vadd.f32 %v4529_v26, %v11852_v20  ;;  %v2817_v3 = vmax.f32 %v2560_v2, 0.0  ;;  %v4515_v22 = vpack.c.bf16 %v10511_v19, %v10495_v37  ;;  %v11861_v19 = vld [vmem:[#allocation50_spill] sm:$0xff]  ;;  %v10581_v59 = vpop.permute.xlu0 %5292  ;;  %v11867_v26 = vld [vmem:[#allocation60_spill] sm:$0xff]  ;;  %v11871_v11 = vld [vmem:[#allocation87_spill] sm:$0xff] }
 0x28f   : > { %5709 = vmatpush1.bf16.msra.mxu0 %v11856_v13  ;;  %5767 = vmatprep.subr.bf16.mxu1 %v4550_v36  ;;  %v5126_v38 = vpack.c.bf16 %v5123_v17, %v10540_v49  ;;  %v5124_v21 = vmul.f32 0.25, %v5120_v23  ;;  %v5353_v54 = vadd.f32 %v11857_v9, %v10524_v7  ;;  %v5355_v41 = vadd.f32 %v11858_v27, %v10524_v7  ;;  %v11868_v2 = vld [vmem:[#allocation96_spill] sm:$0xff]  ;;  %v11869_v36 = vld [vmem:[#allocation71_spill] sm:$0xff]  ;;  %v11874_v27 = vld [vmem:[#allocation38_spill] sm:$0xff] }
 0x290   : > { %v4548_v8 = vmul.f32 0.25, %v4544_v35  ;;  %5710 = vmatprep.subr.bf16.mxu0 %v5055_v50  ;;  %v4545_v48 = vadd.f32 %v4537_v46, %v2816_v52  ;;  %5768 = vmatpush1.bf16.msra.mxu1 %v4514_v62  ;;  %v5121_v33 = vadd.f32 %v5113_v18, %v2817_v3  ;;  %v5357_v31 = vadd.f32 %v11859_v47, %v10533_v45 }
 0x291   : > { %v5359_v37 = vadd.f32 %v11860_v42, %v10533_v45  ;;  %v5363_v15 = vadd.f32 %v11861_v19, %v10550_v55  ;;  %v11864_v32 = vpack.c.bf16 %v11862_v57, %v11863_v5  ;;  %v5822_v12 = vmax.f32 %v5353_v54, 0.0  ;;  %v11877_v5 = vld [vmem:[#allocation83_spill] sm:$0xff] }
 0x292   : > { %v4549_v60 = vmul.f32 0.25, %v4545_v48  ;;  %v5823_v51 = vmax.f32 %v5355_v41, 0.0  ;;  %v5365_v56 = vadd.f32 %v11865_v61, %v10550_v55  ;;  %v5125_v49 = vmul.f32 0.25, %v5121_v33  ;;  %v11875_v33 = vld [vmem:[#allocation45_spill] sm:$0xff] }
 0x293   : > { %5711 = vmatpush1.bf16.msra.mxu0 %v11864_v32  ;;  %v5838_v16 = vmax.f32 %v5357_v31, 0.0  ;;  %v5839_v10 = vmax.f32 %v5359_v37, 0.0  ;;  %v5854_v29 = vmax.f32 %v5363_v15, 0.0  ;;  %v5367_v52 = vadd.f32 %v11866_v1, %v10563_v58  ;;  %v11876_v37 = vld [vmem:[#allocation53_spill] sm:$0xff]  ;;  %v11878_v32 = vld [vmem:[#allocation23_spill] sm:$0xff] }
 0x294   : > { %6347 = vmatprep.subr.bf16.mxu0 %v11482_v40  ;;  %v4551_v25 = vpack.c.bf16 %v4549_v60, %v4548_v8  ;;  %v10583_v17 = vadd.f32 %v5823_v51, %v5822_v12  ;;  %v5855_v44 = vmax.f32 %v5365_v56, 0.0  ;;  %v5127_v35 = vpack.c.bf16 %v5125_v49, %v5124_v21  ;;  %v11872_v8 = vld [vmem:[#allocation125_spill] sm:$0xff] }
 0x295   : > { %v10588_v63 = vadd.f32 %v5839_v10, %v5838_v16  ;;  %v5369_v50 = vadd.f32 %v11868_v2, %v10563_v58  ;;  %v5373_v23 = vadd.f32 %v11869_v36, %v10581_v59  ;;  %v5870_v46 = vmax.f32 %v5367_v52, 0.0  ;;  %v11873_v21 = vld [vmem:[#allocation77_spill] sm:$0xff] }
 0x296   : > { %5729 = vmatmul.mubr.bf16.vlgmr.msra.gmra.mrb[152].mxu0 %v11867_v26  ;;  %5769 = vmatprep.subr.bf16.mxu1 %v4551_v25  ;;  %v10597_v20 = vadd.f32 %v5855_v44, %v5854_v29  ;;  %v5416_v18 = vadd.f32 %v11870_v24, %v10524_v7  ;;  %v5375_v6 = vadd.f32 %v11871_v11, %v10581_v59  ;;  %v11880_v25 = vld [vmem:[#allocation94_spill] sm:$0xff] }
 0x297   : > { %5738 = vmatprep.mubr.bf16.mxu0 %v11482_v40  ;;  %5770 = vmatpush1.bf16.msra.mxu1 %v4515_v22  ;;  %v5871_v13 = vmax.f32 %v5369_v50, 0.0  ;;  %v5886_v62 = vmax.f32 %v5373_v23, 0.0  ;;  %v5418_v3 = vadd.f32 %v11872_v8, %v10524_v7  ;;  %v5377_v48 = vadd.f32 %v11873_v21, %v10594_v4  ;;  %v11882_v50 = vld [vmem:[#allocation44_spill] sm:$0xff] }
 0x298   : > { %5771 = vmatprep.subr.bf16.mxu1 %v5126_v38  ;;  %v5824_v9 = vmax.f32 %v5416_v18, 0.0  ;;  %v5887_v54 = vmax.f32 %v5375_v6, 0.0  ;;  %v5420_v41 = vadd.f32 %v11874_v27, %v10533_v45  ;;  %v5379_v47 = vadd.f32 %v11875_v33, %v10594_v4 }
 0x299   : > { %v10611_v31 = vadd.f32 %v5871_v13, %v5870_v46  ;;  %v5825_v22 = vmax.f32 %v5418_v3, 0.0  ;;  %v5902_v42 = vmax.f32 %v5377_v48, 0.0  ;;  %v5422_v19 = vadd.f32 %v11876_v37, %v10533_v45 }
 0x29a   : > { %v10615_v15 = vadd.f32 %v5887_v54, %v5886_v62  ;;  %v5840_v60 = vmax.f32 %v5420_v41, 0.0  ;;  %v5903_v57 = vmax.f32 %v5379_v47, 0.0  ;;  %v5426_v38 = vadd.f32 %v10389_v53, %v10550_v55 }
 0x29b   : > { %v11879_v12 = vpack.c.bf16 %v11877_v5, %v11878_v32  ;;  %v10622_v51 = vadd.f32 %v5825_v22, %v5824_v9  ;;  %v5841_v61 = vmax.f32 %v5422_v19, 0.0  ;;  %v5428_v56 = vadd.f32 %v10395_v28, %v10550_v55 }
 0x29c   : > { %v5430_v49 = vadd.f32 %v10410_v43, %v10563_v58  ;;  %v10628_v16 = vadd.f32 %v5903_v57, %v5902_v42  ;;  %v5856_v10 = vmax.f32 %v5426_v38, 0.0  ;;  %v5432_v53 = vadd.f32 %v10415_v14, %v10563_v58 }
 0x29d   : > { %5772 = vmatpush1.bf16.msra.mxu1 %v11879_v12  ;;  %v5436_v29 = vadd.f32 %v10445_v39, %v10581_v59  ;;  %v10635_v44 = vadd.f32 %v5841_v61, %v5840_v60  ;;  %v5857_v1 = vmax.f32 %v5428_v56, 0.0  ;;  %v5438_v28 = vadd.f32 %v10449_v30, %v10581_v59  ;;  %v11881_v39 = vld [vmem:[#allocation122_spill] sm:$0xff] }
 0x29e   : > { %5773 = vmatprep.subr.bf16.mxu1 %v5127_v35  ;;  %5739 = vmatmul.mubr.bf16.gmra.mrb[156].mxu0 %v11880_v25  ;;  %v5872_v52 = vmax.f32 %v5430_v49, 0.0  ;;  %v5873_v43 = vmax.f32 %v5432_v53, 0.0  ;;  %v5440_v2 = vadd.f32 %v10455_v34, %v10594_v4  ;;  %v5442_v14 = vadd.f32 %v10465_v0, %v10594_v4  ;;  %v11884_v34 = vld [vmem:[#allocation123_spill] sm:$0xff] }
 0x29f   : > { %5748 = vmatprep.mubr.bf16.mxu0 %v11482_v40  ;;  %v5888_v35 = vmax.f32 %v5436_v29, 0.0  ;;  %v11883_v36 = vpack.c.bf16 %v11881_v39, %v11882_v50  ;;  %v10647_v23 = vadd.f32 %v5857_v1, %v5856_v10  ;;  %v5889_v46 = vmax.f32 %v5438_v28, 0.0 }
 0x2a0   : > { %v10649_v24 = vadd.f32 %v5873_v43, %v5872_v52  ;;  %v5904_v30 = vmax.f32 %v5440_v2, 0.0  ;;  %v5905_v18 = vmax.f32 %v5442_v14, 0.0 }
 0x2a1   : > { %5774 = vmatpush1.bf16.msra.mxu1 %v11883_v36  ;;  %v10651_v11 = vadd.f32 %v5889_v46, %v5888_v35 }
 0x2a2   : > { %v10654_v6 = vadd.f32 %v5905_v18, %v5904_v30 }
 0x2a4   : > { %5792 = vmatmul.mubr.bf16.vlgmr.msra.gmra.mrb[176].mxu1 %v11867_v26 }
 0x2a5   : > { %5801 = vmatprep.mubr.bf16.mxu1 %v11482_v40 }
 0x2a6   : > { %5749 = vmatmul.mubr.bf16.gmra.mrb[160].mxu0 %v11884_v34 }
 0x2ac   : > { %5802 = vmatmul.mubr.bf16.gmra.mrb[180].mxu1 %v11880_v25 }
 0x2ad   : > { %5811 = vmatprep.mubr.bf16.mxu1 %v11482_v40 }
 0x2b0   : > { %v5478_v0 = vpop.f32.mrb[128].mxu0 }
 0x2b1   : > { %v5479_v13 = vadd.f32 %v5478_v0, %v10524_v7  ;;  %v5480_v62 = vpop.f32.mrb[129].mxu0 }
 0x2b2   : > { %v5481_v8 = vadd.f32 %v5480_v62, %v10524_v7  ;;  %v5482_v3 = vpop.f32.mrb[130].mxu0 }
 0x2b3   : > { %v5826_v26 = vmax.f32 %v5479_v13, 0.0  ;;  %v5483_v21 = vadd.f32 %v5482_v3, %v10533_v45  ;;  %v5484_v48 = vpop.f32.mrb[131].mxu0 }
 0x2b4   : > { %5812 = vmatmul.mubr.bf16.gmra.mrb[184].mxu1 %v11884_v34  ;;  %v5827_v9 = vmax.f32 %v5481_v8, 0.0  ;;  %v5485_v54 = vadd.f32 %v5484_v48, %v10533_v45 }
 0x2b5   : > { %v6038_v27 = vadd.f32 %v10583_v17, %v5826_v26  ;;  %v5842_v41 = vmax.f32 %v5483_v21, 0.0 }
 0x2b6   : > { %v5843_v33 = vmax.f32 %v5485_v54, 0.0 }
 0x2b7   : > { %v6050_v47 = vadd.f32 %v6038_v27, %v5827_v9  ;;  %v6039_v22 = vadd.f32 %v10588_v63, %v5842_v41 }
 0x2b9   : > { %v6051_v37 = vadd.f32 %v6039_v22, %v5843_v33  ;;  %v6056_v5 = vmul.f32 0.25, %v6050_v47 }
 0x2ba   : > { %v5488_v42 = vpop.f32.mrb[132].mxu0 }
 0x2bb   : > { %v5489_v19 = vadd.f32 %v5488_v42, %v10550_v55  ;;  %v5490_v60 = vpop.f32.mrb[133].mxu0  ;;  %v6057_v32 = vmul.f32 0.25, %v6051_v37 }
 0x2bc   : > { %v5491_v57 = vadd.f32 %v5490_v60, %v10550_v55  ;;  %v5492_v38 = vpop.f32.mrb[134].mxu0 }
 0x2bd   : > { %v5858_v12 = vmax.f32 %v5489_v19, 0.0  ;;  %v5493_v61 = vadd.f32 %v5492_v38, %v10563_v58  ;;  %v5494_v56 = vpop.f32.mrb[135].mxu0  ;;  %v6062_v10 = vpack.c.bf16 %v6057_v32, %v6056_v5 }
 0x2be   : > { %v5859_v17 = vmax.f32 %v5491_v57, 0.0  ;;  %v5495_v49 = vadd.f32 %v5494_v56, %v10563_v58 }
 0x2bf   : > { %v6040_v63 = vadd.f32 %v10597_v20, %v5858_v12  ;;  %v5874_v53 = vmax.f32 %v5493_v61, 0.0  ;;  %6348 = vmatpush1.bf16.msra.mxu0 %v6062_v10 }
 0x2c0   : > { %v5875_v29 = vmax.f32 %v5495_v49, 0.0  ;;  %6349 = vmatprep.subr.bf16.mxu0 %v11482_v40 }
 0x2c1   : > { %v6052_v25 = vadd.f32 %v6040_v63, %v5859_v17  ;;  %v6041_v1 = vadd.f32 %v10611_v31, %v5874_v53 }
 0x2c3   : > { %v5498_v52 = vpop.f32.mrb[136].mxu0  ;;  %v6053_v28 = vadd.f32 %v6041_v1, %v5875_v29  ;;  %v6058_v39 = vmul.f32 0.25, %v6052_v25 }
 0x2c4   : > { %v5499_v43 = vadd.f32 %v5498_v52, %v10581_v59  ;;  %v5500_v35 = vpop.f32.mrb[137].mxu0 }
 0x2c5   : > { %v5501_v2 = vadd.f32 %v5500_v35, %v10581_v59  ;;  %v5502_v14 = vpop.f32.mrb[138].mxu0  ;;  %v6059_v50 = vmul.f32 0.25, %v6053_v28 }
 0x2c6   : > { %v5890_v36 = vmax.f32 %v5499_v43, 0.0  ;;  %v5503_v20 = vadd.f32 %v5502_v14, %v10594_v4  ;;  %v5504_v46 = vpop.f32.mrb[139].mxu0 }
 0x2c7   : > { %v5891_v30 = vmax.f32 %v5501_v2, 0.0  ;;  %v5505_v31 = vadd.f32 %v5504_v46, %v10594_v4  ;;  %v6063_v18 = vpack.c.bf16 %v6059_v50, %v6058_v39 }
 0x2c8   : > { %v6042_v34 = vadd.f32 %v10615_v15, %v5890_v36  ;;  %v5906_v0 = vmax.f32 %v5503_v20, 0.0 }
 0x2c9   : > { %v5541_v13 = vpop.f32.mrb[152].mxu1  ;;  %v5907_v62 = vmax.f32 %v5505_v31, 0.0  ;;  %6350 = vmatpush1.bf16.msra.mxu0 %v6063_v18 }
 0x2ca   : > { %v5542_v8 = vadd.f32 %v5541_v13, %v10524_v7  ;;  %v6054_v3 = vadd.f32 %v6042_v34, %v5891_v30  ;;  %v5543_v26 = vpop.f32.mrb[153].mxu1  ;;  %v6043_v21 = vadd.f32 %v10628_v16, %v5906_v0  ;;  %6351 = vmatprep.subr.bf16.mxu0 %v11482_v40 }
 0x2cb   : > { %v5544_v48 = vadd.f32 %v5543_v26, %v10524_v7  ;;  %v5545_v9 = vpop.f32.mrb[154].mxu1 }
 0x2cc   : > { %v5828_v54 = vmax.f32 %v5542_v8, 0.0  ;;  %v5546_v27 = vadd.f32 %v5545_v9, %v10533_v45  ;;  %v6055_v41 = vadd.f32 %v6043_v21, %v5907_v62  ;;  %v5547_v15 = vpop.f32.mrb[155].mxu1  ;;  %v6060_v42 = vmul.f32 0.25, %v6054_v3 }
 0x2cd   : > { %v5829_v33 = vmax.f32 %v5544_v48, 0.0  ;;  %v5548_v47 = vadd.f32 %v5547_v15, %v10533_v45 }
 0x2ce   : > { %v6092_v22 = vadd.f32 %v10622_v51, %v5828_v54  ;;  %v5844_v37 = vmax.f32 %v5546_v27, 0.0  ;;  %v6061_v19 = vmul.f32 0.25, %v6055_v41  ;;  %v6785_v27 = vld [vmem:[%s10879_s5 + $0x4] ss:$8 sps:$4 sm:$0xff]  }
 0x2cf   : > { %v5845_v16 = vmax.f32 %v5548_v47, 0.0  ;;  %6700 = vmatprep.mubr.msk.bf16.mxu0 %vm6334_vm3, %v6785_v27 }
 0x2d0   : > { %v6104_v60 = vadd.f32 %v6092_v22, %v5829_v33  ;;  %v6093_v57 = vadd.f32 %v10635_v44, %v5844_v37  ;;  %v6064_v38 = vpack.c.bf16 %v6061_v19, %v6060_v42 }
 0x2d1   : > { %v5551_v5 = vpop.f32.mrb[156].mxu1 }
 0x2d2   : > { %v6105_v32 = vadd.f32 %v6093_v57, %v5845_v16  ;;  %v5552_v12 = vadd.f32 %v5551_v5, %v10550_v55  ;;  %v5553_v61 = vpop.f32.mrb[157].mxu1  ;;  %6352 = vmatpush1.bf16.msra.mxu0 %v6064_v38  ;;  %v6110_v51 = vmul.f32 0.25, %v6104_v60 }
 0x2d3   : > { %v5554_v56 = vadd.f32 %v5553_v61, %v10550_v55  ;;  %v5555_v17 = vpop.f32.mrb[158].mxu1  ;;  %6353 = vmatprep.subr.bf16.mxu0 %v11482_v40 }
 0x2d4   : > { %v6111_v49 = vmul.f32 0.25, %v6105_v32  ;;  %v5860_v10 = vmax.f32 %v5552_v12, 0.0  ;;  %v5556_v63 = vadd.f32 %v5555_v17, %v10563_v58  ;;  %v5557_v53 = vpop.f32.mrb[159].mxu1 }
 0x2d5   : > { %v5861_v29 = vmax.f32 %v5554_v56, 0.0  ;;  %v5558_v44 = vadd.f32 %v5557_v53, %v10563_v58 }
 0x2d6   : > { %v6116_v25 = vpack.c.bf16 %v6111_v49, %v6110_v51  ;;  %v6094_v1 = vadd.f32 %v10647_v23, %v5860_v10  ;;  %v5876_v52 = vmax.f32 %v5556_v63, 0.0 }
 0x2d7   : > { %v5877_v28 = vmax.f32 %v5558_v44, 0.0 }
 0x2d8   : > { %v6106_v43 = vadd.f32 %v6094_v1, %v5861_v29  ;;  %v6095_v35 = vadd.f32 %v10649_v24, %v5876_v52  ;;  %6354 = vmatpush1.bf16.msra.mxu0 %v6116_v25 }
 0x2d9   : > { %v5561_v2 = vpop.f32.mrb[160].mxu1  ;;  %6355 = vmatprep.subr.bf16.mxu0 %v11482_v40 }
 0x2da   : > { %v6107_v14 = vadd.f32 %v6095_v35, %v5877_v28  ;;  %v5562_v39 = vadd.f32 %v5561_v2, %v10581_v59  ;;  %v5563_v50 = vpop.f32.mrb[161].mxu1  ;;  %v6112_v46 = vmul.f32 0.25, %v6106_v43 }
 0x2db   : > { %v5564_v36 = vadd.f32 %v5563_v50, %v10581_v59  ;;  %v5565_v20 = vpop.f32.mrb[162].mxu1 }
 0x2dc   : > { %v6113_v30 = vmul.f32 0.25, %v6107_v14  ;;  %v5892_v31 = vmax.f32 %v5562_v39, 0.0  ;;  %v5566_v23 = vadd.f32 %v5565_v20, %v10594_v4  ;;  %v5567_v18 = vpop.f32.mrb[163].mxu1 }
 0x2dd   : > { %v5893_v34 = vmax.f32 %v5564_v36, 0.0  ;;  %v5568_v24 = vadd.f32 %v5567_v18, %v10594_v4 }
 0x2de   : > { %v6117_v0 = vpack.c.bf16 %v6113_v30, %v6112_v46  ;;  %v6096_v13 = vadd.f32 %v10651_v11, %v5892_v31  ;;  %v5908_v62 = vmax.f32 %v5566_v23, 0.0 }
 0x2df   : > { %v5909_v8 = vmax.f32 %v5568_v24, 0.0 }
 0x2e0   : > { %v6108_v3 = vadd.f32 %v6096_v13, %v5893_v34  ;;  %v6097_v26 = vadd.f32 %v10654_v6, %v5908_v62  ;;  %6356 = vmatpush1.bf16.msra.mxu0 %v6117_v0 }
 0x2e1   : > { %6357 = vmatprep.subr.bf16.mxu0 %v11482_v40 }
 0x2e2   : > { %v6109_v21 = vadd.f32 %v6097_v26, %v5909_v8  ;;  %v6114_v48 = vmul.f32 0.25, %v6108_v3 }
 0x2e4   : > { %v6115_v9 = vmul.f32 0.25, %v6109_v21 }
 0x2e6   : > { %v6118_v54 = vpack.c.bf16 %v6115_v9, %v6114_v48 }
 0x2e8   : > { %6358 = vmatpush1.bf16.msra.mxu0 %v6118_v54 }
 0x2e9   : > { %6359 = vmatprep.subr.bf16.mxu0 %v11482_v40 }
 0x31a   : > { %v5604_v11 = vpop.f32.mrb[140].mxu0 }
 0x31b   : > { %v5605_v6 = vadd.f32 %v5604_v11, %v10524_v7  ;;  %v5606_v41 = vpop.f32.mrb[141].mxu0 }
 0x31c   : > { %v5607_v15 = vadd.f32 %v5606_v41, %v10524_v7  ;;  %v5608_v33 = vpop.f32.mrb[142].mxu0 }
 0x31d   : > { %v5830_v47 = vmax.f32 %v5605_v6, 0.0  ;;  %v5609_v22 = vadd.f32 %v5608_v33, %v10533_v45  ;;  %v5610_v42 = vpop.f32.mrb[143].mxu0 }
 0x31e   : > { %v5831_v37 = vmax.f32 %v5607_v15, 0.0  ;;  %v5611_v19 = vadd.f32 %v5610_v42, %v10533_v45 }
 0x31f   : > { %v5846_v16 = vmax.f32 %v5609_v22, 0.0 }
 0x320   : > { %v10711_v60 = vadd.f32 %v5831_v37, %v5830_v47  ;;  %v5847_v57 = vmax.f32 %v5611_v19, 0.0 }
 0x322   : > { %v10713_v38 = vadd.f32 %v5847_v57, %v5846_v16  ;;  %v5614_v5 = vpop.f32.mrb[144].mxu0 }
 0x323   : > { %v5615_v32 = vadd.f32 %v5614_v5, %v10550_v55  ;;  %v5616_v12 = vpop.f32.mrb[145].mxu0 }
 0x324   : > { %v5617_v61 = vadd.f32 %v5616_v12, %v10550_v55  ;;  %v5618_v56 = vpop.f32.mrb[146].mxu0 }
 0x325   : > { %v5862_v17 = vmax.f32 %v5615_v32, 0.0  ;;  %v5619_v51 = vadd.f32 %v5618_v56, %v10563_v58  ;;  %v5620_v49 = vpop.f32.mrb[147].mxu0 }
 0x326   : > { %v5863_v10 = vmax.f32 %v5617_v61, 0.0  ;;  %v5621_v63 = vadd.f32 %v5620_v49, %v10563_v58 }
 0x327   : > { %v5878_v53 = vmax.f32 %v5619_v51, 0.0 }
 0x328   : > { %v10719_v29 = vadd.f32 %v5863_v10, %v5862_v17  ;;  %v5879_v44 = vmax.f32 %v5621_v63, 0.0 }
 0x32a   : > { %v10721_v25 = vadd.f32 %v5879_v44, %v5878_v53  ;;  %v5624_v1 = vpop.f32.mrb[148].mxu0 }
 0x32b   : > { %v5625_v52 = vadd.f32 %v5624_v1, %v10581_v59  ;;  %v5626_v28 = vpop.f32.mrb[149].mxu0 }
 0x32c   : > { %v5627_v43 = vadd.f32 %v5626_v28, %v10581_v59  ;;  %v5628_v35 = vpop.f32.mrb[150].mxu0 }
 0x32d   : > { %v5894_v2 = vmax.f32 %v5625_v52, 0.0  ;;  %v5629_v14 = vadd.f32 %v5628_v35, %v10594_v4  ;;  %v5630_v39 = vpop.f32.mrb[151].mxu0 }
 0x32e   : > { %v5667_v50 = vpop.f32.mrb[164].mxu1  ;;  %v5895_v36 = vmax.f32 %v5627_v43, 0.0  ;;  %v5631_v20 = vadd.f32 %v5630_v39, %v10594_v4 }
 0x32f   : > { %v5668_v46 = vadd.f32 %v5667_v50, %v10524_v7  ;;  %v5669_v30 = vpop.f32.mrb[165].mxu1  ;;  %v5910_v31 = vmax.f32 %v5629_v14, 0.0 }
 0x330   : > { %v10728_v23 = vadd.f32 %v5895_v36, %v5894_v2  ;;  %v5670_v18 = vadd.f32 %v5669_v30, %v10524_v7  ;;  %v5671_v34 = vpop.f32.mrb[166].mxu1  ;;  %v5911_v24 = vmax.f32 %v5631_v20, 0.0 }
 0x331   : > { %v5832_v0 = vmax.f32 %v5668_v46, 0.0  ;;  %v5672_v13 = vadd.f32 %v5671_v34, %v10533_v45  ;;  %v5673_v62 = vpop.f32.mrb[167].mxu1 }
 0x332   : > { %v5833_v8 = vmax.f32 %v5670_v18, 0.0  ;;  %v10732_v3 = vadd.f32 %v5911_v24, %v5910_v31  ;;  %v5674_v26 = vadd.f32 %v5673_v62, %v10533_v45 }
 0x333   : > { %v5848_v21 = vmax.f32 %v5672_v13, 0.0 }
 0x334   : > { %v10735_v48 = vadd.f32 %v5833_v8, %v5832_v0  ;;  %v5849_v9 = vmax.f32 %v5674_v26, 0.0 }
 0x336   : > { %v10737_v54 = vadd.f32 %v5849_v9, %v5848_v21  ;;  %v5677_v27 = vpop.f32.mrb[168].mxu1 }
 0x337   : > { %v5678_v11 = vadd.f32 %v5677_v27, %v10550_v55  ;;  %v5679_v6 = vpop.f32.mrb[169].mxu1 }
 0x338   : > { %v5680_v41 = vadd.f32 %v5679_v6, %v10550_v55  ;;  %v5681_v15 = vpop.f32.mrb[170].mxu1 }
 0x339   : > { %v5864_v33 = vmax.f32 %v5678_v11, 0.0  ;;  %v5682_v47 = vadd.f32 %v5681_v15, %v10563_v58  ;;  %v5683_v22 = vpop.f32.mrb[171].mxu1 }
 0x33a   : > { %v5865_v42 = vmax.f32 %v5680_v41, 0.0  ;;  %v5684_v37 = vadd.f32 %v5683_v22, %v10563_v58 }
 0x33b   : > { %v5880_v19 = vmax.f32 %v5682_v47, 0.0 }
 0x33c   : > { %v10743_v16 = vadd.f32 %v5865_v42, %v5864_v33  ;;  %v5881_v57 = vmax.f32 %v5684_v37, 0.0 }
 0x33e   : > { %v10745_v5 = vadd.f32 %v5881_v57, %v5880_v19 }
 0x33f   : > { %v5687_v32 = vpop.f32.mrb[172].mxu1 }
 0x340   : > { %v5688_v12 = vadd.f32 %v5687_v32, %v10581_v59  ;;  %v5689_v61 = vpop.f32.mrb[173].mxu1 }
 0x341   : > { %v5690_v56 = vadd.f32 %v5689_v61, %v10581_v59  ;;  %v5691_v17 = vpop.f32.mrb[174].mxu1 }
 0x342   : > { %v5896_v51 = vmax.f32 %v5688_v12, 0.0  ;;  %v5692_v49 = vadd.f32 %v5691_v17, %v10594_v4  ;;  %v5693_v10 = vpop.f32.mrb[175].mxu1 }
 0x343   : > { %v5897_v63 = vmax.f32 %v5690_v56, 0.0  ;;  %v5694_v53 = vadd.f32 %v5693_v10, %v10594_v4 }
 0x344   : > { %v5912_v44 = vmax.f32 %v5692_v49, 0.0 }
 0x345   : > { %v10751_v1 = vadd.f32 %v5897_v63, %v5896_v51  ;;  %v5913_v52 = vmax.f32 %v5694_v53, 0.0 }
 0x347   : > { %v10753_v28 = vadd.f32 %v5913_v52, %v5912_v44 }
 0x369   : > { %v5730_v43 = vpop.f32.mrb[152].mxu0 }
 0x36a   : > { %v5731_v35 = vadd.f32 %v5730_v43, %v10524_v7  ;;  %v5732_v2 = vpop.f32.mrb[153].mxu0 }
 0x36b   : > { %v5733_v14 = vadd.f32 %v5732_v2, %v10524_v7  ;;  %v5734_v39 = vpop.f32.mrb[154].mxu0 }
 0x36c   : > { %v5834_v50 = vmax.f32 %v5731_v35, 0.0  ;;  %v5735_v36 = vadd.f32 %v5734_v39, %v10533_v45  ;;  %v5736_v20 = vpop.f32.mrb[155].mxu0 }
 0x36d   : > { %v5835_v46 = vmax.f32 %v5733_v14, 0.0  ;;  %v5737_v30 = vadd.f32 %v5736_v20, %v10533_v45 }
 0x36e   : > { %v6146_v31 = vadd.f32 %v10711_v60, %v5834_v50  ;;  %v5850_v18 = vmax.f32 %v5735_v36, 0.0 }
 0x36f   : > { %v5851_v34 = vmax.f32 %v5737_v30, 0.0 }
 0x370   : > { %v6158_v24 = vadd.f32 %v6146_v31, %v5835_v46  ;;  %v6147_v0 = vadd.f32 %v10713_v38, %v5850_v18 }
 0x371   : > { %v5740_v13 = vpop.f32.mrb[156].mxu0 }
 0x372   : > { %v6159_v62 = vadd.f32 %v6147_v0, %v5851_v34  ;;  %v5741_v8 = vadd.f32 %v5740_v13, %v10550_v55  ;;  %v5742_v26 = vpop.f32.mrb[157].mxu0  ;;  %v6164_v27 = vmul.f32 0.25, %v6158_v24 }
 0x373   : > { %v5743_v21 = vadd.f32 %v5742_v26, %v10550_v55  ;;  %v5744_v9 = vpop.f32.mrb[158].mxu0 }
 0x374   : > { %v6165_v11 = vmul.f32 0.25, %v6159_v62  ;;  %v5866_v6 = vmax.f32 %v5741_v8, 0.0  ;;  %v5745_v41 = vadd.f32 %v5744_v9, %v10563_v58  ;;  %v5746_v15 = vpop.f32.mrb[159].mxu0 }
 0x375   : > { %v5867_v60 = vmax.f32 %v5743_v21, 0.0  ;;  %v5747_v33 = vadd.f32 %v5746_v15, %v10563_v58 }
 0x376   : > { %v6170_v47 = vpack.c.bf16 %v6165_v11, %v6164_v27  ;;  %v6148_v38 = vadd.f32 %v10719_v29, %v5866_v6  ;;  %v5882_v22 = vmax.f32 %v5745_v41, 0.0 }
 0x377   : > { %v5793_v42 = vpop.f32.mrb[176].mxu1  ;;  %v5883_v37 = vmax.f32 %v5747_v33, 0.0 }
 0x378   : > { %v5794_v19 = vadd.f32 %v5793_v42, %v10524_v7  ;;  %v5795_v57 = vpop.f32.mrb[177].mxu1  ;;  %v6160_v32 = vadd.f32 %v6148_v38, %v5867_v60  ;;  %v6149_v12 = vadd.f32 %v10721_v25, %v5882_v22  ;;  %6360 = vmatpush1.bf16.msra.mxu0 %v6170_v47 }
 0x379   : > { %v5796_v61 = vadd.f32 %v5795_v57, %v10524_v7  ;;  %v5797_v56 = vpop.f32.mrb[178].mxu1  ;;  %v5750_v17 = vpop.f32.mrb[160].mxu0  ;;  %6361 = vmatprep.subr.bf16.mxu0 %v11482_v40 }
 0x37a   : > { %v5836_v51 = vmax.f32 %v5794_v19, 0.0  ;;  %v5798_v49 = vadd.f32 %v5797_v56, %v10533_v45  ;;  %v5799_v10 = vpop.f32.mrb[179].mxu1  ;;  %v6161_v29 = vadd.f32 %v6149_v12, %v5883_v37  ;;  %v5751_v63 = vadd.f32 %v5750_v17, %v10581_v59  ;;  %v5752_v53 = vpop.f32.mrb[161].mxu0 }
 0x37b   : > { %v5837_v44 = vmax.f32 %v5796_v61, 0.0  ;;  %v5753_v25 = vadd.f32 %v5752_v53, %v10581_v59  ;;  %v5754_v43 = vpop.f32.mrb[162].mxu0  ;;  %v5800_v7 = vadd.f32 %v5799_v10, %v10533_v45  ;;  %v6166_v2 = vmul.f32 0.25, %v6160_v32 }
 0x37c   : > { %v6200_v52 = vadd.f32 %v10735_v48, %v5836_v51  ;;  %v5852_v35 = vmax.f32 %v5798_v49, 0.0  ;;  %v6167_v14 = vmul.f32 0.25, %v6161_v29  ;;  %v5898_v39 = vmax.f32 %v5751_v63, 0.0  ;;  %v5756_v36 = vpop.f32.mrb[163].mxu0 }
 0x37d   : > { %v5755_v50 = vadd.f32 %v5754_v43, %v10594_v4  ;;  %v5899_v20 = vmax.f32 %v5753_v25, 0.0  ;;  %v5757_v31 = vadd.f32 %v5756_v36, %v10594_v4  ;;  %v5853_v24 = vmax.f32 %v5800_v7, 0.0  ;;  %v6794_v36 = vld [vmem:[%s10879_s5 + $0x30] ss:$8 sps:$4 sm:$0xff]  }
 0x37e   : > { %v6212_v46 = vadd.f32 %v6200_v52, %v5837_v44  ;;  %v6201_v30 = vadd.f32 %v10737_v54, %v5852_v35  ;;  %v6171_v18 = vpack.c.bf16 %v6167_v14, %v6166_v2  ;;  %v6150_v48 = vadd.f32 %v10728_v23, %v5898_v39  ;;  %v6791_v39 = vld [vmem:[%s10879_s5 + $0x20] ss:$8 sps:$4 sm:$0xff]  }
 0x37f   : > { %v5914_v34 = vmax.f32 %v5755_v50, 0.0  ;;  %v5803_v0 = vpop.f32.mrb[180].mxu1  ;;  %v5915_v13 = vmax.f32 %v5757_v31, 0.0  ;;  %v6792_v50 = vld [vmem:[%s10879_s5 + $0x34] ss:$8 sps:$4 sm:$0xff]  }
 0x380   : > { %v5804_v45 = vadd.f32 %v5803_v0, %v10550_v55  ;;  %v5805_v62 = vpop.f32.mrb[181].mxu1  ;;  %v6162_v8 = vadd.f32 %v6150_v48, %v5899_v20  ;;  %v6213_v21 = vadd.f32 %v6201_v30, %v5853_v24  ;;  %6362 = vmatpush1.bf16.msra.mxu0 %v6171_v18  ;;  %v6218_v23 = vmul.f32 0.25, %v6212_v46  ;;  %v6261_v46 = vpop.permute.xlu0 %6260 }
 0x381   : > { %v6151_v26 = vadd.f32 %v10732_v3, %v5914_v34  ;;  %v5806_v9 = vadd.f32 %v5805_v62, %v10550_v55  ;;  %v5807_v54 = vpop.f32.mrb[182].mxu1  ;;  %6363 = vmatprep.subr.bf16.mxu0 %v11482_v40  ;;  %v6870_v20 = vmov 0.0   ;;  %v6266_v48 = vpop.permute.xlu1 %6265 }
 0x382   : > { %v5868_v27 = vmax.f32 %v5804_v45, 0.0  ;;  %v5808_v11 = vadd.f32 %v5807_v54, %v10563_v58  ;;  %v5809_v6 = vpop.f32.mrb[183].mxu1  ;;  %v6219_v15 = vmul.f32 0.25, %v6213_v21  ;;  %v6168_v38 = vmul.f32 0.25, %v6162_v8  ;;  %6716 = vmatprep.subr.bf16.mxu1 %v6870_v20  ;;  %6724 = vmatprep.mubr.msk.bf16.mxu1 %vm6871_vm4, %v6870_v20 }
 0x383   : > { %v6163_v41 = vadd.f32 %v6151_v26, %v5915_v13  ;;  %v5869_v60 = vmax.f32 %v5806_v9, 0.0  ;;  %v5810_v3 = vadd.f32 %v5809_v6, %v10563_v58 }
 0x384   : > { %v6202_v33 = vadd.f32 %v10743_v16, %v5868_v27  ;;  %v5884_v47 = vmax.f32 %v5808_v11, 0.0  ;;  %v6224_v42 = vpack.c.bf16 %v6219_v15, %v6218_v23  ;;  %v6271_v8 = vpop.permute.xlu0 %6270 }
 0x385   : > { %v6169_v22 = vmul.f32 0.25, %v6163_v41  ;;  %v5885_v19 = vmax.f32 %v5810_v3, 0.0  ;;  %v6276_v54 = vpop.permute.xlu1 %6275 }
 0x386   : > { %v6214_v55 = vadd.f32 %v6202_v33, %v5869_v60  ;;  %v6203_v37 = vadd.f32 %v10745_v5, %v5884_v47 }
 0x387   : > { %v6172_v57 = vpack.c.bf16 %v6169_v22, %v6168_v38  ;;  %v5813_v32 = vpop.f32.mrb[184].mxu1 }
 0x388   : > { %v6215_v12 = vadd.f32 %v6203_v37, %v5885_v19  ;;  %v5814_v61 = vadd.f32 %v5813_v32, %v10581_v59  ;;  %v5815_v56 = vpop.f32.mrb[185].mxu1  ;;  %v6220_v51 = vmul.f32 0.25, %v6214_v55  ;;  %v6281_v60 = vpop.permute.xlu0 %6280 }
 0x389   : > { %6364 = vmatpush1.bf16.msra.mxu0 %v6172_v57  ;;  %v5816_v17 = vadd.f32 %v5815_v56, %v10581_v59  ;;  %v5817_v16 = vpop.f32.mrb[186].mxu1  ;;  %v6286_v38 = vpop.permute.xlu1 %6285 }
 0x38a   : > { %v6221_v49 = vmul.f32 0.25, %v6215_v12  ;;  %v5900_v58 = vmax.f32 %v5814_v61, 0.0  ;;  %v5818_v10 = vadd.f32 %v5817_v16, %v10594_v4  ;;  %6365 = vmatprep.subr.bf16.mxu0 %v11482_v40  ;;  %v5819_v29 = vpop.f32.mrb[187].mxu1 }
 0x38b   : > { %v5901_v5 = vmax.f32 %v5816_v17, 0.0  ;;  %v5820_v63 = vadd.f32 %v5819_v29, %v10594_v4  ;;  %v6783_v4 = vld [vmem:[%s10879_s5] ss:$8 sps:$4 sm:$0xff]  }
 0x38c   : > { %v6225_v53 = vpack.c.bf16 %v6221_v49, %v6220_v51  ;;  %v6204_v44 = vadd.f32 %v10751_v1, %v5900_v58  ;;  %v5916_v52 = vmax.f32 %v5818_v10, 0.0  ;;  %v6786_v1 = vld [vmem:[%s10879_s5 + $0x14] ss:$8 sps:$4 sm:$0xff]   ;;  %v6291_v32 = vpop.permute.xlu0 %6290 }
 0x38d   : > { %v5917_v25 = vmax.f32 %v5820_v63, 0.0  ;;  %6366 = vmatpush1.bf16.msra.mxu0 %v6224_v42  ;;  %v6296_v17 = vpop.permute.xlu1 %6295 }
 0x38e   : > { %v6216_v43 = vadd.f32 %v6204_v44, %v5901_v5  ;;  %v6205_v59 = vadd.f32 %v10753_v28, %v5916_v52  ;;  %6367 = vmatprep.subr.bf16.mxu0 %v11482_v40  ;;  %v6788_v28 = vld [vmem:[%s10879_s5 + $0x10] ss:$8 sps:$4 sm:$0xff]   ;;  %v6795_v5 = vld [vmem:[%s10881_s7] sm:$0x1f]  }
 0x390   : > { %v6217_v35 = vadd.f32 %v6205_v59, %v5917_v25  ;;  %v6222_v7 = vmul.f32 0.25, %v6216_v43 }
 0x391   : > { %6368 = vmatpush1.bf16.msra.mxu0 %v6225_v53 }
 0x392   : > { %v6223_v2 = vmul.f32 0.25, %v6217_v35  ;;  %6369 = vmatprep.subr.bf16.mxu0 %v11482_v40  ;;  %v6789_v40 = vld [vmem:[%s10879_s5 + $0x24] ss:$8 sps:$4 sm:$0xff]  }
 0x394   : > { %v6226_v14 = vpack.c.bf16 %v6223_v2, %v6222_v7 }
 0x396   : > { %6370 = vmatpush1.bf16.msra.mxu0 %v6226_v14 }
 0x399   : > { %6380 = vmatmul.mubr.bf16.vlgmr.msra.gmra.mrb[164].mxu0 %v6783_v4 }
 0x39a   : > { %6701 = vmatprep.mubr.msk.bf16.mxu0 %vm6334_vm3, %v6786_v1 }
 0x3a1   : > { %6388 = vmatmul.mubr.bf16.gmra.mrb[168].mxu0 %v6788_v28 }
 0x3a2   : > { %6702 = vmatprep.mubr.msk.bf16.mxu0 %vm6334_vm3, %v6789_v40 }
 0x3a9   : > { %6396 = vmatmul.mubr.bf16.gmra.mrb[172].mxu0 %v6791_v39 }
 0x3aa   : > { %6703 = vmatprep.mubr.msk.bf16.mxu0 %vm6334_vm3, %v6792_v50 }
 0x3b1   : > { %6404 = vmatmul.mubr.bf16.gmra.mrb[176].mxu0 %v6794_v36 }
 0x46c   : > { %v6381_v30 = vpop.f32.mrb[164].mxu0 }
 0x46d   : > { %v6382_v31 = vadd.f32 %v6381_v30, %v6261_v46  ;;  %v6383_v18 = vpop.f32.mrb[165].mxu0 }
 0x46e   : > { %v6384_v34 = vpop.f32.mrb[166].mxu0 }
 0x46f   : > { %v6385_v24 = vadd.f32 %v6384_v34, %v6266_v48  ;;  %v6386_v0 = vpop.f32.mrb[167].mxu0  ;;  %v6412_v13 = vmax.f32 %v6382_v31, 0.0 }
 0x471   : > { %v6413_v45 = vmax.f32 %v6385_v24, 0.0 }
 0x473   : > { %v6422_v62 = vpack.c.bf16 %v6413_v45, %v6412_v13 }
 0x474   : > { %v6389_v26 = vpop.f32.mrb[168].mxu0 }
 0x475   : > { %v6390_v21 = vadd.f32 %v6389_v26, %v6271_v8  ;;  %v6391_v9 = vpop.f32.mrb[169].mxu0  ;;  %6717 = vmatpush3.bf16.msra.mxu1 %v6422_v62 }
 0x476   : > { %v6392_v27 = vpop.f32.mrb[170].mxu0  ;;  %6718 = vmatprep.subr.bf16.mxu1 %v6870_v20 }
 0x477   : > { %v6393_v11 = vadd.f32 %v6392_v27, %v6276_v54  ;;  %v6394_v6 = vpop.f32.mrb[171].mxu0  ;;  %v6414_v23 = vmax.f32 %v6390_v21, 0.0 }
 0x479   : > { %v6415_v41 = vmax.f32 %v6393_v11, 0.0 }
 0x47b   : > { %v6423_v15 = vpack.c.bf16 %v6415_v41, %v6414_v23 }
 0x47c   : > { %v6397_v33 = vpop.f32.mrb[172].mxu0 }
 0x47d   : > { %v6398_v47 = vadd.f32 %v6397_v33, %v6281_v60  ;;  %v6399_v3 = vpop.f32.mrb[173].mxu0  ;;  %6719 = vmatpush3.bf16.msra.mxu1 %v6423_v15 }
 0x47e   : > { %v6400_v22 = vpop.f32.mrb[174].mxu0  ;;  %6720 = vmatprep.subr.bf16.mxu1 %v6870_v20 }
 0x47f   : > { %v6401_v42 = vadd.f32 %v6400_v22, %v6286_v38  ;;  %v6402_v55 = vpop.f32.mrb[175].mxu0  ;;  %v6416_v37 = vmax.f32 %v6398_v47, 0.0 }
 0x481   : > { %v6417_v19 = vmax.f32 %v6401_v42, 0.0 }
 0x483   : > { %v6424_v57 = vpack.c.bf16 %v6417_v19, %v6416_v37 }
 0x484   : > { %v6405_v12 = vpop.f32.mrb[176].mxu0 }
 0x485   : > { %v6406_v61 = vadd.f32 %v6405_v12, %v6291_v32  ;;  %v6407_v56 = vpop.f32.mrb[177].mxu0  ;;  %6721 = vmatpush3.bf16.msra.mxu1 %v6424_v57 }
 0x486   : > { %v6408_v16 = vpop.f32.mrb[178].mxu0  ;;  %6722 = vmatprep.subr.bf16.mxu1 %v6870_v20 }
 0x487   : > { %v6409_v51 = vadd.f32 %v6408_v16, %v6296_v17  ;;  %v6410_v49 = vpop.f32.mrb[179].mxu0  ;;  %v6418_v58 = vmax.f32 %v6406_v61, 0.0 }
 0x489   : > { %v6419_v10 = vmax.f32 %v6409_v51, 0.0 }
 0x48b   : > { %v6425_v29 = vpack.c.bf16 %v6419_v10, %v6418_v58 }
 0x48d   : > { %6723 = vmatpush3.bf16.msra.mxu1 %v6425_v29 }
 0x490   : > { %6725 = vmatmul.mubr.msk.bf16.vlgmr.msra.gmra.mrb[188].mxu1 %vm6334_vm3, %v6795_v5 }
 0x563   : > { %v6468_v63 = vpop.f32.mrb[188].mxu1 }
 0x564   : > { %6475 = vst [vmem:[%s298_s10] sm:$0xff] %v6468_v63  ;;  %v6726_v53 = vpop.f32.mrb[189].mxu1 }
 0x565   : > { %v6471_v44 = vpop.f32.mrb[190].mxu1 }
 0x566   : > { %6476 = vst [vmem:[%s298_s10 + $0x8] sm:$0x3] %v6471_v44  ;;  %v6727_v52 = vpop.f32.mrb[191].mxu1 }
 0x567   : > { %6817 = shalt.err (!%p6814_p3)
}
 0x568   : > { %s6818_s13 = scalar_lea.hbm %s10831_s20, 256  ;;  %s6822_s10 = scalar_lea.hbm %s10882_s8, 512 }
 0x569   : > { %p6819_p4 = scmp.ne.s32.totalorder %s10831_s20, %s6818_s13  ;;  %p6823_p9 = scmp.lt.u32.totalorder %s10831_s20, %s10882_s8 }
 0x56a   : > { %p6824_p10 = scmp.lt.u32.totalorder %s6822_s10, %s6818_s13  ;;  %p6826_p12 = scmp.lt.u32.totalorder %s6818_s13, %s10831_s20 }
 0x56b   : > { %p6820_p7 = pnand %p6819_p4, %p6959_p5 }
 0x56c   : > { %p6825_p11 = por %p6824_p10, %p6823_p9 }
 0x56d   : > { %p6821_p8 = pneg %p6820_p7 }
 0x56e   : > { %p6827_p13 = por %p6826_p12, %p6825_p11 }
 0x570   : > { %p6828_p0 = pnand %p6827_p13, %p6821_p8 }
 0x572   : > { %6831 = shalt.err (!%p6828_p0)
}
 0x573   : > { %s6873_s19 = smov 128   ;;  %s6874_s22 = smov 256  }
 0x574   : > { %s6875_s9 = smov 8  }
 0x575   : > { %6730 = dma.vmem_to_hbm [thread:$0]  (%p6959_p5), %s10826_s12, 256, %s10831_s20, %s10833_s21, %s6873_s19, %s6874_s22, %s6875_s9  }
 0x576 PF: > { %p6736_p1 = scmp.ge.s32.totalorder %s6866_s30, 2  ;;  %s6505_s23 = sand.u32 1, %s6854_s27  }
 0x577   : > { %s6506_s24 = scalar_lea.sflag [#allocation7], %s6505_s23 }
 0x578   : > { %p6733_p2 = pnand %p6736_p1, %p6963_p6 }
 0x57a   : > { %6849 = dma.done.wait (!%p6733_p2), %s6506_s24, 256  }
 0x57b   : > { %6851 = vsyncadd (!%p6733_p2), %s6506_s24, 4294967040  ;;  %p18_p3 = scmp.ge.s32.totalorder %s6946_s11, 4   ;;  %s11885_s27 = smov %s6858_s28 }
 0x57c   : > { %s11886_s28 = smov %s6862_s29  ;;  %s11887_s29 = smov %s6957_s14 }
 0x57d   : > { %s11888_s30 = smov %s6946_s11  ;;  %20 = sbr.rel (!%p18_p3) target bundleno = 3 (0x3), region = 87 }
 0x584   :  { %6511 = vsyncpa [#allocation7], 1 }
 0x585   :  { %6513 = vsyncpa [#allocation7 + $0x1], 1 }

</bundles_post_ra>
